<compile_context>
chip_gen: v5e
topology: v5e:2x2
jax: 0.10.0
libtpu: 0.0.40
codegen_flags: <defaults>
</compile_context>

<pallas_src>
import math

import jax
import jax.numpy as jnp
from jax.experimental import pallas as pl
from jax.experimental.pallas import tpu as pltpu


def _round_up(x, m):
    return ((x + m - 1) // m) * m


# ----------------------------------------------------------------------------
# Pallas kernel: conv-as-matmul, fused  out = relu(patches @ w + b)
# ----------------------------------------------------------------------------
def _conv_mm_relu_kernel(p_ref, w_ref, b_ref, o_ref):
    acc = jnp.dot(p_ref[...], w_ref[...], preferred_element_type=jnp.float32)
    o_ref[...] = jnp.maximum(acc + b_ref[...], 0.0).astype(o_ref.dtype)


def conv_mm_relu(patches_2d, w2d, b_row):
    """patches_2d: (Mp, Kp) f32, w2d: (Kp, Cout) f32, b_row: (1, Cout) f32."""
    Mp, Kp = patches_2d.shape
    _, N = w2d.shape
    return pl.pallas_call(
        _conv_mm_relu_kernel,
        out_shape=jax.ShapeDtypeStruct((Mp, N), jnp.float32),
        in_specs=[
            pl.BlockSpec((Mp, Kp), lambda: (0, 0)),
            pl.BlockSpec((Kp, N), lambda: (0, 0)),
            pl.BlockSpec((1, N), lambda: (0, 0)),
        ],
        out_specs=pl.BlockSpec((Mp, N), lambda: (0, 0)),
    )(patches_2d, w2d, b_row)


# ----------------------------------------------------------------------------
# Pallas kernel: fused fc1(relu) + fc2, grid over fc1-output halves
# ("parallel" -> sharded across v7x's two TensorCores; fc2 as partial sums)
# ----------------------------------------------------------------------------
def _fc_fused_kernel(x_ref, w1_ref, b1_ref, w2_ref, b2_ref, o_ref):
    j = pl.program_id(0)
    x = x_ref[...].astype(jnp.bfloat16)                                   # (Mp, Kp)
    h = jnp.dot(x, w1_ref[...], preferred_element_type=jnp.float32)       # (Mp, TN)
    h = jnp.maximum(h + b1_ref[...], 0.0)
    q = jnp.dot(h, w2_ref[...], preferred_element_type=jnp.float32)       # (Mp, N2)
    q = q + (j == 0).astype(jnp.float32) * b2_ref[...]                    # bias once
    o_ref[0] = q


def fc_fused(x_flat_pad, w1, b1, w2, b2):
    """x: (Mp, Kp) f32, w1: (Kp, 512) bf16, b1: (1,512), w2: (512,128), b2: (1,128)."""
    Mp, Kp = x_flat_pad.shape
    N1 = w1.shape[1]           # 512
    N2 = w2.shape[1]           # 128 (padded)
    TN = N1 // 2               # 256 per grid step / per core
    q_parts = pl.pallas_call(
        _fc_fused_kernel,
        out_shape=jax.ShapeDtypeStruct((2, Mp, N2), jnp.float32),
        grid=(2,),
        in_specs=[
            pl.BlockSpec((Mp, Kp), lambda j: (0, 0)),
            pl.BlockSpec((Kp, TN), lambda j: (0, j)),
            pl.BlockSpec((1, TN), lambda j: (0, j)),
            pl.BlockSpec((TN, N2), lambda j: (j, 0)),
            pl.BlockSpec((1, N2), lambda j: (0, 0)),
        ],
        out_specs=pl.BlockSpec((1, Mp, N2), lambda j: (j, 0, 0)),
        compiler_params=pltpu.CompilerParams(dimension_semantics=("parallel",)),
    )(x_flat_pad, w1, b1, w2, b2)
    return q_parts[0] + q_parts[1]


# ----------------------------------------------------------------------------
# im2col (plain-JAX strided patch extraction, pure data movement)
# ----------------------------------------------------------------------------
def _im2col(x_nhwc, kh, kw, stride):
    B, H, W, C = x_nhwc.shape
    OH = (H - kh) // stride + 1
    OW = (W - kw) // stride + 1
    patches = []
    for i in range(kh):
        for j in range(kw):
            patches.append(
                x_nhwc[:, i : i + OH * stride : stride, j : j + OW * stride : stride, :]
            )
    p = jnp.stack(patches, axis=3)                       # (B, OH, OW, kh*kw, C)
    return p.reshape(B, OH, OW, kh * kw * C), OH, OW


def conv2d_relu(x_nhwc, w2d, b_row, kh, kw, stride):
    """w2d is pre-packed (Kp, Cout); only the activation is padded at runtime."""
    B = x_nhwc.shape[0]
    patches, OH, OW = _im2col(x_nhwc, kh, kw, stride)
    M = B * OH * OW
    K = patches.shape[-1]
    Kp = w2d.shape[0]
    Mp = _round_up(M, 8)
    p2d = patches.reshape(M, K)
    if (Mp, Kp) != (M, K):
        p2d = jnp.zeros((Mp, Kp), jnp.float32).at[:M, :K].set(p2d)
    y = conv_mm_relu(p2d, w2d, b_row)                    # (Mp, Cout)
    return y[:M].reshape(B, OH, OW, w2d.shape[1])


# ----------------------------------------------------------------------------
# Parameter init (kaiming_uniform_(a=0.01), bias=0.01) + one-time packing
# ----------------------------------------------------------------------------
def _kaiming_uniform(key, shape, fan_in, a=0.01):
    gain = math.sqrt(2.0 / (1.0 + a * a))
    bound = gain * math.sqrt(3.0 / fan_in)
    return jax.random.uniform(key, shape, jnp.float32, -bound, bound)


def init_dqn_params(key, no_frames=4, actions_n=6):
    ks = jax.random.split(key, 5)
    c1 = _kaiming_uniform(ks[0], (32, no_frames, 8, 8), no_frames * 8 * 8)
    c2 = _kaiming_uniform(ks[1], (64, 32, 4, 4), 32 * 4 * 4)
    c3 = _kaiming_uniform(ks[2], (64, 64, 3, 3), 64 * 3 * 3)
    f1 = _kaiming_uniform(ks[3], (512, 3136), 3136)
    f2 = _kaiming_uniform(ks[4], (actions_n, 512), 512)

    def pack_conv(w):
        cout, cin, kh, kw = w.shape
        k = kh * kw * cin
        kp = _round_up(k, 128)
        w2d = jnp.transpose(w, (2, 3, 1, 0)).reshape(k, cout)   # rows = (i, j, cin)
        return jnp.zeros((kp, cout), jnp.float32).at[:k].set(w2d)

    # fc1: permute rows from PyTorch NCHW-flatten order (c,h,w) to our NHWC
    # flatten order (h,w,c), transpose to (K, 512), pad K 3136->3200, cast bf16.
    f1_nhwc = jnp.transpose(f1.reshape(512, 64, 7, 7), (2, 3, 1, 0)).reshape(3136, 512)
    f1p = jnp.zeros((3200, 512), jnp.float32).at[:3136].set(f1_nhwc).astype(jnp.bfloat16)

    # fc2: transpose to (512, actions_n), pad N to 128.
    n2p = _round_up(actions_n, 128)
    f2p = jnp.zeros((512, n2p), jnp.float32).at[:, :actions_n].set(f2.T)
    b2p = jnp.zeros((1, n2p), jnp.float32).at[0, :actions_n].set(
        jnp.full((actions_n,), 0.01, jnp.float32))

    return {
        "conv1_w": pack_conv(c1), "conv1_b": jnp.full((1, 32), 0.01, jnp.float32),
        "conv2_w": pack_conv(c2), "conv2_b": jnp.full((1, 64), 0.01, jnp.float32),
        "conv3_w": pack_conv(c3), "conv3_b": jnp.full((1, 64), 0.01, jnp.float32),
        "fc1_w": f1p, "fc1_b": jnp.full((1, 512), 0.01, jnp.float32),
        "fc2_w": f2p, "fc2_b": b2p,
    }


# ----------------------------------------------------------------------------
# DQN forward
# ----------------------------------------------------------------------------
def dqn_forward(params, x_nchw, actions_n=6):
    B = x_nchw.shape[0]
    x = jnp.transpose(x_nchw, (0, 2, 3, 1))                               # NHWC
    x = conv2d_relu(x, params["conv1_w"], params["conv1_b"], 8, 8, 4)     # (B,20,20,32)
    x = conv2d_relu(x, params["conv2_w"], params["conv2_b"], 4, 4, 2)     # (B, 9, 9,64)
    x = conv2d_relu(x, params["conv3_w"], params["conv3_b"], 3, 3, 1)     # (B, 7, 7,64)

    # NHWC flatten; fc1 weight rows were permuted at init to match this order.
    feat = x.reshape(B, 7 * 7 * 64)                                       # (B, 3136)
    Mp = _round_up(B, 8)
    Kp = params["fc1_w"].shape[0]                                         # 3200
    xf = jnp.zeros((Mp, Kp), jnp.float32).at[:B, : feat.shape[1]].set(feat)

    q = fc_fused(xf, params["fc1_w"], params["fc1_b"],
                 params["fc2_w"], params["fc2_b"])                        # (Mp, 128)
    return q[:B, :actions_n]


if __name__ == "__main__":
    key = jax.random.PRNGKey(0)
    k_params, k_input = jax.random.split(key)

    NO_FRAMES = 4
    ACTIONS_N = 6
    BATCH = 2

    params = init_dqn_params(k_params, no_frames=NO_FRAMES, actions_n=ACTIONS_N)
    # Linear(3136, 512) in the reference forces 84x84 spatial input.
    x = jax.random.uniform(k_input, (BATCH, NO_FRAMES, 84, 84), jnp.float32)

    fwd = jax.jit(dqn_forward, static_argnames=("actions_n",))
    q_values = fwd(params, x, actions_n=ACTIONS_N)
    jax.block_until_ready(q_values)
    assert q_values.shape == (BATCH, ACTIONS_N)
    print("KERNEL_OK")
</pallas_src>

<mosaic_0001>
module attributes {stable_mosaic.version = 11 : i64} {
  func.func @_conv_mm_relu_kernel(%arg0: memref<800x256xf32, #tpu.memory_space<vmem>>, %arg1: memref<256x32xf32, #tpu.memory_space<vmem>>, %arg2: memref<1x32xf32, #tpu.memory_space<vmem>>, %arg3: memref<800x32xf32, #tpu.memory_space<vmem>>) attributes {dimension_semantics = [], scalar_prefetch = 0 : i64, scratch_operands = 0 : i64, tpu.core_type = #tpu.core_type<tc>} {
    %c0 = arith.constant 0 : index
    %c0_0 = arith.constant 0 : index
    %0 = vector.load %arg0[%c0, %c0_0] : memref<800x256xf32, #tpu.memory_space<vmem>>, vector<800x256xf32>
    %c0_1 = arith.constant 0 : index
    %c0_2 = arith.constant 0 : index
    %1 = vector.load %arg1[%c0_1, %c0_2] : memref<256x32xf32, #tpu.memory_space<vmem>>, vector<256x32xf32>
    %cst = arith.constant dense<0.000000e+00> : vector<800x32xf32>
    %2 = tpu.matmul %0, %1, %cst {dimension_numbers = #tpu.dot_dimension_numbers<[1], [0], [0], [1], [0, 0, 1, 1], [], []>} : vector<800x256xf32>, vector<256x32xf32>, vector<800x32xf32> -> vector<800x32xf32>
    %c0_3 = arith.constant 0 : index
    %c0_4 = arith.constant 0 : index
    %3 = vector.load %arg2[%c0_3, %c0_4] : memref<1x32xf32, #tpu.memory_space<vmem>>, vector<1x32xf32>
    %4 = vector.broadcast %3 : vector<1x32xf32> to vector<800x32xf32>
    %5 = arith.addf %2, %4 : vector<800x32xf32>
    %cst_5 = arith.constant 0.000000e+00 : f32
    %6 = vector.broadcast %cst_5 : f32 to vector<800x32xf32>
    %7 = arith.maximumf %5, %6 : vector<800x32xf32>
    %c0_6 = arith.constant 0 : index
    %c0_7 = arith.constant 0 : index
    %8 = vector.load %arg3[%c0_6, %c0_7] : memref<800x32xf32, #tpu.memory_space<vmem>>, vector<800x32xf32>
    tpu.vector_store %arg3[%c0_6, %c0_7], %7 {strides = array<i32>} : memref<800x32xf32, #tpu.memory_space<vmem>>, vector<800x32xf32>,
    return
  }
}

module attributes {stable_mosaic.version = 11 : i64} {
  func.func @_conv_mm_relu_kernel(%arg0: memref<168x512xf32, #tpu.memory_space<vmem>>, %arg1: memref<512x64xf32, #tpu.memory_space<vmem>>, %arg2: memref<1x64xf32, #tpu.memory_space<vmem>>, %arg3: memref<168x64xf32, #tpu.memory_space<vmem>>) attributes {dimension_semantics = [], scalar_prefetch = 0 : i64, scratch_operands = 0 : i64, tpu.core_type = #tpu.core_type<tc>} {
    %c0 = arith.constant 0 : index
    %c0_0 = arith.constant 0 : index
    %0 = vector.load %arg0[%c0, %c0_0] : memref<168x512xf32, #tpu.memory_space<vmem>>, vector<168x512xf32>
    %c0_1 = arith.constant 0 : index
    %c0_2 = arith.constant 0 : index
    %1 = vector.load %arg1[%c0_1, %c0_2] : memref<512x64xf32, #tpu.memory_space<vmem>>, vector<512x64xf32>
    %cst = arith.constant dense<0.000000e+00> : vector<168x64xf32>
    %2 = tpu.matmul %0, %1, %cst {dimension_numbers = #tpu.dot_dimension_numbers<[1], [0], [0], [1], [0, 0, 1, 1], [], []>} : vector<168x512xf32>, vector<512x64xf32>, vector<168x64xf32> -> vector<168x64xf32>
    %c0_3 = arith.constant 0 : index
    %c0_4 = arith.constant 0 : index
    %3 = vector.load %arg2[%c0_3, %c0_4] : memref<1x64xf32, #tpu.memory_space<vmem>>, vector<1x64xf32>
    %4 = vector.broadcast %3 : vector<1x64xf32> to vector<168x64xf32>
    %5 = arith.addf %2, %4 : vector<168x64xf32>
    %cst_5 = arith.constant 0.000000e+00 : f32
    %6 = vector.broadcast %cst_5 : f32 to vector<168x64xf32>
    %7 = arith.maximumf %5, %6 : vector<168x64xf32>
    %c0_6 = arith.constant 0 : index
    %c0_7 = arith.constant 0 : index
    %8 = vector.load %arg3[%c0_6, %c0_7] : memref<168x64xf32, #tpu.memory_space<vmem>>, vector<168x64xf32>
    tpu.vector_store %arg3[%c0_6, %c0_7], %7 {strides = array<i32>} : memref<168x64xf32, #tpu.memory_space<vmem>>, vector<168x64xf32>,
    return
  }
}

module attributes {stable_mosaic.version = 11 : i64} {
  func.func @_conv_mm_relu_kernel(%arg0: memref<104x640xf32, #tpu.memory_space<vmem>>, %arg1: memref<640x64xf32, #tpu.memory_space<vmem>>, %arg2: memref<1x64xf32, #tpu.memory_space<vmem>>, %arg3: memref<104x64xf32, #tpu.memory_space<vmem>>) attributes {dimension_semantics = [], scalar_prefetch = 0 : i64, scratch_operands = 0 : i64, tpu.core_type = #tpu.core_type<tc>} {
    %c0 = arith.constant 0 : index
    %c0_0 = arith.constant 0 : index
    %0 = vector.load %arg0[%c0, %c0_0] : memref<104x640xf32, #tpu.memory_space<vmem>>, vector<104x640xf32>
    %c0_1 = arith.constant 0 : index
    %c0_2 = arith.constant 0 : index
    %1 = vector.load %arg1[%c0_1, %c0_2] : memref<640x64xf32, #tpu.memory_space<vmem>>, vector<640x64xf32>
    %cst = arith.constant dense<0.000000e+00> : vector<104x64xf32>
    %2 = tpu.matmul %0, %1, %cst {dimension_numbers = #tpu.dot_dimension_numbers<[1], [0], [0], [1], [0, 0, 1, 1], [], []>} : vector<104x640xf32>, vector<640x64xf32>, vector<104x64xf32> -> vector<104x64xf32>
    %c0_3 = arith.constant 0 : index
    %c0_4 = arith.constant 0 : index
    %3 = vector.load %arg2[%c0_3, %c0_4] : memref<1x64xf32, #tpu.memory_space<vmem>>, vector<1x64xf32>
    %4 = vector.broadcast %3 : vector<1x64xf32> to vector<104x64xf32>
    %5 = arith.addf %2, %4 : vector<104x64xf32>
    %cst_5 = arith.constant 0.000000e+00 : f32
    %6 = vector.broadcast %cst_5 : f32 to vector<104x64xf32>
    %7 = arith.maximumf %5, %6 : vector<104x64xf32>
    %c0_6 = arith.constant 0 : index
    %c0_7 = arith.constant 0 : index
    %8 = vector.load %arg3[%c0_6, %c0_7] : memref<104x64xf32, #tpu.memory_space<vmem>>, vector<104x64xf32>
    tpu.vector_store %arg3[%c0_6, %c0_7], %7 {strides = array<i32>} : memref<104x64xf32, #tpu.memory_space<vmem>>, vector<104x64xf32>,
    return
  }
}

module attributes {stable_mosaic.version = 11 : i64} {
  func.func @_fc_fused_kernel(%arg0: i32, %arg1: memref<8x3200xf32, #tpu.memory_space<vmem>>, %arg2: memref<3200x256xbf16, #tpu.memory_space<vmem>>, %arg3: memref<1x256xf32, #tpu.memory_space<vmem>>, %arg4: memref<256x128xf32, #tpu.memory_space<vmem>>, %arg5: memref<1x128xf32, #tpu.memory_space<vmem>>, %arg6: memref<1x8x128xf32, #tpu.memory_space<vmem>>) attributes {dimension_semantics = [#tpu.dimension_semantics<parallel>], iteration_bounds = array<i64: 2>, scalar_prefetch = 0 : i64, scratch_operands = 0 : i64, tpu.core_type = #tpu.core_type<tc>, window_params = [{pipeline_mode = #tpu.pipeline_mode<synchronous>, transform_indices = @transform_0, window_bounds = array<i64: 8, 3200>}, {transform_indices = @transform_1, window_bounds = array<i64: 3200, 256>}, {transform_indices = @transform_2, window_bounds = array<i64: 1, 256>}, {transform_indices = @transform_3, window_bounds = array<i64: 256, 128>}, {pipeline_mode = #tpu.pipeline_mode<synchronous>, transform_indices = @transform_4, window_bounds = array<i64: 1, 128>}, {transform_indices = @transform_5, window_bounds = array<i64: 1, 8, 128>}]} {
    %c0 = arith.constant 0 : index
    %c0_0 = arith.constant 0 : index
    %0 = vector.load %arg1[%c0, %c0_0] : memref<8x3200xf32, #tpu.memory_space<vmem>>, vector<8x3200xf32>
    %1 = arith.truncf %0 : vector<8x3200xf32> to vector<8x3200xbf16>
    %c0_1 = arith.constant 0 : index
    %c0_2 = arith.constant 0 : index
    %2 = vector.load %arg2[%c0_1, %c0_2] : memref<3200x256xbf16, #tpu.memory_space<vmem>>, vector<3200x256xbf16>
    %cst = arith.constant dense<0.000000e+00> : vector<8x256xf32>
    %3 = tpu.matmul %1, %2, %cst {dimension_numbers = #tpu.dot_dimension_numbers<[1], [0], [0], [1], [0, 0, 1, 1], [], []>} : vector<8x3200xbf16>, vector<3200x256xbf16>, vector<8x256xf32> -> vector<8x256xf32>
    %c0_3 = arith.constant 0 : index
    %c0_4 = arith.constant 0 : index
    %4 = vector.load %arg3[%c0_3, %c0_4] : memref<1x256xf32, #tpu.memory_space<vmem>>, vector<1x256xf32>
    %5 = vector.broadcast %4 : vector<1x256xf32> to vector<8x256xf32>
    %6 = arith.addf %3, %5 : vector<8x256xf32>
    %cst_5 = arith.constant 0.000000e+00 : f32
    %7 = vector.broadcast %cst_5 : f32 to vector<8x256xf32>
    %8 = arith.maximumf %6, %7 : vector<8x256xf32>
    %c0_6 = arith.constant 0 : index
    %c0_7 = arith.constant 0 : index
    %9 = vector.load %arg4[%c0_6, %c0_7] : memref<256x128xf32, #tpu.memory_space<vmem>>, vector<256x128xf32>
    %cst_8 = arith.constant dense<0.000000e+00> : vector<8x128xf32>
    %10 = tpu.matmul %8, %9, %cst_8 {dimension_numbers = #tpu.dot_dimension_numbers<[1], [0], [0], [1], [0, 0, 1, 1], [], []>} : vector<8x256xf32>, vector<256x128xf32>, vector<8x128xf32> -> vector<8x128xf32>
    %c0_i32 = arith.constant 0 : i32
    %11 = arith.cmpi eq, %arg0, %c0_i32 : i32
    %12 = arith.extui %11 : i1 to i32
    %13 = arith.sitofp %12 : i32 to f32
    %c0_9 = arith.constant 0 : index
    %c0_10 = arith.constant 0 : index
    %14 = vector.load %arg5[%c0_9, %c0_10] : memref<1x128xf32, #tpu.memory_space<vmem>>, vector<1x128xf32>
    %15 = vector.broadcast %13 : f32 to vector<1x128xf32>
    %16 = arith.mulf %15, %14 : vector<1x128xf32>
    %17 = vector.broadcast %16 : vector<1x128xf32> to vector<8x128xf32>
    %18 = arith.addf %10, %17 : vector<8x128xf32>
    %c0_11 = arith.constant 0 : index
    %c0_12 = arith.constant 0 : index
    %c0_13 = arith.constant 0 : index
    %19 = vector.load %arg6[%c0_11, %c0_12, %c0_13] : memref<1x8x128xf32, #tpu.memory_space<vmem>>, vector<1x8x128xf32>
    %20 = vector.shape_cast %19 : vector<1x8x128xf32> to vector<8x128xf32>
    %21 = vector.shape_cast %18 : vector<8x128xf32> to vector<1x8x128xf32>
    tpu.vector_store %arg6[%c0_11, %c0_12, %c0_13], %21 {strides = array<i32>} : memref<1x8x128xf32, #tpu.memory_space<vmem>>, vector<1x8x128xf32>,
    return
  }
  func.func @transform_0(%arg0: i32) -> (i32, i32) {
    %c0_i32 = arith.constant 0 : i32
    %c0_i32_0 = arith.constant 0 : i32
    %c0_i32_1 = arith.constant 0 : i32
    return %c0_i32, %c0_i32_0 : i32, i32
  }
  func.func @transform_1(%arg0: i32) -> (i32, i32) {
    %c0_i32 = arith.constant 0 : i32
    %c0_i32_0 = arith.constant 0 : i32
    return %c0_i32, %arg0 : i32, i32
  }
  func.func @transform_2(%arg0: i32) -> (i32, i32) {
    %c0_i32 = arith.constant 0 : i32
    %c0_i32_0 = arith.constant 0 : i32
    return %c0_i32, %arg0 : i32, i32
  }
  func.func @transform_3(%arg0: i32) -> (i32, i32) {
    %c0_i32 = arith.constant 0 : i32
    %c0_i32_0 = arith.constant 0 : i32
    return %arg0, %c0_i32 : i32, i32
  }
  func.func @transform_4(%arg0: i32) -> (i32, i32) {
    %c0_i32 = arith.constant 0 : i32
    %c0_i32_0 = arith.constant 0 : i32
    %c0_i32_1 = arith.constant 0 : i32
    return %c0_i32, %c0_i32_0 : i32, i32
  }
  func.func @transform_5(%arg0: i32) -> (i32, i32, i32) {
    %c0_i32 = arith.constant 0 : i32
    %c0_i32_0 = arith.constant 0 : i32
    %c0_i32_1 = arith.constant 0 : i32
    return %arg0, %c0_i32, %c0_i32_0 : i32, i32, i32
  }
}

</mosaic_0001>

<bundles_post_ra>
// kernel: dqn_forward.4
= control target key start
LH: loop header
LB: loop body
LE: loop exit
PB: predicated region body
PF: predicated region fallthrough
CT: control target
= control target key end

     0   :  { %vm984_vm0 = vcmask 261120   ;;  %s2349_s1 = inlined_call_operand.vmem [shape: f32[256,32], index: 1, kind: input, shape index: {}]   ;;  %s2350_s0 = inlined_call_operand.vmem [shape: f32[800,256], index: 0, kind: input, shape index: {}]   ;;  %s2351_s2 = inlined_call_operand.vmem [shape: f32[1,32], index: 2, kind: input, shape index: {}]   ;;  %s2352_s3 = inlined_call_operand.vmem [shape: f32[800,32], index: 3, kind: output, shape index: {}]  }
   0x1   :  { %v229_v0 = vld [vmem:[%s2349_s1 + $0x78] sm:$0xff]  ;;  %v228_v1 = vld [vmem:[%s2349_s1 + $0x70] sm:$0xff]  ;;  %v227_v4 = vld [vmem:[%s2349_s1 + $0x68] sm:$0xff] }
   0x2   :  { %v245_v2 = vld [vmem:[%s2349_s1 + $0xf8] sm:$0xff]  ;;  %1089 = vmatpush.msra.mxu2 %v229_v0  ;;  %v244_v3 = vld [vmem:[%s2349_s1 + $0xf0] sm:$0xff]  ;;  %250 = vmatpush.msra.mxu0 %v229_v0  ;;  %v243_v5 = vld [vmem:[%s2349_s1 + $0xe8] sm:$0xff] }
   0x3   :  { %1105 = vmatpush.msra.mxu3 %v245_v2  ;;  %567 = vmatpush.msra.mxu1 %v245_v2  ;;  %v226_v6 = vld [vmem:[%s2349_s1 + $0x60] sm:$0xff]  ;;  %v225_v8 = vld [vmem:[%s2349_s1 + $0x58] sm:$0xff]  ;;  %v224_v10 = vld [vmem:[%s2349_s1 + $0x50] sm:$0xff] }
   0x4   :  { %1090 = vmatpush.msra.mxu2 %v228_v1  ;;  %251 = vmatpush.msra.mxu0 %v228_v1  ;;  %v242_v7 = vld [vmem:[%s2349_s1 + $0xe0] sm:$0xff]  ;;  %v241_v9 = vld [vmem:[%s2349_s1 + $0xd8] sm:$0xff]  ;;  %v240_v11 = vld [vmem:[%s2349_s1 + $0xd0] sm:$0xff] }
   0x5   :  { %1106 = vmatpush.msra.mxu3 %v244_v3  ;;  %568 = vmatpush.msra.mxu1 %v244_v3  ;;  %v223_v12 = vld [vmem:[%s2349_s1 + $0x48] sm:$0xff]  ;;  %v222_v14 = vld [vmem:[%s2349_s1 + $0x40] sm:$0xff]  ;;  %v221_v16 = vld [vmem:[%s2349_s1 + $0x38] sm:$0xff] }
   0x6   :  { %1091 = vmatpush.msra.mxu2 %v227_v4  ;;  %252 = vmatpush.msra.mxu0 %v227_v4  ;;  %v239_v13 = vld [vmem:[%s2349_s1 + $0xc8] sm:$0xff]  ;;  %v238_v15 = vld [vmem:[%s2349_s1 + $0xc0] sm:$0xff]  ;;  %v237_v17 = vld [vmem:[%s2349_s1 + $0xb8] sm:$0xff] }
   0x7   :  { %1107 = vmatpush.msra.mxu3 %v243_v5  ;;  %569 = vmatpush.msra.mxu1 %v243_v5  ;;  %v220_v18 = vld [vmem:[%s2349_s1 + $0x30] sm:$0xff]  ;;  %v219_v20 = vld [vmem:[%s2349_s1 + $0x28] sm:$0xff]  ;;  %v218_v22 = vld [vmem:[%s2349_s1 + $0x20] sm:$0xff] }
   0x8   :  { %1092 = vmatpush.msra.mxu2 %v226_v6  ;;  %253 = vmatpush.msra.mxu0 %v226_v6  ;;  %v236_v19 = vld [vmem:[%s2349_s1 + $0xb0] sm:$0xff]  ;;  %v235_v21 = vld [vmem:[%s2349_s1 + $0xa8] sm:$0xff]  ;;  %v234_v23 = vld [vmem:[%s2349_s1 + $0xa0] sm:$0xff] }
   0x9   :  { %1108 = vmatpush.msra.mxu3 %v242_v7  ;;  %570 = vmatpush.msra.mxu1 %v242_v7  ;;  %v217_v24 = vld [vmem:[%s2349_s1 + $0x18] sm:$0xff]  ;;  %v216_v26 = vld [vmem:[%s2349_s1 + $0x10] sm:$0xff]  ;;  %v215_v28 = vld [vmem:[%s2349_s1 + $0x8] sm:$0xff] }
   0xa   :  { %1093 = vmatpush.msra.mxu2 %v225_v8  ;;  %254 = vmatpush.msra.mxu0 %v225_v8  ;;  %v233_v25 = vld [vmem:[%s2349_s1 + $0x98] sm:$0xff]  ;;  %v232_v27 = vld [vmem:[%s2349_s1 + $0x90] sm:$0xff]  ;;  %v231_v29 = vld [vmem:[%s2349_s1 + $0x88] sm:$0xff] }
   0xb   :  { %1109 = vmatpush.msra.mxu3 %v241_v9  ;;  %571 = vmatpush.msra.mxu1 %v241_v9  ;;  %v214_v30 = vld [vmem:[%s2349_s1] sm:$0xff]  ;;  %v115_v33 = vld [vmem:[%s2350_s0 + $0x328] sm:$0xff]  ;;  %v116_v36 = vld [vmem:[%s2350_s0 + $0x330] sm:$0xff] }
   0xc   :  { %1094 = vmatpush.msra.mxu2 %v224_v10  ;;  %255 = vmatpush.msra.mxu0 %v224_v10  ;;  %v230_v31 = vld [vmem:[%s2349_s1 + $0x80] sm:$0xff]  ;;  %v15_v35 = vld [vmem:[%s2350_s0 + $0x8] sm:$0xff]  ;;  %v117_v37 = vld [vmem:[%s2350_s0 + $0x338] sm:$0xff] }
   0xd   :  { %1110 = vmatpush.msra.mxu3 %v240_v11  ;;  %572 = vmatpush.msra.mxu1 %v240_v11  ;;  %v114_v32 = vld [vmem:[%s2350_s0 + $0x320] sm:$0xff]  ;;  %v16_v38 = vld [vmem:[%s2350_s0 + $0x10] sm:$0xff]  ;;  %v17_v39 = vld [vmem:[%s2350_s0 + $0x18] sm:$0xff] }
   0xe   :  { %1095 = vmatpush.msra.mxu2 %v223_v12  ;;  %256 = vmatpush.msra.mxu0 %v223_v12  ;;  %v14_v34 = vld [vmem:[%s2350_s0] sm:$0xff]  ;;  %v119_v41 = vld [vmem:[%s2350_s0 + $0x348] sm:$0xff]  ;;  %v120_v44 = vld [vmem:[%s2350_s0 + $0x350] sm:$0xff] }
   0xf   :  { %1111 = vmatpush.msra.mxu3 %v239_v13  ;;  %573 = vmatpush.msra.mxu1 %v239_v13  ;;  %v118_v40 = vld [vmem:[%s2350_s0 + $0x340] sm:$0xff]  ;;  %v19_v43 = vld [vmem:[%s2350_s0 + $0x28] sm:$0xff]  ;;  %v121_v45 = vld [vmem:[%s2350_s0 + $0x358] sm:$0xff] }
  0x10   :  { %1096 = vmatpush.msra.mxu2 %v222_v14  ;;  %257 = vmatpush.msra.mxu0 %v222_v14  ;;  %v18_v42 = vld [vmem:[%s2350_s0 + $0x20] sm:$0xff]  ;;  %v20_v46 = vld [vmem:[%s2350_s0 + $0x30] sm:$0xff]  ;;  %v21_v47 = vld [vmem:[%s2350_s0 + $0x38] sm:$0xff] }
  0x11   :  { %1112 = vmatpush.msra.mxu3 %v238_v15  ;;  %574 = vmatpush.msra.mxu1 %v238_v15  ;;  %v122_v48 = vld [vmem:[%s2350_s0 + $0x360] sm:$0xff]  ;;  %v123_v49 = vld [vmem:[%s2350_s0 + $0x368] sm:$0xff]  ;;  %v124_v52 = vld [vmem:[%s2350_s0 + $0x370] sm:$0xff] }
  0x12   :  { %1097 = vmatpush.msra.mxu2 %v221_v16  ;;  %258 = vmatpush.msra.mxu0 %v221_v16  ;;  %v22_v50 = vld [vmem:[%s2350_s0 + $0x40] sm:$0xff]  ;;  %v23_v51 = vld [vmem:[%s2350_s0 + $0x48] sm:$0xff]  ;;  %v125_v53 = vld [vmem:[%s2350_s0 + $0x378] sm:$0xff] }
  0x13   :  { %1113 = vmatpush.msra.mxu3 %v237_v17  ;;  %575 = vmatpush.msra.mxu1 %v237_v17  ;;  %v24_v54 = vld [vmem:[%s2350_s0 + $0x50] sm:$0xff]  ;;  %v25_v55 = vld [vmem:[%s2350_s0 + $0x58] sm:$0xff]  ;;  %v126_v56 = vld [vmem:[%s2350_s0 + $0x380] sm:$0xff] }
  0x14   :  { %1098 = vmatpush.msra.mxu2 %v220_v18  ;;  %259 = vmatpush.msra.mxu0 %v220_v18  ;;  %v127_v57 = vld [vmem:[%s2350_s0 + $0x388] sm:$0xff]  ;;  %v26_v58 = vld [vmem:[%s2350_s0 + $0x60] sm:$0xff]  ;;  %v128_v60 = vld [vmem:[%s2350_s0 + $0x390] sm:$0xff] }
  0x15   :  { %1114 = vmatpush.msra.mxu3 %v236_v19  ;;  %576 = vmatpush.msra.mxu1 %v236_v19  ;;  %v27_v59 = vld [vmem:[%s2350_s0 + $0x68] sm:$0xff]  ;;  %v129_v61 = vld [vmem:[%s2350_s0 + $0x398] sm:$0xff]  ;;  %v28_v62 = vld [vmem:[%s2350_s0 + $0x70] sm:$0xff] }
  0x16   :  { %1099 = vmatpush.msra.mxu2 %v219_v20  ;;  %260 = vmatpush.msra.mxu0 %v219_v20  ;;  %v29_v63 = vld [vmem:[%s2350_s0 + $0x78] sm:$0xff]  ;;  %v130_v0 = vld [vmem:[%s2350_s0 + $0x3a0] sm:$0xff]  ;;  %v131_v1 = vld [vmem:[%s2350_s0 + $0x3a8] sm:$0xff] }
  0x17   :  { %1115 = vmatpush.msra.mxu3 %v235_v21  ;;  %577 = vmatpush.msra.mxu1 %v235_v21  ;;  %v30_v2 = vld [vmem:[%s2350_s0 + $0x80] sm:$0xff]  ;;  %v31_v3 = vld [vmem:[%s2350_s0 + $0x88] sm:$0xff]  ;;  %v132_v4 = vld [vmem:[%s2350_s0 + $0x3b0] sm:$0xff] }
  0x18   :  { %1100 = vmatpush.msra.mxu2 %v218_v22  ;;  %261 = vmatpush.msra.mxu0 %v218_v22  ;;  %v133_v5 = vld [vmem:[%s2350_s0 + $0x3b8] sm:$0xff]  ;;  %v32_v6 = vld [vmem:[%s2350_s0 + $0x90] sm:$0xff]  ;;  %v134_v8 = vld [vmem:[%s2350_s0 + $0x3c0] sm:$0xff] }
  0x19   :  { %1116 = vmatpush.msra.mxu3 %v234_v23  ;;  %578 = vmatpush.msra.mxu1 %v234_v23  ;;  %v33_v7 = vld [vmem:[%s2350_s0 + $0x98] sm:$0xff]  ;;  %v135_v9 = vld [vmem:[%s2350_s0 + $0x3c8] sm:$0xff]  ;;  %v34_v10 = vld [vmem:[%s2350_s0 + $0xa0] sm:$0xff] }
  0x1a   :  { %1101 = vmatpush.msra.mxu2 %v217_v24  ;;  %262 = vmatpush.msra.mxu0 %v217_v24  ;;  %v35_v11 = vld [vmem:[%s2350_s0 + $0xa8] sm:$0xff]  ;;  %v136_v12 = vld [vmem:[%s2350_s0 + $0x3d0] sm:$0xff]  ;;  %v137_v13 = vld [vmem:[%s2350_s0 + $0x3d8] sm:$0xff] }
  0x1b   :  { %1117 = vmatpush.msra.mxu3 %v233_v25  ;;  %579 = vmatpush.msra.mxu1 %v233_v25  ;;  %v36_v14 = vld [vmem:[%s2350_s0 + $0xb0] sm:$0xff]  ;;  %v37_v15 = vld [vmem:[%s2350_s0 + $0xb8] sm:$0xff]  ;;  %v138_v16 = vld [vmem:[%s2350_s0 + $0x3e0] sm:$0xff] }
  0x1c   :  { %1102 = vmatpush.msra.mxu2 %v216_v26  ;;  %263 = vmatpush.msra.mxu0 %v216_v26  ;;  %v139_v17 = vld [vmem:[%s2350_s0 + $0x3e8] sm:$0xff]  ;;  %v38_v18 = vld [vmem:[%s2350_s0 + $0xc0] sm:$0xff]  ;;  %v140_v20 = vld [vmem:[%s2350_s0 + $0x3f0] sm:$0xff] }
  0x1d   :  { %1118 = vmatpush.msra.mxu3 %v232_v27  ;;  %580 = vmatpush.msra.mxu1 %v232_v27  ;;  %v39_v19 = vld [vmem:[%s2350_s0 + $0xc8] sm:$0xff]  ;;  %v141_v21 = vld [vmem:[%s2350_s0 + $0x3f8] sm:$0xff]  ;;  %v40_v22 = vld [vmem:[%s2350_s0 + $0xd0] sm:$0xff] }
  0x1e   :  { %1103 = vmatpush.msra.mxu2 %v215_v28  ;;  %264 = vmatpush.msra.mxu0 %v215_v28  ;;  %v41_v23 = vld [vmem:[%s2350_s0 + $0xd8] sm:$0xff]  ;;  %v142_v24 = vld [vmem:[%s2350_s0 + $0x400] sm:$0xff]  ;;  %v143_v25 = vld [vmem:[%s2350_s0 + $0x408] sm:$0xff] }
  0x1f   :  { %1119 = vmatpush.msra.mxu3 %v231_v29  ;;  %581 = vmatpush.msra.mxu1 %v231_v29  ;;  %v42_v26 = vld [vmem:[%s2350_s0 + $0xe0] sm:$0xff]  ;;  %v43_v27 = vld [vmem:[%s2350_s0 + $0xe8] sm:$0xff]  ;;  %v144_v28 = vld [vmem:[%s2350_s0 + $0x410] sm:$0xff] }
  0x20   :  { %1104 = vmatpush.msra.mxu2 %v214_v30  ;;  %265 = vmatpush.msra.mxu0 %v214_v30  ;;  %v145_v29 = vld [vmem:[%s2350_s0 + $0x418] sm:$0xff]  ;;  %v44_v30 = vld [vmem:[%s2350_s0 + $0xf0] sm:$0xff] }
  0x21   :  { %1120 = vmatpush.msra.mxu3 %v230_v31  ;;  %416 = vmatmul.f32.vlgmr.msra.gmra.mxu2 %v114_v32  ;;  %v1434_v32 = vld [vmem:[%s2351_s2] ss:$0 sm:$0xff] }
  0x22   :  { %733 = vmatmul.f32.vlgmr.msra.gmra.mxu3 %v115_v33  ;;  %582 = vmatpush.msra.mxu1 %v230_v31  ;;  %v45_v31 = vld [vmem:[%s2350_s0 + $0xf8] sm:$0xff]  ;;  %v146_v33 = vld [vmem:[%s2350_s0 + $0x420] sm:$0xff] }
  0x23   :  { %266 = vmatmul.f32.vlgmr.msra.gmra.mxu0 %v14_v34  ;;  %583 = vmatmul.f32.vlgmr.msra.gmra.mxu1 %v15_v35  ;;  %v147_v34 = vld [vmem:[%s2350_s0 + $0x428] sm:$0xff] }
  0x29   :  { %419 = vmatmul.f32.gmra.mxu2 %v116_v36 }
  0x2a   :  { %736 = vmatmul.f32.gmra.mxu3 %v117_v37  ;;  %v46_v37 = vld [vmem:[%s2350_s0 + $0x100] sm:$0xff] }
  0x2b   :  { %269 = vmatmul.f32.gmra.mxu0 %v16_v38  ;;  %586 = vmatmul.f32.gmra.mxu1 %v17_v39  ;;  %v47_v38 = vld [vmem:[%s2350_s0 + $0x108] sm:$0xff] }
  0x31   :  { %422 = vmatmul.f32.gmra.mxu2 %v118_v40 }
  0x32   :  { %739 = vmatmul.f32.gmra.mxu3 %v119_v41 }
  0x33   :  { %272 = vmatmul.f32.gmra.mxu0 %v18_v42  ;;  %589 = vmatmul.f32.gmra.mxu1 %v19_v43 }
  0x39   :  { %425 = vmatmul.f32.gmra.mxu2 %v120_v44 }
  0x3a   :  { %742 = vmatmul.f32.gmra.mxu3 %v121_v45  ;;  %v148_v45 = vld [vmem:[%s2350_s0 + $0x430] sm:$0xff] }
  0x3b   :  { %275 = vmatmul.f32.gmra.mxu0 %v20_v46  ;;  %592 = vmatmul.f32.gmra.mxu1 %v21_v47  ;;  %v149_v46 = vld [vmem:[%s2350_s0 + $0x438] sm:$0xff] }
  0x41   :  { %428 = vmatmul.f32.gmra.mxu2 %v122_v48 }
  0x42   :  { %745 = vmatmul.f32.gmra.mxu3 %v123_v49 }
  0x43   :  { %278 = vmatmul.f32.gmra.mxu0 %v22_v50  ;;  %595 = vmatmul.f32.gmra.mxu1 %v23_v51  ;;  %v48_v50 = vld [vmem:[%s2350_s0 + $0x110] sm:$0xff]  ;;  %v49_v51 = vld [vmem:[%s2350_s0 + $0x118] sm:$0xff] }
  0x49   :  { %431 = vmatmul.f32.gmra.mxu2 %v124_v52 }
  0x4a   :  { %748 = vmatmul.f32.gmra.mxu3 %v125_v53 }
  0x4b   :  { %281 = vmatmul.f32.gmra.mxu0 %v24_v54  ;;  %598 = vmatmul.f32.gmra.mxu1 %v25_v55 }
  0x51   :  { %434 = vmatmul.f32.gmra.mxu2 %v126_v56 }
  0x52   :  { %751 = vmatmul.f32.gmra.mxu3 %v127_v57 }
  0x53   :  { %284 = vmatmul.f32.gmra.mxu0 %v26_v58  ;;  %601 = vmatmul.f32.gmra.mxu1 %v27_v59  ;;  %v150_v59 = vld [vmem:[%s2350_s0 + $0x440] sm:$0xff] }
  0x59   :  { %437 = vmatmul.f32.gmra.mxu2 %v128_v60  ;;  %v151_v60 = vld [vmem:[%s2350_s0 + $0x448] sm:$0xff] }
  0x5a   :  { %754 = vmatmul.f32.gmra.mxu3 %v129_v61 }
  0x5b   :  { %287 = vmatmul.f32.gmra.mxu0 %v28_v62  ;;  %604 = vmatmul.f32.gmra.mxu1 %v29_v63 }
  0x61   :  { %440 = vmatmul.f32.gmra.mxu2 %v130_v0  ;;  %v50_v0 = vld [vmem:[%s2350_s0 + $0x120] sm:$0xff] }
  0x62   :  { %757 = vmatmul.f32.gmra.mxu3 %v131_v1  ;;  %v51_v1 = vld [vmem:[%s2350_s0 + $0x128] sm:$0xff] }
  0x63   :  { %290 = vmatmul.f32.gmra.mxu0 %v30_v2  ;;  %607 = vmatmul.f32.gmra.mxu1 %v31_v3 }
  0x69   :  { %443 = vmatmul.f32.gmra.mxu2 %v132_v4 }
  0x6a   :  { %760 = vmatmul.f32.gmra.mxu3 %v133_v5 }
  0x6b   :  { %293 = vmatmul.f32.gmra.mxu0 %v32_v6  ;;  %610 = vmatmul.f32.gmra.mxu1 %v33_v7 }
  0x71   :  { %446 = vmatmul.f32.gmra.mxu2 %v134_v8 }
  0x72   :  { %763 = vmatmul.f32.gmra.mxu3 %v135_v9  ;;  %v152_v9 = vld [vmem:[%s2350_s0 + $0x450] sm:$0xff] }
  0x73   :  { %296 = vmatmul.f32.gmra.mxu0 %v34_v10  ;;  %613 = vmatmul.f32.gmra.mxu1 %v35_v11  ;;  %v153_v10 = vld [vmem:[%s2350_s0 + $0x458] sm:$0xff] }
  0x79   :  { %449 = vmatmul.f32.gmra.mxu2 %v136_v12 }
  0x7a   :  { %766 = vmatmul.f32.gmra.mxu3 %v137_v13 }
  0x7b   :  { %299 = vmatmul.f32.gmra.mxu0 %v36_v14  ;;  %616 = vmatmul.f32.gmra.mxu1 %v37_v15  ;;  %v52_v14 = vld [vmem:[%s2350_s0 + $0x130] sm:$0xff]  ;;  %v53_v15 = vld [vmem:[%s2350_s0 + $0x138] sm:$0xff] }
  0x81   :  { %452 = vmatmul.f32.gmra.mxu2 %v138_v16 }
  0x82   :  { %769 = vmatmul.f32.gmra.mxu3 %v139_v17 }
  0x83   :  { %302 = vmatmul.f32.gmra.mxu0 %v38_v18  ;;  %619 = vmatmul.f32.gmra.mxu1 %v39_v19 }
  0x89   :  { %455 = vmatmul.f32.gmra.mxu2 %v140_v20 }
  0x8a   :  { %772 = vmatmul.f32.gmra.mxu3 %v141_v21 }
  0x8b   :  { %305 = vmatmul.f32.gmra.mxu0 %v40_v22  ;;  %622 = vmatmul.f32.gmra.mxu1 %v41_v23  ;;  %v154_v23 = vld [vmem:[%s2350_s0 + $0x460] sm:$0xff] }
  0x91   :  { %458 = vmatmul.f32.gmra.mxu2 %v142_v24  ;;  %v155_v24 = vld [vmem:[%s2350_s0 + $0x468] sm:$0xff] }
  0x92   :  { %775 = vmatmul.f32.gmra.mxu3 %v143_v25 }
  0x93   :  { %308 = vmatmul.f32.gmra.mxu0 %v42_v26  ;;  %625 = vmatmul.f32.gmra.mxu1 %v43_v27 }
  0x99   :  { %461 = vmatmul.f32.gmra.mxu2 %v144_v28  ;;  %v54_v28 = vld [vmem:[%s2350_s0 + $0x140] sm:$0xff] }
  0x9a   :  { %778 = vmatmul.f32.gmra.mxu3 %v145_v29  ;;  %v55_v29 = vld [vmem:[%s2350_s0 + $0x148] sm:$0xff] }
  0x9b   :  { %311 = vmatmul.f32.gmra.mxu0 %v44_v30  ;;  %628 = vmatmul.f32.gmra.mxu1 %v45_v31 }
  0xa0   :  { %v267_v35 = vpop.f32.mrf.mxu0  ;;  %v584_v36 = vpop.f32.mrf.mxu1 }
  0xa1   :  { %464 = vmatmul.f32.gmra.mxu2 %v146_v33  ;;  %v268_v39 = vadd.f32 %v1434_v32, %v267_v35 }
  0xa2   :  { %781 = vmatmul.f32.gmra.mxu3 %v147_v34 }
  0xa3   :  { %v585_v40 = vadd.f32 %v584_v36, %v268_v39  ;;  %314 = vmatmul.f32.gmra.mxu0 %v46_v37  ;;  %631 = vmatmul.f32.gmra.mxu1 %v47_v38  ;;  %v156_v38 = vld [vmem:[%s2350_s0 + $0x470] sm:$0xff]  ;;  %v157_v39 = vld [vmem:[%s2350_s0 + $0x478] sm:$0xff] }
  0xa4   :  { %v417_v41 = vpop.f32.mrf.mxu2 }
  0xa5   :  { %v734_v42 = vpop.f32.mrf.mxu3  ;;  %v418_v43 = vadd.f32 %v1434_v32, %v417_v41  ;;  %v884_v44 = vmax.f32 %v585_v40, 0.0 }
  0xa7   :  { %985 = vst.msk [vmem:[%s2352_s3] sm:$0xff] %vm984_vm0, %v884_v44  ;;  %v735_v47 = vadd.f32 %v734_v42, %v418_v43  ;;  %v56_v43 = vld [vmem:[%s2350_s0 + $0x150] sm:$0xff]  ;;  %v57_v44 = vld [vmem:[%s2350_s0 + $0x158] sm:$0xff] }
  0xa8   :  { %v270_v48 = vpop.f32.mrf.mxu0  ;;  %v587_v49 = vpop.f32.mrf.mxu1 }
  0xa9   :  { %v934_v52 = vmax.f32 %v735_v47, 0.0  ;;  %467 = vmatmul.f32.gmra.mxu2 %v148_v45  ;;  %v271_v53 = vadd.f32 %v1434_v32, %v270_v48 }
  0xaa   :  { %784 = vmatmul.f32.gmra.mxu3 %v149_v46 }
  0xab   :  { %1035 = vst.msk [vmem:[%s2352_s3 + $0x190] sm:$0xff] %vm984_vm0, %v934_v52  ;;  %v588_v54 = vadd.f32 %v587_v49, %v271_v53  ;;  %317 = vmatmul.f32.gmra.mxu0 %v48_v50  ;;  %634 = vmatmul.f32.gmra.mxu1 %v49_v51  ;;  %v158_v52 = vld [vmem:[%s2350_s0 + $0x480] sm:$0xff]  ;;  %v159_v53 = vld [vmem:[%s2350_s0 + $0x488] sm:$0xff] }
  0xac   :  { %v420_v55 = vpop.f32.mrf.mxu2 }
  0xad   :  { %v737_v56 = vpop.f32.mrf.mxu3  ;;  %v421_v57 = vadd.f32 %v1434_v32, %v420_v55  ;;  %v885_v58 = vmax.f32 %v588_v54, 0.0 }
  0xaf   :  { %986 = vst.msk [vmem:[%s2352_s3 + $0x8] sm:$0xff] %vm984_vm0, %v885_v58  ;;  %v738_v61 = vadd.f32 %v737_v56, %v421_v57  ;;  %v58_v57 = vld [vmem:[%s2350_s0 + $0x160] sm:$0xff]  ;;  %v59_v58 = vld [vmem:[%s2350_s0 + $0x168] sm:$0xff] }
  0xb0   :  { %v273_v62 = vpop.f32.mrf.mxu0  ;;  %v590_v63 = vpop.f32.mrf.mxu1 }
  0xb1   :  { %v935_v2 = vmax.f32 %v738_v61, 0.0  ;;  %470 = vmatmul.f32.gmra.mxu2 %v150_v59  ;;  %v274_v3 = vadd.f32 %v1434_v32, %v273_v62 }
  0xb2   :  { %787 = vmatmul.f32.gmra.mxu3 %v151_v60 }
  0xb3   :  { %1036 = vst.msk [vmem:[%s2352_s3 + $0x198] sm:$0xff] %vm984_vm0, %v935_v2  ;;  %v591_v4 = vadd.f32 %v590_v63, %v274_v3  ;;  %320 = vmatmul.f32.gmra.mxu0 %v50_v0  ;;  %637 = vmatmul.f32.gmra.mxu1 %v51_v1  ;;  %v160_v2 = vld [vmem:[%s2350_s0 + $0x490] sm:$0xff]  ;;  %v161_v3 = vld [vmem:[%s2350_s0 + $0x498] sm:$0xff] }
  0xb4   :  { %v423_v5 = vpop.f32.mrf.mxu2 }
  0xb5   :  { %v740_v6 = vpop.f32.mrf.mxu3  ;;  %v424_v7 = vadd.f32 %v1434_v32, %v423_v5  ;;  %v886_v8 = vmax.f32 %v591_v4, 0.0 }
  0xb7   :  { %987 = vst.msk [vmem:[%s2352_s3 + $0x10] sm:$0xff] %vm984_vm0, %v886_v8  ;;  %v741_v11 = vadd.f32 %v740_v6, %v424_v7  ;;  %v60_v7 = vld [vmem:[%s2350_s0 + $0x170] sm:$0xff]  ;;  %v61_v8 = vld [vmem:[%s2350_s0 + $0x178] sm:$0xff] }
  0xb8   :  { %v276_v12 = vpop.f32.mrf.mxu0  ;;  %v593_v13 = vpop.f32.mrf.mxu1 }
  0xb9   :  { %v936_v16 = vmax.f32 %v741_v11, 0.0  ;;  %473 = vmatmul.f32.gmra.mxu2 %v152_v9  ;;  %v277_v17 = vadd.f32 %v1434_v32, %v276_v12 }
  0xba   :  { %790 = vmatmul.f32.gmra.mxu3 %v153_v10 }
  0xbb   :  { %1037 = vst.msk [vmem:[%s2352_s3 + $0x1a0] sm:$0xff] %vm984_vm0, %v936_v16  ;;  %v594_v18 = vadd.f32 %v593_v13, %v277_v17  ;;  %323 = vmatmul.f32.gmra.mxu0 %v52_v14  ;;  %640 = vmatmul.f32.gmra.mxu1 %v53_v15  ;;  %v162_v16 = vld [vmem:[%s2350_s0 + $0x4a0] sm:$0xff]  ;;  %v163_v17 = vld [vmem:[%s2350_s0 + $0x4a8] sm:$0xff] }
  0xbc   :  { %v426_v19 = vpop.f32.mrf.mxu2 }
  0xbd   :  { %v743_v20 = vpop.f32.mrf.mxu3  ;;  %v427_v21 = vadd.f32 %v1434_v32, %v426_v19  ;;  %v887_v22 = vmax.f32 %v594_v18, 0.0 }
  0xbf   :  { %988 = vst.msk [vmem:[%s2352_s3 + $0x18] sm:$0xff] %vm984_vm0, %v887_v22  ;;  %v744_v25 = vadd.f32 %v743_v20, %v427_v21  ;;  %v62_v21 = vld [vmem:[%s2350_s0 + $0x180] sm:$0xff]  ;;  %v63_v22 = vld [vmem:[%s2350_s0 + $0x188] sm:$0xff] }
  0xc0   :  { %v279_v26 = vpop.f32.mrf.mxu0  ;;  %v596_v27 = vpop.f32.mrf.mxu1 }
  0xc1   :  { %v937_v30 = vmax.f32 %v744_v25, 0.0  ;;  %476 = vmatmul.f32.gmra.mxu2 %v154_v23  ;;  %v280_v31 = vadd.f32 %v1434_v32, %v279_v26 }
  0xc2   :  { %793 = vmatmul.f32.gmra.mxu3 %v155_v24 }
  0xc3   :  { %1038 = vst.msk [vmem:[%s2352_s3 + $0x1a8] sm:$0xff] %vm984_vm0, %v937_v30  ;;  %v597_v33 = vadd.f32 %v596_v27, %v280_v31  ;;  %326 = vmatmul.f32.gmra.mxu0 %v54_v28  ;;  %643 = vmatmul.f32.gmra.mxu1 %v55_v29  ;;  %v164_v30 = vld [vmem:[%s2350_s0 + $0x4b0] sm:$0xff]  ;;  %v165_v31 = vld [vmem:[%s2350_s0 + $0x4b8] sm:$0xff] }
  0xc4   :  { %v429_v34 = vpop.f32.mrf.mxu2 }
  0xc5   :  { %v746_v35 = vpop.f32.mrf.mxu3  ;;  %v430_v36 = vadd.f32 %v1434_v32, %v429_v34  ;;  %v888_v37 = vmax.f32 %v597_v33, 0.0 }
  0xc7   :  { %989 = vst.msk [vmem:[%s2352_s3 + $0x20] sm:$0xff] %vm984_vm0, %v888_v37  ;;  %v747_v40 = vadd.f32 %v746_v35, %v430_v36  ;;  %v64_v36 = vld [vmem:[%s2350_s0 + $0x190] sm:$0xff]  ;;  %v65_v37 = vld [vmem:[%s2350_s0 + $0x198] sm:$0xff] }
  0xc8   :  { %v282_v41 = vpop.f32.mrf.mxu0  ;;  %v599_v42 = vpop.f32.mrf.mxu1 }
  0xc9   :  { %v938_v45 = vmax.f32 %v747_v40, 0.0  ;;  %479 = vmatmul.f32.gmra.mxu2 %v156_v38  ;;  %v283_v46 = vadd.f32 %v1434_v32, %v282_v41 }
  0xca   :  { %796 = vmatmul.f32.gmra.mxu3 %v157_v39 }
  0xcb   :  { %1039 = vst.msk [vmem:[%s2352_s3 + $0x1b0] sm:$0xff] %vm984_vm0, %v938_v45  ;;  %v600_v47 = vadd.f32 %v599_v42, %v283_v46  ;;  %329 = vmatmul.f32.gmra.mxu0 %v56_v43  ;;  %646 = vmatmul.f32.gmra.mxu1 %v57_v44  ;;  %v166_v45 = vld [vmem:[%s2350_s0 + $0x4c0] sm:$0xff]  ;;  %v167_v46 = vld [vmem:[%s2350_s0 + $0x4c8] sm:$0xff] }
  0xcc   :  { %v432_v48 = vpop.f32.mrf.mxu2 }
  0xcd   :  { %v749_v49 = vpop.f32.mrf.mxu3  ;;  %v433_v50 = vadd.f32 %v1434_v32, %v432_v48  ;;  %v889_v51 = vmax.f32 %v600_v47, 0.0 }
  0xcf   :  { %990 = vst.msk [vmem:[%s2352_s3 + $0x28] sm:$0xff] %vm984_vm0, %v889_v51  ;;  %v750_v54 = vadd.f32 %v749_v49, %v433_v50  ;;  %v66_v50 = vld [vmem:[%s2350_s0 + $0x1a0] sm:$0xff]  ;;  %v67_v51 = vld [vmem:[%s2350_s0 + $0x1a8] sm:$0xff] }
  0xd0   :  { %v285_v55 = vpop.f32.mrf.mxu0  ;;  %v602_v56 = vpop.f32.mrf.mxu1 }
  0xd1   :  { %v939_v59 = vmax.f32 %v750_v54, 0.0  ;;  %482 = vmatmul.f32.gmra.mxu2 %v158_v52  ;;  %v286_v60 = vadd.f32 %v1434_v32, %v285_v55 }
  0xd2   :  { %799 = vmatmul.f32.gmra.mxu3 %v159_v53 }
  0xd3   :  { %1040 = vst.msk [vmem:[%s2352_s3 + $0x1b8] sm:$0xff] %vm984_vm0, %v939_v59  ;;  %v603_v61 = vadd.f32 %v602_v56, %v286_v60  ;;  %332 = vmatmul.f32.gmra.mxu0 %v58_v57  ;;  %649 = vmatmul.f32.gmra.mxu1 %v59_v58  ;;  %v168_v59 = vld [vmem:[%s2350_s0 + $0x4d0] sm:$0xff]  ;;  %v169_v60 = vld [vmem:[%s2350_s0 + $0x4d8] sm:$0xff] }
  0xd4   :  { %v435_v62 = vpop.f32.mrf.mxu2 }
  0xd5   :  { %v752_v63 = vpop.f32.mrf.mxu3  ;;  %v436_v0 = vadd.f32 %v1434_v32, %v435_v62  ;;  %v890_v1 = vmax.f32 %v603_v61, 0.0 }
  0xd7   :  { %991 = vst.msk [vmem:[%s2352_s3 + $0x30] sm:$0xff] %vm984_vm0, %v890_v1  ;;  %v753_v4 = vadd.f32 %v752_v63, %v436_v0  ;;  %v68_v0 = vld [vmem:[%s2350_s0 + $0x1b0] sm:$0xff]  ;;  %v69_v1 = vld [vmem:[%s2350_s0 + $0x1b8] sm:$0xff] }
  0xd8   :  { %v288_v5 = vpop.f32.mrf.mxu0  ;;  %v605_v6 = vpop.f32.mrf.mxu1 }
  0xd9   :  { %v940_v9 = vmax.f32 %v753_v4, 0.0  ;;  %485 = vmatmul.f32.gmra.mxu2 %v160_v2  ;;  %v289_v10 = vadd.f32 %v1434_v32, %v288_v5 }
  0xda   :  { %802 = vmatmul.f32.gmra.mxu3 %v161_v3 }
  0xdb   :  { %1041 = vst.msk [vmem:[%s2352_s3 + $0x1c0] sm:$0xff] %vm984_vm0, %v940_v9  ;;  %v606_v11 = vadd.f32 %v605_v6, %v289_v10  ;;  %335 = vmatmul.f32.gmra.mxu0 %v60_v7  ;;  %652 = vmatmul.f32.gmra.mxu1 %v61_v8  ;;  %v170_v9 = vld [vmem:[%s2350_s0 + $0x4e0] sm:$0xff]  ;;  %v171_v10 = vld [vmem:[%s2350_s0 + $0x4e8] sm:$0xff] }
  0xdc   :  { %v438_v12 = vpop.f32.mrf.mxu2 }
  0xdd   :  { %v755_v13 = vpop.f32.mrf.mxu3  ;;  %v439_v14 = vadd.f32 %v1434_v32, %v438_v12  ;;  %v891_v15 = vmax.f32 %v606_v11, 0.0 }
  0xdf   :  { %992 = vst.msk [vmem:[%s2352_s3 + $0x38] sm:$0xff] %vm984_vm0, %v891_v15  ;;  %v756_v18 = vadd.f32 %v755_v13, %v439_v14  ;;  %v70_v14 = vld [vmem:[%s2350_s0 + $0x1c0] sm:$0xff]  ;;  %v71_v15 = vld [vmem:[%s2350_s0 + $0x1c8] sm:$0xff] }
  0xe0   :  { %v291_v19 = vpop.f32.mrf.mxu0  ;;  %v608_v20 = vpop.f32.mrf.mxu1 }
  0xe1   :  { %v941_v23 = vmax.f32 %v756_v18, 0.0  ;;  %488 = vmatmul.f32.gmra.mxu2 %v162_v16  ;;  %v292_v24 = vadd.f32 %v1434_v32, %v291_v19 }
  0xe2   :  { %805 = vmatmul.f32.gmra.mxu3 %v163_v17 }
  0xe3   :  { %1042 = vst.msk [vmem:[%s2352_s3 + $0x1c8] sm:$0xff] %vm984_vm0, %v941_v23  ;;  %v609_v25 = vadd.f32 %v608_v20, %v292_v24  ;;  %338 = vmatmul.f32.gmra.mxu0 %v62_v21  ;;  %655 = vmatmul.f32.gmra.mxu1 %v63_v22  ;;  %v172_v23 = vld [vmem:[%s2350_s0 + $0x4f0] sm:$0xff]  ;;  %v173_v24 = vld [vmem:[%s2350_s0 + $0x4f8] sm:$0xff] }
  0xe4   :  { %v441_v26 = vpop.f32.mrf.mxu2 }
  0xe5   :  { %v758_v27 = vpop.f32.mrf.mxu3  ;;  %v442_v28 = vadd.f32 %v1434_v32, %v441_v26  ;;  %v892_v29 = vmax.f32 %v609_v25, 0.0 }
  0xe7   :  { %993 = vst.msk [vmem:[%s2352_s3 + $0x40] sm:$0xff] %vm984_vm0, %v892_v29  ;;  %v759_v33 = vadd.f32 %v758_v27, %v442_v28  ;;  %v72_v28 = vld [vmem:[%s2350_s0 + $0x1d0] sm:$0xff]  ;;  %v73_v29 = vld [vmem:[%s2350_s0 + $0x1d8] sm:$0xff] }
  0xe8   :  { %v294_v34 = vpop.f32.mrf.mxu0  ;;  %v611_v35 = vpop.f32.mrf.mxu1 }
  0xe9   :  { %v942_v38 = vmax.f32 %v759_v33, 0.0  ;;  %491 = vmatmul.f32.gmra.mxu2 %v164_v30  ;;  %v295_v39 = vadd.f32 %v1434_v32, %v294_v34 }
  0xea   :  { %808 = vmatmul.f32.gmra.mxu3 %v165_v31 }
  0xeb   :  { %1043 = vst.msk [vmem:[%s2352_s3 + $0x1d0] sm:$0xff] %vm984_vm0, %v942_v38  ;;  %v612_v40 = vadd.f32 %v611_v35, %v295_v39  ;;  %341 = vmatmul.f32.gmra.mxu0 %v64_v36  ;;  %658 = vmatmul.f32.gmra.mxu1 %v65_v37  ;;  %v174_v38 = vld [vmem:[%s2350_s0 + $0x500] sm:$0xff]  ;;  %v175_v39 = vld [vmem:[%s2350_s0 + $0x508] sm:$0xff] }
  0xec   :  { %v444_v41 = vpop.f32.mrf.mxu2 }
  0xed   :  { %v761_v42 = vpop.f32.mrf.mxu3  ;;  %v445_v43 = vadd.f32 %v1434_v32, %v444_v41  ;;  %v893_v44 = vmax.f32 %v612_v40, 0.0 }
  0xef   :  { %994 = vst.msk [vmem:[%s2352_s3 + $0x48] sm:$0xff] %vm984_vm0, %v893_v44  ;;  %v762_v47 = vadd.f32 %v761_v42, %v445_v43  ;;  %v74_v43 = vld [vmem:[%s2350_s0 + $0x1e0] sm:$0xff]  ;;  %v75_v44 = vld [vmem:[%s2350_s0 + $0x1e8] sm:$0xff] }
  0xf0   :  { %v297_v48 = vpop.f32.mrf.mxu0  ;;  %v614_v49 = vpop.f32.mrf.mxu1 }
  0xf1   :  { %v943_v52 = vmax.f32 %v762_v47, 0.0  ;;  %494 = vmatmul.f32.gmra.mxu2 %v166_v45  ;;  %v298_v53 = vadd.f32 %v1434_v32, %v297_v48 }
  0xf2   :  { %811 = vmatmul.f32.gmra.mxu3 %v167_v46 }
  0xf3   :  { %1044 = vst.msk [vmem:[%s2352_s3 + $0x1d8] sm:$0xff] %vm984_vm0, %v943_v52  ;;  %v615_v54 = vadd.f32 %v614_v49, %v298_v53  ;;  %344 = vmatmul.f32.gmra.mxu0 %v66_v50  ;;  %661 = vmatmul.f32.gmra.mxu1 %v67_v51  ;;  %v176_v52 = vld [vmem:[%s2350_s0 + $0x510] sm:$0xff]  ;;  %v177_v53 = vld [vmem:[%s2350_s0 + $0x518] sm:$0xff] }
  0xf4   :  { %v447_v55 = vpop.f32.mrf.mxu2 }
  0xf5   :  { %v764_v56 = vpop.f32.mrf.mxu3  ;;  %v448_v57 = vadd.f32 %v1434_v32, %v447_v55  ;;  %v894_v58 = vmax.f32 %v615_v54, 0.0 }
  0xf7   :  { %995 = vst.msk [vmem:[%s2352_s3 + $0x50] sm:$0xff] %vm984_vm0, %v894_v58  ;;  %v765_v61 = vadd.f32 %v764_v56, %v448_v57  ;;  %v76_v57 = vld [vmem:[%s2350_s0 + $0x1f0] sm:$0xff]  ;;  %v77_v58 = vld [vmem:[%s2350_s0 + $0x1f8] sm:$0xff] }
  0xf8   :  { %v300_v62 = vpop.f32.mrf.mxu0  ;;  %v617_v63 = vpop.f32.mrf.mxu1 }
  0xf9   :  { %v944_v2 = vmax.f32 %v765_v61, 0.0  ;;  %497 = vmatmul.f32.gmra.mxu2 %v168_v59  ;;  %v301_v3 = vadd.f32 %v1434_v32, %v300_v62 }
  0xfa   :  { %814 = vmatmul.f32.gmra.mxu3 %v169_v60 }
  0xfb   :  { %1045 = vst.msk [vmem:[%s2352_s3 + $0x1e0] sm:$0xff] %vm984_vm0, %v944_v2  ;;  %v618_v4 = vadd.f32 %v617_v63, %v301_v3  ;;  %347 = vmatmul.f32.gmra.mxu0 %v68_v0  ;;  %664 = vmatmul.f32.gmra.mxu1 %v69_v1  ;;  %v178_v2 = vld [vmem:[%s2350_s0 + $0x520] sm:$0xff]  ;;  %v179_v3 = vld [vmem:[%s2350_s0 + $0x528] sm:$0xff] }
  0xfc   :  { %v450_v5 = vpop.f32.mrf.mxu2 }
  0xfd   :  { %v767_v6 = vpop.f32.mrf.mxu3  ;;  %v451_v7 = vadd.f32 %v1434_v32, %v450_v5  ;;  %v895_v8 = vmax.f32 %v618_v4, 0.0 }
  0xff   :  { %996 = vst.msk [vmem:[%s2352_s3 + $0x58] sm:$0xff] %vm984_vm0, %v895_v8  ;;  %v768_v11 = vadd.f32 %v767_v6, %v451_v7  ;;  %v78_v7 = vld [vmem:[%s2350_s0 + $0x200] sm:$0xff]  ;;  %v79_v8 = vld [vmem:[%s2350_s0 + $0x208] sm:$0xff] }
 0x100   :  { %v303_v12 = vpop.f32.mrf.mxu0  ;;  %v620_v13 = vpop.f32.mrf.mxu1 }
 0x101   :  { %v945_v16 = vmax.f32 %v768_v11, 0.0  ;;  %500 = vmatmul.f32.gmra.mxu2 %v170_v9  ;;  %v304_v17 = vadd.f32 %v1434_v32, %v303_v12 }
 0x102   :  { %817 = vmatmul.f32.gmra.mxu3 %v171_v10 }
 0x103   :  { %1046 = vst.msk [vmem:[%s2352_s3 + $0x1e8] sm:$0xff] %vm984_vm0, %v945_v16  ;;  %v621_v18 = vadd.f32 %v620_v13, %v304_v17  ;;  %350 = vmatmul.f32.gmra.mxu0 %v70_v14  ;;  %667 = vmatmul.f32.gmra.mxu1 %v71_v15  ;;  %v180_v16 = vld [vmem:[%s2350_s0 + $0x530] sm:$0xff]  ;;  %v181_v17 = vld [vmem:[%s2350_s0 + $0x538] sm:$0xff] }
 0x104   :  { %v453_v19 = vpop.f32.mrf.mxu2 }
 0x105   :  { %v770_v20 = vpop.f32.mrf.mxu3  ;;  %v454_v21 = vadd.f32 %v1434_v32, %v453_v19  ;;  %v896_v22 = vmax.f32 %v621_v18, 0.0 }
 0x107   :  { %997 = vst.msk [vmem:[%s2352_s3 + $0x60] sm:$0xff] %vm984_vm0, %v896_v22  ;;  %v771_v25 = vadd.f32 %v770_v20, %v454_v21  ;;  %v80_v21 = vld [vmem:[%s2350_s0 + $0x210] sm:$0xff]  ;;  %v81_v22 = vld [vmem:[%s2350_s0 + $0x218] sm:$0xff] }
 0x108   :  { %v306_v26 = vpop.f32.mrf.mxu0  ;;  %v623_v27 = vpop.f32.mrf.mxu1 }
 0x109   :  { %v946_v30 = vmax.f32 %v771_v25, 0.0  ;;  %503 = vmatmul.f32.gmra.mxu2 %v172_v23  ;;  %v307_v31 = vadd.f32 %v1434_v32, %v306_v26 }
 0x10a   :  { %820 = vmatmul.f32.gmra.mxu3 %v173_v24 }
 0x10b   :  { %1047 = vst.msk [vmem:[%s2352_s3 + $0x1f0] sm:$0xff] %vm984_vm0, %v946_v30  ;;  %v624_v33 = vadd.f32 %v623_v27, %v307_v31  ;;  %353 = vmatmul.f32.gmra.mxu0 %v72_v28  ;;  %670 = vmatmul.f32.gmra.mxu1 %v73_v29  ;;  %v182_v30 = vld [vmem:[%s2350_s0 + $0x540] sm:$0xff]  ;;  %v183_v31 = vld [vmem:[%s2350_s0 + $0x548] sm:$0xff] }
 0x10c   :  { %v456_v34 = vpop.f32.mrf.mxu2 }
 0x10d   :  { %v773_v35 = vpop.f32.mrf.mxu3  ;;  %v457_v36 = vadd.f32 %v1434_v32, %v456_v34  ;;  %v897_v37 = vmax.f32 %v624_v33, 0.0 }
 0x10f   :  { %998 = vst.msk [vmem:[%s2352_s3 + $0x68] sm:$0xff] %vm984_vm0, %v897_v37  ;;  %v774_v40 = vadd.f32 %v773_v35, %v457_v36  ;;  %v82_v36 = vld [vmem:[%s2350_s0 + $0x220] sm:$0xff]  ;;  %v83_v37 = vld [vmem:[%s2350_s0 + $0x228] sm:$0xff] }
 0x110   :  { %v309_v41 = vpop.f32.mrf.mxu0  ;;  %v626_v42 = vpop.f32.mrf.mxu1 }
 0x111   :  { %v947_v45 = vmax.f32 %v774_v40, 0.0  ;;  %506 = vmatmul.f32.gmra.mxu2 %v174_v38  ;;  %v310_v46 = vadd.f32 %v1434_v32, %v309_v41 }
 0x112   :  { %823 = vmatmul.f32.gmra.mxu3 %v175_v39 }
 0x113   :  { %1048 = vst.msk [vmem:[%s2352_s3 + $0x1f8] sm:$0xff] %vm984_vm0, %v947_v45  ;;  %v627_v47 = vadd.f32 %v626_v42, %v310_v46  ;;  %356 = vmatmul.f32.gmra.mxu0 %v74_v43  ;;  %673 = vmatmul.f32.gmra.mxu1 %v75_v44  ;;  %v184_v45 = vld [vmem:[%s2350_s0 + $0x550] sm:$0xff]  ;;  %v185_v46 = vld [vmem:[%s2350_s0 + $0x558] sm:$0xff] }
 0x114   :  { %v459_v48 = vpop.f32.mrf.mxu2 }
 0x115   :  { %v776_v49 = vpop.f32.mrf.mxu3  ;;  %v460_v50 = vadd.f32 %v1434_v32, %v459_v48  ;;  %v898_v51 = vmax.f32 %v627_v47, 0.0 }
 0x117   :  { %999 = vst.msk [vmem:[%s2352_s3 + $0x70] sm:$0xff] %vm984_vm0, %v898_v51  ;;  %v777_v54 = vadd.f32 %v776_v49, %v460_v50  ;;  %v84_v50 = vld [vmem:[%s2350_s0 + $0x230] sm:$0xff]  ;;  %v85_v51 = vld [vmem:[%s2350_s0 + $0x238] sm:$0xff] }
 0x118   :  { %v312_v55 = vpop.f32.mrf.mxu0  ;;  %v629_v56 = vpop.f32.mrf.mxu1 }
 0x119   :  { %v948_v59 = vmax.f32 %v777_v54, 0.0  ;;  %509 = vmatmul.f32.gmra.mxu2 %v176_v52  ;;  %v313_v60 = vadd.f32 %v1434_v32, %v312_v55 }
 0x11a   :  { %826 = vmatmul.f32.gmra.mxu3 %v177_v53 }
 0x11b   :  { %1049 = vst.msk [vmem:[%s2352_s3 + $0x200] sm:$0xff] %vm984_vm0, %v948_v59  ;;  %v630_v61 = vadd.f32 %v629_v56, %v313_v60  ;;  %359 = vmatmul.f32.gmra.mxu0 %v76_v57  ;;  %676 = vmatmul.f32.gmra.mxu1 %v77_v58  ;;  %v186_v59 = vld [vmem:[%s2350_s0 + $0x560] sm:$0xff]  ;;  %v187_v60 = vld [vmem:[%s2350_s0 + $0x568] sm:$0xff] }
 0x11c   :  { %v462_v62 = vpop.f32.mrf.mxu2 }
 0x11d   :  { %v779_v63 = vpop.f32.mrf.mxu3  ;;  %v463_v0 = vadd.f32 %v1434_v32, %v462_v62  ;;  %v899_v1 = vmax.f32 %v630_v61, 0.0 }
 0x11f   :  { %1000 = vst.msk [vmem:[%s2352_s3 + $0x78] sm:$0xff] %vm984_vm0, %v899_v1  ;;  %v780_v4 = vadd.f32 %v779_v63, %v463_v0  ;;  %v86_v0 = vld [vmem:[%s2350_s0 + $0x240] sm:$0xff]  ;;  %v87_v1 = vld [vmem:[%s2350_s0 + $0x248] sm:$0xff] }
 0x120   :  { %v315_v5 = vpop.f32.mrf.mxu0  ;;  %v632_v6 = vpop.f32.mrf.mxu1 }
 0x121   :  { %v949_v9 = vmax.f32 %v780_v4, 0.0  ;;  %512 = vmatmul.f32.gmra.mxu2 %v178_v2  ;;  %v316_v10 = vadd.f32 %v1434_v32, %v315_v5 }
 0x122   :  { %829 = vmatmul.f32.gmra.mxu3 %v179_v3 }
 0x123   :  { %1050 = vst.msk [vmem:[%s2352_s3 + $0x208] sm:$0xff] %vm984_vm0, %v949_v9  ;;  %v633_v11 = vadd.f32 %v632_v6, %v316_v10  ;;  %362 = vmatmul.f32.gmra.mxu0 %v78_v7  ;;  %679 = vmatmul.f32.gmra.mxu1 %v79_v8  ;;  %v188_v9 = vld [vmem:[%s2350_s0 + $0x570] sm:$0xff]  ;;  %v189_v10 = vld [vmem:[%s2350_s0 + $0x578] sm:$0xff] }
 0x124   :  { %v465_v12 = vpop.f32.mrf.mxu2 }
 0x125   :  { %v782_v13 = vpop.f32.mrf.mxu3  ;;  %v466_v14 = vadd.f32 %v1434_v32, %v465_v12  ;;  %v900_v15 = vmax.f32 %v633_v11, 0.0 }
 0x127   :  { %1001 = vst.msk [vmem:[%s2352_s3 + $0x80] sm:$0xff] %vm984_vm0, %v900_v15  ;;  %v783_v18 = vadd.f32 %v782_v13, %v466_v14  ;;  %v88_v14 = vld [vmem:[%s2350_s0 + $0x250] sm:$0xff]  ;;  %v89_v15 = vld [vmem:[%s2350_s0 + $0x258] sm:$0xff] }
 0x128   :  { %v318_v19 = vpop.f32.mrf.mxu0  ;;  %v635_v20 = vpop.f32.mrf.mxu1 }
 0x129   :  { %v950_v23 = vmax.f32 %v783_v18, 0.0  ;;  %515 = vmatmul.f32.gmra.mxu2 %v180_v16  ;;  %v319_v24 = vadd.f32 %v1434_v32, %v318_v19 }
 0x12a   :  { %832 = vmatmul.f32.gmra.mxu3 %v181_v17 }
 0x12b   :  { %1051 = vst.msk [vmem:[%s2352_s3 + $0x210] sm:$0xff] %vm984_vm0, %v950_v23  ;;  %v636_v25 = vadd.f32 %v635_v20, %v319_v24  ;;  %365 = vmatmul.f32.gmra.mxu0 %v80_v21  ;;  %682 = vmatmul.f32.gmra.mxu1 %v81_v22  ;;  %v190_v23 = vld [vmem:[%s2350_s0 + $0x580] sm:$0xff]  ;;  %v191_v24 = vld [vmem:[%s2350_s0 + $0x588] sm:$0xff] }
 0x12c   :  { %v468_v26 = vpop.f32.mrf.mxu2 }
 0x12d   :  { %v785_v27 = vpop.f32.mrf.mxu3  ;;  %v469_v28 = vadd.f32 %v1434_v32, %v468_v26  ;;  %v901_v29 = vmax.f32 %v636_v25, 0.0 }
 0x12f   :  { %1002 = vst.msk [vmem:[%s2352_s3 + $0x88] sm:$0xff] %vm984_vm0, %v901_v29  ;;  %v786_v33 = vadd.f32 %v785_v27, %v469_v28  ;;  %v90_v28 = vld [vmem:[%s2350_s0 + $0x260] sm:$0xff]  ;;  %v91_v29 = vld [vmem:[%s2350_s0 + $0x268] sm:$0xff] }
 0x130   :  { %v321_v34 = vpop.f32.mrf.mxu0  ;;  %v638_v35 = vpop.f32.mrf.mxu1 }
 0x131   :  { %v951_v38 = vmax.f32 %v786_v33, 0.0  ;;  %518 = vmatmul.f32.gmra.mxu2 %v182_v30  ;;  %v322_v39 = vadd.f32 %v1434_v32, %v321_v34 }
 0x132   :  { %835 = vmatmul.f32.gmra.mxu3 %v183_v31 }
 0x133   :  { %1052 = vst.msk [vmem:[%s2352_s3 + $0x218] sm:$0xff] %vm984_vm0, %v951_v38  ;;  %v639_v40 = vadd.f32 %v638_v35, %v322_v39  ;;  %368 = vmatmul.f32.gmra.mxu0 %v82_v36  ;;  %685 = vmatmul.f32.gmra.mxu1 %v83_v37  ;;  %v192_v38 = vld [vmem:[%s2350_s0 + $0x590] sm:$0xff]  ;;  %v193_v39 = vld [vmem:[%s2350_s0 + $0x598] sm:$0xff] }
 0x134   :  { %v471_v41 = vpop.f32.mrf.mxu2 }
 0x135   :  { %v788_v42 = vpop.f32.mrf.mxu3  ;;  %v472_v43 = vadd.f32 %v1434_v32, %v471_v41  ;;  %v902_v44 = vmax.f32 %v639_v40, 0.0 }
 0x137   :  { %1003 = vst.msk [vmem:[%s2352_s3 + $0x90] sm:$0xff] %vm984_vm0, %v902_v44  ;;  %v789_v47 = vadd.f32 %v788_v42, %v472_v43  ;;  %v92_v43 = vld [vmem:[%s2350_s0 + $0x270] sm:$0xff]  ;;  %v93_v44 = vld [vmem:[%s2350_s0 + $0x278] sm:$0xff] }
 0x138   :  { %v324_v48 = vpop.f32.mrf.mxu0  ;;  %v641_v49 = vpop.f32.mrf.mxu1 }
 0x139   :  { %v952_v52 = vmax.f32 %v789_v47, 0.0  ;;  %521 = vmatmul.f32.gmra.mxu2 %v184_v45  ;;  %v325_v53 = vadd.f32 %v1434_v32, %v324_v48 }
 0x13a   :  { %838 = vmatmul.f32.gmra.mxu3 %v185_v46 }
 0x13b   :  { %1053 = vst.msk [vmem:[%s2352_s3 + $0x220] sm:$0xff] %vm984_vm0, %v952_v52  ;;  %v642_v54 = vadd.f32 %v641_v49, %v325_v53  ;;  %371 = vmatmul.f32.gmra.mxu0 %v84_v50  ;;  %688 = vmatmul.f32.gmra.mxu1 %v85_v51  ;;  %v194_v52 = vld [vmem:[%s2350_s0 + $0x5a0] sm:$0xff]  ;;  %v195_v53 = vld [vmem:[%s2350_s0 + $0x5a8] sm:$0xff] }
 0x13c   :  { %v474_v55 = vpop.f32.mrf.mxu2 }
 0x13d   :  { %v791_v56 = vpop.f32.mrf.mxu3  ;;  %v475_v57 = vadd.f32 %v1434_v32, %v474_v55  ;;  %v903_v58 = vmax.f32 %v642_v54, 0.0 }
 0x13f   :  { %1004 = vst.msk [vmem:[%s2352_s3 + $0x98] sm:$0xff] %vm984_vm0, %v903_v58  ;;  %v792_v61 = vadd.f32 %v791_v56, %v475_v57  ;;  %v94_v57 = vld [vmem:[%s2350_s0 + $0x280] sm:$0xff]  ;;  %v95_v58 = vld [vmem:[%s2350_s0 + $0x288] sm:$0xff] }
 0x140   :  { %v327_v62 = vpop.f32.mrf.mxu0  ;;  %v644_v63 = vpop.f32.mrf.mxu1 }
 0x141   :  { %v953_v2 = vmax.f32 %v792_v61, 0.0  ;;  %524 = vmatmul.f32.gmra.mxu2 %v186_v59  ;;  %v328_v3 = vadd.f32 %v1434_v32, %v327_v62 }
 0x142   :  { %841 = vmatmul.f32.gmra.mxu3 %v187_v60 }
 0x143   :  { %1054 = vst.msk [vmem:[%s2352_s3 + $0x228] sm:$0xff] %vm984_vm0, %v953_v2  ;;  %v645_v4 = vadd.f32 %v644_v63, %v328_v3  ;;  %374 = vmatmul.f32.gmra.mxu0 %v86_v0  ;;  %691 = vmatmul.f32.gmra.mxu1 %v87_v1  ;;  %v196_v2 = vld [vmem:[%s2350_s0 + $0x5b0] sm:$0xff]  ;;  %v197_v3 = vld [vmem:[%s2350_s0 + $0x5b8] sm:$0xff] }
 0x144   :  { %v477_v5 = vpop.f32.mrf.mxu2 }
 0x145   :  { %v794_v6 = vpop.f32.mrf.mxu3  ;;  %v478_v7 = vadd.f32 %v1434_v32, %v477_v5  ;;  %v904_v8 = vmax.f32 %v645_v4, 0.0 }
 0x147   :  { %1005 = vst.msk [vmem:[%s2352_s3 + $0xa0] sm:$0xff] %vm984_vm0, %v904_v8  ;;  %v795_v11 = vadd.f32 %v794_v6, %v478_v7  ;;  %v96_v7 = vld [vmem:[%s2350_s0 + $0x290] sm:$0xff]  ;;  %v97_v8 = vld [vmem:[%s2350_s0 + $0x298] sm:$0xff] }
 0x148   :  { %v330_v12 = vpop.f32.mrf.mxu0  ;;  %v647_v13 = vpop.f32.mrf.mxu1 }
 0x149   :  { %v954_v16 = vmax.f32 %v795_v11, 0.0  ;;  %527 = vmatmul.f32.gmra.mxu2 %v188_v9  ;;  %v331_v17 = vadd.f32 %v1434_v32, %v330_v12 }
 0x14a   :  { %844 = vmatmul.f32.gmra.mxu3 %v189_v10 }
 0x14b   :  { %1055 = vst.msk [vmem:[%s2352_s3 + $0x230] sm:$0xff] %vm984_vm0, %v954_v16  ;;  %v648_v18 = vadd.f32 %v647_v13, %v331_v17  ;;  %377 = vmatmul.f32.gmra.mxu0 %v88_v14  ;;  %694 = vmatmul.f32.gmra.mxu1 %v89_v15  ;;  %v2002_v14 = vld [vmem:[%s2351_s2] ss:$0 sm:$0xff]  ;;  %v199_v17 = vld [vmem:[%s2350_s0 + $0x5c8] sm:$0xff] }
 0x14c   :  { %v480_v19 = vpop.f32.mrf.mxu2 }
 0x14d   :  { %v797_v20 = vpop.f32.mrf.mxu3  ;;  %v481_v21 = vadd.f32 %v1434_v32, %v480_v19  ;;  %v905_v22 = vmax.f32 %v648_v18, 0.0 }
 0x14f   :  { %1006 = vst.msk [vmem:[%s2352_s3 + $0xa8] sm:$0xff] %vm984_vm0, %v905_v22  ;;  %v798_v25 = vadd.f32 %v797_v20, %v481_v21  ;;  %v98_v21 = vld [vmem:[%s2350_s0 + $0x2a0] sm:$0xff]  ;;  %v99_v22 = vld [vmem:[%s2350_s0 + $0x2a8] sm:$0xff] }
 0x150   :  { %v333_v26 = vpop.f32.mrf.mxu0  ;;  %v650_v27 = vpop.f32.mrf.mxu1 }
 0x151   :  { %v955_v30 = vmax.f32 %v798_v25, 0.0  ;;  %530 = vmatmul.f32.gmra.mxu2 %v190_v23  ;;  %v334_v31 = vadd.f32 %v1434_v32, %v333_v26 }
 0x152   :  { %847 = vmatmul.f32.gmra.mxu3 %v191_v24 }
 0x153   :  { %1056 = vst.msk [vmem:[%s2352_s3 + $0x238] sm:$0xff] %vm984_vm0, %v955_v30  ;;  %v651_v33 = vadd.f32 %v650_v27, %v334_v31  ;;  %380 = vmatmul.f32.gmra.mxu0 %v90_v28  ;;  %697 = vmatmul.f32.gmra.mxu1 %v91_v29  ;;  %v200_v30 = vld [vmem:[%s2350_s0 + $0x5d0] sm:$0xff]  ;;  %v201_v31 = vld [vmem:[%s2350_s0 + $0x5d8] sm:$0xff] }
 0x154   :  { %v483_v34 = vpop.f32.mrf.mxu2 }
 0x155   :  { %v800_v35 = vpop.f32.mrf.mxu3  ;;  %v484_v36 = vadd.f32 %v1434_v32, %v483_v34  ;;  %v906_v37 = vmax.f32 %v651_v33, 0.0 }
 0x157   :  { %1007 = vst.msk [vmem:[%s2352_s3 + $0xb0] sm:$0xff] %vm984_vm0, %v906_v37  ;;  %v801_v40 = vadd.f32 %v800_v35, %v484_v36  ;;  %v100_v36 = vld [vmem:[%s2350_s0 + $0x2b0] sm:$0xff]  ;;  %v101_v37 = vld [vmem:[%s2350_s0 + $0x2b8] sm:$0xff] }
 0x158   :  { %v336_v41 = vpop.f32.mrf.mxu0  ;;  %v653_v42 = vpop.f32.mrf.mxu1 }
 0x159   :  { %v956_v45 = vmax.f32 %v801_v40, 0.0  ;;  %533 = vmatmul.f32.gmra.mxu2 %v192_v38  ;;  %v337_v46 = vadd.f32 %v1434_v32, %v336_v41 }
 0x15a   :  { %850 = vmatmul.f32.gmra.mxu3 %v193_v39 }
 0x15b   :  { %1057 = vst.msk [vmem:[%s2352_s3 + $0x240] sm:$0xff] %vm984_vm0, %v956_v45  ;;  %v654_v47 = vadd.f32 %v653_v42, %v337_v46  ;;  %383 = vmatmul.f32.gmra.mxu0 %v92_v43  ;;  %700 = vmatmul.f32.gmra.mxu1 %v93_v44  ;;  %v202_v45 = vld [vmem:[%s2350_s0 + $0x5e0] sm:$0xff]  ;;  %v203_v46 = vld [vmem:[%s2350_s0 + $0x5e8] sm:$0xff] }
 0x15c   :  { %v486_v48 = vpop.f32.mrf.mxu2 }
 0x15d   :  { %v803_v49 = vpop.f32.mrf.mxu3  ;;  %v487_v50 = vadd.f32 %v1434_v32, %v486_v48  ;;  %v907_v51 = vmax.f32 %v654_v47, 0.0 }
 0x15f   :  { %1008 = vst.msk [vmem:[%s2352_s3 + $0xb8] sm:$0xff] %vm984_vm0, %v907_v51  ;;  %v804_v54 = vadd.f32 %v803_v49, %v487_v50  ;;  %v102_v50 = vld [vmem:[%s2350_s0 + $0x2c0] sm:$0xff]  ;;  %v103_v51 = vld [vmem:[%s2350_s0 + $0x2c8] sm:$0xff] }
 0x160   :  { %v339_v55 = vpop.f32.mrf.mxu0  ;;  %v656_v56 = vpop.f32.mrf.mxu1 }
 0x161   :  { %v957_v59 = vmax.f32 %v804_v54, 0.0  ;;  %536 = vmatmul.f32.gmra.mxu2 %v194_v52  ;;  %v340_v60 = vadd.f32 %v1434_v32, %v339_v55 }
 0x162   :  { %853 = vmatmul.f32.gmra.mxu3 %v195_v53 }
 0x163   :  { %1058 = vst.msk [vmem:[%s2352_s3 + $0x248] sm:$0xff] %vm984_vm0, %v957_v59  ;;  %v657_v61 = vadd.f32 %v656_v56, %v340_v60  ;;  %386 = vmatmul.f32.gmra.mxu0 %v94_v57  ;;  %703 = vmatmul.f32.gmra.mxu1 %v95_v58  ;;  %v204_v59 = vld [vmem:[%s2350_s0 + $0x5f0] sm:$0xff]  ;;  %v205_v60 = vld [vmem:[%s2350_s0 + $0x5f8] sm:$0xff] }
 0x164   :  { %v489_v62 = vpop.f32.mrf.mxu2 }
 0x165   :  { %v806_v63 = vpop.f32.mrf.mxu3  ;;  %v490_v0 = vadd.f32 %v1434_v32, %v489_v62  ;;  %v908_v1 = vmax.f32 %v657_v61, 0.0 }
 0x167   :  { %1009 = vst.msk [vmem:[%s2352_s3 + $0xc0] sm:$0xff] %vm984_vm0, %v908_v1  ;;  %v807_v4 = vadd.f32 %v806_v63, %v490_v0  ;;  %v104_v0 = vld [vmem:[%s2350_s0 + $0x2d0] sm:$0xff]  ;;  %v105_v1 = vld [vmem:[%s2350_s0 + $0x2d8] sm:$0xff] }
 0x168   :  { %v342_v5 = vpop.f32.mrf.mxu0  ;;  %v659_v6 = vpop.f32.mrf.mxu1 }
 0x169   :  { %v958_v9 = vmax.f32 %v807_v4, 0.0  ;;  %539 = vmatmul.f32.gmra.mxu2 %v196_v2  ;;  %v343_v10 = vadd.f32 %v1434_v32, %v342_v5  ;;  %v198_v32 = vld [vmem:[%s2350_s0 + $0x5c0] sm:$0xff] }
 0x16a   :  { %856 = vmatmul.f32.gmra.mxu3 %v197_v3 }
 0x16b   :  { %1059 = vst.msk [vmem:[%s2352_s3 + $0x250] sm:$0xff] %vm984_vm0, %v958_v9  ;;  %v660_v11 = vadd.f32 %v659_v6, %v343_v10  ;;  %389 = vmatmul.f32.gmra.mxu0 %v96_v7  ;;  %706 = vmatmul.f32.gmra.mxu1 %v97_v8  ;;  %v206_v9 = vld [vmem:[%s2350_s0 + $0x600] sm:$0xff]  ;;  %v207_v10 = vld [vmem:[%s2350_s0 + $0x608] sm:$0xff] }
 0x16c   :  { %v492_v12 = vpop.f32.mrf.mxu2 }
 0x16d   :  { %v809_v13 = vpop.f32.mrf.mxu3  ;;  %v493_v15 = vadd.f32 %v2002_v14, %v492_v12  ;;  %v909_v16 = vmax.f32 %v660_v11, 0.0 }
 0x16f   :  { %1010 = vst.msk [vmem:[%s2352_s3 + $0xc8] sm:$0xff] %vm984_vm0, %v909_v16  ;;  %v810_v18 = vadd.f32 %v809_v13, %v493_v15  ;;  %v106_v15 = vld [vmem:[%s2350_s0 + $0x2e0] sm:$0xff]  ;;  %v107_v16 = vld [vmem:[%s2350_s0 + $0x2e8] sm:$0xff] }
 0x170   :  { %v345_v19 = vpop.f32.mrf.mxu0  ;;  %v662_v20 = vpop.f32.mrf.mxu1 }
 0x171   :  { %v959_v23 = vmax.f32 %v810_v18, 0.0  ;;  %542 = vmatmul.f32.gmra.mxu2 %v198_v32  ;;  %v346_v24 = vadd.f32 %v2002_v14, %v345_v19 }
 0x172   :  { %859 = vmatmul.f32.gmra.mxu3 %v199_v17 }
 0x173   :  { %1060 = vst.msk [vmem:[%s2352_s3 + $0x258] sm:$0xff] %vm984_vm0, %v959_v23  ;;  %v663_v25 = vadd.f32 %v662_v20, %v346_v24  ;;  %392 = vmatmul.f32.gmra.mxu0 %v98_v21  ;;  %709 = vmatmul.f32.gmra.mxu1 %v99_v22  ;;  %v208_v23 = vld [vmem:[%s2350_s0 + $0x610] sm:$0xff]  ;;  %v209_v24 = vld [vmem:[%s2350_s0 + $0x618] sm:$0xff] }
 0x174   :  { %v495_v26 = vpop.f32.mrf.mxu2 }
 0x175   :  { %v812_v27 = vpop.f32.mrf.mxu3  ;;  %v496_v28 = vadd.f32 %v2002_v14, %v495_v26  ;;  %v910_v29 = vmax.f32 %v663_v25, 0.0 }
 0x177   :  { %1011 = vst.msk [vmem:[%s2352_s3 + $0xd0] sm:$0xff] %vm984_vm0, %v910_v29  ;;  %v813_v33 = vadd.f32 %v812_v27, %v496_v28  ;;  %v108_v28 = vld [vmem:[%s2350_s0 + $0x2f0] sm:$0xff]  ;;  %v109_v29 = vld [vmem:[%s2350_s0 + $0x2f8] sm:$0xff] }
 0x178   :  { %v348_v34 = vpop.f32.mrf.mxu0  ;;  %v665_v35 = vpop.f32.mrf.mxu1 }
 0x179   :  { %v960_v38 = vmax.f32 %v813_v33, 0.0  ;;  %545 = vmatmul.f32.gmra.mxu2 %v200_v30  ;;  %v349_v39 = vadd.f32 %v2002_v14, %v348_v34 }
 0x17a   :  { %862 = vmatmul.f32.gmra.mxu3 %v201_v31 }
 0x17b   :  { %1061 = vst.msk [vmem:[%s2352_s3 + $0x260] sm:$0xff] %vm984_vm0, %v960_v38  ;;  %v666_v40 = vadd.f32 %v665_v35, %v349_v39  ;;  %395 = vmatmul.f32.gmra.mxu0 %v100_v36  ;;  %712 = vmatmul.f32.gmra.mxu1 %v101_v37  ;;  %v210_v38 = vld [vmem:[%s2350_s0 + $0x620] sm:$0xff]  ;;  %v211_v39 = vld [vmem:[%s2350_s0 + $0x628] sm:$0xff] }
 0x17c   :  { %v498_v41 = vpop.f32.mrf.mxu2 }
 0x17d   :  { %v815_v42 = vpop.f32.mrf.mxu3  ;;  %v499_v43 = vadd.f32 %v2002_v14, %v498_v41  ;;  %v911_v44 = vmax.f32 %v666_v40, 0.0 }
 0x17f   :  { %1012 = vst.msk [vmem:[%s2352_s3 + $0xd8] sm:$0xff] %vm984_vm0, %v911_v44  ;;  %v816_v47 = vadd.f32 %v815_v42, %v499_v43  ;;  %v110_v43 = vld [vmem:[%s2350_s0 + $0x300] sm:$0xff]  ;;  %v111_v44 = vld [vmem:[%s2350_s0 + $0x308] sm:$0xff] }
 0x180   :  { %v351_v48 = vpop.f32.mrf.mxu0  ;;  %v668_v49 = vpop.f32.mrf.mxu1 }
 0x181   :  { %v961_v52 = vmax.f32 %v816_v47, 0.0  ;;  %548 = vmatmul.f32.gmra.mxu2 %v202_v45  ;;  %v352_v53 = vadd.f32 %v2002_v14, %v351_v48 }
 0x182   :  { %865 = vmatmul.f32.gmra.mxu3 %v203_v46 }
 0x183   :  { %1062 = vst.msk [vmem:[%s2352_s3 + $0x268] sm:$0xff] %vm984_vm0, %v961_v52  ;;  %v669_v54 = vadd.f32 %v668_v49, %v352_v53  ;;  %398 = vmatmul.f32.gmra.mxu0 %v102_v50  ;;  %715 = vmatmul.f32.gmra.mxu1 %v103_v51  ;;  %v212_v52 = vld [vmem:[%s2350_s0 + $0x630] sm:$0xff]  ;;  %v213_v53 = vld [vmem:[%s2350_s0 + $0x638] sm:$0xff] }
 0x184   :  { %v501_v55 = vpop.f32.mrf.mxu2 }
 0x185   :  { %v818_v56 = vpop.f32.mrf.mxu3  ;;  %v502_v57 = vadd.f32 %v2002_v14, %v501_v55  ;;  %v912_v58 = vmax.f32 %v669_v54, 0.0 }
 0x187   :  { %1013 = vst.msk [vmem:[%s2352_s3 + $0xe0] sm:$0xff] %vm984_vm0, %v912_v58  ;;  %v819_v61 = vadd.f32 %v818_v56, %v502_v57  ;;  %v112_v57 = vld [vmem:[%s2350_s0 + $0x310] sm:$0xff]  ;;  %v113_v58 = vld [vmem:[%s2350_s0 + $0x318] sm:$0xff] }
 0x188   :  { %v354_v62 = vpop.f32.mrf.mxu0  ;;  %v671_v63 = vpop.f32.mrf.mxu1 }
 0x189   :  { %v962_v2 = vmax.f32 %v819_v61, 0.0  ;;  %551 = vmatmul.f32.gmra.mxu2 %v204_v59  ;;  %v355_v3 = vadd.f32 %v2002_v14, %v354_v62 }
 0x18a   :  { %868 = vmatmul.f32.gmra.mxu3 %v205_v60 }
 0x18b   :  { %1063 = vst.msk [vmem:[%s2352_s3 + $0x270] sm:$0xff] %vm984_vm0, %v962_v2  ;;  %v672_v4 = vadd.f32 %v671_v63, %v355_v3  ;;  %401 = vmatmul.f32.gmra.mxu0 %v104_v0  ;;  %718 = vmatmul.f32.gmra.mxu1 %v105_v1 }
 0x18c   :  { %v504_v5 = vpop.f32.mrf.mxu2 }
 0x18d   :  { %v821_v6 = vpop.f32.mrf.mxu3  ;;  %v505_v7 = vadd.f32 %v2002_v14, %v504_v5  ;;  %v913_v8 = vmax.f32 %v672_v4, 0.0 }
 0x18f   :  { %1014 = vst.msk [vmem:[%s2352_s3 + $0xe8] sm:$0xff] %vm984_vm0, %v913_v8  ;;  %v822_v11 = vadd.f32 %v821_v6, %v505_v7 }
 0x190   :  { %v357_v12 = vpop.f32.mrf.mxu0  ;;  %v674_v13 = vpop.f32.mrf.mxu1 }
 0x191   :  { %v963_v32 = vmax.f32 %v822_v11, 0.0  ;;  %554 = vmatmul.f32.gmra.mxu2 %v206_v9  ;;  %v358_v17 = vadd.f32 %v2002_v14, %v357_v12 }
 0x192   :  { %871 = vmatmul.f32.gmra.mxu3 %v207_v10 }
 0x193   :  { %1064 = vst.msk [vmem:[%s2352_s3 + $0x278] sm:$0xff] %vm984_vm0, %v963_v32  ;;  %v675_v18 = vadd.f32 %v674_v13, %v358_v17  ;;  %404 = vmatmul.f32.gmra.mxu0 %v106_v15  ;;  %721 = vmatmul.f32.gmra.mxu1 %v107_v16 }
 0x194   :  { %v507_v19 = vpop.f32.mrf.mxu2 }
 0x195   :  { %v824_v20 = vpop.f32.mrf.mxu3  ;;  %v508_v21 = vadd.f32 %v2002_v14, %v507_v19  ;;  %v914_v22 = vmax.f32 %v675_v18, 0.0 }
 0x197   :  { %1015 = vst.msk [vmem:[%s2352_s3 + $0xf0] sm:$0xff] %vm984_vm0, %v914_v22  ;;  %v825_v25 = vadd.f32 %v824_v20, %v508_v21 }
 0x198   :  { %v360_v26 = vpop.f32.mrf.mxu0  ;;  %v677_v27 = vpop.f32.mrf.mxu1 }
 0x199   :  { %v964_v30 = vmax.f32 %v825_v25, 0.0  ;;  %557 = vmatmul.f32.gmra.mxu2 %v208_v23  ;;  %v361_v31 = vadd.f32 %v2002_v14, %v360_v26 }
 0x19a   :  { %874 = vmatmul.f32.gmra.mxu3 %v209_v24 }
 0x19b   :  { %1065 = vst.msk [vmem:[%s2352_s3 + $0x280] sm:$0xff] %vm984_vm0, %v964_v30  ;;  %v678_v33 = vadd.f32 %v677_v27, %v361_v31  ;;  %407 = vmatmul.f32.gmra.mxu0 %v108_v28  ;;  %724 = vmatmul.f32.gmra.mxu1 %v109_v29 }
 0x19c   :  { %v510_v34 = vpop.f32.mrf.mxu2 }
 0x19d   :  { %v827_v35 = vpop.f32.mrf.mxu3  ;;  %v511_v36 = vadd.f32 %v2002_v14, %v510_v34  ;;  %v915_v37 = vmax.f32 %v678_v33, 0.0 }
 0x19f   :  { %1016 = vst.msk [vmem:[%s2352_s3 + $0xf8] sm:$0xff] %vm984_vm0, %v915_v37  ;;  %v828_v40 = vadd.f32 %v827_v35, %v511_v36 }
 0x1a0   :  { %v363_v41 = vpop.f32.mrf.mxu0  ;;  %v680_v42 = vpop.f32.mrf.mxu1 }
 0x1a1   :  { %v965_v45 = vmax.f32 %v828_v40, 0.0  ;;  %560 = vmatmul.f32.gmra.mxu2 %v210_v38  ;;  %v364_v46 = vadd.f32 %v2002_v14, %v363_v41 }
 0x1a2   :  { %877 = vmatmul.f32.gmra.mxu3 %v211_v39 }
 0x1a3   :  { %1066 = vst.msk [vmem:[%s2352_s3 + $0x288] sm:$0xff] %vm984_vm0, %v965_v45  ;;  %v681_v47 = vadd.f32 %v680_v42, %v364_v46  ;;  %410 = vmatmul.f32.gmra.mxu0 %v110_v43  ;;  %727 = vmatmul.f32.gmra.mxu1 %v111_v44 }
 0x1a4   :  { %v513_v48 = vpop.f32.mrf.mxu2 }
 0x1a5   :  { %v830_v49 = vpop.f32.mrf.mxu3  ;;  %v514_v50 = vadd.f32 %v2002_v14, %v513_v48  ;;  %v916_v51 = vmax.f32 %v681_v47, 0.0 }
 0x1a7   :  { %1017 = vst.msk [vmem:[%s2352_s3 + $0x100] sm:$0xff] %vm984_vm0, %v916_v51  ;;  %v831_v54 = vadd.f32 %v830_v49, %v514_v50 }
 0x1a8   :  { %v366_v55 = vpop.f32.mrf.mxu0  ;;  %v683_v56 = vpop.f32.mrf.mxu1 }
 0x1a9   :  { %v966_v59 = vmax.f32 %v831_v54, 0.0  ;;  %563 = vmatmul.f32.gmra.mxu2 %v212_v52  ;;  %v367_v60 = vadd.f32 %v2002_v14, %v366_v55 }
 0x1aa   :  { %880 = vmatmul.f32.gmra.mxu3 %v213_v53 }
 0x1ab   :  { %1067 = vst.msk [vmem:[%s2352_s3 + $0x290] sm:$0xff] %vm984_vm0, %v966_v59  ;;  %v684_v61 = vadd.f32 %v683_v56, %v367_v60  ;;  %413 = vmatmul.f32.gmra.mxu0 %v112_v57  ;;  %730 = vmatmul.f32.gmra.mxu1 %v113_v58 }
 0x1ac   :  { %v516_v62 = vpop.f32.mrf.mxu2 }
 0x1ad   :  { %v833_v63 = vpop.f32.mrf.mxu3  ;;  %v517_v0 = vadd.f32 %v2002_v14, %v516_v62  ;;  %v917_v1 = vmax.f32 %v684_v61, 0.0 }
 0x1af   :  { %1018 = vst.msk [vmem:[%s2352_s3 + $0x108] sm:$0xff] %vm984_vm0, %v917_v1  ;;  %v834_v2 = vadd.f32 %v833_v63, %v517_v0 }
 0x1b0   :  { %v369_v3 = vpop.f32.mrf.mxu0  ;;  %v686_v4 = vpop.f32.mrf.mxu1 }
 0x1b1   :  { %v967_v5 = vmax.f32 %v834_v2, 0.0  ;;  %v370_v6 = vadd.f32 %v2002_v14, %v369_v3 }
 0x1b3   :  { %1068 = vst.msk [vmem:[%s2352_s3 + $0x298] sm:$0xff] %vm984_vm0, %v967_v5  ;;  %v687_v7 = vadd.f32 %v686_v4, %v370_v6 }
 0x1b4   :  { %v519_v8 = vpop.f32.mrf.mxu2 }
 0x1b5   :  { %v836_v9 = vpop.f32.mrf.mxu3  ;;  %v520_v10 = vadd.f32 %v2002_v14, %v519_v8  ;;  %v918_v11 = vmax.f32 %v687_v7, 0.0 }
 0x1b7   :  { %1019 = vst.msk [vmem:[%s2352_s3 + $0x110] sm:$0xff] %vm984_vm0, %v918_v11  ;;  %v837_v12 = vadd.f32 %v836_v9, %v520_v10 }
 0x1b8   :  { %v372_v13 = vpop.f32.mrf.mxu0  ;;  %v689_v15 = vpop.f32.mrf.mxu1 }
 0x1b9   :  { %v968_v16 = vmax.f32 %v837_v12, 0.0  ;;  %v373_v32 = vadd.f32 %v2002_v14, %v372_v13 }
 0x1bb   :  { %1069 = vst.msk [vmem:[%s2352_s3 + $0x2a0] sm:$0xff] %vm984_vm0, %v968_v16  ;;  %v690_v17 = vadd.f32 %v689_v15, %v373_v32 }
 0x1bc   :  { %v522_v18 = vpop.f32.mrf.mxu2 }
 0x1bd   :  { %v839_v19 = vpop.f32.mrf.mxu3  ;;  %v523_v20 = vadd.f32 %v2002_v14, %v522_v18  ;;  %v919_v21 = vmax.f32 %v690_v17, 0.0 }
 0x1bf   :  { %1020 = vst.msk [vmem:[%s2352_s3 + $0x118] sm:$0xff] %vm984_vm0, %v919_v21  ;;  %v840_v22 = vadd.f32 %v839_v19, %v523_v20 }
 0x1c0   :  { %v375_v23 = vpop.f32.mrf.mxu0  ;;  %v692_v24 = vpop.f32.mrf.mxu1 }
 0x1c1   :  { %v969_v25 = vmax.f32 %v840_v22, 0.0  ;;  %v376_v26 = vadd.f32 %v2002_v14, %v375_v23 }
 0x1c3   :  { %1070 = vst.msk [vmem:[%s2352_s3 + $0x2a8] sm:$0xff] %vm984_vm0, %v969_v25  ;;  %v693_v27 = vadd.f32 %v692_v24, %v376_v26 }
 0x1c4   :  { %v525_v28 = vpop.f32.mrf.mxu2 }
 0x1c5   :  { %v842_v29 = vpop.f32.mrf.mxu3  ;;  %v526_v30 = vadd.f32 %v2002_v14, %v525_v28  ;;  %v920_v31 = vmax.f32 %v693_v27, 0.0 }
 0x1c7   :  { %1021 = vst.msk [vmem:[%s2352_s3 + $0x120] sm:$0xff] %vm984_vm0, %v920_v31  ;;  %v843_v33 = vadd.f32 %v842_v29, %v526_v30 }
 0x1c8   :  { %v378_v34 = vpop.f32.mrf.mxu0  ;;  %v695_v35 = vpop.f32.mrf.mxu1 }
 0x1c9   :  { %v970_v36 = vmax.f32 %v843_v33, 0.0  ;;  %v379_v37 = vadd.f32 %v2002_v14, %v378_v34 }
 0x1cb   :  { %1071 = vst.msk [vmem:[%s2352_s3 + $0x2b0] sm:$0xff] %vm984_vm0, %v970_v36  ;;  %v696_v38 = vadd.f32 %v695_v35, %v379_v37 }
 0x1cc   :  { %v528_v39 = vpop.f32.mrf.mxu2 }
 0x1cd   :  { %v845_v40 = vpop.f32.mrf.mxu3  ;;  %v529_v41 = vadd.f32 %v2002_v14, %v528_v39  ;;  %v921_v42 = vmax.f32 %v696_v38, 0.0 }
 0x1cf   :  { %1022 = vst.msk [vmem:[%s2352_s3 + $0x128] sm:$0xff] %vm984_vm0, %v921_v42  ;;  %v846_v43 = vadd.f32 %v845_v40, %v529_v41 }
 0x1d0   :  { %v381_v44 = vpop.f32.mrf.mxu0  ;;  %v698_v45 = vpop.f32.mrf.mxu1 }
 0x1d1   :  { %v971_v46 = vmax.f32 %v846_v43, 0.0  ;;  %v382_v47 = vadd.f32 %v2002_v14, %v381_v44 }
 0x1d3   :  { %1072 = vst.msk [vmem:[%s2352_s3 + $0x2b8] sm:$0xff] %vm984_vm0, %v971_v46  ;;  %v699_v48 = vadd.f32 %v698_v45, %v382_v47 }
 0x1d4   :  { %v531_v49 = vpop.f32.mrf.mxu2 }
 0x1d5   :  { %v848_v50 = vpop.f32.mrf.mxu3  ;;  %v532_v51 = vadd.f32 %v2002_v14, %v531_v49  ;;  %v922_v52 = vmax.f32 %v699_v48, 0.0 }
 0x1d7   :  { %1023 = vst.msk [vmem:[%s2352_s3 + $0x130] sm:$0xff] %vm984_vm0, %v922_v52  ;;  %v849_v53 = vadd.f32 %v848_v50, %v532_v51 }
 0x1d8   :  { %v384_v54 = vpop.f32.mrf.mxu0  ;;  %v701_v55 = vpop.f32.mrf.mxu1 }
 0x1d9   :  { %v972_v56 = vmax.f32 %v849_v53, 0.0  ;;  %v385_v57 = vadd.f32 %v2002_v14, %v384_v54 }
 0x1db   :  { %1073 = vst.msk [vmem:[%s2352_s3 + $0x2c0] sm:$0xff] %vm984_vm0, %v972_v56  ;;  %v702_v58 = vadd.f32 %v701_v55, %v385_v57 }
 0x1dc   :  { %v534_v59 = vpop.f32.mrf.mxu2 }
 0x1dd   :  { %v851_v60 = vpop.f32.mrf.mxu3  ;;  %v535_v61 = vadd.f32 %v2002_v14, %v534_v59  ;;  %v923_v62 = vmax.f32 %v702_v58, 0.0 }
 0x1df   :  { %1024 = vst.msk [vmem:[%s2352_s3 + $0x138] sm:$0xff] %vm984_vm0, %v923_v62  ;;  %v852_v63 = vadd.f32 %v851_v60, %v535_v61 }
 0x1e0   :  { %v387_v0 = vpop.f32.mrf.mxu0  ;;  %v704_v1 = vpop.f32.mrf.mxu1 }
 0x1e1   :  { %v973_v2 = vmax.f32 %v852_v63, 0.0  ;;  %v388_v3 = vadd.f32 %v2002_v14, %v387_v0 }
 0x1e3   :  { %1074 = vst.msk [vmem:[%s2352_s3 + $0x2c8] sm:$0xff] %vm984_vm0, %v973_v2  ;;  %v705_v4 = vadd.f32 %v704_v1, %v388_v3 }
 0x1e4   :  { %v537_v5 = vpop.f32.mrf.mxu2 }
 0x1e5   :  { %v854_v6 = vpop.f32.mrf.mxu3  ;;  %v538_v7 = vadd.f32 %v2002_v14, %v537_v5  ;;  %v924_v8 = vmax.f32 %v705_v4, 0.0 }
 0x1e7   :  { %1025 = vst.msk [vmem:[%s2352_s3 + $0x140] sm:$0xff] %vm984_vm0, %v924_v8  ;;  %v855_v9 = vadd.f32 %v854_v6, %v538_v7 }
 0x1e8   :  { %v390_v10 = vpop.f32.mrf.mxu0  ;;  %v707_v11 = vpop.f32.mrf.mxu1 }
 0x1e9   :  { %v974_v12 = vmax.f32 %v855_v9, 0.0  ;;  %v391_v13 = vadd.f32 %v2002_v14, %v390_v10 }
 0x1eb   :  { %1075 = vst.msk [vmem:[%s2352_s3 + $0x2d0] sm:$0xff] %vm984_vm0, %v974_v12  ;;  %v708_v15 = vadd.f32 %v707_v11, %v391_v13 }
 0x1ec   :  { %v540_v16 = vpop.f32.mrf.mxu2 }
 0x1ed   :  { %v857_v32 = vpop.f32.mrf.mxu3  ;;  %v541_v17 = vadd.f32 %v2002_v14, %v540_v16  ;;  %v925_v18 = vmax.f32 %v708_v15, 0.0 }
 0x1ef   :  { %1026 = vst.msk [vmem:[%s2352_s3 + $0x148] sm:$0xff] %vm984_vm0, %v925_v18  ;;  %v858_v19 = vadd.f32 %v857_v32, %v541_v17 }
 0x1f0   :  { %v393_v20 = vpop.f32.mrf.mxu0  ;;  %v710_v21 = vpop.f32.mrf.mxu1 }
 0x1f1   :  { %v975_v22 = vmax.f32 %v858_v19, 0.0  ;;  %v394_v23 = vadd.f32 %v2002_v14, %v393_v20 }
 0x1f3   :  { %1076 = vst.msk [vmem:[%s2352_s3 + $0x2d8] sm:$0xff] %vm984_vm0, %v975_v22  ;;  %v711_v24 = vadd.f32 %v710_v21, %v394_v23 }
 0x1f4   :  { %v543_v25 = vpop.f32.mrf.mxu2 }
 0x1f5   :  { %v860_v26 = vpop.f32.mrf.mxu3  ;;  %v544_v27 = vadd.f32 %v2002_v14, %v543_v25  ;;  %v926_v28 = vmax.f32 %v711_v24, 0.0 }
 0x1f7   :  { %1027 = vst.msk [vmem:[%s2352_s3 + $0x150] sm:$0xff] %vm984_vm0, %v926_v28  ;;  %v861_v29 = vadd.f32 %v860_v26, %v544_v27 }
 0x1f8   :  { %v396_v30 = vpop.f32.mrf.mxu0  ;;  %v713_v31 = vpop.f32.mrf.mxu1 }
 0x1f9   :  { %v976_v33 = vmax.f32 %v861_v29, 0.0  ;;  %v397_v34 = vadd.f32 %v2002_v14, %v396_v30 }
 0x1fb   :  { %1077 = vst.msk [vmem:[%s2352_s3 + $0x2e0] sm:$0xff] %vm984_vm0, %v976_v33  ;;  %v714_v35 = vadd.f32 %v713_v31, %v397_v34 }
 0x1fc   :  { %v546_v36 = vpop.f32.mrf.mxu2 }
 0x1fd   :  { %v863_v37 = vpop.f32.mrf.mxu3  ;;  %v547_v38 = vadd.f32 %v2002_v14, %v546_v36  ;;  %v927_v39 = vmax.f32 %v714_v35, 0.0 }
 0x1ff   :  { %1028 = vst.msk [vmem:[%s2352_s3 + $0x158] sm:$0xff] %vm984_vm0, %v927_v39  ;;  %v864_v40 = vadd.f32 %v863_v37, %v547_v38 }
 0x200   :  { %v399_v41 = vpop.f32.mrf.mxu0  ;;  %v716_v42 = vpop.f32.mrf.mxu1 }
 0x201   :  { %v977_v43 = vmax.f32 %v864_v40, 0.0  ;;  %v400_v44 = vadd.f32 %v2002_v14, %v399_v41 }
 0x203   :  { %1078 = vst.msk [vmem:[%s2352_s3 + $0x2e8] sm:$0xff] %vm984_vm0, %v977_v43  ;;  %v717_v45 = vadd.f32 %v716_v42, %v400_v44 }
 0x204   :  { %v549_v46 = vpop.f32.mrf.mxu2 }
 0x205   :  { %v866_v47 = vpop.f32.mrf.mxu3  ;;  %v550_v48 = vadd.f32 %v2002_v14, %v549_v46  ;;  %v928_v49 = vmax.f32 %v717_v45, 0.0 }
 0x207   :  { %1029 = vst.msk [vmem:[%s2352_s3 + $0x160] sm:$0xff] %vm984_vm0, %v928_v49  ;;  %v867_v50 = vadd.f32 %v866_v47, %v550_v48 }
 0x208   :  { %v402_v51 = vpop.f32.mrf.mxu0  ;;  %v719_v52 = vpop.f32.mrf.mxu1 }
 0x209   :  { %v978_v53 = vmax.f32 %v867_v50, 0.0  ;;  %v403_v54 = vadd.f32 %v2002_v14, %v402_v51 }
 0x20b   :  { %1079 = vst.msk [vmem:[%s2352_s3 + $0x2f0] sm:$0xff] %vm984_vm0, %v978_v53  ;;  %v720_v55 = vadd.f32 %v719_v52, %v403_v54 }
 0x20c   :  { %v552_v56 = vpop.f32.mrf.mxu2 }
 0x20d   :  { %v869_v57 = vpop.f32.mrf.mxu3  ;;  %v553_v58 = vadd.f32 %v2002_v14, %v552_v56  ;;  %v929_v59 = vmax.f32 %v720_v55, 0.0 }
 0x20f   :  { %1030 = vst.msk [vmem:[%s2352_s3 + $0x168] sm:$0xff] %vm984_vm0, %v929_v59  ;;  %v870_v60 = vadd.f32 %v869_v57, %v553_v58 }
 0x210   :  { %v405_v61 = vpop.f32.mrf.mxu0  ;;  %v722_v62 = vpop.f32.mrf.mxu1 }
 0x211   :  { %v979_v63 = vmax.f32 %v870_v60, 0.0  ;;  %v406_v0 = vadd.f32 %v2002_v14, %v405_v61 }
 0x213   :  { %1080 = vst.msk [vmem:[%s2352_s3 + $0x2f8] sm:$0xff] %vm984_vm0, %v979_v63  ;;  %v723_v1 = vadd.f32 %v722_v62, %v406_v0 }
 0x214   :  { %v555_v2 = vpop.f32.mrf.mxu2 }
 0x215   :  { %v872_v3 = vpop.f32.mrf.mxu3  ;;  %v556_v4 = vadd.f32 %v2002_v14, %v555_v2  ;;  %v930_v5 = vmax.f32 %v723_v1, 0.0 }
 0x217   :  { %1031 = vst.msk [vmem:[%s2352_s3 + $0x170] sm:$0xff] %vm984_vm0, %v930_v5  ;;  %v873_v6 = vadd.f32 %v872_v3, %v556_v4 }
 0x218   :  { %v408_v7 = vpop.f32.mrf.mxu0  ;;  %v725_v8 = vpop.f32.mrf.mxu1 }
 0x219   :  { %v980_v9 = vmax.f32 %v873_v6, 0.0  ;;  %v409_v10 = vadd.f32 %v2002_v14, %v408_v7 }
 0x21b   :  { %1081 = vst.msk [vmem:[%s2352_s3 + $0x300] sm:$0xff] %vm984_vm0, %v980_v9  ;;  %v726_v11 = vadd.f32 %v725_v8, %v409_v10 }
 0x21c   :  { %v558_v12 = vpop.f32.mrf.mxu2 }
 0x21d   :  { %v875_v13 = vpop.f32.mrf.mxu3  ;;  %v559_v15 = vadd.f32 %v2002_v14, %v558_v12  ;;  %v931_v16 = vmax.f32 %v726_v11, 0.0 }
 0x21f   :  { %1032 = vst.msk [vmem:[%s2352_s3 + $0x178] sm:$0xff] %vm984_vm0, %v931_v16  ;;  %v876_v32 = vadd.f32 %v875_v13, %v559_v15 }
 0x220   :  { %v411_v17 = vpop.f32.mrf.mxu0  ;;  %v728_v18 = vpop.f32.mrf.mxu1 }
 0x221   :  { %v981_v19 = vmax.f32 %v876_v32, 0.0  ;;  %v412_v20 = vadd.f32 %v2002_v14, %v411_v17 }
 0x223   :  { %1082 = vst.msk [vmem:[%s2352_s3 + $0x308] sm:$0xff] %vm984_vm0, %v981_v19  ;;  %v729_v21 = vadd.f32 %v728_v18, %v412_v20 }
 0x224   :  { %v561_v22 = vpop.f32.mrf.mxu2 }
 0x225   :  { %v878_v23 = vpop.f32.mrf.mxu3  ;;  %v562_v24 = vadd.f32 %v2002_v14, %v561_v22  ;;  %v932_v25 = vmax.f32 %v729_v21, 0.0 }
 0x227   :  { %1033 = vst.msk [vmem:[%s2352_s3 + $0x180] sm:$0xff] %vm984_vm0, %v932_v25  ;;  %v879_v26 = vadd.f32 %v878_v23, %v562_v24 }
 0x228   :  { %v414_v27 = vpop.f32.mrf.mxu0  ;;  %v731_v28 = vpop.f32.mrf.mxu1 }
 0x229   :  { %v982_v29 = vmax.f32 %v879_v26, 0.0  ;;  %v415_v30 = vadd.f32 %v2002_v14, %v414_v27 }
 0x22b   :  { %1083 = vst.msk [vmem:[%s2352_s3 + $0x310] sm:$0xff] %vm984_vm0, %v982_v29  ;;  %v732_v31 = vadd.f32 %v731_v28, %v415_v30 }
 0x22c   :  { %v564_v33 = vpop.f32.mrf.mxu2 }
 0x22d   :  { %v881_v34 = vpop.f32.mrf.mxu3  ;;  %v565_v35 = vadd.f32 %v2002_v14, %v564_v33  ;;  %v933_v36 = vmax.f32 %v732_v31, 0.0 }
 0x22f   :  { %1034 = vst.msk [vmem:[%s2352_s3 + $0x188] sm:$0xff] %vm984_vm0, %v933_v36  ;;  %v882_v37 = vadd.f32 %v881_v34, %v565_v35 }
 0x231   :  { %v983_v38 = vmax.f32 %v882_v37, 0.0 }
 0x233   :  { %1084 = vst.msk [vmem:[%s2352_s3 + $0x318] sm:$0xff] %vm984_vm0, %v983_v38 }

// kernel: dqn_forward.5
= control target key start
LH: loop header
LB: loop body
LE: loop exit
PB: predicated region body
PF: predicated region fallthrough
CT: control target
= control target key end

     0   :  { %vm507_vm0 = vcmask 523264   ;;  %s1108_s1 = inlined_call_operand.vmem [shape: f32[512,64], index: 1, kind: input, shape index: {}]   ;;  %s1109_s0 = inlined_call_operand.vmem [shape: f32[168,512], index: 0, kind: input, shape index: {}]   ;;  %s1110_s2 = inlined_call_operand.vmem [shape: f32[1,64], index: 2, kind: input, shape index: {}]   ;;  %s1111_s3 = inlined_call_operand.vmem [shape: f32[168,64], index: 3, kind: output, shape index: {}]  }
   0x1   :  { %v145_v0 = vld [vmem:[%s1108_s1 + $0x178] sm:$0xff]  ;;  %v144_v2 = vld [vmem:[%s1108_s1 + $0x170] sm:$0xff]  ;;  %v143_v6 = vld [vmem:[%s1108_s1 + $0x168] sm:$0xff] }
   0x2   :  { %v113_v1 = vld [vmem:[%s1108_s1 + $0x78] sm:$0xff]  ;;  %326 = vmatpush.msra.mxu2 %v145_v0  ;;  %v112_v4 = vld [vmem:[%s1108_s1 + $0x70] sm:$0xff]  ;;  %v111_v8 = vld [vmem:[%s1108_s1 + $0x68] sm:$0xff] }
   0x3   :  { %166 = vmatpush.msra.mxu0 %v113_v1  ;;  %v161_v3 = vld [vmem:[%s1108_s1 + $0x1f8] sm:$0xff]  ;;  %v160_v7 = vld [vmem:[%s1108_s1 + $0x1f0] sm:$0xff]  ;;  %v159_v10 = vld [vmem:[%s1108_s1 + $0x1e8] sm:$0xff] }
   0x4   :  { %v129_v5 = vld [vmem:[%s1108_s1 + $0xf8] sm:$0xff]  ;;  %406 = vmatpush.msra.mxu3 %v161_v3  ;;  %327 = vmatpush.msra.mxu2 %v144_v2  ;;  %v128_v9 = vld [vmem:[%s1108_s1 + $0xf0] sm:$0xff]  ;;  %v142_v11 = vld [vmem:[%s1108_s1 + $0x160] sm:$0xff] }
   0x5   :  { %246 = vmatpush.msra.mxu1 %v129_v5  ;;  %167 = vmatpush.msra.mxu0 %v112_v4  ;;  %v110_v12 = vld [vmem:[%s1108_s1 + $0x60] sm:$0xff]  ;;  %v127_v13 = vld [vmem:[%s1108_s1 + $0xe8] sm:$0xff]  ;;  %v141_v16 = vld [vmem:[%s1108_s1 + $0x158] sm:$0xff] }
   0x6   :  { %407 = vmatpush.msra.mxu3 %v160_v7  ;;  %328 = vmatpush.msra.mxu2 %v143_v6  ;;  %v158_v14 = vld [vmem:[%s1108_s1 + $0x1e0] sm:$0xff]  ;;  %v109_v17 = vld [vmem:[%s1108_s1 + $0x58] sm:$0xff]  ;;  %v140_v20 = vld [vmem:[%s1108_s1 + $0x150] sm:$0xff] }
   0x7   :  { %247 = vmatpush.msra.mxu1 %v128_v9  ;;  %168 = vmatpush.msra.mxu0 %v111_v8  ;;  %v126_v15 = vld [vmem:[%s1108_s1 + $0xe0] sm:$0xff]  ;;  %v157_v18 = vld [vmem:[%s1108_s1 + $0x1d8] sm:$0xff]  ;;  %v108_v21 = vld [vmem:[%s1108_s1 + $0x50] sm:$0xff] }
   0x8   :  { %408 = vmatpush.msra.mxu3 %v159_v10  ;;  %329 = vmatpush.msra.mxu2 %v142_v11  ;;  %v125_v19 = vld [vmem:[%s1108_s1 + $0xd8] sm:$0xff]  ;;  %v156_v22 = vld [vmem:[%s1108_s1 + $0x1d0] sm:$0xff]  ;;  %v139_v24 = vld [vmem:[%s1108_s1 + $0x148] sm:$0xff] }
   0x9   :  { %248 = vmatpush.msra.mxu1 %v127_v13  ;;  %169 = vmatpush.msra.mxu0 %v110_v12  ;;  %v124_v23 = vld [vmem:[%s1108_s1 + $0xd0] sm:$0xff]  ;;  %v107_v25 = vld [vmem:[%s1108_s1 + $0x48] sm:$0xff]  ;;  %v138_v28 = vld [vmem:[%s1108_s1 + $0x140] sm:$0xff] }
   0xa   :  { %409 = vmatpush.msra.mxu3 %v158_v14  ;;  %330 = vmatpush.msra.mxu2 %v141_v16  ;;  %v155_v26 = vld [vmem:[%s1108_s1 + $0x1c8] sm:$0xff]  ;;  %v106_v29 = vld [vmem:[%s1108_s1 + $0x40] sm:$0xff]  ;;  %v137_v32 = vld [vmem:[%s1108_s1 + $0x138] sm:$0xff] }
   0xb   :  { %249 = vmatpush.msra.mxu1 %v126_v15  ;;  %170 = vmatpush.msra.mxu0 %v109_v17  ;;  %v123_v27 = vld [vmem:[%s1108_s1 + $0xc8] sm:$0xff]  ;;  %v154_v30 = vld [vmem:[%s1108_s1 + $0x1c0] sm:$0xff]  ;;  %v105_v33 = vld [vmem:[%s1108_s1 + $0x38] sm:$0xff] }
   0xc   :  { %410 = vmatpush.msra.mxu3 %v157_v18  ;;  %331 = vmatpush.msra.mxu2 %v140_v20  ;;  %v122_v31 = vld [vmem:[%s1108_s1 + $0xc0] sm:$0xff]  ;;  %v153_v34 = vld [vmem:[%s1108_s1 + $0x1b8] sm:$0xff]  ;;  %v136_v36 = vld [vmem:[%s1108_s1 + $0x130] sm:$0xff] }
   0xd   :  { %250 = vmatpush.msra.mxu1 %v125_v19  ;;  %171 = vmatpush.msra.mxu0 %v108_v21  ;;  %v121_v35 = vld [vmem:[%s1108_s1 + $0xb8] sm:$0xff]  ;;  %v104_v37 = vld [vmem:[%s1108_s1 + $0x30] sm:$0xff]  ;;  %v135_v40 = vld [vmem:[%s1108_s1 + $0x128] sm:$0xff] }
   0xe   :  { %411 = vmatpush.msra.mxu3 %v156_v22  ;;  %332 = vmatpush.msra.mxu2 %v139_v24  ;;  %v152_v38 = vld [vmem:[%s1108_s1 + $0x1b0] sm:$0xff]  ;;  %v103_v41 = vld [vmem:[%s1108_s1 + $0x28] sm:$0xff]  ;;  %v134_v44 = vld [vmem:[%s1108_s1 + $0x120] sm:$0xff] }
   0xf   :  { %251 = vmatpush.msra.mxu1 %v124_v23  ;;  %172 = vmatpush.msra.mxu0 %v107_v25  ;;  %v120_v39 = vld [vmem:[%s1108_s1 + $0xb0] sm:$0xff]  ;;  %v151_v42 = vld [vmem:[%s1108_s1 + $0x1a8] sm:$0xff]  ;;  %v102_v45 = vld [vmem:[%s1108_s1 + $0x20] sm:$0xff] }
  0x10   :  { %412 = vmatpush.msra.mxu3 %v155_v26  ;;  %333 = vmatpush.msra.mxu2 %v138_v28  ;;  %v119_v43 = vld [vmem:[%s1108_s1 + $0xa8] sm:$0xff]  ;;  %v150_v46 = vld [vmem:[%s1108_s1 + $0x1a0] sm:$0xff]  ;;  %v133_v48 = vld [vmem:[%s1108_s1 + $0x118] sm:$0xff] }
  0x11   :  { %252 = vmatpush.msra.mxu1 %v123_v27  ;;  %173 = vmatpush.msra.mxu0 %v106_v29  ;;  %v118_v47 = vld [vmem:[%s1108_s1 + $0xa0] sm:$0xff]  ;;  %v101_v49 = vld [vmem:[%s1108_s1 + $0x18] sm:$0xff]  ;;  %v132_v52 = vld [vmem:[%s1108_s1 + $0x110] sm:$0xff] }
  0x12   :  { %413 = vmatpush.msra.mxu3 %v154_v30  ;;  %334 = vmatpush.msra.mxu2 %v137_v32  ;;  %v149_v50 = vld [vmem:[%s1108_s1 + $0x198] sm:$0xff]  ;;  %v100_v53 = vld [vmem:[%s1108_s1 + $0x10] sm:$0xff]  ;;  %v131_v56 = vld [vmem:[%s1108_s1 + $0x108] sm:$0xff] }
  0x13   :  { %253 = vmatpush.msra.mxu1 %v122_v31  ;;  %174 = vmatpush.msra.mxu0 %v105_v33  ;;  %v117_v51 = vld [vmem:[%s1108_s1 + $0x98] sm:$0xff]  ;;  %v148_v54 = vld [vmem:[%s1108_s1 + $0x190] sm:$0xff]  ;;  %v99_v57 = vld [vmem:[%s1108_s1 + $0x8] sm:$0xff] }
  0x14   :  { %414 = vmatpush.msra.mxu3 %v153_v34  ;;  %335 = vmatpush.msra.mxu2 %v136_v36  ;;  %v116_v55 = vld [vmem:[%s1108_s1 + $0x90] sm:$0xff]  ;;  %v147_v58 = vld [vmem:[%s1108_s1 + $0x188] sm:$0xff]  ;;  %v130_v60 = vld [vmem:[%s1108_s1 + $0x100] sm:$0xff] }
  0x15   :  { %254 = vmatpush.msra.mxu1 %v121_v35  ;;  %175 = vmatpush.msra.mxu0 %v104_v37  ;;  %v115_v59 = vld [vmem:[%s1108_s1 + $0x88] sm:$0xff]  ;;  %v98_v61 = vld [vmem:[%s1108_s1] sm:$0xff]  ;;  %v16_v62 = vld [vmem:[%s1109_s0 + $0x10] sm:$0xff] }
  0x16   :  { %415 = vmatpush.msra.mxu3 %v152_v38  ;;  %336 = vmatpush.msra.mxu2 %v135_v40  ;;  %v146_v63 = vld [vmem:[%s1108_s1 + $0x180] sm:$0xff]  ;;  %v17_v1 = vld [vmem:[%s1109_s0 + $0x18] sm:$0xff]  ;;  %v15_v3 = vld [vmem:[%s1109_s0 + $0x8] sm:$0xff] }
  0x17   :  { %255 = vmatpush.msra.mxu1 %v120_v39  ;;  %176 = vmatpush.msra.mxu0 %v103_v41  ;;  %v14_v0 = vld [vmem:[%s1109_s0] sm:$0xff]  ;;  %v20_v4 = vld [vmem:[%s1109_s0 + $0x30] sm:$0xff]  ;;  %v21_v6 = vld [vmem:[%s1109_s0 + $0x38] sm:$0xff] }
  0x18   :  { %416 = vmatpush.msra.mxu3 %v151_v42  ;;  %337 = vmatpush.msra.mxu2 %v134_v44  ;;  %v114_v2 = vld [vmem:[%s1108_s1 + $0x80] sm:$0xff]  ;;  %v19_v7 = vld [vmem:[%s1109_s0 + $0x28] sm:$0xff]  ;;  %v24_v8 = vld [vmem:[%s1109_s0 + $0x50] sm:$0xff] }
  0x19   :  { %256 = vmatpush.msra.mxu1 %v119_v43  ;;  %177 = vmatpush.msra.mxu0 %v102_v45  ;;  %v18_v5 = vld [vmem:[%s1109_s0 + $0x20] sm:$0xff]  ;;  %v25_v10 = vld [vmem:[%s1109_s0 + $0x58] sm:$0xff]  ;;  %v23_v11 = vld [vmem:[%s1109_s0 + $0x48] sm:$0xff] }
  0x1a   :  { %417 = vmatpush.msra.mxu3 %v150_v46  ;;  %338 = vmatpush.msra.mxu2 %v133_v48  ;;  %v22_v9 = vld [vmem:[%s1109_s0 + $0x40] sm:$0xff]  ;;  %v28_v12 = vld [vmem:[%s1109_s0 + $0x70] sm:$0xff]  ;;  %v29_v14 = vld [vmem:[%s1109_s0 + $0x78] sm:$0xff] }
  0x1b   :  { %257 = vmatpush.msra.mxu1 %v118_v47  ;;  %178 = vmatpush.msra.mxu0 %v101_v49  ;;  %v26_v13 = vld [vmem:[%s1109_s0 + $0x60] sm:$0xff]  ;;  %v27_v15 = vld [vmem:[%s1109_s0 + $0x68] sm:$0xff]  ;;  %v32_v16 = vld [vmem:[%s1109_s0 + $0x90] sm:$0xff] }
  0x1c   :  { %418 = vmatpush.msra.mxu3 %v149_v50  ;;  %339 = vmatpush.msra.mxu2 %v132_v52  ;;  %v30_v17 = vld [vmem:[%s1109_s0 + $0x80] sm:$0xff]  ;;  %v33_v18 = vld [vmem:[%s1109_s0 + $0x98] sm:$0xff]  ;;  %v31_v19 = vld [vmem:[%s1109_s0 + $0x88] sm:$0xff] }
  0x1d   :  { %258 = vmatpush.msra.mxu1 %v117_v51  ;;  %179 = vmatpush.msra.mxu0 %v100_v53  ;;  %v36_v20 = vld [vmem:[%s1109_s0 + $0xb0] sm:$0xff]  ;;  %v34_v21 = vld [vmem:[%s1109_s0 + $0xa0] sm:$0xff]  ;;  %v37_v22 = vld [vmem:[%s1109_s0 + $0xb8] sm:$0xff] }
  0x1e   :  { %419 = vmatpush.msra.mxu3 %v148_v54  ;;  %340 = vmatpush.msra.mxu2 %v131_v56  ;;  %v35_v23 = vld [vmem:[%s1109_s0 + $0xa8] sm:$0xff]  ;;  %v40_v24 = vld [vmem:[%s1109_s0 + $0xd0] sm:$0xff]  ;;  %v38_v25 = vld [vmem:[%s1109_s0 + $0xc0] sm:$0xff] }
  0x1f   :  { %259 = vmatpush.msra.mxu1 %v116_v55  ;;  %180 = vmatpush.msra.mxu0 %v99_v57  ;;  %v41_v26 = vld [vmem:[%s1109_s0 + $0xd8] sm:$0xff]  ;;  %v39_v27 = vld [vmem:[%s1109_s0 + $0xc8] sm:$0xff]  ;;  %v44_v28 = vld [vmem:[%s1109_s0 + $0xf0] sm:$0xff] }
  0x20   :  { %420 = vmatpush.msra.mxu3 %v147_v58  ;;  %341 = vmatpush.msra.mxu2 %v130_v60  ;;  %v42_v29 = vld [vmem:[%s1109_s0 + $0xe0] sm:$0xff]  ;;  %v45_v30 = vld [vmem:[%s1109_s0 + $0xf8] sm:$0xff]  ;;  %v43_v31 = vld [vmem:[%s1109_s0 + $0xe8] sm:$0xff] }
  0x21   :  { %260 = vmatpush.msra.mxu1 %v115_v59  ;;  %181 = vmatpush.msra.mxu0 %v98_v61  ;;  %v48_v32 = vld [vmem:[%s1109_s0 + $0x110] sm:$0xff]  ;;  %v46_v33 = vld [vmem:[%s1109_s0 + $0x100] sm:$0xff]  ;;  %v49_v34 = vld [vmem:[%s1109_s0 + $0x118] sm:$0xff] }
  0x22   :  { %342 = vmatmul.f32.vlgmr.msra.gmra.mxu2 %v16_v62  ;;  %421 = vmatpush.msra.mxu3 %v146_v63  ;;  %v47_v35 = vld [vmem:[%s1109_s0 + $0x108] sm:$0xff]  ;;  %v52_v36 = vld [vmem:[%s1109_s0 + $0x130] sm:$0xff]  ;;  %v50_v37 = vld [vmem:[%s1109_s0 + $0x120] sm:$0xff] }
  0x23   :  { %182 = vmatmul.f32.vlgmr.msra.gmra.mxu0 %v14_v0  ;;  %422 = vmatmul.f32.vlgmr.msra.gmra.mxu3 %v17_v1  ;;  %v53_v38 = vld [vmem:[%s1109_s0 + $0x138] sm:$0xff]  ;;  %v51_v39 = vld [vmem:[%s1109_s0 + $0x128] sm:$0xff]  ;;  %v56_v40 = vld [vmem:[%s1109_s0 + $0x150] sm:$0xff] }
  0x24   :  { %261 = vmatpush.msra.mxu1 %v114_v2  ;;  %v54_v41 = vld [vmem:[%s1109_s0 + $0x140] sm:$0xff]  ;;  %v57_v42 = vld [vmem:[%s1109_s0 + $0x158] sm:$0xff]  ;;  %v55_v43 = vld [vmem:[%s1109_s0 + $0x148] sm:$0xff] }
  0x25   :  { %262 = vmatmul.f32.vlgmr.msra.gmra.mxu1 %v15_v3  ;;  %v60_v44 = vld [vmem:[%s1109_s0 + $0x170] sm:$0xff]  ;;  %v58_v45 = vld [vmem:[%s1109_s0 + $0x160] sm:$0xff]  ;;  %v61_v46 = vld [vmem:[%s1109_s0 + $0x178] sm:$0xff] }
  0x26   :  { %v59_v47 = vld [vmem:[%s1109_s0 + $0x168] sm:$0xff]  ;;  %v64_v48 = vld [vmem:[%s1109_s0 + $0x190] sm:$0xff]  ;;  %v62_v49 = vld [vmem:[%s1109_s0 + $0x180] sm:$0xff] }
  0x27   :  { %v65_v50 = vld [vmem:[%s1109_s0 + $0x198] sm:$0xff]  ;;  %v63_v51 = vld [vmem:[%s1109_s0 + $0x188] sm:$0xff]  ;;  %v68_v52 = vld [vmem:[%s1109_s0 + $0x1b0] sm:$0xff] }
  0x28   :  { %v66_v53 = vld [vmem:[%s1109_s0 + $0x1a0] sm:$0xff]  ;;  %v69_v54 = vld [vmem:[%s1109_s0 + $0x1b8] sm:$0xff]  ;;  %v67_v55 = vld [vmem:[%s1109_s0 + $0x1a8] sm:$0xff] }
  0x29   :  { %v72_v56 = vld [vmem:[%s1109_s0 + $0x1d0] sm:$0xff]  ;;  %v70_v57 = vld [vmem:[%s1109_s0 + $0x1c0] sm:$0xff]  ;;  %v73_v58 = vld [vmem:[%s1109_s0 + $0x1d8] sm:$0xff] }
  0x2a   :  { %345 = vmatmul.f32.gmra.mxu2 %v20_v4  ;;  %v71_v59 = vld [vmem:[%s1109_s0 + $0x1c8] sm:$0xff]  ;;  %v76_v60 = vld [vmem:[%s1109_s0 + $0x1f0] sm:$0xff]  ;;  %v74_v61 = vld [vmem:[%s1109_s0 + $0x1e0] sm:$0xff] }
  0x2b   :  { %185 = vmatmul.f32.gmra.mxu0 %v18_v5  ;;  %425 = vmatmul.f32.gmra.mxu3 %v21_v6  ;;  %v77_v62 = vld [vmem:[%s1109_s0 + $0x1f8] sm:$0xff]  ;;  %v75_v63 = vld [vmem:[%s1109_s0 + $0x1e8] sm:$0xff]  ;;  %v941_v0 = vld [vmem:[%s1110_s2] ss:$0 sm:$0xff] }
  0x2c   :  { %v80_v1 = vld [vmem:[%s1109_s0 + $0x210] sm:$0xff]  ;;  %v78_v3 = vld [vmem:[%s1109_s0 + $0x200] sm:$0xff]  ;;  %v81_v4 = vld [vmem:[%s1109_s0 + $0x218] sm:$0xff] }
  0x2d   :  { %265 = vmatmul.f32.gmra.mxu1 %v19_v7  ;;  %v79_v7 = vld [vmem:[%s1109_s0 + $0x208] sm:$0xff] }
  0x32   :  { %348 = vmatmul.f32.gmra.mxu2 %v24_v8 }
  0x33   :  { %188 = vmatmul.f32.gmra.mxu0 %v22_v9  ;;  %428 = vmatmul.f32.gmra.mxu3 %v25_v10 }
  0x35   :  { %268 = vmatmul.f32.gmra.mxu1 %v23_v11 }
  0x3a   :  { %351 = vmatmul.f32.gmra.mxu2 %v28_v12  ;;  %v84_v12 = vld [vmem:[%s1109_s0 + $0x230] sm:$0xff] }
  0x3b   :  { %191 = vmatmul.f32.gmra.mxu0 %v26_v13  ;;  %431 = vmatmul.f32.gmra.mxu3 %v29_v14 }
  0x3d   :  { %271 = vmatmul.f32.gmra.mxu1 %v27_v15  ;;  %v82_v15 = vld [vmem:[%s1109_s0 + $0x220] sm:$0xff] }
  0x42   :  { %354 = vmatmul.f32.gmra.mxu2 %v32_v16  ;;  %v85_v16 = vld [vmem:[%s1109_s0 + $0x238] sm:$0xff] }
  0x43   :  { %194 = vmatmul.f32.gmra.mxu0 %v30_v17  ;;  %434 = vmatmul.f32.gmra.mxu3 %v33_v18 }
  0x45   :  { %274 = vmatmul.f32.gmra.mxu1 %v31_v19 }
  0x4a   :  { %357 = vmatmul.f32.gmra.mxu2 %v36_v20  ;;  %v83_v20 = vld [vmem:[%s1109_s0 + $0x228] sm:$0xff] }
  0x4b   :  { %197 = vmatmul.f32.gmra.mxu0 %v34_v21  ;;  %437 = vmatmul.f32.gmra.mxu3 %v37_v22 }
  0x4d   :  { %277 = vmatmul.f32.gmra.mxu1 %v35_v23 }
  0x52   :  { %360 = vmatmul.f32.gmra.mxu2 %v40_v24 }
  0x53   :  { %200 = vmatmul.f32.gmra.mxu0 %v38_v25  ;;  %440 = vmatmul.f32.gmra.mxu3 %v41_v26  ;;  %v88_v25 = vld [vmem:[%s1109_s0 + $0x250] sm:$0xff] }
  0x55   :  { %280 = vmatmul.f32.gmra.mxu1 %v39_v27 }
  0x5a   :  { %363 = vmatmul.f32.gmra.mxu2 %v44_v28  ;;  %v86_v28 = vld [vmem:[%s1109_s0 + $0x240] sm:$0xff] }
  0x5b   :  { %203 = vmatmul.f32.gmra.mxu0 %v42_v29  ;;  %443 = vmatmul.f32.gmra.mxu3 %v45_v30  ;;  %v89_v29 = vld [vmem:[%s1109_s0 + $0x258] sm:$0xff] }
  0x5d   :  { %283 = vmatmul.f32.gmra.mxu1 %v43_v31 }
  0x62   :  { %366 = vmatmul.f32.gmra.mxu2 %v48_v32 }
  0x63   :  { %206 = vmatmul.f32.gmra.mxu0 %v46_v33  ;;  %446 = vmatmul.f32.gmra.mxu3 %v49_v34  ;;  %v87_v33 = vld [vmem:[%s1109_s0 + $0x248] sm:$0xff] }
  0x65   :  { %286 = vmatmul.f32.gmra.mxu1 %v47_v35 }
  0x6a   :  { %369 = vmatmul.f32.gmra.mxu2 %v52_v36 }
  0x6b   :  { %209 = vmatmul.f32.gmra.mxu0 %v50_v37  ;;  %449 = vmatmul.f32.gmra.mxu3 %v53_v38  ;;  %v92_v38 = vld [vmem:[%s1109_s0 + $0x270] sm:$0xff] }
  0x6d   :  { %289 = vmatmul.f32.gmra.mxu1 %v51_v39 }
  0x72   :  { %372 = vmatmul.f32.gmra.mxu2 %v56_v40 }
  0x73   :  { %212 = vmatmul.f32.gmra.mxu0 %v54_v41  ;;  %452 = vmatmul.f32.gmra.mxu3 %v57_v42  ;;  %v90_v41 = vld [vmem:[%s1109_s0 + $0x260] sm:$0xff]  ;;  %v93_v42 = vld [vmem:[%s1109_s0 + $0x278] sm:$0xff] }
  0x75   :  { %292 = vmatmul.f32.gmra.mxu1 %v55_v43 }
  0x7a   :  { %375 = vmatmul.f32.gmra.mxu2 %v60_v44 }
  0x7b   :  { %215 = vmatmul.f32.gmra.mxu0 %v58_v45  ;;  %455 = vmatmul.f32.gmra.mxu3 %v61_v46  ;;  %v91_v46 = vld [vmem:[%s1109_s0 + $0x268] sm:$0xff] }
  0x7d   :  { %295 = vmatmul.f32.gmra.mxu1 %v59_v47 }
  0x82   :  { %378 = vmatmul.f32.gmra.mxu2 %v64_v48 }
  0x83   :  { %218 = vmatmul.f32.gmra.mxu0 %v62_v49  ;;  %458 = vmatmul.f32.gmra.mxu3 %v65_v50 }
  0x85   :  { %298 = vmatmul.f32.gmra.mxu1 %v63_v51  ;;  %v96_v51 = vld [vmem:[%s1109_s0 + $0x290] sm:$0xff] }
  0x8a   :  { %381 = vmatmul.f32.gmra.mxu2 %v68_v52 }
  0x8b   :  { %221 = vmatmul.f32.gmra.mxu0 %v66_v53  ;;  %461 = vmatmul.f32.gmra.mxu3 %v69_v54  ;;  %v94_v54 = vld [vmem:[%s1109_s0 + $0x280] sm:$0xff] }
  0x8d   :  { %301 = vmatmul.f32.gmra.mxu1 %v67_v55  ;;  %v97_v55 = vld [vmem:[%s1109_s0 + $0x298] sm:$0xff] }
  0x92   :  { %384 = vmatmul.f32.gmra.mxu2 %v72_v56 }
  0x93   :  { %224 = vmatmul.f32.gmra.mxu0 %v70_v57  ;;  %464 = vmatmul.f32.gmra.mxu3 %v73_v58 }
  0x95   :  { %304 = vmatmul.f32.gmra.mxu1 %v71_v59  ;;  %v95_v59 = vld [vmem:[%s1109_s0 + $0x288] sm:$0xff] }
  0x9a   :  { %387 = vmatmul.f32.gmra.mxu2 %v76_v60 }
  0x9b   :  { %227 = vmatmul.f32.gmra.mxu0 %v74_v61  ;;  %467 = vmatmul.f32.gmra.mxu3 %v77_v62 }
  0x9d   :  { %307 = vmatmul.f32.gmra.mxu1 %v75_v63 }
  0xa0   :  { %v183_v2 = vpop.f32.mrf.mxu0 }
  0xa1   :  { %v184_v5 = vadd.f32 %v941_v0, %v183_v2 }
  0xa2   :  { %390 = vmatmul.f32.gmra.mxu2 %v80_v1  ;;  %v263_v6 = vpop.f32.mrf.mxu1 }
  0xa3   :  { %v264_v8 = vadd.f32 %v263_v6, %v184_v5  ;;  %230 = vmatmul.f32.gmra.mxu0 %v78_v3  ;;  %470 = vmatmul.f32.gmra.mxu3 %v81_v4 }
  0xa5   :  { %v343_v9 = vpop.f32.mrf.mxu2  ;;  %310 = vmatmul.f32.gmra.mxu1 %v79_v7 }
  0xa6   :  { %v344_v10 = vadd.f32 %v343_v9, %v264_v8  ;;  %v423_v11 = vpop.f32.mrf.mxu3 }
  0xa8   :  { %v424_v13 = vadd.f32 %v423_v11, %v344_v10  ;;  %v186_v14 = vpop.f32.mrf.mxu0 }
  0xa9   :  { %v187_v17 = vadd.f32 %v941_v0, %v186_v14 }
  0xaa   :  { %v486_v18 = vmax.f32 %v424_v13, 0.0  ;;  %393 = vmatmul.f32.gmra.mxu2 %v84_v12  ;;  %v266_v19 = vpop.f32.mrf.mxu1 }
  0xab   :  { %v267_v21 = vadd.f32 %v266_v19, %v187_v17  ;;  %233 = vmatmul.f32.gmra.mxu0 %v82_v15  ;;  %473 = vmatmul.f32.gmra.mxu3 %v85_v16 }
  0xac   :  { %508 = vst.msk [vmem:[%s1111_s3] sm:$0xff] %vm507_vm0, %v486_v18 }
  0xad   :  { %v346_v22 = vpop.f32.mrf.mxu2  ;;  %313 = vmatmul.f32.gmra.mxu1 %v83_v20 }
  0xae   :  { %v347_v23 = vadd.f32 %v346_v22, %v267_v21  ;;  %v426_v24 = vpop.f32.mrf.mxu3 }
  0xb0   :  { %v427_v26 = vadd.f32 %v426_v24, %v347_v23  ;;  %v189_v27 = vpop.f32.mrf.mxu0 }
  0xb1   :  { %v190_v30 = vadd.f32 %v941_v0, %v189_v27 }
  0xb2   :  { %v487_v31 = vmax.f32 %v427_v26, 0.0  ;;  %396 = vmatmul.f32.gmra.mxu2 %v88_v25  ;;  %v269_v32 = vpop.f32.mrf.mxu1 }
  0xb3   :  { %v270_v34 = vadd.f32 %v269_v32, %v190_v30  ;;  %236 = vmatmul.f32.gmra.mxu0 %v86_v28  ;;  %476 = vmatmul.f32.gmra.mxu3 %v89_v29 }
  0xb4   :  { %509 = vst.msk [vmem:[%s1111_s3 + $0x8] sm:$0xff] %vm507_vm0, %v487_v31 }
  0xb5   :  { %v349_v35 = vpop.f32.mrf.mxu2  ;;  %316 = vmatmul.f32.gmra.mxu1 %v87_v33 }
  0xb6   :  { %v350_v36 = vadd.f32 %v349_v35, %v270_v34  ;;  %v429_v37 = vpop.f32.mrf.mxu3 }
  0xb8   :  { %v430_v39 = vadd.f32 %v429_v37, %v350_v36  ;;  %v192_v40 = vpop.f32.mrf.mxu0 }
  0xb9   :  { %v193_v43 = vadd.f32 %v941_v0, %v192_v40 }
  0xba   :  { %v488_v44 = vmax.f32 %v430_v39, 0.0  ;;  %399 = vmatmul.f32.gmra.mxu2 %v92_v38  ;;  %v272_v45 = vpop.f32.mrf.mxu1 }
  0xbb   :  { %v273_v47 = vadd.f32 %v272_v45, %v193_v43  ;;  %239 = vmatmul.f32.gmra.mxu0 %v90_v41  ;;  %479 = vmatmul.f32.gmra.mxu3 %v93_v42 }
  0xbc   :  { %510 = vst.msk [vmem:[%s1111_s3 + $0x10] sm:$0xff] %vm507_vm0, %v488_v44 }
  0xbd   :  { %v352_v48 = vpop.f32.mrf.mxu2  ;;  %319 = vmatmul.f32.gmra.mxu1 %v91_v46 }
  0xbe   :  { %v353_v49 = vadd.f32 %v352_v48, %v273_v47  ;;  %v432_v50 = vpop.f32.mrf.mxu3 }
  0xc0   :  { %v433_v52 = vadd.f32 %v432_v50, %v353_v49  ;;  %v195_v53 = vpop.f32.mrf.mxu0 }
  0xc1   :  { %v196_v56 = vadd.f32 %v941_v0, %v195_v53 }
  0xc2   :  { %v489_v57 = vmax.f32 %v433_v52, 0.0  ;;  %402 = vmatmul.f32.gmra.mxu2 %v96_v51  ;;  %v275_v58 = vpop.f32.mrf.mxu1 }
  0xc3   :  { %v276_v60 = vadd.f32 %v275_v58, %v196_v56  ;;  %242 = vmatmul.f32.gmra.mxu0 %v94_v54  ;;  %482 = vmatmul.f32.gmra.mxu3 %v97_v55 }
  0xc4   :  { %511 = vst.msk [vmem:[%s1111_s3 + $0x18] sm:$0xff] %vm507_vm0, %v489_v57 }
  0xc5   :  { %v355_v61 = vpop.f32.mrf.mxu2  ;;  %322 = vmatmul.f32.gmra.mxu1 %v95_v59 }
  0xc6   :  { %v356_v62 = vadd.f32 %v355_v61, %v276_v60  ;;  %v435_v63 = vpop.f32.mrf.mxu3 }
  0xc8   :  { %v436_v1 = vadd.f32 %v435_v63, %v356_v62  ;;  %v198_v2 = vpop.f32.mrf.mxu0 }
  0xc9   :  { %v199_v3 = vadd.f32 %v941_v0, %v198_v2 }
  0xca   :  { %v490_v4 = vmax.f32 %v436_v1, 0.0  ;;  %v278_v5 = vpop.f32.mrf.mxu1 }
  0xcb   :  { %v279_v6 = vadd.f32 %v278_v5, %v199_v3 }
  0xcc   :  { %512 = vst.msk [vmem:[%s1111_s3 + $0x20] sm:$0xff] %vm507_vm0, %v490_v4 }
  0xcd   :  { %v358_v7 = vpop.f32.mrf.mxu2 }
  0xce   :  { %v359_v8 = vadd.f32 %v358_v7, %v279_v6  ;;  %v438_v9 = vpop.f32.mrf.mxu3 }
  0xd0   :  { %v439_v10 = vadd.f32 %v438_v9, %v359_v8  ;;  %v201_v11 = vpop.f32.mrf.mxu0 }
  0xd1   :  { %v202_v12 = vadd.f32 %v941_v0, %v201_v11 }
  0xd2   :  { %v491_v13 = vmax.f32 %v439_v10, 0.0  ;;  %v281_v14 = vpop.f32.mrf.mxu1 }
  0xd3   :  { %v282_v15 = vadd.f32 %v281_v14, %v202_v12 }
  0xd4   :  { %513 = vst.msk [vmem:[%s1111_s3 + $0x28] sm:$0xff] %vm507_vm0, %v491_v13 }
  0xd5   :  { %v361_v16 = vpop.f32.mrf.mxu2 }
  0xd6   :  { %v362_v17 = vadd.f32 %v361_v16, %v282_v15  ;;  %v441_v18 = vpop.f32.mrf.mxu3 }
  0xd8   :  { %v442_v19 = vadd.f32 %v441_v18, %v362_v17  ;;  %v204_v20 = vpop.f32.mrf.mxu0 }
  0xd9   :  { %v205_v21 = vadd.f32 %v941_v0, %v204_v20 }
  0xda   :  { %v492_v22 = vmax.f32 %v442_v19, 0.0  ;;  %v284_v23 = vpop.f32.mrf.mxu1 }
  0xdb   :  { %v285_v24 = vadd.f32 %v284_v23, %v205_v21 }
  0xdc   :  { %514 = vst.msk [vmem:[%s1111_s3 + $0x30] sm:$0xff] %vm507_vm0, %v492_v22 }
  0xdd   :  { %v364_v25 = vpop.f32.mrf.mxu2 }
  0xde   :  { %v365_v26 = vadd.f32 %v364_v25, %v285_v24  ;;  %v444_v27 = vpop.f32.mrf.mxu3 }
  0xe0   :  { %v445_v28 = vadd.f32 %v444_v27, %v365_v26  ;;  %v207_v29 = vpop.f32.mrf.mxu0 }
  0xe1   :  { %v208_v30 = vadd.f32 %v941_v0, %v207_v29 }
  0xe2   :  { %v493_v31 = vmax.f32 %v445_v28, 0.0  ;;  %v287_v32 = vpop.f32.mrf.mxu1 }
  0xe3   :  { %v288_v33 = vadd.f32 %v287_v32, %v208_v30 }
  0xe4   :  { %515 = vst.msk [vmem:[%s1111_s3 + $0x38] sm:$0xff] %vm507_vm0, %v493_v31 }
  0xe5   :  { %v367_v34 = vpop.f32.mrf.mxu2 }
  0xe6   :  { %v368_v35 = vadd.f32 %v367_v34, %v288_v33  ;;  %v447_v36 = vpop.f32.mrf.mxu3 }
  0xe8   :  { %v448_v37 = vadd.f32 %v447_v36, %v368_v35  ;;  %v210_v38 = vpop.f32.mrf.mxu0 }
  0xe9   :  { %v211_v39 = vadd.f32 %v941_v0, %v210_v38 }
  0xea   :  { %v494_v40 = vmax.f32 %v448_v37, 0.0  ;;  %v290_v41 = vpop.f32.mrf.mxu1 }
  0xeb   :  { %v291_v42 = vadd.f32 %v290_v41, %v211_v39 }
  0xec   :  { %516 = vst.msk [vmem:[%s1111_s3 + $0x40] sm:$0xff] %vm507_vm0, %v494_v40 }
  0xed   :  { %v370_v43 = vpop.f32.mrf.mxu2 }
  0xee   :  { %v371_v44 = vadd.f32 %v370_v43, %v291_v42  ;;  %v450_v45 = vpop.f32.mrf.mxu3 }
  0xf0   :  { %v451_v46 = vadd.f32 %v450_v45, %v371_v44  ;;  %v213_v47 = vpop.f32.mrf.mxu0 }
  0xf1   :  { %v214_v48 = vadd.f32 %v941_v0, %v213_v47 }
  0xf2   :  { %v495_v49 = vmax.f32 %v451_v46, 0.0  ;;  %v293_v50 = vpop.f32.mrf.mxu1 }
  0xf3   :  { %v294_v51 = vadd.f32 %v293_v50, %v214_v48 }
  0xf4   :  { %517 = vst.msk [vmem:[%s1111_s3 + $0x48] sm:$0xff] %vm507_vm0, %v495_v49 }
  0xf5   :  { %v373_v52 = vpop.f32.mrf.mxu2 }
  0xf6   :  { %v374_v53 = vadd.f32 %v373_v52, %v294_v51  ;;  %v453_v54 = vpop.f32.mrf.mxu3 }
  0xf8   :  { %v454_v55 = vadd.f32 %v453_v54, %v374_v53  ;;  %v216_v56 = vpop.f32.mrf.mxu0 }
  0xf9   :  { %v217_v57 = vadd.f32 %v941_v0, %v216_v56 }
  0xfa   :  { %v496_v58 = vmax.f32 %v454_v55, 0.0  ;;  %v296_v59 = vpop.f32.mrf.mxu1 }
  0xfb   :  { %v297_v60 = vadd.f32 %v296_v59, %v217_v57 }
  0xfc   :  { %518 = vst.msk [vmem:[%s1111_s3 + $0x50] sm:$0xff] %vm507_vm0, %v496_v58 }
  0xfd   :  { %v376_v61 = vpop.f32.mrf.mxu2 }
  0xfe   :  { %v377_v62 = vadd.f32 %v376_v61, %v297_v60  ;;  %v456_v63 = vpop.f32.mrf.mxu3 }
 0x100   :  { %v457_v1 = vadd.f32 %v456_v63, %v377_v62  ;;  %v219_v2 = vpop.f32.mrf.mxu0 }
 0x101   :  { %v220_v3 = vadd.f32 %v941_v0, %v219_v2 }
 0x102   :  { %v497_v4 = vmax.f32 %v457_v1, 0.0  ;;  %v299_v5 = vpop.f32.mrf.mxu1 }
 0x103   :  { %v300_v6 = vadd.f32 %v299_v5, %v220_v3 }
 0x104   :  { %519 = vst.msk [vmem:[%s1111_s3 + $0x58] sm:$0xff] %vm507_vm0, %v497_v4 }
 0x105   :  { %v379_v7 = vpop.f32.mrf.mxu2 }
 0x106   :  { %v380_v8 = vadd.f32 %v379_v7, %v300_v6  ;;  %v459_v9 = vpop.f32.mrf.mxu3 }
 0x108   :  { %v460_v10 = vadd.f32 %v459_v9, %v380_v8  ;;  %v222_v11 = vpop.f32.mrf.mxu0 }
 0x109   :  { %v223_v12 = vadd.f32 %v941_v0, %v222_v11 }
 0x10a   :  { %v498_v13 = vmax.f32 %v460_v10, 0.0  ;;  %v302_v14 = vpop.f32.mrf.mxu1 }
 0x10b   :  { %v303_v15 = vadd.f32 %v302_v14, %v223_v12 }
 0x10c   :  { %520 = vst.msk [vmem:[%s1111_s3 + $0x60] sm:$0xff] %vm507_vm0, %v498_v13 }
 0x10d   :  { %v382_v16 = vpop.f32.mrf.mxu2 }
 0x10e   :  { %v383_v17 = vadd.f32 %v382_v16, %v303_v15  ;;  %v462_v18 = vpop.f32.mrf.mxu3 }
 0x110   :  { %v463_v19 = vadd.f32 %v462_v18, %v383_v17  ;;  %v225_v20 = vpop.f32.mrf.mxu0 }
 0x111   :  { %v226_v21 = vadd.f32 %v941_v0, %v225_v20 }
 0x112   :  { %v499_v22 = vmax.f32 %v463_v19, 0.0  ;;  %v305_v23 = vpop.f32.mrf.mxu1 }
 0x113   :  { %v306_v24 = vadd.f32 %v305_v23, %v226_v21 }
 0x114   :  { %521 = vst.msk [vmem:[%s1111_s3 + $0x68] sm:$0xff] %vm507_vm0, %v499_v22 }
 0x115   :  { %v385_v25 = vpop.f32.mrf.mxu2 }
 0x116   :  { %v386_v26 = vadd.f32 %v385_v25, %v306_v24  ;;  %v465_v27 = vpop.f32.mrf.mxu3 }
 0x118   :  { %v466_v28 = vadd.f32 %v465_v27, %v386_v26  ;;  %v228_v29 = vpop.f32.mrf.mxu0 }
 0x119   :  { %v229_v30 = vadd.f32 %v941_v0, %v228_v29 }
 0x11a   :  { %v500_v31 = vmax.f32 %v466_v28, 0.0  ;;  %v308_v32 = vpop.f32.mrf.mxu1 }
 0x11b   :  { %v309_v33 = vadd.f32 %v308_v32, %v229_v30 }
 0x11c   :  { %522 = vst.msk [vmem:[%s1111_s3 + $0x70] sm:$0xff] %vm507_vm0, %v500_v31 }
 0x11d   :  { %v388_v34 = vpop.f32.mrf.mxu2 }
 0x11e   :  { %v389_v35 = vadd.f32 %v388_v34, %v309_v33  ;;  %v468_v36 = vpop.f32.mrf.mxu3 }
 0x120   :  { %v469_v37 = vadd.f32 %v468_v36, %v389_v35  ;;  %v231_v38 = vpop.f32.mrf.mxu0 }
 0x121   :  { %v232_v39 = vadd.f32 %v941_v0, %v231_v38 }
 0x122   :  { %v501_v40 = vmax.f32 %v469_v37, 0.0  ;;  %v311_v41 = vpop.f32.mrf.mxu1 }
 0x123   :  { %v312_v42 = vadd.f32 %v311_v41, %v232_v39 }
 0x124   :  { %523 = vst.msk [vmem:[%s1111_s3 + $0x78] sm:$0xff] %vm507_vm0, %v501_v40 }
 0x125   :  { %v391_v43 = vpop.f32.mrf.mxu2 }
 0x126   :  { %v392_v44 = vadd.f32 %v391_v43, %v312_v42  ;;  %v471_v45 = vpop.f32.mrf.mxu3 }
 0x128   :  { %v472_v46 = vadd.f32 %v471_v45, %v392_v44  ;;  %v234_v47 = vpop.f32.mrf.mxu0 }
 0x129   :  { %v235_v48 = vadd.f32 %v941_v0, %v234_v47 }
 0x12a   :  { %v502_v49 = vmax.f32 %v472_v46, 0.0  ;;  %v314_v50 = vpop.f32.mrf.mxu1 }
 0x12b   :  { %v315_v51 = vadd.f32 %v314_v50, %v235_v48 }
 0x12c   :  { %524 = vst.msk [vmem:[%s1111_s3 + $0x80] sm:$0xff] %vm507_vm0, %v502_v49 }
 0x12d   :  { %v394_v52 = vpop.f32.mrf.mxu2 }
 0x12e   :  { %v395_v53 = vadd.f32 %v394_v52, %v315_v51  ;;  %v474_v54 = vpop.f32.mrf.mxu3 }
 0x130   :  { %v475_v55 = vadd.f32 %v474_v54, %v395_v53  ;;  %v237_v56 = vpop.f32.mrf.mxu0 }
 0x131   :  { %v238_v57 = vadd.f32 %v941_v0, %v237_v56 }
 0x132   :  { %v503_v58 = vmax.f32 %v475_v55, 0.0  ;;  %v317_v59 = vpop.f32.mrf.mxu1 }
 0x133   :  { %v318_v60 = vadd.f32 %v317_v59, %v238_v57 }
 0x134   :  { %525 = vst.msk [vmem:[%s1111_s3 + $0x88] sm:$0xff] %vm507_vm0, %v503_v58 }
 0x135   :  { %v397_v61 = vpop.f32.mrf.mxu2 }
 0x136   :  { %v398_v62 = vadd.f32 %v397_v61, %v318_v60  ;;  %v477_v63 = vpop.f32.mrf.mxu3 }
 0x138   :  { %v478_v1 = vadd.f32 %v477_v63, %v398_v62  ;;  %v240_v2 = vpop.f32.mrf.mxu0 }
 0x139   :  { %v241_v3 = vadd.f32 %v941_v0, %v240_v2 }
 0x13a   :  { %v504_v4 = vmax.f32 %v478_v1, 0.0  ;;  %v320_v5 = vpop.f32.mrf.mxu1 }
 0x13b   :  { %v321_v6 = vadd.f32 %v320_v5, %v241_v3 }
 0x13c   :  { %526 = vst.msk [vmem:[%s1111_s3 + $0x90] sm:$0xff] %vm507_vm0, %v504_v4 }
 0x13d   :  { %v400_v7 = vpop.f32.mrf.mxu2 }
 0x13e   :  { %v401_v8 = vadd.f32 %v400_v7, %v321_v6  ;;  %v480_v9 = vpop.f32.mrf.mxu3 }
 0x140   :  { %v481_v10 = vadd.f32 %v480_v9, %v401_v8  ;;  %v243_v11 = vpop.f32.mrf.mxu0 }
 0x141   :  { %v244_v12 = vadd.f32 %v941_v0, %v243_v11 }
 0x142   :  { %v505_v13 = vmax.f32 %v481_v10, 0.0  ;;  %v323_v14 = vpop.f32.mrf.mxu1 }
 0x143   :  { %v324_v15 = vadd.f32 %v323_v14, %v244_v12 }
 0x144   :  { %527 = vst.msk [vmem:[%s1111_s3 + $0x98] sm:$0xff] %vm507_vm0, %v505_v13 }
 0x145   :  { %v403_v16 = vpop.f32.mrf.mxu2 }
 0x146   :  { %v404_v17 = vadd.f32 %v403_v16, %v324_v15  ;;  %v483_v18 = vpop.f32.mrf.mxu3 }
 0x148   :  { %v484_v19 = vadd.f32 %v483_v18, %v404_v17 }
 0x14a   :  { %v506_v20 = vmax.f32 %v484_v19, 0.0 }
 0x14c   :  { %528 = vst.msk [vmem:[%s1111_s3 + $0xa0] sm:$0xff] %vm507_vm0, %v506_v20 }

// kernel: dqn_forward.6
= control target key start
LH: loop header
LB: loop body
LE: loop exit
PB: predicated region body
PF: predicated region fallthrough
CT: control target
= control target key end

     0   :  { %vm456_vm0 = vcmask 523264   ;;  %s1075_s1 = inlined_call_operand.vmem [shape: f32[640,64], index: 1, kind: input, shape index: {}]   ;;  %s1076_s0 = inlined_call_operand.vmem [shape: f32[104,640], index: 0, kind: input, shape index: {}]   ;;  %s1077_s2 = inlined_call_operand.vmem [shape: f32[1,64], index: 2, kind: input, shape index: {}]   ;;  %s1078_s3 = inlined_call_operand.vmem [shape: f32[104,64], index: 3, kind: output, shape index: {}]  }
   0x1   :  { %v94_v0 = vld [vmem:[%s1075_s1 + $0x78] sm:$0xff]  ;;  %v93_v1 = vld [vmem:[%s1075_s1 + $0x70] sm:$0xff]  ;;  %v92_v2 = vld [vmem:[%s1075_s1 + $0x68] sm:$0xff] }
   0x2   :  { %474 = vmatpush.msra.mxu1 %v94_v0  ;;  %475 = vmatpush.msra.mxu2 %v94_v0  ;;  %v91_v3 = vld [vmem:[%s1075_s1 + $0x60] sm:$0xff]  ;;  %v90_v4 = vld [vmem:[%s1075_s1 + $0x58] sm:$0xff]  ;;  %v89_v5 = vld [vmem:[%s1075_s1 + $0x50] sm:$0xff] }
   0x3   :  { %476 = vmatpush.msra.mxu3 %v94_v0  ;;  %163 = vmatpush.msra.mxu0 %v94_v0  ;;  %v88_v6 = vld [vmem:[%s1075_s1 + $0x48] sm:$0xff]  ;;  %v87_v7 = vld [vmem:[%s1075_s1 + $0x40] sm:$0xff]  ;;  %v86_v8 = vld [vmem:[%s1075_s1 + $0x38] sm:$0xff] }
   0x4   :  { %477 = vmatpush.msra.mxu1 %v93_v1  ;;  %478 = vmatpush.msra.mxu2 %v93_v1  ;;  %v85_v9 = vld [vmem:[%s1075_s1 + $0x30] sm:$0xff]  ;;  %v84_v10 = vld [vmem:[%s1075_s1 + $0x28] sm:$0xff]  ;;  %v83_v11 = vld [vmem:[%s1075_s1 + $0x20] sm:$0xff] }
   0x5   :  { %479 = vmatpush.msra.mxu3 %v93_v1  ;;  %164 = vmatpush.msra.mxu0 %v93_v1  ;;  %v82_v12 = vld [vmem:[%s1075_s1 + $0x18] sm:$0xff]  ;;  %v81_v13 = vld [vmem:[%s1075_s1 + $0x10] sm:$0xff]  ;;  %v80_v14 = vld [vmem:[%s1075_s1 + $0x8] sm:$0xff] }
   0x6   :  { %480 = vmatpush.msra.mxu1 %v92_v2  ;;  %481 = vmatpush.msra.mxu2 %v92_v2  ;;  %v79_v15 = vld [vmem:[%s1075_s1] sm:$0xff]  ;;  %v126_v18 = vld [vmem:[%s1075_s1 + $0x178] sm:$0xff]  ;;  %v125_v20 = vld [vmem:[%s1075_s1 + $0x170] sm:$0xff] }
   0x7   :  { %482 = vmatpush.msra.mxu3 %v92_v2  ;;  %165 = vmatpush.msra.mxu0 %v92_v2  ;;  %v34_v16 = vld [vmem:[%s1076_s0 + $0xa0] sm:$0xff]  ;;  %v110_v19 = vld [vmem:[%s1075_s1 + $0xf8] sm:$0xff]  ;;  %v109_v21 = vld [vmem:[%s1075_s1 + $0xf0] sm:$0xff] }
   0x8   :  { %483 = vmatpush.msra.mxu1 %v91_v3  ;;  %484 = vmatpush.msra.mxu2 %v91_v3  ;;  %v54_v17 = vld [vmem:[%s1076_s0 + $0x140] sm:$0xff]  ;;  %v142_v22 = vld [vmem:[%s1075_s1 + $0x1f8] sm:$0xff]  ;;  %v124_v24 = vld [vmem:[%s1075_s1 + $0x168] sm:$0xff] }
   0x9   :  { %485 = vmatpush.msra.mxu3 %v91_v3  ;;  %166 = vmatpush.msra.mxu0 %v91_v3  ;;  %v14_v23 = vld [vmem:[%s1076_s0] sm:$0xff]  ;;  %v108_v25 = vld [vmem:[%s1075_s1 + $0xe8] sm:$0xff]  ;;  %v141_v26 = vld [vmem:[%s1075_s1 + $0x1f0] sm:$0xff] }
   0xa   :  { %486 = vmatpush.msra.mxu1 %v90_v4  ;;  %487 = vmatpush.msra.mxu2 %v90_v4  ;;  %v158_v27 = vld [vmem:[%s1075_s1 + $0x278] sm:$0xff]  ;;  %v123_v28 = vld [vmem:[%s1075_s1 + $0x160] sm:$0xff]  ;;  %v140_v30 = vld [vmem:[%s1075_s1 + $0x1e8] sm:$0xff] }
   0xb   :  { %488 = vmatpush.msra.mxu3 %v90_v4  ;;  %167 = vmatpush.msra.mxu0 %v90_v4  ;;  %v107_v29 = vld [vmem:[%s1075_s1 + $0xe0] sm:$0xff]  ;;  %v39_v31 = vld [vmem:[%s1076_s0 + $0xc8] sm:$0xff]  ;;  %v106_v33 = vld [vmem:[%s1075_s1 + $0xd8] sm:$0xff] }
   0xc   :  { %489 = vmatpush.msra.mxu1 %v89_v5  ;;  %490 = vmatpush.msra.mxu2 %v89_v5  ;;  %v59_v32 = vld [vmem:[%s1076_s0 + $0x168] sm:$0xff]  ;;  %v122_v34 = vld [vmem:[%s1075_s1 + $0x158] sm:$0xff]  ;;  %v139_v35 = vld [vmem:[%s1075_s1 + $0x1e0] sm:$0xff] }
   0xd   :  { %491 = vmatpush.msra.mxu3 %v89_v5  ;;  %168 = vmatpush.msra.mxu0 %v89_v5  ;;  %v105_v36 = vld [vmem:[%s1075_s1 + $0xd0] sm:$0xff]  ;;  %v138_v39 = vld [vmem:[%s1075_s1 + $0x1d8] sm:$0xff]  ;;  %v104_v40 = vld [vmem:[%s1075_s1 + $0xc8] sm:$0xff] }
   0xe   :  { %492 = vmatpush.msra.mxu1 %v88_v6  ;;  %493 = vmatpush.msra.mxu2 %v88_v6  ;;  %v157_v37 = vld [vmem:[%s1075_s1 + $0x270] sm:$0xff]  ;;  %v156_v41 = vld [vmem:[%s1075_s1 + $0x268] sm:$0xff]  ;;  %v103_v44 = vld [vmem:[%s1075_s1 + $0xc0] sm:$0xff] }
   0xf   :  { %494 = vmatpush.msra.mxu3 %v88_v6  ;;  %169 = vmatpush.msra.mxu0 %v88_v6  ;;  %v121_v38 = vld [vmem:[%s1075_s1 + $0x150] sm:$0xff]  ;;  %v120_v42 = vld [vmem:[%s1075_s1 + $0x148] sm:$0xff]  ;;  %v155_v45 = vld [vmem:[%s1075_s1 + $0x260] sm:$0xff] }
  0x10   :  { %495 = vmatpush.msra.mxu1 %v87_v7  ;;  %496 = vmatpush.msra.mxu2 %v87_v7  ;;  %v137_v43 = vld [vmem:[%s1075_s1 + $0x1d0] sm:$0xff]  ;;  %v119_v46 = vld [vmem:[%s1075_s1 + $0x140] sm:$0xff]  ;;  %v136_v47 = vld [vmem:[%s1075_s1 + $0x1c8] sm:$0xff] }
  0x11   :  { %497 = vmatpush.msra.mxu3 %v87_v7  ;;  %170 = vmatpush.msra.mxu0 %v87_v7  ;;  %v44_v48 = vld [vmem:[%s1076_s0 + $0xf0] sm:$0xff]  ;;  %v118_v50 = vld [vmem:[%s1075_s1 + $0x138] sm:$0xff]  ;;  %v135_v52 = vld [vmem:[%s1075_s1 + $0x1c0] sm:$0xff] }
  0x12   :  { %498 = vmatpush.msra.mxu1 %v86_v8  ;;  %499 = vmatpush.msra.mxu2 %v86_v8  ;;  %v64_v49 = vld [vmem:[%s1076_s0 + $0x190] sm:$0xff]  ;;  %v102_v51 = vld [vmem:[%s1075_s1 + $0xb8] sm:$0xff]  ;;  %v19_v53 = vld [vmem:[%s1076_s0 + $0x28] sm:$0xff] }
  0x13   :  { %500 = vmatpush.msra.mxu3 %v86_v8  ;;  %171 = vmatpush.msra.mxu0 %v86_v8  ;;  %v117_v54 = vld [vmem:[%s1075_s1 + $0x130] sm:$0xff]  ;;  %v154_v55 = vld [vmem:[%s1075_s1 + $0x258] sm:$0xff]  ;;  %v116_v58 = vld [vmem:[%s1075_s1 + $0x128] sm:$0xff] }
  0x14   :  { %501 = vmatpush.msra.mxu1 %v85_v9  ;;  %502 = vmatpush.msra.mxu2 %v85_v9  ;;  %v101_v56 = vld [vmem:[%s1075_s1 + $0xb0] sm:$0xff]  ;;  %v134_v57 = vld [vmem:[%s1075_s1 + $0x1b8] sm:$0xff]  ;;  %v100_v60 = vld [vmem:[%s1075_s1 + $0xa8] sm:$0xff] }
  0x15   :  { %503 = vmatpush.msra.mxu3 %v85_v9  ;;  %172 = vmatpush.msra.mxu0 %v85_v9  ;;  %v153_v59 = vld [vmem:[%s1075_s1 + $0x250] sm:$0xff]  ;;  %v115_v62 = vld [vmem:[%s1075_s1 + $0x120] sm:$0xff]  ;;  %v152_v63 = vld [vmem:[%s1075_s1 + $0x248] sm:$0xff] }
  0x16   :  { %504 = vmatpush.msra.mxu1 %v84_v10  ;;  %505 = vmatpush.msra.mxu2 %v84_v10  ;;  %v133_v61 = vld [vmem:[%s1075_s1 + $0x1b0] sm:$0xff]  ;;  %v99_v0 = vld [vmem:[%s1075_s1 + $0xa0] sm:$0xff]  ;;  %v132_v1 = vld [vmem:[%s1075_s1 + $0x1a8] sm:$0xff] }
  0x17   :  { %506 = vmatpush.msra.mxu3 %v84_v10  ;;  %173 = vmatpush.msra.mxu0 %v84_v10  ;;  %v49_v2 = vld [vmem:[%s1076_s0 + $0x118] sm:$0xff]  ;;  %v151_v5 = vld [vmem:[%s1075_s1 + $0x240] sm:$0xff]  ;;  %v24_v8 = vld [vmem:[%s1076_s0 + $0x50] sm:$0xff] }
  0x18   :  { %507 = vmatpush.msra.mxu1 %v83_v11  ;;  %508 = vmatpush.msra.mxu2 %v83_v11  ;;  %v69_v3 = vld [vmem:[%s1076_s0 + $0x1b8] sm:$0xff]  ;;  %v131_v7 = vld [vmem:[%s1075_s1 + $0x1a0] sm:$0xff]  ;;  %v113_v10 = vld [vmem:[%s1075_s1 + $0x110] sm:$0xff] }
  0x19   :  { %509 = vmatpush.msra.mxu3 %v83_v11  ;;  %174 = vmatpush.msra.mxu0 %v83_v11  ;;  %v114_v4 = vld [vmem:[%s1075_s1 + $0x118] sm:$0xff]  ;;  %v74_v9 = vld [vmem:[%s1076_s0 + $0x1e0] sm:$0xff] }
  0x1a   :  { %510 = vmatpush.msra.mxu1 %v82_v12  ;;  %511 = vmatpush.msra.mxu2 %v82_v12  ;;  %v98_v6 = vld [vmem:[%s1075_s1 + $0x98] sm:$0xff] }
  0x1b   :  { %512 = vmatpush.msra.mxu3 %v82_v12  ;;  %175 = vmatpush.msra.mxu0 %v82_v12  ;;  %v150_v11 = vld [vmem:[%s1075_s1 + $0x238] sm:$0xff]  ;;  %v97_v12 = vld [vmem:[%s1075_s1 + $0x90] sm:$0xff] }
  0x1c   :  { %513 = vmatpush.msra.mxu1 %v81_v13  ;;  %514 = vmatpush.msra.mxu2 %v81_v13 }
  0x1d   :  { %515 = vmatpush.msra.mxu3 %v81_v13  ;;  %176 = vmatpush.msra.mxu0 %v81_v13  ;;  %v130_v13 = vld [vmem:[%s1075_s1 + $0x198] sm:$0xff] }
  0x1e   :  { %516 = vmatpush.msra.mxu1 %v80_v14  ;;  %517 = vmatpush.msra.mxu2 %v80_v14 }
  0x1f   :  { %518 = vmatpush.msra.mxu3 %v80_v14  ;;  %177 = vmatpush.msra.mxu0 %v80_v14  ;;  %v112_v14 = vld [vmem:[%s1075_s1 + $0x108] sm:$0xff] }
  0x20   :  { %519 = vmatpush.msra.mxu1 %v79_v15  ;;  %520 = vmatpush.msra.mxu2 %v79_v15 }
  0x21   :  { %191 = vmatmul.f32.vlgmr.msra.gmra.mxu1 %v34_v16  ;;  %203 = vmatmul.f32.vlgmr.msra.gmra.mxu2 %v54_v17  ;;  %v96_v16 = vld [vmem:[%s1075_s1 + $0x88] sm:$0xff]  ;;  %v129_v17 = vld [vmem:[%s1075_s1 + $0x190] sm:$0xff] }
  0x22   :  { %275 = vmatpush.msrb.mxu2 %v126_v18  ;;  %219 = vmatpush.msrb.mxu1 %v110_v19  ;;  %v111_v18 = vld [vmem:[%s1075_s1 + $0x100] sm:$0xff]  ;;  %v148_v19 = vld [vmem:[%s1075_s1 + $0x228] sm:$0xff] }
  0x23   :  { %521 = vmatpush.msra.mxu3 %v79_v15  ;;  %178 = vmatpush.msra.mxu0 %v79_v15  ;;  %v149_v15 = vld [vmem:[%s1075_s1 + $0x230] sm:$0xff] }
  0x24   :  { %276 = vmatpush.msrb.mxu2 %v125_v20  ;;  %220 = vmatpush.msrb.mxu1 %v109_v21  ;;  %v95_v20 = vld [vmem:[%s1075_s1 + $0x80] sm:$0xff]  ;;  %v128_v21 = vld [vmem:[%s1075_s1 + $0x188] sm:$0xff] }
  0x25   :  { %331 = vmatpush.msrb.mxu3 %v142_v22  ;;  %179 = vmatmul.f32.vlgmr.msra.gmra.mxu0 %v14_v23  ;;  %v15_v22 = vld [vmem:[%s1076_s0 + $0x8] sm:$0xff]  ;;  %v16_v23 = vld [vmem:[%s1076_s0 + $0x10] sm:$0xff] }
  0x26   :  { %277 = vmatpush.msrb.mxu2 %v124_v24  ;;  %221 = vmatpush.msrb.mxu1 %v108_v25  ;;  %v147_v24 = vld [vmem:[%s1075_s1 + $0x220] sm:$0xff] }
  0x27   :  { %332 = vmatpush.msrb.mxu3 %v141_v26  ;;  %387 = vmatpush.msrb.mxu0 %v158_v27  ;;  %v127_v25 = vld [vmem:[%s1075_s1 + $0x180] sm:$0xff]  ;;  %v29_v26 = vld [vmem:[%s1076_s0 + $0x78] sm:$0xff] }
  0x28   :  { %278 = vmatpush.msrb.mxu2 %v123_v28  ;;  %222 = vmatpush.msrb.mxu1 %v107_v29  ;;  %v17_v27 = vld [vmem:[%s1076_s0 + $0x18] sm:$0xff]  ;;  %v145_v29 = vld [vmem:[%s1075_s1 + $0x210] sm:$0xff] }
  0x29   :  { %333 = vmatpush.msrb.mxu3 %v140_v30  ;;  %194 = vmatmul.f32.gmra.mxu1 %v39_v31  ;;  %v146_v28 = vld [vmem:[%s1075_s1 + $0x218] sm:$0xff]  ;;  %v144_v30 = vld [vmem:[%s1075_s1 + $0x208] sm:$0xff]  ;;  %v20_v31 = vld [vmem:[%s1076_s0 + $0x30] sm:$0xff] }
  0x2a   :  { %206 = vmatmul.f32.gmra.mxu2 %v59_v32  ;;  %223 = vmatpush.msrb.mxu1 %v106_v33  ;;  %v21_v32 = vld [vmem:[%s1076_s0 + $0x38] sm:$0xff]  ;;  %v143_v33 = vld [vmem:[%s1075_s1 + $0x200] sm:$0xff] }
  0x2b   :  { %279 = vmatpush.msrb.mxu2 %v122_v34  ;;  %334 = vmatpush.msrb.mxu3 %v139_v35  ;;  %v22_v34 = vld [vmem:[%s1076_s0 + $0x40] sm:$0xff] }
  0x2c   :  { %224 = vmatpush.msrb.mxu1 %v105_v36  ;;  %388 = vmatpush.msrb.mxu0 %v157_v37  ;;  %v18_v35 = vld [vmem:[%s1076_s0 + $0x20] sm:$0xff]  ;;  %v25_v36 = vld [vmem:[%s1076_s0 + $0x58] sm:$0xff] }
  0x2d   :  { %280 = vmatpush.msrb.mxu2 %v121_v38  ;;  %335 = vmatpush.msrb.mxu3 %v138_v39  ;;  %v26_v37 = vld [vmem:[%s1076_s0 + $0x60] sm:$0xff]  ;;  %v27_v38 = vld [vmem:[%s1076_s0 + $0x68] sm:$0xff] }
  0x2e   :  { %225 = vmatpush.msrb.mxu1 %v104_v40  ;;  %389 = vmatpush.msrb.mxu0 %v156_v41  ;;  %v23_v39 = vld [vmem:[%s1076_s0 + $0x48] sm:$0xff]  ;;  %v30_v40 = vld [vmem:[%s1076_s0 + $0x80] sm:$0xff] }
  0x2f   :  { %281 = vmatpush.msrb.mxu2 %v120_v42  ;;  %336 = vmatpush.msrb.mxu3 %v137_v43  ;;  %v31_v41 = vld [vmem:[%s1076_s0 + $0x88] sm:$0xff]  ;;  %v32_v42 = vld [vmem:[%s1076_s0 + $0x90] sm:$0xff] }
  0x30   :  { %226 = vmatpush.msrb.mxu1 %v103_v44  ;;  %390 = vmatpush.msrb.mxu0 %v155_v45  ;;  %v28_v43 = vld [vmem:[%s1076_s0 + $0x70] sm:$0xff]  ;;  %v35_v44 = vld [vmem:[%s1076_s0 + $0xa8] sm:$0xff] }
  0x31   :  { %282 = vmatpush.msrb.mxu2 %v119_v46  ;;  %337 = vmatpush.msrb.mxu3 %v136_v47  ;;  %v36_v45 = vld [vmem:[%s1076_s0 + $0xb0] sm:$0xff]  ;;  %v37_v46 = vld [vmem:[%s1076_s0 + $0xb8] sm:$0xff] }
  0x32   :  { %197 = vmatmul.f32.gmra.mxu1 %v44_v48  ;;  %209 = vmatmul.f32.gmra.mxu2 %v64_v49  ;;  %v33_v47 = vld [vmem:[%s1076_s0 + $0x98] sm:$0xff]  ;;  %v40_v48 = vld [vmem:[%s1076_s0 + $0xd0] sm:$0xff] }
  0x33   :  { %283 = vmatpush.msrb.mxu2 %v118_v50  ;;  %227 = vmatpush.msrb.mxu1 %v102_v51  ;;  %v41_v49 = vld [vmem:[%s1076_s0 + $0xd8] sm:$0xff]  ;;  %v42_v50 = vld [vmem:[%s1076_s0 + $0xe0] sm:$0xff] }
  0x34   :  { %338 = vmatpush.msrb.mxu3 %v135_v52  ;;  %182 = vmatmul.f32.gmra.mxu0 %v19_v53  ;;  %v38_v51 = vld [vmem:[%s1076_s0 + $0xc0] sm:$0xff]  ;;  %v45_v52 = vld [vmem:[%s1076_s0 + $0xf8] sm:$0xff] }
  0x35   :  { %284 = vmatpush.msrb.mxu2 %v117_v54  ;;  %391 = vmatpush.msrb.mxu0 %v154_v55  ;;  %v46_v53 = vld [vmem:[%s1076_s0 + $0x100] sm:$0xff]  ;;  %v47_v54 = vld [vmem:[%s1076_s0 + $0x108] sm:$0xff] }
  0x36   :  { %228 = vmatpush.msrb.mxu1 %v101_v56  ;;  %339 = vmatpush.msrb.mxu3 %v134_v57  ;;  %v43_v55 = vld [vmem:[%s1076_s0 + $0xe8] sm:$0xff]  ;;  %v50_v56 = vld [vmem:[%s1076_s0 + $0x120] sm:$0xff] }
  0x37   :  { %285 = vmatpush.msrb.mxu2 %v116_v58  ;;  %392 = vmatpush.msrb.mxu0 %v153_v59  ;;  %v51_v57 = vld [vmem:[%s1076_s0 + $0x128] sm:$0xff]  ;;  %v52_v58 = vld [vmem:[%s1076_s0 + $0x130] sm:$0xff] }
  0x38   :  { %229 = vmatpush.msrb.mxu1 %v100_v60  ;;  %340 = vmatpush.msrb.mxu3 %v133_v61  ;;  %v48_v59 = vld [vmem:[%s1076_s0 + $0x110] sm:$0xff]  ;;  %v55_v60 = vld [vmem:[%s1076_s0 + $0x148] sm:$0xff] }
  0x39   :  { %286 = vmatpush.msrb.mxu2 %v115_v62  ;;  %393 = vmatpush.msrb.mxu0 %v152_v63  ;;  %v56_v61 = vld [vmem:[%s1076_s0 + $0x150] sm:$0xff]  ;;  %v57_v62 = vld [vmem:[%s1076_s0 + $0x158] sm:$0xff] }
  0x3a   :  { %230 = vmatpush.msrb.mxu1 %v99_v0  ;;  %341 = vmatpush.msrb.mxu3 %v132_v1  ;;  %v53_v63 = vld [vmem:[%s1076_s0 + $0x138] sm:$0xff]  ;;  %v60_v0 = vld [vmem:[%s1076_s0 + $0x170] sm:$0xff] }
  0x3b   :  { %200 = vmatmul.f32.gmra.mxu1 %v49_v2  ;;  %212 = vmatmul.f32.gmra.mxu2 %v69_v3  ;;  %v61_v1 = vld [vmem:[%s1076_s0 + $0x178] sm:$0xff]  ;;  %v62_v2 = vld [vmem:[%s1076_s0 + $0x180] sm:$0xff] }
  0x3c   :  { %287 = vmatpush.msrb.mxu2 %v114_v4  ;;  %394 = vmatpush.msrb.mxu0 %v151_v5  ;;  %v58_v3 = vld [vmem:[%s1076_s0 + $0x160] sm:$0xff]  ;;  %v65_v4 = vld [vmem:[%s1076_s0 + $0x198] sm:$0xff] }
  0x3d   :  { %231 = vmatpush.msrb.mxu1 %v98_v6  ;;  %342 = vmatpush.msrb.mxu3 %v131_v7  ;;  %v66_v5 = vld [vmem:[%s1076_s0 + $0x1a0] sm:$0xff]  ;;  %v67_v6 = vld [vmem:[%s1076_s0 + $0x1a8] sm:$0xff] }
  0x3e   :  { %185 = vmatmul.f32.gmra.mxu0 %v24_v8  ;;  %215 = vmatmul.f32.vlgmr.msra.gmra.mxu3 %v74_v9  ;;  %v63_v7 = vld [vmem:[%s1076_s0 + $0x188] sm:$0xff]  ;;  %v70_v8 = vld [vmem:[%s1076_s0 + $0x1c0] sm:$0xff] }
  0x3f   :  { %288 = vmatpush.msrb.mxu2 %v113_v10  ;;  %395 = vmatpush.msrb.mxu0 %v150_v11  ;;  %v71_v9 = vld [vmem:[%s1076_s0 + $0x1c8] sm:$0xff]  ;;  %v72_v10 = vld [vmem:[%s1076_s0 + $0x1d0] sm:$0xff] }
  0x40   :  { %232 = vmatpush.msrb.mxu1 %v97_v12  ;;  %343 = vmatpush.msrb.mxu3 %v130_v13  ;;  %v68_v11 = vld [vmem:[%s1076_s0 + $0x1b0] sm:$0xff]  ;;  %v75_v13 = vld [vmem:[%s1076_s0 + $0x1e8] sm:$0xff] }
  0x41   :  { %289 = vmatpush.msrb.mxu2 %v112_v14  ;;  %396 = vmatpush.msrb.mxu0 %v149_v15  ;;  %v76_v14 = vld [vmem:[%s1076_s0 + $0x1f0] sm:$0xff]  ;;  %v974_v15 = vld [vmem:[%s1077_s2] ss:$0 sm:$0xff] }
  0x42   :  { %233 = vmatpush.msrb.mxu1 %v96_v16  ;;  %344 = vmatpush.msrb.mxu3 %v129_v17  ;;  %v77_v16 = vld [vmem:[%s1076_s0 + $0x1f8] sm:$0xff] }
  0x43   :  { %290 = vmatpush.msrb.mxu2 %v111_v18  ;;  %397 = vmatpush.msrb.mxu0 %v148_v19  ;;  %v73_v17 = vld [vmem:[%s1076_s0 + $0x1d8] sm:$0xff] }
  0x44   :  { %234 = vmatpush.msrb.mxu1 %v95_v20  ;;  %345 = vmatpush.msrb.mxu3 %v128_v21 }
  0x45   :  { %235 = vmatmul.f32.vlgmr.msrb.gmra.mxu1 %v15_v22  ;;  %291 = vmatmul.f32.vlgmr.msrb.gmra.mxu2 %v16_v23  ;;  %v78_v22 = vld [vmem:[%s1076_s0 + $0x200] sm:$0xff] }
  0x46   :  { %398 = vmatpush.msrb.mxu0 %v147_v24  ;;  %346 = vmatpush.msrb.mxu3 %v127_v25 }
  0x47   :  { %188 = vmatmul.f32.gmra.mxu0 %v29_v26  ;;  %347 = vmatmul.f32.vlgmr.msrb.gmra.mxu3 %v17_v27 }
  0x48   :  { %399 = vmatpush.msrb.mxu0 %v146_v28 }
  0x4a   :  { %400 = vmatpush.msrb.mxu0 %v145_v29 }
  0x4c   :  { %401 = vmatpush.msrb.mxu0 %v144_v30 }
  0x4d   :  { %238 = vmatmul.f32.gmra.mxu1 %v20_v31  ;;  %294 = vmatmul.f32.gmra.mxu2 %v21_v32 }
  0x4e   :  { %402 = vmatpush.msrb.mxu0 %v143_v33 }
  0x4f   :  { %350 = vmatmul.f32.gmra.mxu3 %v22_v34  ;;  %403 = vmatmul.f32.vlgmr.msrb.gmra.mxu0 %v18_v35 }
  0x55   :  { %241 = vmatmul.f32.gmra.mxu1 %v25_v36  ;;  %297 = vmatmul.f32.gmra.mxu2 %v26_v37 }
  0x57   :  { %353 = vmatmul.f32.gmra.mxu3 %v27_v38  ;;  %406 = vmatmul.f32.gmra.mxu0 %v23_v39 }
  0x5d   :  { %244 = vmatmul.f32.gmra.mxu1 %v30_v40  ;;  %300 = vmatmul.f32.gmra.mxu2 %v31_v41 }
  0x5f   :  { %356 = vmatmul.f32.gmra.mxu3 %v32_v42  ;;  %409 = vmatmul.f32.gmra.mxu0 %v28_v43 }
  0x65   :  { %247 = vmatmul.f32.gmra.mxu1 %v35_v44  ;;  %303 = vmatmul.f32.gmra.mxu2 %v36_v45 }
  0x67   :  { %359 = vmatmul.f32.gmra.mxu3 %v37_v46  ;;  %412 = vmatmul.f32.gmra.mxu0 %v33_v47 }
  0x6d   :  { %250 = vmatmul.f32.gmra.mxu1 %v40_v48  ;;  %306 = vmatmul.f32.gmra.mxu2 %v41_v49 }
  0x6f   :  { %362 = vmatmul.f32.gmra.mxu3 %v42_v50  ;;  %415 = vmatmul.f32.gmra.mxu0 %v38_v51 }
  0x75   :  { %253 = vmatmul.f32.gmra.mxu1 %v45_v52  ;;  %309 = vmatmul.f32.gmra.mxu2 %v46_v53 }
  0x77   :  { %365 = vmatmul.f32.gmra.mxu3 %v47_v54  ;;  %418 = vmatmul.f32.gmra.mxu0 %v43_v55 }
  0x7d   :  { %256 = vmatmul.f32.gmra.mxu1 %v50_v56  ;;  %312 = vmatmul.f32.gmra.mxu2 %v51_v57 }
  0x7f   :  { %368 = vmatmul.f32.gmra.mxu3 %v52_v58  ;;  %421 = vmatmul.f32.gmra.mxu0 %v48_v59 }
  0x85   :  { %259 = vmatmul.f32.gmra.mxu1 %v55_v60  ;;  %315 = vmatmul.f32.gmra.mxu2 %v56_v61 }
  0x87   :  { %371 = vmatmul.f32.gmra.mxu3 %v57_v62  ;;  %424 = vmatmul.f32.gmra.mxu0 %v53_v63 }
  0x8d   :  { %262 = vmatmul.f32.gmra.mxu1 %v60_v0  ;;  %318 = vmatmul.f32.gmra.mxu2 %v61_v1 }
  0x8f   :  { %374 = vmatmul.f32.gmra.mxu3 %v62_v2  ;;  %427 = vmatmul.f32.gmra.mxu0 %v58_v3 }
  0x95   :  { %265 = vmatmul.f32.gmra.mxu1 %v65_v4  ;;  %321 = vmatmul.f32.gmra.mxu2 %v66_v5 }
  0x97   :  { %377 = vmatmul.f32.gmra.mxu3 %v67_v6  ;;  %430 = vmatmul.f32.gmra.mxu0 %v63_v7 }
  0x9d   :  { %268 = vmatmul.f32.gmra.mxu1 %v70_v8  ;;  %324 = vmatmul.f32.gmra.mxu2 %v71_v9 }
  0x9e   :  { %v963_v12 = vpop.f32.mrf.mxu1 }
  0x9f   :  { %380 = vmatmul.f32.gmra.mxu3 %v72_v10  ;;  %433 = vmatmul.f32.gmra.mxu0 %v68_v11  ;;  %v193_v11 = vadd.f32 %v974_v15, %v963_v12 }
  0xa2   :  { %v180_v21 = vpop.f32.mrf.mxu0 }
  0xa3   :  { %v181_v37 = vadd.f32 %v974_v15, %v180_v21 }
  0xa4   :  { %v204_v18 = vpop.f32.mrf.mxu2 }
  0xa5   :  { %271 = vmatmul.f32.gmra.mxu1 %v75_v13  ;;  %327 = vmatmul.f32.gmra.mxu2 %v76_v14  ;;  %v983_v19 = vadd.f32 %v974_v15, %v204_v18 }
  0xa6   :  { %v985_v20 = vpop.f32.mrf.mxu1 }
  0xa7   :  { %383 = vmatmul.f32.gmra.mxu3 %v77_v16  ;;  %436 = vmatmul.f32.gmra.mxu0 %v73_v17 }
  0xad   :  { %v207_v23 = vpop.f32.mrf.mxu2 }
  0xae   :  { %v991_v24 = vadd.f32 %v974_v15, %v207_v23 }
  0xaf   :  { %439 = vmatmul.f32.gmra.mxu0 %v78_v22  ;;  %v993_v25 = vpop.f32.mrf.mxu1 }
  0xb1   :  { %v183_v26 = vpop.f32.mrf.mxu0 }
  0xb2   :  { %v184_v45 = vadd.f32 %v974_v15, %v183_v26 }
  0xb5   :  { %v210_v27 = vpop.f32.mrf.mxu2 }
  0xb6   :  { %v996_v28 = vadd.f32 %v974_v15, %v210_v27  ;;  %v196_v27 = vadd.f32 %v974_v15, %v985_v20 }
  0xb8   :  { %v998_v29 = vpop.f32.mrf.mxu1 }
  0xbb   :  { %v186_v30 = vpop.f32.mrf.mxu0 }
  0xbc   :  { %v187_v55 = vadd.f32 %v974_v15, %v186_v30 }
  0xbe   :  { %v213_v31 = vpop.f32.mrf.mxu2 }
  0xbf   :  { %v1001_v32 = vadd.f32 %v974_v15, %v213_v31 }
  0xc1   :  { %v216_v33 = vpop.f32.mrf.mxu3 }
  0xc2   :  { %v1004_v34 = vadd.f32 %v974_v15, %v216_v33  ;;  %v236_v35 = vpop.f32.mrf.mxu1 }
  0xc3   :  { %v237_v38 = vadd.f32 %v236_v35, %v181_v37 }
  0xc4   :  { %v189_v36 = vpop.f32.mrf.mxu0 }
  0xc5   :  { %v190_v1 = vadd.f32 %v974_v15, %v189_v36 }
  0xc8   :  { %v292_v39 = vpop.f32.mrf.mxu2 }
  0xc9   :  { %v293_v40 = vadd.f32 %v292_v39, %v237_v38 }
  0xca   :  { %v239_v41 = vpop.f32.mrf.mxu1  ;;  %v348_v42 = vpop.f32.mrf.mxu3 }
  0xcb   :  { %v349_v43 = vadd.f32 %v348_v42, %v293_v40  ;;  %v240_v47 = vadd.f32 %v239_v41, %v184_v45  ;;  %v199_v40 = vadd.f32 %v974_v15, %v993_v25 }
  0xcc   :  { %v404_v44 = vpop.f32.mrf.mxu0 }
  0xcd   :  { %v405_v46 = vadd.f32 %v404_v44, %v349_v43 }
  0xcf   :  { %v443_v48 = vmax.f32 %v405_v46, 0.0 }
  0xd0   :  { %v295_v49 = vpop.f32.mrf.mxu2 }
  0xd1   :  { %457 = vst.msk [vmem:[%s1078_s3] sm:$0xff] %vm456_vm0, %v443_v48  ;;  %v296_v50 = vadd.f32 %v295_v49, %v240_v47  ;;  %v202_v49 = vadd.f32 %v974_v15, %v998_v29 }
  0xd2   :  { %v242_v51 = vpop.f32.mrf.mxu1  ;;  %v351_v52 = vpop.f32.mrf.mxu3 }
  0xd3   :  { %v352_v53 = vadd.f32 %v351_v52, %v296_v50  ;;  %v243_v57 = vadd.f32 %v242_v51, %v187_v55 }
  0xd4   :  { %v407_v54 = vpop.f32.mrf.mxu0 }
  0xd5   :  { %v408_v56 = vadd.f32 %v407_v54, %v352_v53 }
  0xd7   :  { %v444_v58 = vmax.f32 %v408_v56, 0.0 }
  0xd8   :  { %v298_v59 = vpop.f32.mrf.mxu2 }
  0xd9   :  { %458 = vst.msk [vmem:[%s1078_s3 + $0x8] sm:$0xff] %vm456_vm0, %v444_v58  ;;  %v299_v60 = vadd.f32 %v298_v59, %v243_v57 }
  0xda   :  { %v245_v61 = vpop.f32.mrf.mxu1  ;;  %v354_v62 = vpop.f32.mrf.mxu3 }
  0xdb   :  { %v355_v63 = vadd.f32 %v354_v62, %v299_v60  ;;  %v246_v3 = vadd.f32 %v245_v61, %v190_v1 }
  0xdc   :  { %v410_v0 = vpop.f32.mrf.mxu0 }
  0xdd   :  { %v411_v2 = vadd.f32 %v410_v0, %v355_v63 }
  0xdf   :  { %v445_v4 = vmax.f32 %v411_v2, 0.0 }
  0xe0   :  { %v301_v5 = vpop.f32.mrf.mxu2 }
  0xe1   :  { %459 = vst.msk [vmem:[%s1078_s3 + $0x10] sm:$0xff] %vm456_vm0, %v445_v4  ;;  %v302_v6 = vadd.f32 %v301_v5, %v246_v3 }
  0xe2   :  { %v248_v7 = vpop.f32.mrf.mxu1  ;;  %v357_v8 = vpop.f32.mrf.mxu3 }
  0xe3   :  { %v358_v9 = vadd.f32 %v357_v8, %v302_v6  ;;  %v249_v14 = vadd.f32 %v248_v7, %v193_v11 }
  0xe4   :  { %v413_v10 = vpop.f32.mrf.mxu0 }
  0xe5   :  { %v414_v13 = vadd.f32 %v413_v10, %v358_v9 }
  0xe7   :  { %v446_v16 = vmax.f32 %v414_v13, 0.0 }
  0xe8   :  { %v304_v17 = vpop.f32.mrf.mxu2 }
  0xe9   :  { %460 = vst.msk [vmem:[%s1078_s3 + $0x18] sm:$0xff] %vm456_vm0, %v446_v16  ;;  %v305_v18 = vadd.f32 %v304_v17, %v249_v14 }
  0xea   :  { %v251_v21 = vpop.f32.mrf.mxu1  ;;  %v360_v22 = vpop.f32.mrf.mxu3 }
  0xeb   :  { %v361_v23 = vadd.f32 %v360_v22, %v305_v18  ;;  %v252_v31 = vadd.f32 %v251_v21, %v196_v27 }
  0xec   :  { %v416_v26 = vpop.f32.mrf.mxu0 }
  0xed   :  { %v417_v30 = vadd.f32 %v416_v26, %v361_v23 }
  0xef   :  { %v447_v12 = vmax.f32 %v417_v30, 0.0 }
  0xf0   :  { %v307_v33 = vpop.f32.mrf.mxu2 }
  0xf1   :  { %461 = vst.msk [vmem:[%s1078_s3 + $0x20] sm:$0xff] %vm456_vm0, %v447_v12  ;;  %v308_v35 = vadd.f32 %v307_v33, %v252_v31 }
  0xf2   :  { %v254_v36 = vpop.f32.mrf.mxu1  ;;  %v363_v37 = vpop.f32.mrf.mxu3 }
  0xf3   :  { %v364_v38 = vadd.f32 %v363_v37, %v308_v35  ;;  %v255_v42 = vadd.f32 %v254_v36, %v199_v40 }
  0xf4   :  { %v419_v39 = vpop.f32.mrf.mxu0 }
  0xf5   :  { %v420_v41 = vadd.f32 %v419_v39, %v364_v38 }
  0xf7   :  { %v448_v20 = vmax.f32 %v420_v41, 0.0 }
  0xf8   :  { %v310_v43 = vpop.f32.mrf.mxu2 }
  0xf9   :  { %462 = vst.msk [vmem:[%s1078_s3 + $0x28] sm:$0xff] %vm456_vm0, %v448_v20  ;;  %v311_v44 = vadd.f32 %v310_v43, %v255_v42 }
  0xfa   :  { %v257_v45 = vpop.f32.mrf.mxu1  ;;  %v366_v46 = vpop.f32.mrf.mxu3 }
  0xfb   :  { %v367_v47 = vadd.f32 %v366_v46, %v311_v44  ;;  %v258_v51 = vadd.f32 %v257_v45, %v202_v49 }
  0xfc   :  { %v422_v48 = vpop.f32.mrf.mxu0 }
  0xfd   :  { %v423_v50 = vadd.f32 %v422_v48, %v367_v47 }
  0xff   :  { %v449_v25 = vmax.f32 %v423_v50, 0.0 }
 0x100   :  { %v313_v52 = vpop.f32.mrf.mxu2 }
 0x101   :  { %463 = vst.msk [vmem:[%s1078_s3 + $0x30] sm:$0xff] %vm456_vm0, %v449_v25  ;;  %v314_v53 = vadd.f32 %v313_v52, %v258_v51 }
 0x102   :  { %v260_v54 = vpop.f32.mrf.mxu1  ;;  %v369_v55 = vpop.f32.mrf.mxu3 }
 0x103   :  { %v370_v56 = vadd.f32 %v369_v55, %v314_v53  ;;  %v261_v59 = vadd.f32 %v260_v54, %v983_v19 }
 0x104   :  { %v425_v57 = vpop.f32.mrf.mxu0 }
 0x105   :  { %v426_v58 = vadd.f32 %v425_v57, %v370_v56 }
 0x107   :  { %v450_v60 = vmax.f32 %v426_v58, 0.0 }
 0x108   :  { %v316_v61 = vpop.f32.mrf.mxu2 }
 0x109   :  { %464 = vst.msk [vmem:[%s1078_s3 + $0x38] sm:$0xff] %vm456_vm0, %v450_v60  ;;  %v317_v15 = vadd.f32 %v316_v61, %v261_v59 }
 0x10a   :  { %v263_v29 = vpop.f32.mrf.mxu1  ;;  %v372_v62 = vpop.f32.mrf.mxu3 }
 0x10b   :  { %v373_v63 = vadd.f32 %v372_v62, %v317_v15  ;;  %v264_v2 = vadd.f32 %v263_v29, %v991_v24 }
 0x10c   :  { %v428_v0 = vpop.f32.mrf.mxu0 }
 0x10d   :  { %v429_v1 = vadd.f32 %v428_v0, %v373_v63 }
 0x10f   :  { %v451_v3 = vmax.f32 %v429_v1, 0.0 }
 0x110   :  { %v319_v4 = vpop.f32.mrf.mxu2 }
 0x111   :  { %465 = vst.msk [vmem:[%s1078_s3 + $0x40] sm:$0xff] %vm456_vm0, %v451_v3  ;;  %v320_v19 = vadd.f32 %v319_v4, %v264_v2 }
 0x112   :  { %v266_v5 = vpop.f32.mrf.mxu1  ;;  %v375_v6 = vpop.f32.mrf.mxu3 }
 0x113   :  { %v376_v7 = vadd.f32 %v375_v6, %v320_v19  ;;  %v267_v10 = vadd.f32 %v266_v5, %v996_v28 }
 0x114   :  { %v431_v8 = vpop.f32.mrf.mxu0 }
 0x115   :  { %v432_v9 = vadd.f32 %v431_v8, %v376_v7 }
 0x117   :  { %v452_v11 = vmax.f32 %v432_v9, 0.0 }
 0x118   :  { %v322_v13 = vpop.f32.mrf.mxu2 }
 0x119   :  { %466 = vst.msk [vmem:[%s1078_s3 + $0x48] sm:$0xff] %vm456_vm0, %v452_v11  ;;  %v323_v24 = vadd.f32 %v322_v13, %v267_v10 }
 0x11a   :  { %v269_v14 = vpop.f32.mrf.mxu1  ;;  %v378_v16 = vpop.f32.mrf.mxu3 }
 0x11b   :  { %v379_v17 = vadd.f32 %v378_v16, %v323_v24  ;;  %v270_v22 = vadd.f32 %v269_v14, %v1001_v32 }
 0x11c   :  { %v434_v18 = vpop.f32.mrf.mxu0 }
 0x11d   :  { %v435_v21 = vadd.f32 %v434_v18, %v379_v17 }
 0x11f   :  { %v453_v23 = vmax.f32 %v435_v21, 0.0 }
 0x120   :  { %v325_v26 = vpop.f32.mrf.mxu2 }
 0x121   :  { %467 = vst.msk [vmem:[%s1078_s3 + $0x50] sm:$0xff] %vm456_vm0, %v453_v23  ;;  %v326_v28 = vadd.f32 %v325_v26, %v270_v22 }
 0x122   :  { %v381_v27 = vpop.f32.mrf.mxu3  ;;  %v272_v31 = vpop.f32.mrf.mxu1 }
 0x123   :  { %v382_v30 = vadd.f32 %v381_v27, %v326_v28  ;;  %v273_v35 = vadd.f32 %v272_v31, %v1004_v34 }
 0x124   :  { %v437_v12 = vpop.f32.mrf.mxu0 }
 0x125   :  { %v438_v33 = vadd.f32 %v437_v12, %v382_v30 }
 0x127   :  { %v454_v36 = vmax.f32 %v438_v33, 0.0 }
 0x128   :  { %v328_v37 = vpop.f32.mrf.mxu2 }
 0x129   :  { %468 = vst.msk [vmem:[%s1078_s3 + $0x58] sm:$0xff] %vm456_vm0, %v454_v36  ;;  %v329_v32 = vadd.f32 %v328_v37, %v273_v35 }
 0x12a   :  { %v384_v38 = vpop.f32.mrf.mxu3 }
 0x12b   :  { %v385_v39 = vadd.f32 %v384_v38, %v329_v32 }
 0x12c   :  { %v440_v40 = vpop.f32.mrf.mxu0 }
 0x12d   :  { %v441_v41 = vadd.f32 %v440_v40, %v385_v39 }
 0x12f   :  { %v455_v42 = vmax.f32 %v441_v41, 0.0 }
 0x131   :  { %469 = vst.msk [vmem:[%s1078_s3 + $0x60] sm:$0xff] %vm456_vm0, %v455_v42 }

// kernel: dqn_forward.7
= control target key start
LH: loop header
LB: loop body
LE: loop exit
PB: predicated region body
PF: predicated region fallthrough
CT: control target
= control target key end

     0   :  { %s8907_s18 = smov 0   ;;  %s8909_s19 = smov 0   ;;  %s10847_s0 = inlined_call_operand.vmem [shape: f32[8,3200], index: 0, kind: input, shape index: {}]   ;;  %s10848_s1 = inlined_call_operand.vmem [shape: bf16[3200,512], index: 1, kind: input, shape index: {}]   ;;  %s10849_s2 = inlined_call_operand.vmem [shape: f32[1,512], index: 2, kind: input, shape index: {}]   ;;  %s10850_s3 = inlined_call_operand.vmem [shape: f32[512,128], index: 3, kind: input, shape index: {}]   ;;  %s10851_s4 = inlined_call_operand.vmem [shape: f32[1,128], index: 4, kind: input, shape index: {}]   ;;  %s10852_s5 = inlined_call_operand.vmem [shape: f32[2,8,128], index: 5, kind: output, shape index: {}]  }
   0x1   :  { %s8911_s20 = smov 0  }
   0x2 LB: > { %s8923_s21 = sadd.s32 4294967295, %s8875_s20   ;;  %s8926_s22 = sadd.s32 1, %s8875_s20   ;;  %s8875_s20 = sphi %s8911_s20, %s10857_s20   ;;  %s8871_s19 = sphi %s8909_s19, %s10856_s19   ;;  %s8867_s18 = sphi %s8907_s18, %s10855_s18  }
   0x3   : > { %s40_s23 = ssub.s32 %s8875_s20, %s8926_s22  ;;  %s43_s24 = sadd.s32 1, %s8871_s19 }
   0x4   : > { %p41_p0 = scmp.eq.s32.totalorder %s40_s23, 0  ;;  %p50_p1 = scmp.ne.s32.totalorder %s8871_s19, %s8867_s18 }
   0x5   : > { %p51_p2 = scmp.eq.s32.totalorder %s8875_s20, 0  ;;  %p6815_p4 = scmp.ge.s32.totalorder %s8875_s20, 2 }
   0x6   : > { %s8935_s25 = scalar_select %p41_p0, %s8871_s19, %s43_s24  }
   0x7   : > { %p52_p3 = por %p51_p2, %p50_p1  ;;  %181 = sbr.rel (%p6815_p4) target bundleno = 416 (0x1a0), region = 24 }
   0xc   : > { %184 = sbr.rel (!%p52_p3) target bundleno = 416 (0x1a0), region = 28  ;;  %s186_s26 = sand.u32 (%p52_p3), 1, %s8871_s19  }
   0xd   : > { %s8425_s27 = sshll.u32 (%p52_p3), %s8875_s20, 3  ;;  %s8826_s28 = smul.u32 (%p52_p3), 3200, %s186_s26 }
   0xe   : > { %s8943_s6 = scalar_lea.vmem (%p52_p3), %s10848_s1, %s8425_s27 }
   0xf   : > { %v1019_v0 = vld [vmem:[%s8943_s6] sm:$0xff] (%p52_p3)  ;;  %v1021_v1 = vld [vmem:[%s8943_s6 + $0x10] sm:$0xff] (%p52_p3)  ;;  %s8948_s7 = scalar_lea.vmem (%p52_p3), [#allocation2], %s8826_s28 }
  0x10   : > { %v1023_v2 = vld [vmem:[%s8943_s6 + $0x20] sm:$0xff] (%p52_p3)  ;;  %1020 = vst [vmem:[%s8948_s7] sm:$0xff] (%p52_p3), %v1019_v0  ;;  %v1025_v3 = vld [vmem:[%s8943_s6 + $0x30] sm:$0xff] (%p52_p3) }
  0x11   : > { %1022 = vst [vmem:[%s8948_s7 + $0x8] sm:$0xff] %v1021_v1  ;;  %v1027_v4 = vld [vmem:[%s8943_s6 + $0x40] sm:$0xff]  ;;  %v1029_v5 = vld [vmem:[%s8943_s6 + $0x50] sm:$0xff] }
  0x12   : > { %1024 = vst [vmem:[%s8948_s7 + $0x10] sm:$0xff] %v1023_v2  ;;  %v1031_v6 = vld [vmem:[%s8943_s6 + $0x60] sm:$0xff]  ;;  %v1033_v7 = vld [vmem:[%s8943_s6 + $0x70] sm:$0xff] }
  0x13   : > { %1026 = vst [vmem:[%s8948_s7 + $0x18] sm:$0xff] %v1025_v3  ;;  %v1035_v8 = vld [vmem:[%s8943_s6 + $0x80] sm:$0xff]  ;;  %v1037_v9 = vld [vmem:[%s8943_s6 + $0x90] sm:$0xff] }
  0x14   : > { %1028 = vst [vmem:[%s8948_s7 + $0x20] sm:$0xff] %v1027_v4  ;;  %v1039_v10 = vld [vmem:[%s8943_s6 + $0xa0] sm:$0xff]  ;;  %v1041_v11 = vld [vmem:[%s8943_s6 + $0xb0] sm:$0xff] }
  0x15   : > { %1030 = vst [vmem:[%s8948_s7 + $0x28] sm:$0xff] %v1029_v5  ;;  %v1043_v12 = vld [vmem:[%s8943_s6 + $0xc0] sm:$0xff]  ;;  %v1045_v13 = vld [vmem:[%s8943_s6 + $0xd0] sm:$0xff] }
  0x16   : > { %1032 = vst [vmem:[%s8948_s7 + $0x30] sm:$0xff] %v1031_v6  ;;  %v1047_v14 = vld [vmem:[%s8943_s6 + $0xe0] sm:$0xff]  ;;  %v1049_v15 = vld [vmem:[%s8943_s6 + $0xf0] sm:$0xff] }
  0x17   : > { %1034 = vst [vmem:[%s8948_s7 + $0x38] sm:$0xff] %v1033_v7  ;;  %v1051_v16 = vld [vmem:[%s8943_s6 + $0x100] sm:$0xff]  ;;  %v1053_v17 = vld [vmem:[%s8943_s6 + $0x110] sm:$0xff] }
  0x18   : > { %1036 = vst [vmem:[%s8948_s7 + $0x40] sm:$0xff] %v1035_v8  ;;  %v1055_v18 = vld [vmem:[%s8943_s6 + $0x120] sm:$0xff]  ;;  %v1057_v19 = vld [vmem:[%s8943_s6 + $0x130] sm:$0xff] }
  0x19   : > { %1038 = vst [vmem:[%s8948_s7 + $0x48] sm:$0xff] %v1037_v9  ;;  %v1059_v20 = vld [vmem:[%s8943_s6 + $0x140] sm:$0xff]  ;;  %v1061_v21 = vld [vmem:[%s8943_s6 + $0x150] sm:$0xff] }
  0x1a   : > { %1040 = vst [vmem:[%s8948_s7 + $0x50] sm:$0xff] %v1039_v10  ;;  %v1063_v22 = vld [vmem:[%s8943_s6 + $0x160] sm:$0xff]  ;;  %v1065_v23 = vld [vmem:[%s8943_s6 + $0x170] sm:$0xff] }
  0x1b   : > { %1042 = vst [vmem:[%s8948_s7 + $0x58] sm:$0xff] %v1041_v11  ;;  %v1067_v24 = vld [vmem:[%s8943_s6 + $0x180] sm:$0xff]  ;;  %v1069_v25 = vld [vmem:[%s8943_s6 + $0x190] sm:$0xff] }
  0x1c   : > { %1044 = vst [vmem:[%s8948_s7 + $0x60] sm:$0xff] %v1043_v12  ;;  %v1071_v26 = vld [vmem:[%s8943_s6 + $0x1a0] sm:$0xff]  ;;  %v1073_v27 = vld [vmem:[%s8943_s6 + $0x1b0] sm:$0xff] }
  0x1d   : > { %1046 = vst [vmem:[%s8948_s7 + $0x68] sm:$0xff] %v1045_v13  ;;  %v1075_v28 = vld [vmem:[%s8943_s6 + $0x1c0] sm:$0xff]  ;;  %v1077_v29 = vld [vmem:[%s8943_s6 + $0x1d0] sm:$0xff] }
  0x1e   : > { %1048 = vst [vmem:[%s8948_s7 + $0x70] sm:$0xff] %v1047_v14  ;;  %v1079_v30 = vld [vmem:[%s8943_s6 + $0x1e0] sm:$0xff]  ;;  %v1081_v31 = vld [vmem:[%s8943_s6 + $0x1f0] sm:$0xff] }
  0x1f   : > { %1050 = vst [vmem:[%s8948_s7 + $0x78] sm:$0xff] %v1049_v15  ;;  %v1083_v32 = vld [vmem:[%s8943_s6 + $0x200] sm:$0xff]  ;;  %v1085_v33 = vld [vmem:[%s8943_s6 + $0x210] sm:$0xff] }
  0x20   : > { %1052 = vst [vmem:[%s8948_s7 + $0x80] sm:$0xff] %v1051_v16  ;;  %v1087_v34 = vld [vmem:[%s8943_s6 + $0x220] sm:$0xff]  ;;  %v1089_v35 = vld [vmem:[%s8943_s6 + $0x230] sm:$0xff] }
  0x21   : > { %1054 = vst [vmem:[%s8948_s7 + $0x88] sm:$0xff] %v1053_v17  ;;  %v1091_v36 = vld [vmem:[%s8943_s6 + $0x240] sm:$0xff]  ;;  %v1093_v37 = vld [vmem:[%s8943_s6 + $0x250] sm:$0xff] }
  0x22   : > { %1056 = vst [vmem:[%s8948_s7 + $0x90] sm:$0xff] %v1055_v18  ;;  %v1095_v38 = vld [vmem:[%s8943_s6 + $0x260] sm:$0xff]  ;;  %v1097_v39 = vld [vmem:[%s8943_s6 + $0x270] sm:$0xff] }
  0x23   : > { %1058 = vst [vmem:[%s8948_s7 + $0x98] sm:$0xff] %v1057_v19  ;;  %v1099_v40 = vld [vmem:[%s8943_s6 + $0x280] sm:$0xff]  ;;  %v1101_v41 = vld [vmem:[%s8943_s6 + $0x290] sm:$0xff] }
  0x24   : > { %1060 = vst [vmem:[%s8948_s7 + $0xa0] sm:$0xff] %v1059_v20  ;;  %v1103_v42 = vld [vmem:[%s8943_s6 + $0x2a0] sm:$0xff]  ;;  %v1105_v43 = vld [vmem:[%s8943_s6 + $0x2b0] sm:$0xff] }
  0x25   : > { %1062 = vst [vmem:[%s8948_s7 + $0xa8] sm:$0xff] %v1061_v21  ;;  %v1107_v44 = vld [vmem:[%s8943_s6 + $0x2c0] sm:$0xff]  ;;  %v1109_v45 = vld [vmem:[%s8943_s6 + $0x2d0] sm:$0xff] }
  0x26   : > { %1064 = vst [vmem:[%s8948_s7 + $0xb0] sm:$0xff] %v1063_v22  ;;  %v1111_v46 = vld [vmem:[%s8943_s6 + $0x2e0] sm:$0xff]  ;;  %v1113_v47 = vld [vmem:[%s8943_s6 + $0x2f0] sm:$0xff] }
  0x27   : > { %1066 = vst [vmem:[%s8948_s7 + $0xb8] sm:$0xff] %v1065_v23  ;;  %v1115_v48 = vld [vmem:[%s8943_s6 + $0x300] sm:$0xff]  ;;  %v1117_v49 = vld [vmem:[%s8943_s6 + $0x310] sm:$0xff] }
  0x28   : > { %1068 = vst [vmem:[%s8948_s7 + $0xc0] sm:$0xff] %v1067_v24  ;;  %v1119_v50 = vld [vmem:[%s8943_s6 + $0x320] sm:$0xff]  ;;  %v1121_v51 = vld [vmem:[%s8943_s6 + $0x330] sm:$0xff] }
  0x29   : > { %1070 = vst [vmem:[%s8948_s7 + $0xc8] sm:$0xff] %v1069_v25  ;;  %v1123_v52 = vld [vmem:[%s8943_s6 + $0x340] sm:$0xff]  ;;  %v1125_v53 = vld [vmem:[%s8943_s6 + $0x350] sm:$0xff] }
  0x2a   : > { %1072 = vst [vmem:[%s8948_s7 + $0xd0] sm:$0xff] %v1071_v26  ;;  %v1127_v54 = vld [vmem:[%s8943_s6 + $0x360] sm:$0xff]  ;;  %v1129_v55 = vld [vmem:[%s8943_s6 + $0x370] sm:$0xff] }
  0x2b   : > { %1074 = vst [vmem:[%s8948_s7 + $0xd8] sm:$0xff] %v1073_v27  ;;  %v1131_v56 = vld [vmem:[%s8943_s6 + $0x380] sm:$0xff]  ;;  %v1133_v57 = vld [vmem:[%s8943_s6 + $0x390] sm:$0xff] }
  0x2c   : > { %1076 = vst [vmem:[%s8948_s7 + $0xe0] sm:$0xff] %v1075_v28  ;;  %v1135_v58 = vld [vmem:[%s8943_s6 + $0x3a0] sm:$0xff]  ;;  %v1137_v59 = vld [vmem:[%s8943_s6 + $0x3b0] sm:$0xff] }
  0x2d   : > { %1078 = vst [vmem:[%s8948_s7 + $0xe8] sm:$0xff] %v1077_v29  ;;  %v1139_v60 = vld [vmem:[%s8943_s6 + $0x3c0] sm:$0xff]  ;;  %v1141_v61 = vld [vmem:[%s8943_s6 + $0x3d0] sm:$0xff] }
  0x2e   : > { %1080 = vst [vmem:[%s8948_s7 + $0xf0] sm:$0xff] %v1079_v30  ;;  %v1143_v62 = vld [vmem:[%s8943_s6 + $0x3e0] sm:$0xff]  ;;  %v1145_v63 = vld [vmem:[%s8943_s6 + $0x3f0] sm:$0xff] }
  0x2f   : > { %1082 = vst [vmem:[%s8948_s7 + $0xf8] sm:$0xff] %v1081_v31  ;;  %v1147_v0 = vld [vmem:[%s8943_s6 + $0x400] sm:$0xff]  ;;  %v1149_v1 = vld [vmem:[%s8943_s6 + $0x410] sm:$0xff] }
  0x30   : > { %1084 = vst [vmem:[%s8948_s7 + $0x100] sm:$0xff] %v1083_v32  ;;  %v1151_v2 = vld [vmem:[%s8943_s6 + $0x420] sm:$0xff]  ;;  %v1153_v3 = vld [vmem:[%s8943_s6 + $0x430] sm:$0xff] }
  0x31   : > { %1086 = vst [vmem:[%s8948_s7 + $0x108] sm:$0xff] %v1085_v33  ;;  %v1155_v4 = vld [vmem:[%s8943_s6 + $0x440] sm:$0xff]  ;;  %v1157_v5 = vld [vmem:[%s8943_s6 + $0x450] sm:$0xff] }
  0x32   : > { %1088 = vst [vmem:[%s8948_s7 + $0x110] sm:$0xff] %v1087_v34  ;;  %v1159_v6 = vld [vmem:[%s8943_s6 + $0x460] sm:$0xff]  ;;  %v1161_v7 = vld [vmem:[%s8943_s6 + $0x470] sm:$0xff] }
  0x33   : > { %1090 = vst [vmem:[%s8948_s7 + $0x118] sm:$0xff] %v1089_v35  ;;  %v1163_v8 = vld [vmem:[%s8943_s6 + $0x480] sm:$0xff]  ;;  %v1165_v9 = vld [vmem:[%s8943_s6 + $0x490] sm:$0xff] }
  0x34   : > { %1092 = vst [vmem:[%s8948_s7 + $0x120] sm:$0xff] %v1091_v36  ;;  %v1167_v10 = vld [vmem:[%s8943_s6 + $0x4a0] sm:$0xff]  ;;  %v1169_v11 = vld [vmem:[%s8943_s6 + $0x4b0] sm:$0xff] }
  0x35   : > { %1094 = vst [vmem:[%s8948_s7 + $0x128] sm:$0xff] %v1093_v37  ;;  %v1171_v12 = vld [vmem:[%s8943_s6 + $0x4c0] sm:$0xff]  ;;  %v1173_v13 = vld [vmem:[%s8943_s6 + $0x4d0] sm:$0xff] }
  0x36   : > { %1096 = vst [vmem:[%s8948_s7 + $0x130] sm:$0xff] %v1095_v38  ;;  %v1175_v14 = vld [vmem:[%s8943_s6 + $0x4e0] sm:$0xff]  ;;  %v1177_v15 = vld [vmem:[%s8943_s6 + $0x4f0] sm:$0xff] }
  0x37   : > { %1098 = vst [vmem:[%s8948_s7 + $0x138] sm:$0xff] %v1097_v39  ;;  %v1179_v16 = vld [vmem:[%s8943_s6 + $0x500] sm:$0xff]  ;;  %v1181_v17 = vld [vmem:[%s8943_s6 + $0x510] sm:$0xff] }
  0x38   : > { %1100 = vst [vmem:[%s8948_s7 + $0x140] sm:$0xff] %v1099_v40  ;;  %v1183_v18 = vld [vmem:[%s8943_s6 + $0x520] sm:$0xff]  ;;  %v1185_v19 = vld [vmem:[%s8943_s6 + $0x530] sm:$0xff] }
  0x39   : > { %1102 = vst [vmem:[%s8948_s7 + $0x148] sm:$0xff] %v1101_v41  ;;  %v1187_v20 = vld [vmem:[%s8943_s6 + $0x540] sm:$0xff]  ;;  %v1189_v21 = vld [vmem:[%s8943_s6 + $0x550] sm:$0xff] }
  0x3a   : > { %1104 = vst [vmem:[%s8948_s7 + $0x150] sm:$0xff] %v1103_v42  ;;  %v1191_v22 = vld [vmem:[%s8943_s6 + $0x560] sm:$0xff]  ;;  %v1193_v23 = vld [vmem:[%s8943_s6 + $0x570] sm:$0xff] }
  0x3b   : > { %1106 = vst [vmem:[%s8948_s7 + $0x158] sm:$0xff] %v1105_v43  ;;  %v1195_v24 = vld [vmem:[%s8943_s6 + $0x580] sm:$0xff]  ;;  %v1197_v25 = vld [vmem:[%s8943_s6 + $0x590] sm:$0xff] }
  0x3c   : > { %1108 = vst [vmem:[%s8948_s7 + $0x160] sm:$0xff] %v1107_v44  ;;  %v1199_v26 = vld [vmem:[%s8943_s6 + $0x5a0] sm:$0xff]  ;;  %v1201_v27 = vld [vmem:[%s8943_s6 + $0x5b0] sm:$0xff] }
  0x3d   : > { %1110 = vst [vmem:[%s8948_s7 + $0x168] sm:$0xff] %v1109_v45  ;;  %v1203_v28 = vld [vmem:[%s8943_s6 + $0x5c0] sm:$0xff]  ;;  %v1205_v29 = vld [vmem:[%s8943_s6 + $0x5d0] sm:$0xff] }
  0x3e   : > { %1112 = vst [vmem:[%s8948_s7 + $0x170] sm:$0xff] %v1111_v46  ;;  %v1207_v30 = vld [vmem:[%s8943_s6 + $0x5e0] sm:$0xff]  ;;  %v1209_v31 = vld [vmem:[%s8943_s6 + $0x5f0] sm:$0xff] }
  0x3f   : > { %1114 = vst [vmem:[%s8948_s7 + $0x178] sm:$0xff] %v1113_v47  ;;  %v1211_v32 = vld [vmem:[%s8943_s6 + $0x600] sm:$0xff]  ;;  %v1213_v33 = vld [vmem:[%s8943_s6 + $0x610] sm:$0xff] }
  0x40   : > { %1116 = vst [vmem:[%s8948_s7 + $0x180] sm:$0xff] %v1115_v48  ;;  %v1215_v34 = vld [vmem:[%s8943_s6 + $0x620] sm:$0xff]  ;;  %v1217_v35 = vld [vmem:[%s8943_s6 + $0x630] sm:$0xff] }
  0x41   : > { %1118 = vst [vmem:[%s8948_s7 + $0x188] sm:$0xff] %v1117_v49  ;;  %v1219_v36 = vld [vmem:[%s8943_s6 + $0x640] sm:$0xff]  ;;  %v1221_v37 = vld [vmem:[%s8943_s6 + $0x650] sm:$0xff] }
  0x42   : > { %1120 = vst [vmem:[%s8948_s7 + $0x190] sm:$0xff] %v1119_v50  ;;  %v1223_v38 = vld [vmem:[%s8943_s6 + $0x660] sm:$0xff]  ;;  %v1225_v39 = vld [vmem:[%s8943_s6 + $0x670] sm:$0xff] }
  0x43   : > { %1122 = vst [vmem:[%s8948_s7 + $0x198] sm:$0xff] %v1121_v51  ;;  %v1227_v40 = vld [vmem:[%s8943_s6 + $0x680] sm:$0xff]  ;;  %v1229_v41 = vld [vmem:[%s8943_s6 + $0x690] sm:$0xff] }
  0x44   : > { %1124 = vst [vmem:[%s8948_s7 + $0x1a0] sm:$0xff] %v1123_v52  ;;  %v1231_v42 = vld [vmem:[%s8943_s6 + $0x6a0] sm:$0xff]  ;;  %v1233_v43 = vld [vmem:[%s8943_s6 + $0x6b0] sm:$0xff] }
  0x45   : > { %1126 = vst [vmem:[%s8948_s7 + $0x1a8] sm:$0xff] %v1125_v53  ;;  %v1235_v44 = vld [vmem:[%s8943_s6 + $0x6c0] sm:$0xff]  ;;  %v1237_v45 = vld [vmem:[%s8943_s6 + $0x6d0] sm:$0xff] }
  0x46   : > { %1128 = vst [vmem:[%s8948_s7 + $0x1b0] sm:$0xff] %v1127_v54  ;;  %v1239_v46 = vld [vmem:[%s8943_s6 + $0x6e0] sm:$0xff]  ;;  %v1241_v47 = vld [vmem:[%s8943_s6 + $0x6f0] sm:$0xff] }
  0x47   : > { %1130 = vst [vmem:[%s8948_s7 + $0x1b8] sm:$0xff] %v1129_v55  ;;  %v1243_v48 = vld [vmem:[%s8943_s6 + $0x700] sm:$0xff]  ;;  %v1245_v49 = vld [vmem:[%s8943_s6 + $0x710] sm:$0xff] }
  0x48   : > { %1132 = vst [vmem:[%s8948_s7 + $0x1c0] sm:$0xff] %v1131_v56  ;;  %v1247_v50 = vld [vmem:[%s8943_s6 + $0x720] sm:$0xff]  ;;  %v1249_v51 = vld [vmem:[%s8943_s6 + $0x730] sm:$0xff] }
  0x49   : > { %1134 = vst [vmem:[%s8948_s7 + $0x1c8] sm:$0xff] %v1133_v57  ;;  %v1251_v52 = vld [vmem:[%s8943_s6 + $0x740] sm:$0xff]  ;;  %v1253_v53 = vld [vmem:[%s8943_s6 + $0x750] sm:$0xff] }
  0x4a   : > { %1136 = vst [vmem:[%s8948_s7 + $0x1d0] sm:$0xff] %v1135_v58  ;;  %v1255_v54 = vld [vmem:[%s8943_s6 + $0x760] sm:$0xff]  ;;  %v1257_v55 = vld [vmem:[%s8943_s6 + $0x770] sm:$0xff] }
  0x4b   : > { %1138 = vst [vmem:[%s8948_s7 + $0x1d8] sm:$0xff] %v1137_v59  ;;  %v1259_v56 = vld [vmem:[%s8943_s6 + $0x780] sm:$0xff]  ;;  %v1261_v57 = vld [vmem:[%s8943_s6 + $0x790] sm:$0xff] }
  0x4c   : > { %1140 = vst [vmem:[%s8948_s7 + $0x1e0] sm:$0xff] %v1139_v60  ;;  %v1263_v58 = vld [vmem:[%s8943_s6 + $0x7a0] sm:$0xff]  ;;  %v1265_v59 = vld [vmem:[%s8943_s6 + $0x7b0] sm:$0xff] }
  0x4d   : > { %1142 = vst [vmem:[%s8948_s7 + $0x1e8] sm:$0xff] %v1141_v61  ;;  %v1267_v60 = vld [vmem:[%s8943_s6 + $0x7c0] sm:$0xff]  ;;  %v1269_v61 = vld [vmem:[%s8943_s6 + $0x7d0] sm:$0xff] }
  0x4e   : > { %1144 = vst [vmem:[%s8948_s7 + $0x1f0] sm:$0xff] %v1143_v62  ;;  %v1271_v62 = vld [vmem:[%s8943_s6 + $0x7e0] sm:$0xff] }
  0x4f   : > { %1146 = vst [vmem:[%s8948_s7 + $0x1f8] sm:$0xff] %v1145_v63  ;;  %v1273_v63 = vld [vmem:[%s8943_s6 + $0x7f0] sm:$0xff] }
  0x50   : > { %1148 = vst [vmem:[%s8948_s7 + $0x200] sm:$0xff] %v1147_v0  ;;  %v1275_v0 = vld [vmem:[%s8943_s6 + $0x800] sm:$0xff] }
  0x51   : > { %1150 = vst [vmem:[%s8948_s7 + $0x208] sm:$0xff] %v1149_v1  ;;  %v1277_v1 = vld [vmem:[%s8943_s6 + $0x810] sm:$0xff] }
  0x52   : > { %1152 = vst [vmem:[%s8948_s7 + $0x210] sm:$0xff] %v1151_v2  ;;  %v1279_v2 = vld [vmem:[%s8943_s6 + $0x820] sm:$0xff] }
  0x53   : > { %1154 = vst [vmem:[%s8948_s7 + $0x218] sm:$0xff] %v1153_v3  ;;  %v1281_v3 = vld [vmem:[%s8943_s6 + $0x830] sm:$0xff] }
  0x54   : > { %1156 = vst [vmem:[%s8948_s7 + $0x220] sm:$0xff] %v1155_v4  ;;  %v1283_v4 = vld [vmem:[%s8943_s6 + $0x840] sm:$0xff] }
  0x55   : > { %1158 = vst [vmem:[%s8948_s7 + $0x228] sm:$0xff] %v1157_v5  ;;  %v1285_v5 = vld [vmem:[%s8943_s6 + $0x850] sm:$0xff] }
  0x56   : > { %1160 = vst [vmem:[%s8948_s7 + $0x230] sm:$0xff] %v1159_v6  ;;  %v1287_v6 = vld [vmem:[%s8943_s6 + $0x860] sm:$0xff] }
  0x57   : > { %1162 = vst [vmem:[%s8948_s7 + $0x238] sm:$0xff] %v1161_v7  ;;  %v1289_v7 = vld [vmem:[%s8943_s6 + $0x870] sm:$0xff] }
  0x58   : > { %1164 = vst [vmem:[%s8948_s7 + $0x240] sm:$0xff] %v1163_v8  ;;  %v1291_v8 = vld [vmem:[%s8943_s6 + $0x880] sm:$0xff] }
  0x59   : > { %1166 = vst [vmem:[%s8948_s7 + $0x248] sm:$0xff] %v1165_v9  ;;  %v1293_v9 = vld [vmem:[%s8943_s6 + $0x890] sm:$0xff] }
  0x5a   : > { %1168 = vst [vmem:[%s8948_s7 + $0x250] sm:$0xff] %v1167_v10  ;;  %v1295_v10 = vld [vmem:[%s8943_s6 + $0x8a0] sm:$0xff] }
  0x5b   : > { %1170 = vst [vmem:[%s8948_s7 + $0x258] sm:$0xff] %v1169_v11  ;;  %v1297_v11 = vld [vmem:[%s8943_s6 + $0x8b0] sm:$0xff] }
  0x5c   : > { %1172 = vst [vmem:[%s8948_s7 + $0x260] sm:$0xff] %v1171_v12  ;;  %v1299_v12 = vld [vmem:[%s8943_s6 + $0x8c0] sm:$0xff] }
  0x5d   : > { %1174 = vst [vmem:[%s8948_s7 + $0x268] sm:$0xff] %v1173_v13  ;;  %v1301_v13 = vld [vmem:[%s8943_s6 + $0x8d0] sm:$0xff] }
  0x5e   : > { %1176 = vst [vmem:[%s8948_s7 + $0x270] sm:$0xff] %v1175_v14  ;;  %v1303_v14 = vld [vmem:[%s8943_s6 + $0x8e0] sm:$0xff] }
  0x5f   : > { %1178 = vst [vmem:[%s8948_s7 + $0x278] sm:$0xff] %v1177_v15  ;;  %v1305_v15 = vld [vmem:[%s8943_s6 + $0x8f0] sm:$0xff] }
  0x60   : > { %1180 = vst [vmem:[%s8948_s7 + $0x280] sm:$0xff] %v1179_v16  ;;  %v1307_v16 = vld [vmem:[%s8943_s6 + $0x900] sm:$0xff] }
  0x61   : > { %1182 = vst [vmem:[%s8948_s7 + $0x288] sm:$0xff] %v1181_v17  ;;  %v1309_v17 = vld [vmem:[%s8943_s6 + $0x910] sm:$0xff] }
  0x62   : > { %1184 = vst [vmem:[%s8948_s7 + $0x290] sm:$0xff] %v1183_v18  ;;  %v1311_v18 = vld [vmem:[%s8943_s6 + $0x920] sm:$0xff] }
  0x63   : > { %1186 = vst [vmem:[%s8948_s7 + $0x298] sm:$0xff] %v1185_v19  ;;  %v1313_v19 = vld [vmem:[%s8943_s6 + $0x930] sm:$0xff] }
  0x64   : > { %1188 = vst [vmem:[%s8948_s7 + $0x2a0] sm:$0xff] %v1187_v20  ;;  %v1315_v20 = vld [vmem:[%s8943_s6 + $0x940] sm:$0xff] }
  0x65   : > { %1190 = vst [vmem:[%s8948_s7 + $0x2a8] sm:$0xff] %v1189_v21  ;;  %v1317_v21 = vld [vmem:[%s8943_s6 + $0x950] sm:$0xff] }
  0x66   : > { %1192 = vst [vmem:[%s8948_s7 + $0x2b0] sm:$0xff] %v1191_v22  ;;  %v1319_v22 = vld [vmem:[%s8943_s6 + $0x960] sm:$0xff] }
  0x67   : > { %1194 = vst [vmem:[%s8948_s7 + $0x2b8] sm:$0xff] %v1193_v23  ;;  %v1321_v23 = vld [vmem:[%s8943_s6 + $0x970] sm:$0xff] }
  0x68   : > { %1196 = vst [vmem:[%s8948_s7 + $0x2c0] sm:$0xff] %v1195_v24  ;;  %v1323_v24 = vld [vmem:[%s8943_s6 + $0x980] sm:$0xff] }
  0x69   : > { %1198 = vst [vmem:[%s8948_s7 + $0x2c8] sm:$0xff] %v1197_v25  ;;  %v1325_v25 = vld [vmem:[%s8943_s6 + $0x990] sm:$0xff] }
  0x6a   : > { %1200 = vst [vmem:[%s8948_s7 + $0x2d0] sm:$0xff] %v1199_v26  ;;  %v1327_v26 = vld [vmem:[%s8943_s6 + $0x9a0] sm:$0xff] }
  0x6b   : > { %1202 = vst [vmem:[%s8948_s7 + $0x2d8] sm:$0xff] %v1201_v27  ;;  %v1329_v27 = vld [vmem:[%s8943_s6 + $0x9b0] sm:$0xff] }
  0x6c   : > { %1204 = vst [vmem:[%s8948_s7 + $0x2e0] sm:$0xff] %v1203_v28  ;;  %v1331_v28 = vld [vmem:[%s8943_s6 + $0x9c0] sm:$0xff] }
  0x6d   : > { %1206 = vst [vmem:[%s8948_s7 + $0x2e8] sm:$0xff] %v1205_v29  ;;  %v1333_v29 = vld [vmem:[%s8943_s6 + $0x9d0] sm:$0xff] }
  0x6e   : > { %1208 = vst [vmem:[%s8948_s7 + $0x2f0] sm:$0xff] %v1207_v30  ;;  %v1335_v30 = vld [vmem:[%s8943_s6 + $0x9e0] sm:$0xff] }
  0x6f   : > { %1210 = vst [vmem:[%s8948_s7 + $0x2f8] sm:$0xff] %v1209_v31  ;;  %v1337_v31 = vld [vmem:[%s8943_s6 + $0x9f0] sm:$0xff] }
  0x70   : > { %1212 = vst [vmem:[%s8948_s7 + $0x300] sm:$0xff] %v1211_v32  ;;  %v1339_v32 = vld [vmem:[%s8943_s6 + $0xa00] sm:$0xff] }
  0x71   : > { %1214 = vst [vmem:[%s8948_s7 + $0x308] sm:$0xff] %v1213_v33  ;;  %v1341_v33 = vld [vmem:[%s8943_s6 + $0xa10] sm:$0xff] }
  0x72   : > { %1216 = vst [vmem:[%s8948_s7 + $0x310] sm:$0xff] %v1215_v34  ;;  %v1343_v34 = vld [vmem:[%s8943_s6 + $0xa20] sm:$0xff] }
  0x73   : > { %1218 = vst [vmem:[%s8948_s7 + $0x318] sm:$0xff] %v1217_v35  ;;  %v1345_v35 = vld [vmem:[%s8943_s6 + $0xa30] sm:$0xff] }
  0x74   : > { %1220 = vst [vmem:[%s8948_s7 + $0x320] sm:$0xff] %v1219_v36  ;;  %v1347_v36 = vld [vmem:[%s8943_s6 + $0xa40] sm:$0xff] }
  0x75   : > { %1222 = vst [vmem:[%s8948_s7 + $0x328] sm:$0xff] %v1221_v37  ;;  %v1349_v37 = vld [vmem:[%s8943_s6 + $0xa50] sm:$0xff] }
  0x76   : > { %1224 = vst [vmem:[%s8948_s7 + $0x330] sm:$0xff] %v1223_v38  ;;  %v1351_v38 = vld [vmem:[%s8943_s6 + $0xa60] sm:$0xff] }
  0x77   : > { %1226 = vst [vmem:[%s8948_s7 + $0x338] sm:$0xff] %v1225_v39  ;;  %v1353_v39 = vld [vmem:[%s8943_s6 + $0xa70] sm:$0xff] }
  0x78   : > { %1228 = vst [vmem:[%s8948_s7 + $0x340] sm:$0xff] %v1227_v40  ;;  %v1355_v40 = vld [vmem:[%s8943_s6 + $0xa80] sm:$0xff] }
  0x79   : > { %1230 = vst [vmem:[%s8948_s7 + $0x348] sm:$0xff] %v1229_v41  ;;  %v1357_v41 = vld [vmem:[%s8943_s6 + $0xa90] sm:$0xff] }
  0x7a   : > { %1232 = vst [vmem:[%s8948_s7 + $0x350] sm:$0xff] %v1231_v42  ;;  %v1359_v42 = vld [vmem:[%s8943_s6 + $0xaa0] sm:$0xff] }
  0x7b   : > { %1234 = vst [vmem:[%s8948_s7 + $0x358] sm:$0xff] %v1233_v43  ;;  %v1361_v43 = vld [vmem:[%s8943_s6 + $0xab0] sm:$0xff] }
  0x7c   : > { %1236 = vst [vmem:[%s8948_s7 + $0x360] sm:$0xff] %v1235_v44  ;;  %v1363_v44 = vld [vmem:[%s8943_s6 + $0xac0] sm:$0xff] }
  0x7d   : > { %1238 = vst [vmem:[%s8948_s7 + $0x368] sm:$0xff] %v1237_v45  ;;  %v1365_v45 = vld [vmem:[%s8943_s6 + $0xad0] sm:$0xff] }
  0x7e   : > { %1240 = vst [vmem:[%s8948_s7 + $0x370] sm:$0xff] %v1239_v46  ;;  %v1367_v46 = vld [vmem:[%s8943_s6 + $0xae0] sm:$0xff] }
  0x7f   : > { %1242 = vst [vmem:[%s8948_s7 + $0x378] sm:$0xff] %v1241_v47  ;;  %v1369_v47 = vld [vmem:[%s8943_s6 + $0xaf0] sm:$0xff] }
  0x80   : > { %1244 = vst [vmem:[%s8948_s7 + $0x380] sm:$0xff] %v1243_v48  ;;  %v1371_v48 = vld [vmem:[%s8943_s6 + $0xb00] sm:$0xff] }
  0x81   : > { %1246 = vst [vmem:[%s8948_s7 + $0x388] sm:$0xff] %v1245_v49  ;;  %v1373_v49 = vld [vmem:[%s8943_s6 + $0xb10] sm:$0xff] }
  0x82   : > { %1248 = vst [vmem:[%s8948_s7 + $0x390] sm:$0xff] %v1247_v50  ;;  %v1375_v50 = vld [vmem:[%s8943_s6 + $0xb20] sm:$0xff] }
  0x83   : > { %1250 = vst [vmem:[%s8948_s7 + $0x398] sm:$0xff] %v1249_v51  ;;  %v1377_v51 = vld [vmem:[%s8943_s6 + $0xb30] sm:$0xff] }
  0x84   : > { %1252 = vst [vmem:[%s8948_s7 + $0x3a0] sm:$0xff] %v1251_v52  ;;  %v1379_v52 = vld [vmem:[%s8943_s6 + $0xb40] sm:$0xff] }
  0x85   : > { %1254 = vst [vmem:[%s8948_s7 + $0x3a8] sm:$0xff] %v1253_v53  ;;  %v1381_v53 = vld [vmem:[%s8943_s6 + $0xb50] sm:$0xff] }
  0x86   : > { %1256 = vst [vmem:[%s8948_s7 + $0x3b0] sm:$0xff] %v1255_v54  ;;  %v1383_v54 = vld [vmem:[%s8943_s6 + $0xb60] sm:$0xff] }
  0x87   : > { %1258 = vst [vmem:[%s8948_s7 + $0x3b8] sm:$0xff] %v1257_v55  ;;  %v1385_v55 = vld [vmem:[%s8943_s6 + $0xb70] sm:$0xff] }
  0x88   : > { %1260 = vst [vmem:[%s8948_s7 + $0x3c0] sm:$0xff] %v1259_v56  ;;  %v1387_v56 = vld [vmem:[%s8943_s6 + $0xb80] sm:$0xff] }
  0x89   : > { %1262 = vst [vmem:[%s8948_s7 + $0x3c8] sm:$0xff] %v1261_v57  ;;  %v1389_v57 = vld [vmem:[%s8943_s6 + $0xb90] sm:$0xff] }
  0x8a   : > { %1264 = vst [vmem:[%s8948_s7 + $0x3d0] sm:$0xff] %v1263_v58  ;;  %v1391_v58 = vld [vmem:[%s8943_s6 + $0xba0] sm:$0xff] }
  0x8b   : > { %1266 = vst [vmem:[%s8948_s7 + $0x3d8] sm:$0xff] %v1265_v59  ;;  %v1393_v59 = vld [vmem:[%s8943_s6 + $0xbb0] sm:$0xff] }
  0x8c   : > { %1268 = vst [vmem:[%s8948_s7 + $0x3e0] sm:$0xff] %v1267_v60  ;;  %v1395_v60 = vld [vmem:[%s8943_s6 + $0xbc0] sm:$0xff] }
  0x8d   : > { %1270 = vst [vmem:[%s8948_s7 + $0x3e8] sm:$0xff] %v1269_v61  ;;  %v1397_v61 = vld [vmem:[%s8943_s6 + $0xbd0] sm:$0xff] }
  0x8e   : > { %1272 = vst [vmem:[%s8948_s7 + $0x3f0] sm:$0xff] %v1271_v62  ;;  %v1399_v62 = vld [vmem:[%s8943_s6 + $0xbe0] sm:$0xff] }
  0x8f   : > { %1274 = vst [vmem:[%s8948_s7 + $0x3f8] sm:$0xff] %v1273_v63  ;;  %v1401_v63 = vld [vmem:[%s8943_s6 + $0xbf0] sm:$0xff] }
  0x90   : > { %1276 = vst [vmem:[%s8948_s7 + $0x400] sm:$0xff] %v1275_v0  ;;  %v1403_v0 = vld [vmem:[%s8943_s6 + $0xc00] sm:$0xff] }
  0x91   : > { %1278 = vst [vmem:[%s8948_s7 + $0x408] sm:$0xff] %v1277_v1  ;;  %v1405_v1 = vld [vmem:[%s8943_s6 + $0xc10] sm:$0xff] }
  0x92   : > { %1280 = vst [vmem:[%s8948_s7 + $0x410] sm:$0xff] %v1279_v2  ;;  %v1407_v2 = vld [vmem:[%s8943_s6 + $0xc20] sm:$0xff] }
  0x93   : > { %1282 = vst [vmem:[%s8948_s7 + $0x418] sm:$0xff] %v1281_v3  ;;  %v1409_v3 = vld [vmem:[%s8943_s6 + $0xc30] sm:$0xff] }
  0x94   : > { %1284 = vst [vmem:[%s8948_s7 + $0x420] sm:$0xff] %v1283_v4  ;;  %v1411_v4 = vld [vmem:[%s8943_s6 + $0xc40] sm:$0xff] }
  0x95   : > { %1286 = vst [vmem:[%s8948_s7 + $0x428] sm:$0xff] %v1285_v5  ;;  %v1413_v5 = vld [vmem:[%s8943_s6 + $0xc50] sm:$0xff] }
  0x96   : > { %1288 = vst [vmem:[%s8948_s7 + $0x430] sm:$0xff] %v1287_v6  ;;  %v1415_v6 = vld [vmem:[%s8943_s6 + $0xc60] sm:$0xff] }
  0x97   : > { %1290 = vst [vmem:[%s8948_s7 + $0x438] sm:$0xff] %v1289_v7  ;;  %v1417_v7 = vld [vmem:[%s8943_s6 + $0xc70] sm:$0xff] }
  0x98   : > { %1292 = vst [vmem:[%s8948_s7 + $0x440] sm:$0xff] %v1291_v8  ;;  %v1419_v8 = vld [vmem:[%s8943_s6 + $0xc80] sm:$0xff] }
  0x99   : > { %1294 = vst [vmem:[%s8948_s7 + $0x448] sm:$0xff] %v1293_v9  ;;  %v1421_v9 = vld [vmem:[%s8943_s6 + $0xc90] sm:$0xff] }
  0x9a   : > { %1296 = vst [vmem:[%s8948_s7 + $0x450] sm:$0xff] %v1295_v10  ;;  %v1423_v10 = vld [vmem:[%s8943_s6 + $0xca0] sm:$0xff] }
  0x9b   : > { %1298 = vst [vmem:[%s8948_s7 + $0x458] sm:$0xff] %v1297_v11  ;;  %v1425_v11 = vld [vmem:[%s8943_s6 + $0xcb0] sm:$0xff] }
  0x9c   : > { %1300 = vst [vmem:[%s8948_s7 + $0x460] sm:$0xff] %v1299_v12  ;;  %v1427_v12 = vld [vmem:[%s8943_s6 + $0xcc0] sm:$0xff] }
  0x9d   : > { %1302 = vst [vmem:[%s8948_s7 + $0x468] sm:$0xff] %v1301_v13  ;;  %v1429_v13 = vld [vmem:[%s8943_s6 + $0xcd0] sm:$0xff] }
  0x9e   : > { %1304 = vst [vmem:[%s8948_s7 + $0x470] sm:$0xff] %v1303_v14  ;;  %v1431_v14 = vld [vmem:[%s8943_s6 + $0xce0] sm:$0xff] }
  0x9f   : > { %1306 = vst [vmem:[%s8948_s7 + $0x478] sm:$0xff] %v1305_v15  ;;  %v1433_v15 = vld [vmem:[%s8943_s6 + $0xcf0] sm:$0xff] }
  0xa0   : > { %1308 = vst [vmem:[%s8948_s7 + $0x480] sm:$0xff] %v1307_v16  ;;  %v1435_v16 = vld [vmem:[%s8943_s6 + $0xd00] sm:$0xff] }
  0xa1   : > { %1310 = vst [vmem:[%s8948_s7 + $0x488] sm:$0xff] %v1309_v17  ;;  %v1437_v17 = vld [vmem:[%s8943_s6 + $0xd10] sm:$0xff] }
  0xa2   : > { %1312 = vst [vmem:[%s8948_s7 + $0x490] sm:$0xff] %v1311_v18  ;;  %v1439_v18 = vld [vmem:[%s8943_s6 + $0xd20] sm:$0xff] }
  0xa3   : > { %1314 = vst [vmem:[%s8948_s7 + $0x498] sm:$0xff] %v1313_v19  ;;  %v1441_v19 = vld [vmem:[%s8943_s6 + $0xd30] sm:$0xff] }
  0xa4   : > { %1316 = vst [vmem:[%s8948_s7 + $0x4a0] sm:$0xff] %v1315_v20  ;;  %v1443_v20 = vld [vmem:[%s8943_s6 + $0xd40] sm:$0xff] }
  0xa5   : > { %1318 = vst [vmem:[%s8948_s7 + $0x4a8] sm:$0xff] %v1317_v21  ;;  %v1445_v21 = vld [vmem:[%s8943_s6 + $0xd50] sm:$0xff] }
  0xa6   : > { %1320 = vst [vmem:[%s8948_s7 + $0x4b0] sm:$0xff] %v1319_v22  ;;  %v1447_v22 = vld [vmem:[%s8943_s6 + $0xd60] sm:$0xff] }
  0xa7   : > { %1322 = vst [vmem:[%s8948_s7 + $0x4b8] sm:$0xff] %v1321_v23  ;;  %v1449_v23 = vld [vmem:[%s8943_s6 + $0xd70] sm:$0xff] }
  0xa8   : > { %1324 = vst [vmem:[%s8948_s7 + $0x4c0] sm:$0xff] %v1323_v24  ;;  %v1451_v24 = vld [vmem:[%s8943_s6 + $0xd80] sm:$0xff] }
  0xa9   : > { %1326 = vst [vmem:[%s8948_s7 + $0x4c8] sm:$0xff] %v1325_v25  ;;  %v1453_v25 = vld [vmem:[%s8943_s6 + $0xd90] sm:$0xff] }
  0xaa   : > { %1328 = vst [vmem:[%s8948_s7 + $0x4d0] sm:$0xff] %v1327_v26  ;;  %v1455_v26 = vld [vmem:[%s8943_s6 + $0xda0] sm:$0xff] }
  0xab   : > { %1330 = vst [vmem:[%s8948_s7 + $0x4d8] sm:$0xff] %v1329_v27  ;;  %v1457_v27 = vld [vmem:[%s8943_s6 + $0xdb0] sm:$0xff] }
  0xac   : > { %1332 = vst [vmem:[%s8948_s7 + $0x4e0] sm:$0xff] %v1331_v28  ;;  %v1459_v28 = vld [vmem:[%s8943_s6 + $0xdc0] sm:$0xff] }
  0xad   : > { %1334 = vst [vmem:[%s8948_s7 + $0x4e8] sm:$0xff] %v1333_v29  ;;  %v1461_v29 = vld [vmem:[%s8943_s6 + $0xdd0] sm:$0xff] }
  0xae   : > { %1336 = vst [vmem:[%s8948_s7 + $0x4f0] sm:$0xff] %v1335_v30  ;;  %v1463_v30 = vld [vmem:[%s8943_s6 + $0xde0] sm:$0xff] }
  0xaf   : > { %1338 = vst [vmem:[%s8948_s7 + $0x4f8] sm:$0xff] %v1337_v31  ;;  %v1465_v31 = vld [vmem:[%s8943_s6 + $0xdf0] sm:$0xff] }
  0xb0   : > { %1340 = vst [vmem:[%s8948_s7 + $0x500] sm:$0xff] %v1339_v32  ;;  %v1467_v32 = vld [vmem:[%s8943_s6 + $0xe00] sm:$0xff] }
  0xb1   : > { %1342 = vst [vmem:[%s8948_s7 + $0x508] sm:$0xff] %v1341_v33  ;;  %v1469_v33 = vld [vmem:[%s8943_s6 + $0xe10] sm:$0xff] }
  0xb2   : > { %1344 = vst [vmem:[%s8948_s7 + $0x510] sm:$0xff] %v1343_v34  ;;  %v1471_v34 = vld [vmem:[%s8943_s6 + $0xe20] sm:$0xff] }
  0xb3   : > { %1346 = vst [vmem:[%s8948_s7 + $0x518] sm:$0xff] %v1345_v35  ;;  %v1473_v35 = vld [vmem:[%s8943_s6 + $0xe30] sm:$0xff] }
  0xb4   : > { %1348 = vst [vmem:[%s8948_s7 + $0x520] sm:$0xff] %v1347_v36  ;;  %v1475_v36 = vld [vmem:[%s8943_s6 + $0xe40] sm:$0xff] }
  0xb5   : > { %1350 = vst [vmem:[%s8948_s7 + $0x528] sm:$0xff] %v1349_v37  ;;  %v1477_v37 = vld [vmem:[%s8943_s6 + $0xe50] sm:$0xff] }
  0xb6   : > { %1352 = vst [vmem:[%s8948_s7 + $0x530] sm:$0xff] %v1351_v38  ;;  %v1479_v38 = vld [vmem:[%s8943_s6 + $0xe60] sm:$0xff] }
  0xb7   : > { %1354 = vst [vmem:[%s8948_s7 + $0x538] sm:$0xff] %v1353_v39  ;;  %v1481_v39 = vld [vmem:[%s8943_s6 + $0xe70] sm:$0xff] }
  0xb8   : > { %1356 = vst [vmem:[%s8948_s7 + $0x540] sm:$0xff] %v1355_v40  ;;  %v1483_v40 = vld [vmem:[%s8943_s6 + $0xe80] sm:$0xff] }
  0xb9   : > { %1358 = vst [vmem:[%s8948_s7 + $0x548] sm:$0xff] %v1357_v41  ;;  %v1485_v41 = vld [vmem:[%s8943_s6 + $0xe90] sm:$0xff] }
  0xba   : > { %1360 = vst [vmem:[%s8948_s7 + $0x550] sm:$0xff] %v1359_v42  ;;  %v1487_v42 = vld [vmem:[%s8943_s6 + $0xea0] sm:$0xff] }
  0xbb   : > { %1362 = vst [vmem:[%s8948_s7 + $0x558] sm:$0xff] %v1361_v43  ;;  %v1489_v43 = vld [vmem:[%s8943_s6 + $0xeb0] sm:$0xff] }
  0xbc   : > { %1364 = vst [vmem:[%s8948_s7 + $0x560] sm:$0xff] %v1363_v44  ;;  %v1491_v44 = vld [vmem:[%s8943_s6 + $0xec0] sm:$0xff] }
  0xbd   : > { %1366 = vst [vmem:[%s8948_s7 + $0x568] sm:$0xff] %v1365_v45  ;;  %v1493_v45 = vld [vmem:[%s8943_s6 + $0xed0] sm:$0xff] }
  0xbe   : > { %1368 = vst [vmem:[%s8948_s7 + $0x570] sm:$0xff] %v1367_v46  ;;  %v1495_v46 = vld [vmem:[%s8943_s6 + $0xee0] sm:$0xff] }
  0xbf   : > { %1370 = vst [vmem:[%s8948_s7 + $0x578] sm:$0xff] %v1369_v47  ;;  %v1497_v47 = vld [vmem:[%s8943_s6 + $0xef0] sm:$0xff] }
  0xc0   : > { %1372 = vst [vmem:[%s8948_s7 + $0x580] sm:$0xff] %v1371_v48  ;;  %v1499_v48 = vld [vmem:[%s8943_s6 + $0xf00] sm:$0xff] }
  0xc1   : > { %1374 = vst [vmem:[%s8948_s7 + $0x588] sm:$0xff] %v1373_v49  ;;  %v1501_v49 = vld [vmem:[%s8943_s6 + $0xf10] sm:$0xff] }
  0xc2   : > { %1376 = vst [vmem:[%s8948_s7 + $0x590] sm:$0xff] %v1375_v50  ;;  %v1503_v50 = vld [vmem:[%s8943_s6 + $0xf20] sm:$0xff] }
  0xc3   : > { %1378 = vst [vmem:[%s8948_s7 + $0x598] sm:$0xff] %v1377_v51  ;;  %v1505_v51 = vld [vmem:[%s8943_s6 + $0xf30] sm:$0xff] }
  0xc4   : > { %1380 = vst [vmem:[%s8948_s7 + $0x5a0] sm:$0xff] %v1379_v52  ;;  %v1507_v52 = vld [vmem:[%s8943_s6 + $0xf40] sm:$0xff] }
  0xc5   : > { %1382 = vst [vmem:[%s8948_s7 + $0x5a8] sm:$0xff] %v1381_v53  ;;  %v1509_v53 = vld [vmem:[%s8943_s6 + $0xf50] sm:$0xff] }
  0xc6   : > { %1384 = vst [vmem:[%s8948_s7 + $0x5b0] sm:$0xff] %v1383_v54  ;;  %v1511_v54 = vld [vmem:[%s8943_s6 + $0xf60] sm:$0xff] }
  0xc7   : > { %1386 = vst [vmem:[%s8948_s7 + $0x5b8] sm:$0xff] %v1385_v55  ;;  %v1513_v55 = vld [vmem:[%s8943_s6 + $0xf70] sm:$0xff] }
  0xc8   : > { %1388 = vst [vmem:[%s8948_s7 + $0x5c0] sm:$0xff] %v1387_v56  ;;  %v1515_v56 = vld [vmem:[%s8943_s6 + $0xf80] sm:$0xff] }
  0xc9   : > { %1390 = vst [vmem:[%s8948_s7 + $0x5c8] sm:$0xff] %v1389_v57  ;;  %v1517_v57 = vld [vmem:[%s8943_s6 + $0xf90] sm:$0xff] }
  0xca   : > { %1392 = vst [vmem:[%s8948_s7 + $0x5d0] sm:$0xff] %v1391_v58  ;;  %v1519_v58 = vld [vmem:[%s8943_s6 + $0xfa0] sm:$0xff] }
  0xcb   : > { %1394 = vst [vmem:[%s8948_s7 + $0x5d8] sm:$0xff] %v1393_v59  ;;  %v1521_v59 = vld [vmem:[%s8943_s6 + $0xfb0] sm:$0xff] }
  0xcc   : > { %1396 = vst [vmem:[%s8948_s7 + $0x5e0] sm:$0xff] %v1395_v60  ;;  %v1523_v60 = vld [vmem:[%s8943_s6 + $0xfc0] sm:$0xff] }
  0xcd   : > { %1398 = vst [vmem:[%s8948_s7 + $0x5e8] sm:$0xff] %v1397_v61  ;;  %v1525_v61 = vld [vmem:[%s8943_s6 + $0xfd0] sm:$0xff] }
  0xce   : > { %1400 = vst [vmem:[%s8948_s7 + $0x5f0] sm:$0xff] %v1399_v62  ;;  %v1527_v62 = vld [vmem:[%s8943_s6 + $0xfe0] sm:$0xff] }
  0xcf   : > { %1402 = vst [vmem:[%s8948_s7 + $0x5f8] sm:$0xff] %v1401_v63  ;;  %v1529_v63 = vld [vmem:[%s8943_s6 + $0xff0] sm:$0xff] }
  0xd0   : > { %1404 = vst [vmem:[%s8948_s7 + $0x600] sm:$0xff] %v1403_v0  ;;  %v1531_v0 = vld [vmem:[%s8943_s6 + $0x1000] sm:$0xff] }
  0xd1   : > { %1406 = vst [vmem:[%s8948_s7 + $0x608] sm:$0xff] %v1405_v1  ;;  %v1533_v1 = vld [vmem:[%s8943_s6 + $0x1010] sm:$0xff] }
  0xd2   : > { %1408 = vst [vmem:[%s8948_s7 + $0x610] sm:$0xff] %v1407_v2  ;;  %v1535_v2 = vld [vmem:[%s8943_s6 + $0x1020] sm:$0xff] }
  0xd3   : > { %1410 = vst [vmem:[%s8948_s7 + $0x618] sm:$0xff] %v1409_v3  ;;  %v1537_v3 = vld [vmem:[%s8943_s6 + $0x1030] sm:$0xff] }
  0xd4   : > { %1412 = vst [vmem:[%s8948_s7 + $0x620] sm:$0xff] %v1411_v4  ;;  %v1539_v4 = vld [vmem:[%s8943_s6 + $0x1040] sm:$0xff] }
  0xd5   : > { %1414 = vst [vmem:[%s8948_s7 + $0x628] sm:$0xff] %v1413_v5  ;;  %v1541_v5 = vld [vmem:[%s8943_s6 + $0x1050] sm:$0xff] }
  0xd6   : > { %1416 = vst [vmem:[%s8948_s7 + $0x630] sm:$0xff] %v1415_v6  ;;  %v1543_v6 = vld [vmem:[%s8943_s6 + $0x1060] sm:$0xff] }
  0xd7   : > { %1418 = vst [vmem:[%s8948_s7 + $0x638] sm:$0xff] %v1417_v7  ;;  %v1545_v7 = vld [vmem:[%s8943_s6 + $0x1070] sm:$0xff] }
  0xd8   : > { %1420 = vst [vmem:[%s8948_s7 + $0x640] sm:$0xff] %v1419_v8  ;;  %v1547_v8 = vld [vmem:[%s8943_s6 + $0x1080] sm:$0xff] }
  0xd9   : > { %1422 = vst [vmem:[%s8948_s7 + $0x648] sm:$0xff] %v1421_v9  ;;  %v1549_v9 = vld [vmem:[%s8943_s6 + $0x1090] sm:$0xff] }
  0xda   : > { %1424 = vst [vmem:[%s8948_s7 + $0x650] sm:$0xff] %v1423_v10  ;;  %v1551_v10 = vld [vmem:[%s8943_s6 + $0x10a0] sm:$0xff] }
  0xdb   : > { %1426 = vst [vmem:[%s8948_s7 + $0x658] sm:$0xff] %v1425_v11  ;;  %v1553_v11 = vld [vmem:[%s8943_s6 + $0x10b0] sm:$0xff] }
  0xdc   : > { %1428 = vst [vmem:[%s8948_s7 + $0x660] sm:$0xff] %v1427_v12  ;;  %v1555_v12 = vld [vmem:[%s8943_s6 + $0x10c0] sm:$0xff] }
  0xdd   : > { %1430 = vst [vmem:[%s8948_s7 + $0x668] sm:$0xff] %v1429_v13  ;;  %v1557_v13 = vld [vmem:[%s8943_s6 + $0x10d0] sm:$0xff] }
  0xde   : > { %1432 = vst [vmem:[%s8948_s7 + $0x670] sm:$0xff] %v1431_v14  ;;  %v1559_v14 = vld [vmem:[%s8943_s6 + $0x10e0] sm:$0xff] }
  0xdf   : > { %1434 = vst [vmem:[%s8948_s7 + $0x678] sm:$0xff] %v1433_v15  ;;  %v1561_v15 = vld [vmem:[%s8943_s6 + $0x10f0] sm:$0xff] }
  0xe0   : > { %1436 = vst [vmem:[%s8948_s7 + $0x680] sm:$0xff] %v1435_v16  ;;  %v1563_v16 = vld [vmem:[%s8943_s6 + $0x1100] sm:$0xff] }
  0xe1   : > { %1438 = vst [vmem:[%s8948_s7 + $0x688] sm:$0xff] %v1437_v17  ;;  %v1565_v17 = vld [vmem:[%s8943_s6 + $0x1110] sm:$0xff] }
  0xe2   : > { %1440 = vst [vmem:[%s8948_s7 + $0x690] sm:$0xff] %v1439_v18  ;;  %v1567_v18 = vld [vmem:[%s8943_s6 + $0x1120] sm:$0xff] }
  0xe3   : > { %1442 = vst [vmem:[%s8948_s7 + $0x698] sm:$0xff] %v1441_v19  ;;  %v1569_v19 = vld [vmem:[%s8943_s6 + $0x1130] sm:$0xff] }
  0xe4   : > { %1444 = vst [vmem:[%s8948_s7 + $0x6a0] sm:$0xff] %v1443_v20  ;;  %v1571_v20 = vld [vmem:[%s8943_s6 + $0x1140] sm:$0xff] }
  0xe5   : > { %1446 = vst [vmem:[%s8948_s7 + $0x6a8] sm:$0xff] %v1445_v21  ;;  %v1573_v21 = vld [vmem:[%s8943_s6 + $0x1150] sm:$0xff] }
  0xe6   : > { %1448 = vst [vmem:[%s8948_s7 + $0x6b0] sm:$0xff] %v1447_v22  ;;  %v1575_v22 = vld [vmem:[%s8943_s6 + $0x1160] sm:$0xff] }
  0xe7   : > { %1450 = vst [vmem:[%s8948_s7 + $0x6b8] sm:$0xff] %v1449_v23  ;;  %v1577_v23 = vld [vmem:[%s8943_s6 + $0x1170] sm:$0xff] }
  0xe8   : > { %1452 = vst [vmem:[%s8948_s7 + $0x6c0] sm:$0xff] %v1451_v24  ;;  %v1579_v24 = vld [vmem:[%s8943_s6 + $0x1180] sm:$0xff] }
  0xe9   : > { %1454 = vst [vmem:[%s8948_s7 + $0x6c8] sm:$0xff] %v1453_v25  ;;  %v1581_v25 = vld [vmem:[%s8943_s6 + $0x1190] sm:$0xff] }
  0xea   : > { %1456 = vst [vmem:[%s8948_s7 + $0x6d0] sm:$0xff] %v1455_v26  ;;  %v1583_v26 = vld [vmem:[%s8943_s6 + $0x11a0] sm:$0xff] }
  0xeb   : > { %1458 = vst [vmem:[%s8948_s7 + $0x6d8] sm:$0xff] %v1457_v27  ;;  %v1585_v27 = vld [vmem:[%s8943_s6 + $0x11b0] sm:$0xff] }
  0xec   : > { %1460 = vst [vmem:[%s8948_s7 + $0x6e0] sm:$0xff] %v1459_v28  ;;  %v1587_v28 = vld [vmem:[%s8943_s6 + $0x11c0] sm:$0xff] }
  0xed   : > { %1462 = vst [vmem:[%s8948_s7 + $0x6e8] sm:$0xff] %v1461_v29  ;;  %v1589_v29 = vld [vmem:[%s8943_s6 + $0x11d0] sm:$0xff] }
  0xee   : > { %1464 = vst [vmem:[%s8948_s7 + $0x6f0] sm:$0xff] %v1463_v30  ;;  %v1591_v30 = vld [vmem:[%s8943_s6 + $0x11e0] sm:$0xff] }
  0xef   : > { %1466 = vst [vmem:[%s8948_s7 + $0x6f8] sm:$0xff] %v1465_v31  ;;  %v1593_v31 = vld [vmem:[%s8943_s6 + $0x11f0] sm:$0xff] }
  0xf0   : > { %1468 = vst [vmem:[%s8948_s7 + $0x700] sm:$0xff] %v1467_v32  ;;  %v1595_v32 = vld [vmem:[%s8943_s6 + $0x1200] sm:$0xff] }
  0xf1   : > { %1470 = vst [vmem:[%s8948_s7 + $0x708] sm:$0xff] %v1469_v33  ;;  %v1597_v33 = vld [vmem:[%s8943_s6 + $0x1210] sm:$0xff] }
  0xf2   : > { %1472 = vst [vmem:[%s8948_s7 + $0x710] sm:$0xff] %v1471_v34  ;;  %v1599_v34 = vld [vmem:[%s8943_s6 + $0x1220] sm:$0xff] }
  0xf3   : > { %1474 = vst [vmem:[%s8948_s7 + $0x718] sm:$0xff] %v1473_v35  ;;  %v1601_v35 = vld [vmem:[%s8943_s6 + $0x1230] sm:$0xff] }
  0xf4   : > { %1476 = vst [vmem:[%s8948_s7 + $0x720] sm:$0xff] %v1475_v36  ;;  %v1603_v36 = vld [vmem:[%s8943_s6 + $0x1240] sm:$0xff] }
  0xf5   : > { %1478 = vst [vmem:[%s8948_s7 + $0x728] sm:$0xff] %v1477_v37  ;;  %v1605_v37 = vld [vmem:[%s8943_s6 + $0x1250] sm:$0xff] }
  0xf6   : > { %1480 = vst [vmem:[%s8948_s7 + $0x730] sm:$0xff] %v1479_v38  ;;  %v1607_v38 = vld [vmem:[%s8943_s6 + $0x1260] sm:$0xff] }
  0xf7   : > { %1482 = vst [vmem:[%s8948_s7 + $0x738] sm:$0xff] %v1481_v39  ;;  %v1609_v39 = vld [vmem:[%s8943_s6 + $0x1270] sm:$0xff] }
  0xf8   : > { %1484 = vst [vmem:[%s8948_s7 + $0x740] sm:$0xff] %v1483_v40  ;;  %v1611_v40 = vld [vmem:[%s8943_s6 + $0x1280] sm:$0xff] }
  0xf9   : > { %1486 = vst [vmem:[%s8948_s7 + $0x748] sm:$0xff] %v1485_v41  ;;  %v1613_v41 = vld [vmem:[%s8943_s6 + $0x1290] sm:$0xff] }
  0xfa   : > { %1488 = vst [vmem:[%s8948_s7 + $0x750] sm:$0xff] %v1487_v42  ;;  %v1615_v42 = vld [vmem:[%s8943_s6 + $0x12a0] sm:$0xff] }
  0xfb   : > { %1490 = vst [vmem:[%s8948_s7 + $0x758] sm:$0xff] %v1489_v43  ;;  %v1617_v43 = vld [vmem:[%s8943_s6 + $0x12b0] sm:$0xff] }
  0xfc   : > { %1492 = vst [vmem:[%s8948_s7 + $0x760] sm:$0xff] %v1491_v44  ;;  %v1619_v44 = vld [vmem:[%s8943_s6 + $0x12c0] sm:$0xff] }
  0xfd   : > { %1494 = vst [vmem:[%s8948_s7 + $0x768] sm:$0xff] %v1493_v45  ;;  %v1621_v45 = vld [vmem:[%s8943_s6 + $0x12d0] sm:$0xff] }
  0xfe   : > { %1496 = vst [vmem:[%s8948_s7 + $0x770] sm:$0xff] %v1495_v46  ;;  %v1623_v46 = vld [vmem:[%s8943_s6 + $0x12e0] sm:$0xff] }
  0xff   : > { %1498 = vst [vmem:[%s8948_s7 + $0x778] sm:$0xff] %v1497_v47  ;;  %v1625_v47 = vld [vmem:[%s8943_s6 + $0x12f0] sm:$0xff] }
 0x100   : > { %1500 = vst [vmem:[%s8948_s7 + $0x780] sm:$0xff] %v1499_v48  ;;  %v1627_v48 = vld [vmem:[%s8943_s6 + $0x1300] sm:$0xff] }
 0x101   : > { %1502 = vst [vmem:[%s8948_s7 + $0x788] sm:$0xff] %v1501_v49  ;;  %v1629_v49 = vld [vmem:[%s8943_s6 + $0x1310] sm:$0xff] }
 0x102   : > { %1504 = vst [vmem:[%s8948_s7 + $0x790] sm:$0xff] %v1503_v50  ;;  %v1631_v50 = vld [vmem:[%s8943_s6 + $0x1320] sm:$0xff] }
 0x103   : > { %1506 = vst [vmem:[%s8948_s7 + $0x798] sm:$0xff] %v1505_v51  ;;  %v1633_v51 = vld [vmem:[%s8943_s6 + $0x1330] sm:$0xff] }
 0x104   : > { %1508 = vst [vmem:[%s8948_s7 + $0x7a0] sm:$0xff] %v1507_v52  ;;  %v1635_v52 = vld [vmem:[%s8943_s6 + $0x1340] sm:$0xff] }
 0x105   : > { %1510 = vst [vmem:[%s8948_s7 + $0x7a8] sm:$0xff] %v1509_v53  ;;  %v1637_v53 = vld [vmem:[%s8943_s6 + $0x1350] sm:$0xff] }
 0x106   : > { %1512 = vst [vmem:[%s8948_s7 + $0x7b0] sm:$0xff] %v1511_v54  ;;  %v1639_v54 = vld [vmem:[%s8943_s6 + $0x1360] sm:$0xff] }
 0x107   : > { %1514 = vst [vmem:[%s8948_s7 + $0x7b8] sm:$0xff] %v1513_v55  ;;  %v1641_v55 = vld [vmem:[%s8943_s6 + $0x1370] sm:$0xff] }
 0x108   : > { %1516 = vst [vmem:[%s8948_s7 + $0x7c0] sm:$0xff] %v1515_v56  ;;  %v1643_v56 = vld [vmem:[%s8943_s6 + $0x1380] sm:$0xff] }
 0x109   : > { %1518 = vst [vmem:[%s8948_s7 + $0x7c8] sm:$0xff] %v1517_v57  ;;  %v1645_v57 = vld [vmem:[%s8943_s6 + $0x1390] sm:$0xff] }
 0x10a   : > { %1520 = vst [vmem:[%s8948_s7 + $0x7d0] sm:$0xff] %v1519_v58  ;;  %v1647_v58 = vld [vmem:[%s8943_s6 + $0x13a0] sm:$0xff] }
 0x10b   : > { %1522 = vst [vmem:[%s8948_s7 + $0x7d8] sm:$0xff] %v1521_v59  ;;  %v1649_v59 = vld [vmem:[%s8943_s6 + $0x13b0] sm:$0xff] }
 0x10c   : > { %1524 = vst [vmem:[%s8948_s7 + $0x7e0] sm:$0xff] %v1523_v60  ;;  %v1651_v60 = vld [vmem:[%s8943_s6 + $0x13c0] sm:$0xff] }
 0x10d   : > { %1526 = vst [vmem:[%s8948_s7 + $0x7e8] sm:$0xff] %v1525_v61  ;;  %v1653_v61 = vld [vmem:[%s8943_s6 + $0x13d0] sm:$0xff] }
 0x10e   : > { %1528 = vst [vmem:[%s8948_s7 + $0x7f0] sm:$0xff] %v1527_v62  ;;  %v1655_v62 = vld [vmem:[%s8943_s6 + $0x13e0] sm:$0xff] }
 0x10f   : > { %1530 = vst [vmem:[%s8948_s7 + $0x7f8] sm:$0xff] %v1529_v63  ;;  %v1657_v63 = vld [vmem:[%s8943_s6 + $0x13f0] sm:$0xff] }
 0x110   : > { %1532 = vst [vmem:[%s8948_s7 + $0x800] sm:$0xff] %v1531_v0  ;;  %v1659_v0 = vld [vmem:[%s8943_s6 + $0x1400] sm:$0xff] }
 0x111   : > { %1534 = vst [vmem:[%s8948_s7 + $0x808] sm:$0xff] %v1533_v1  ;;  %v1661_v1 = vld [vmem:[%s8943_s6 + $0x1410] sm:$0xff] }
 0x112   : > { %1536 = vst [vmem:[%s8948_s7 + $0x810] sm:$0xff] %v1535_v2  ;;  %v1663_v2 = vld [vmem:[%s8943_s6 + $0x1420] sm:$0xff] }
 0x113   : > { %1538 = vst [vmem:[%s8948_s7 + $0x818] sm:$0xff] %v1537_v3  ;;  %v1665_v3 = vld [vmem:[%s8943_s6 + $0x1430] sm:$0xff] }
 0x114   : > { %1540 = vst [vmem:[%s8948_s7 + $0x820] sm:$0xff] %v1539_v4  ;;  %v1667_v4 = vld [vmem:[%s8943_s6 + $0x1440] sm:$0xff] }
 0x115   : > { %1542 = vst [vmem:[%s8948_s7 + $0x828] sm:$0xff] %v1541_v5  ;;  %v1669_v5 = vld [vmem:[%s8943_s6 + $0x1450] sm:$0xff] }
 0x116   : > { %1544 = vst [vmem:[%s8948_s7 + $0x830] sm:$0xff] %v1543_v6  ;;  %v1671_v6 = vld [vmem:[%s8943_s6 + $0x1460] sm:$0xff] }
 0x117   : > { %1546 = vst [vmem:[%s8948_s7 + $0x838] sm:$0xff] %v1545_v7  ;;  %v1673_v7 = vld [vmem:[%s8943_s6 + $0x1470] sm:$0xff] }
 0x118   : > { %1548 = vst [vmem:[%s8948_s7 + $0x840] sm:$0xff] %v1547_v8  ;;  %v1675_v8 = vld [vmem:[%s8943_s6 + $0x1480] sm:$0xff] }
 0x119   : > { %1550 = vst [vmem:[%s8948_s7 + $0x848] sm:$0xff] %v1549_v9  ;;  %v1677_v9 = vld [vmem:[%s8943_s6 + $0x1490] sm:$0xff] }
 0x11a   : > { %1552 = vst [vmem:[%s8948_s7 + $0x850] sm:$0xff] %v1551_v10  ;;  %v1679_v10 = vld [vmem:[%s8943_s6 + $0x14a0] sm:$0xff] }
 0x11b   : > { %1554 = vst [vmem:[%s8948_s7 + $0x858] sm:$0xff] %v1553_v11  ;;  %v1681_v11 = vld [vmem:[%s8943_s6 + $0x14b0] sm:$0xff] }
 0x11c   : > { %1556 = vst [vmem:[%s8948_s7 + $0x860] sm:$0xff] %v1555_v12  ;;  %v1683_v12 = vld [vmem:[%s8943_s6 + $0x14c0] sm:$0xff] }
 0x11d   : > { %1558 = vst [vmem:[%s8948_s7 + $0x868] sm:$0xff] %v1557_v13  ;;  %v1685_v13 = vld [vmem:[%s8943_s6 + $0x14d0] sm:$0xff] }
 0x11e   : > { %1560 = vst [vmem:[%s8948_s7 + $0x870] sm:$0xff] %v1559_v14  ;;  %v1687_v14 = vld [vmem:[%s8943_s6 + $0x14e0] sm:$0xff] }
 0x11f   : > { %1562 = vst [vmem:[%s8948_s7 + $0x878] sm:$0xff] %v1561_v15  ;;  %v1689_v15 = vld [vmem:[%s8943_s6 + $0x14f0] sm:$0xff] }
 0x120   : > { %1564 = vst [vmem:[%s8948_s7 + $0x880] sm:$0xff] %v1563_v16  ;;  %v1691_v16 = vld [vmem:[%s8943_s6 + $0x1500] sm:$0xff] }
 0x121   : > { %1566 = vst [vmem:[%s8948_s7 + $0x888] sm:$0xff] %v1565_v17  ;;  %v1693_v17 = vld [vmem:[%s8943_s6 + $0x1510] sm:$0xff] }
 0x122   : > { %1568 = vst [vmem:[%s8948_s7 + $0x890] sm:$0xff] %v1567_v18  ;;  %v1695_v18 = vld [vmem:[%s8943_s6 + $0x1520] sm:$0xff] }
 0x123   : > { %1570 = vst [vmem:[%s8948_s7 + $0x898] sm:$0xff] %v1569_v19  ;;  %v1697_v19 = vld [vmem:[%s8943_s6 + $0x1530] sm:$0xff] }
 0x124   : > { %1572 = vst [vmem:[%s8948_s7 + $0x8a0] sm:$0xff] %v1571_v20  ;;  %v1699_v20 = vld [vmem:[%s8943_s6 + $0x1540] sm:$0xff] }
 0x125   : > { %1574 = vst [vmem:[%s8948_s7 + $0x8a8] sm:$0xff] %v1573_v21  ;;  %v1701_v21 = vld [vmem:[%s8943_s6 + $0x1550] sm:$0xff] }
 0x126   : > { %1576 = vst [vmem:[%s8948_s7 + $0x8b0] sm:$0xff] %v1575_v22  ;;  %v1703_v22 = vld [vmem:[%s8943_s6 + $0x1560] sm:$0xff] }
 0x127   : > { %1578 = vst [vmem:[%s8948_s7 + $0x8b8] sm:$0xff] %v1577_v23  ;;  %v1705_v23 = vld [vmem:[%s8943_s6 + $0x1570] sm:$0xff] }
 0x128   : > { %1580 = vst [vmem:[%s8948_s7 + $0x8c0] sm:$0xff] %v1579_v24  ;;  %v1707_v24 = vld [vmem:[%s8943_s6 + $0x1580] sm:$0xff] }
 0x129   : > { %1582 = vst [vmem:[%s8948_s7 + $0x8c8] sm:$0xff] %v1581_v25  ;;  %v1709_v25 = vld [vmem:[%s8943_s6 + $0x1590] sm:$0xff] }
 0x12a   : > { %1584 = vst [vmem:[%s8948_s7 + $0x8d0] sm:$0xff] %v1583_v26  ;;  %v1711_v26 = vld [vmem:[%s8943_s6 + $0x15a0] sm:$0xff] }
 0x12b   : > { %1586 = vst [vmem:[%s8948_s7 + $0x8d8] sm:$0xff] %v1585_v27  ;;  %v1713_v27 = vld [vmem:[%s8943_s6 + $0x15b0] sm:$0xff] }
 0x12c   : > { %1588 = vst [vmem:[%s8948_s7 + $0x8e0] sm:$0xff] %v1587_v28  ;;  %v1715_v28 = vld [vmem:[%s8943_s6 + $0x15c0] sm:$0xff] }
 0x12d   : > { %1590 = vst [vmem:[%s8948_s7 + $0x8e8] sm:$0xff] %v1589_v29  ;;  %v1717_v29 = vld [vmem:[%s8943_s6 + $0x15d0] sm:$0xff] }
 0x12e   : > { %1592 = vst [vmem:[%s8948_s7 + $0x8f0] sm:$0xff] %v1591_v30  ;;  %v1719_v30 = vld [vmem:[%s8943_s6 + $0x15e0] sm:$0xff] }
 0x12f   : > { %1594 = vst [vmem:[%s8948_s7 + $0x8f8] sm:$0xff] %v1593_v31  ;;  %v1721_v31 = vld [vmem:[%s8943_s6 + $0x15f0] sm:$0xff] }
 0x130   : > { %1596 = vst [vmem:[%s8948_s7 + $0x900] sm:$0xff] %v1595_v32  ;;  %v1723_v32 = vld [vmem:[%s8943_s6 + $0x1600] sm:$0xff] }
 0x131   : > { %1598 = vst [vmem:[%s8948_s7 + $0x908] sm:$0xff] %v1597_v33  ;;  %v1725_v33 = vld [vmem:[%s8943_s6 + $0x1610] sm:$0xff] }
 0x132   : > { %1600 = vst [vmem:[%s8948_s7 + $0x910] sm:$0xff] %v1599_v34  ;;  %v1727_v34 = vld [vmem:[%s8943_s6 + $0x1620] sm:$0xff] }
 0x133   : > { %1602 = vst [vmem:[%s8948_s7 + $0x918] sm:$0xff] %v1601_v35  ;;  %v1729_v35 = vld [vmem:[%s8943_s6 + $0x1630] sm:$0xff] }
 0x134   : > { %1604 = vst [vmem:[%s8948_s7 + $0x920] sm:$0xff] %v1603_v36  ;;  %v1731_v36 = vld [vmem:[%s8943_s6 + $0x1640] sm:$0xff] }
 0x135   : > { %1606 = vst [vmem:[%s8948_s7 + $0x928] sm:$0xff] %v1605_v37  ;;  %v1733_v37 = vld [vmem:[%s8943_s6 + $0x1650] sm:$0xff] }
 0x136   : > { %1608 = vst [vmem:[%s8948_s7 + $0x930] sm:$0xff] %v1607_v38  ;;  %v1735_v38 = vld [vmem:[%s8943_s6 + $0x1660] sm:$0xff] }
 0x137   : > { %1610 = vst [vmem:[%s8948_s7 + $0x938] sm:$0xff] %v1609_v39  ;;  %v1737_v39 = vld [vmem:[%s8943_s6 + $0x1670] sm:$0xff] }
 0x138   : > { %1612 = vst [vmem:[%s8948_s7 + $0x940] sm:$0xff] %v1611_v40  ;;  %v1739_v40 = vld [vmem:[%s8943_s6 + $0x1680] sm:$0xff] }
 0x139   : > { %1614 = vst [vmem:[%s8948_s7 + $0x948] sm:$0xff] %v1613_v41  ;;  %v1741_v41 = vld [vmem:[%s8943_s6 + $0x1690] sm:$0xff] }
 0x13a   : > { %1616 = vst [vmem:[%s8948_s7 + $0x950] sm:$0xff] %v1615_v42  ;;  %v1743_v42 = vld [vmem:[%s8943_s6 + $0x16a0] sm:$0xff] }
 0x13b   : > { %1618 = vst [vmem:[%s8948_s7 + $0x958] sm:$0xff] %v1617_v43  ;;  %v1745_v43 = vld [vmem:[%s8943_s6 + $0x16b0] sm:$0xff] }
 0x13c   : > { %1620 = vst [vmem:[%s8948_s7 + $0x960] sm:$0xff] %v1619_v44  ;;  %v1747_v44 = vld [vmem:[%s8943_s6 + $0x16c0] sm:$0xff] }
 0x13d   : > { %1622 = vst [vmem:[%s8948_s7 + $0x968] sm:$0xff] %v1621_v45  ;;  %v1749_v45 = vld [vmem:[%s8943_s6 + $0x16d0] sm:$0xff] }
 0x13e   : > { %1624 = vst [vmem:[%s8948_s7 + $0x970] sm:$0xff] %v1623_v46  ;;  %v1751_v46 = vld [vmem:[%s8943_s6 + $0x16e0] sm:$0xff] }
 0x13f   : > { %1626 = vst [vmem:[%s8948_s7 + $0x978] sm:$0xff] %v1625_v47  ;;  %v1753_v47 = vld [vmem:[%s8943_s6 + $0x16f0] sm:$0xff] }
 0x140   : > { %1628 = vst [vmem:[%s8948_s7 + $0x980] sm:$0xff] %v1627_v48  ;;  %v1755_v48 = vld [vmem:[%s8943_s6 + $0x1700] sm:$0xff] }
 0x141   : > { %1630 = vst [vmem:[%s8948_s7 + $0x988] sm:$0xff] %v1629_v49  ;;  %v1757_v49 = vld [vmem:[%s8943_s6 + $0x1710] sm:$0xff] }
 0x142   : > { %1632 = vst [vmem:[%s8948_s7 + $0x990] sm:$0xff] %v1631_v50  ;;  %v1759_v50 = vld [vmem:[%s8943_s6 + $0x1720] sm:$0xff] }
 0x143   : > { %1634 = vst [vmem:[%s8948_s7 + $0x998] sm:$0xff] %v1633_v51  ;;  %v1761_v51 = vld [vmem:[%s8943_s6 + $0x1730] sm:$0xff] }
 0x144   : > { %1636 = vst [vmem:[%s8948_s7 + $0x9a0] sm:$0xff] %v1635_v52  ;;  %v1763_v52 = vld [vmem:[%s8943_s6 + $0x1740] sm:$0xff] }
 0x145   : > { %1638 = vst [vmem:[%s8948_s7 + $0x9a8] sm:$0xff] %v1637_v53  ;;  %v1765_v53 = vld [vmem:[%s8943_s6 + $0x1750] sm:$0xff] }
 0x146   : > { %1640 = vst [vmem:[%s8948_s7 + $0x9b0] sm:$0xff] %v1639_v54  ;;  %v1767_v54 = vld [vmem:[%s8943_s6 + $0x1760] sm:$0xff] }
 0x147   : > { %1642 = vst [vmem:[%s8948_s7 + $0x9b8] sm:$0xff] %v1641_v55  ;;  %v1769_v55 = vld [vmem:[%s8943_s6 + $0x1770] sm:$0xff] }
 0x148   : > { %1644 = vst [vmem:[%s8948_s7 + $0x9c0] sm:$0xff] %v1643_v56  ;;  %v1771_v56 = vld [vmem:[%s8943_s6 + $0x1780] sm:$0xff] }
 0x149   : > { %1646 = vst [vmem:[%s8948_s7 + $0x9c8] sm:$0xff] %v1645_v57  ;;  %v1773_v57 = vld [vmem:[%s8943_s6 + $0x1790] sm:$0xff] }
 0x14a   : > { %1648 = vst [vmem:[%s8948_s7 + $0x9d0] sm:$0xff] %v1647_v58  ;;  %v1775_v58 = vld [vmem:[%s8943_s6 + $0x17a0] sm:$0xff] }
 0x14b   : > { %1650 = vst [vmem:[%s8948_s7 + $0x9d8] sm:$0xff] %v1649_v59  ;;  %v1777_v59 = vld [vmem:[%s8943_s6 + $0x17b0] sm:$0xff] }
 0x14c   : > { %1652 = vst [vmem:[%s8948_s7 + $0x9e0] sm:$0xff] %v1651_v60  ;;  %v1779_v60 = vld [vmem:[%s8943_s6 + $0x17c0] sm:$0xff] }
 0x14d   : > { %1654 = vst [vmem:[%s8948_s7 + $0x9e8] sm:$0xff] %v1653_v61  ;;  %v1781_v61 = vld [vmem:[%s8943_s6 + $0x17d0] sm:$0xff] }
 0x14e   : > { %1656 = vst [vmem:[%s8948_s7 + $0x9f0] sm:$0xff] %v1655_v62  ;;  %v1783_v62 = vld [vmem:[%s8943_s6 + $0x17e0] sm:$0xff] }
 0x14f   : > { %1658 = vst [vmem:[%s8948_s7 + $0x9f8] sm:$0xff] %v1657_v63  ;;  %v1785_v63 = vld [vmem:[%s8943_s6 + $0x17f0] sm:$0xff] }
 0x150   : > { %1660 = vst [vmem:[%s8948_s7 + $0xa00] sm:$0xff] %v1659_v0  ;;  %v1787_v0 = vld [vmem:[%s8943_s6 + $0x1800] sm:$0xff] }
 0x151   : > { %1662 = vst [vmem:[%s8948_s7 + $0xa08] sm:$0xff] %v1661_v1  ;;  %v1789_v1 = vld [vmem:[%s8943_s6 + $0x1810] sm:$0xff] }
 0x152   : > { %1664 = vst [vmem:[%s8948_s7 + $0xa10] sm:$0xff] %v1663_v2  ;;  %v1791_v2 = vld [vmem:[%s8943_s6 + $0x1820] sm:$0xff] }
 0x153   : > { %1666 = vst [vmem:[%s8948_s7 + $0xa18] sm:$0xff] %v1665_v3  ;;  %v1793_v3 = vld [vmem:[%s8943_s6 + $0x1830] sm:$0xff] }
 0x154   : > { %1668 = vst [vmem:[%s8948_s7 + $0xa20] sm:$0xff] %v1667_v4  ;;  %v1795_v4 = vld [vmem:[%s8943_s6 + $0x1840] sm:$0xff] }
 0x155   : > { %1670 = vst [vmem:[%s8948_s7 + $0xa28] sm:$0xff] %v1669_v5  ;;  %v1797_v5 = vld [vmem:[%s8943_s6 + $0x1850] sm:$0xff] }
 0x156   : > { %1672 = vst [vmem:[%s8948_s7 + $0xa30] sm:$0xff] %v1671_v6  ;;  %v1799_v6 = vld [vmem:[%s8943_s6 + $0x1860] sm:$0xff] }
 0x157   : > { %1674 = vst [vmem:[%s8948_s7 + $0xa38] sm:$0xff] %v1673_v7  ;;  %v1801_v7 = vld [vmem:[%s8943_s6 + $0x1870] sm:$0xff] }
 0x158   : > { %1676 = vst [vmem:[%s8948_s7 + $0xa40] sm:$0xff] %v1675_v8  ;;  %v1803_v8 = vld [vmem:[%s8943_s6 + $0x1880] sm:$0xff] }
 0x159   : > { %1678 = vst [vmem:[%s8948_s7 + $0xa48] sm:$0xff] %v1677_v9  ;;  %v1805_v9 = vld [vmem:[%s8943_s6 + $0x1890] sm:$0xff] }
 0x15a   : > { %1680 = vst [vmem:[%s8948_s7 + $0xa50] sm:$0xff] %v1679_v10  ;;  %v1807_v10 = vld [vmem:[%s8943_s6 + $0x18a0] sm:$0xff] }
 0x15b   : > { %1682 = vst [vmem:[%s8948_s7 + $0xa58] sm:$0xff] %v1681_v11  ;;  %v1809_v11 = vld [vmem:[%s8943_s6 + $0x18b0] sm:$0xff] }
 0x15c   : > { %1684 = vst [vmem:[%s8948_s7 + $0xa60] sm:$0xff] %v1683_v12  ;;  %v1811_v12 = vld [vmem:[%s8943_s6 + $0x18c0] sm:$0xff] }
 0x15d   : > { %1686 = vst [vmem:[%s8948_s7 + $0xa68] sm:$0xff] %v1685_v13  ;;  %v1813_v13 = vld [vmem:[%s8943_s6 + $0x18d0] sm:$0xff] }
 0x15e   : > { %1688 = vst [vmem:[%s8948_s7 + $0xa70] sm:$0xff] %v1687_v14  ;;  %v1815_v14 = vld [vmem:[%s8943_s6 + $0x18e0] sm:$0xff] }
 0x15f   : > { %1690 = vst [vmem:[%s8948_s7 + $0xa78] sm:$0xff] %v1689_v15  ;;  %v1817_v15 = vld [vmem:[%s8943_s6 + $0x18f0] sm:$0xff] }
 0x160   : > { %1692 = vst [vmem:[%s8948_s7 + $0xa80] sm:$0xff] %v1691_v16 }
 0x161   : > { %1694 = vst [vmem:[%s8948_s7 + $0xa88] sm:$0xff] %v1693_v17 }
 0x162   : > { %1696 = vst [vmem:[%s8948_s7 + $0xa90] sm:$0xff] %v1695_v18 }
 0x163   : > { %1698 = vst [vmem:[%s8948_s7 + $0xa98] sm:$0xff] %v1697_v19 }
 0x164   : > { %1700 = vst [vmem:[%s8948_s7 + $0xaa0] sm:$0xff] %v1699_v20 }
 0x165   : > { %1702 = vst [vmem:[%s8948_s7 + $0xaa8] sm:$0xff] %v1701_v21 }
 0x166   : > { %1704 = vst [vmem:[%s8948_s7 + $0xab0] sm:$0xff] %v1703_v22 }
 0x167   : > { %1706 = vst [vmem:[%s8948_s7 + $0xab8] sm:$0xff] %v1705_v23 }
 0x168   : > { %1708 = vst [vmem:[%s8948_s7 + $0xac0] sm:$0xff] %v1707_v24 }
 0x169   : > { %1710 = vst [vmem:[%s8948_s7 + $0xac8] sm:$0xff] %v1709_v25 }
 0x16a   : > { %1712 = vst [vmem:[%s8948_s7 + $0xad0] sm:$0xff] %v1711_v26 }
 0x16b   : > { %1714 = vst [vmem:[%s8948_s7 + $0xad8] sm:$0xff] %v1713_v27 }
 0x16c   : > { %1716 = vst [vmem:[%s8948_s7 + $0xae0] sm:$0xff] %v1715_v28 }
 0x16d   : > { %1718 = vst [vmem:[%s8948_s7 + $0xae8] sm:$0xff] %v1717_v29 }
 0x16e   : > { %1720 = vst [vmem:[%s8948_s7 + $0xaf0] sm:$0xff] %v1719_v30 }
 0x16f   : > { %1722 = vst [vmem:[%s8948_s7 + $0xaf8] sm:$0xff] %v1721_v31 }
 0x170   : > { %1724 = vst [vmem:[%s8948_s7 + $0xb00] sm:$0xff] %v1723_v32 }
 0x171   : > { %1726 = vst [vmem:[%s8948_s7 + $0xb08] sm:$0xff] %v1725_v33 }
 0x172   : > { %1728 = vst [vmem:[%s8948_s7 + $0xb10] sm:$0xff] %v1727_v34 }
 0x173   : > { %1730 = vst [vmem:[%s8948_s7 + $0xb18] sm:$0xff] %v1729_v35 }
 0x174   : > { %1732 = vst [vmem:[%s8948_s7 + $0xb20] sm:$0xff] %v1731_v36 }
 0x175   : > { %1734 = vst [vmem:[%s8948_s7 + $0xb28] sm:$0xff] %v1733_v37 }
 0x176   : > { %1736 = vst [vmem:[%s8948_s7 + $0xb30] sm:$0xff] %v1735_v38 }
 0x177   : > { %1738 = vst [vmem:[%s8948_s7 + $0xb38] sm:$0xff] %v1737_v39 }
 0x178   : > { %1740 = vst [vmem:[%s8948_s7 + $0xb40] sm:$0xff] %v1739_v40 }
 0x179   : > { %1742 = vst [vmem:[%s8948_s7 + $0xb48] sm:$0xff] %v1741_v41 }
 0x17a   : > { %1744 = vst [vmem:[%s8948_s7 + $0xb50] sm:$0xff] %v1743_v42 }
 0x17b   : > { %1746 = vst [vmem:[%s8948_s7 + $0xb58] sm:$0xff] %v1745_v43 }
 0x17c   : > { %1748 = vst [vmem:[%s8948_s7 + $0xb60] sm:$0xff] %v1747_v44 }
 0x17d   : > { %1750 = vst [vmem:[%s8948_s7 + $0xb68] sm:$0xff] %v1749_v45 }
 0x17e   : > { %1752 = vst [vmem:[%s8948_s7 + $0xb70] sm:$0xff] %v1751_v46 }
 0x17f   : > { %1754 = vst [vmem:[%s8948_s7 + $0xb78] sm:$0xff] %v1753_v47 }
 0x180   : > { %1756 = vst [vmem:[%s8948_s7 + $0xb80] sm:$0xff] %v1755_v48 }
 0x181   : > { %1758 = vst [vmem:[%s8948_s7 + $0xb88] sm:$0xff] %v1757_v49 }
 0x182   : > { %1760 = vst [vmem:[%s8948_s7 + $0xb90] sm:$0xff] %v1759_v50 }
 0x183   : > { %1762 = vst [vmem:[%s8948_s7 + $0xb98] sm:$0xff] %v1761_v51 }
 0x184   : > { %1764 = vst [vmem:[%s8948_s7 + $0xba0] sm:$0xff] %v1763_v52 }
 0x185   : > { %1766 = vst [vmem:[%s8948_s7 + $0xba8] sm:$0xff] %v1765_v53 }
 0x186   : > { %1768 = vst [vmem:[%s8948_s7 + $0xbb0] sm:$0xff] %v1767_v54 }
 0x187   : > { %1770 = vst [vmem:[%s8948_s7 + $0xbb8] sm:$0xff] %v1769_v55 }
 0x188   : > { %1772 = vst [vmem:[%s8948_s7 + $0xbc0] sm:$0xff] %v1771_v56 }
 0x189   : > { %1774 = vst [vmem:[%s8948_s7 + $0xbc8] sm:$0xff] %v1773_v57 }
 0x18a   : > { %1776 = vst [vmem:[%s8948_s7 + $0xbd0] sm:$0xff] %v1775_v58 }
 0x18b   : > { %1778 = vst [vmem:[%s8948_s7 + $0xbd8] sm:$0xff] %v1777_v59 }
 0x18c   : > { %1780 = vst [vmem:[%s8948_s7 + $0xbe0] sm:$0xff] %v1779_v60 }
 0x18d   : > { %1782 = vst [vmem:[%s8948_s7 + $0xbe8] sm:$0xff] %v1781_v61 }
 0x18e   : > { %1784 = vst [vmem:[%s8948_s7 + $0xbf0] sm:$0xff] %v1783_v62 }
 0x18f   : > { %1786 = vst [vmem:[%s8948_s7 + $0xbf8] sm:$0xff] %v1785_v63 }
 0x190   : > { %1788 = vst [vmem:[%s8948_s7 + $0xc00] sm:$0xff] %v1787_v0 }
 0x191   : > { %1790 = vst [vmem:[%s8948_s7 + $0xc08] sm:$0xff] %v1789_v1 }
 0x192   : > { %1792 = vst [vmem:[%s8948_s7 + $0xc10] sm:$0xff] %v1791_v2 }
 0x193   : > { %1794 = vst [vmem:[%s8948_s7 + $0xc18] sm:$0xff] %v1793_v3 }
 0x194   : > { %1796 = vst [vmem:[%s8948_s7 + $0xc20] sm:$0xff] %v1795_v4 }
 0x195   : > { %1798 = vst [vmem:[%s8948_s7 + $0xc28] sm:$0xff] %v1797_v5 }
 0x196   : > { %1800 = vst [vmem:[%s8948_s7 + $0xc30] sm:$0xff] %v1799_v6 }
 0x197   : > { %1802 = vst [vmem:[%s8948_s7 + $0xc38] sm:$0xff] %v1801_v7 }
 0x198   : > { %1804 = vst [vmem:[%s8948_s7 + $0xc40] sm:$0xff] %v1803_v8 }
 0x199   : > { %1806 = vst [vmem:[%s8948_s7 + $0xc48] sm:$0xff] %v1805_v9 }
 0x19a   : > { %1808 = vst [vmem:[%s8948_s7 + $0xc50] sm:$0xff] %v1807_v10 }
 0x19b   : > { %1810 = vst [vmem:[%s8948_s7 + $0xc58] sm:$0xff] %v1809_v11 }
 0x19c   : > { %1812 = vst [vmem:[%s8948_s7 + $0xc60] sm:$0xff] %v1811_v12 }
 0x19d   : > { %1814 = vst [vmem:[%s8948_s7 + $0xc68] sm:$0xff] %v1813_v13 }
 0x19e   : > { %1816 = vst [vmem:[%s8948_s7 + $0xc70] sm:$0xff] %v1815_v14 }
 0x19f   : > { %1818 = vst [vmem:[%s8948_s7 + $0xc78] sm:$0xff] %v1817_v15 }
 0x1a0 PF: > { %p6818_p5 = scmp.ge.s32.totalorder %s8875_s20, 1  ;;  %p3475_p6 = scmp.lt.s32.totalorder %s8875_s20, 3 }
 0x1a2   : > { %p3476_p7 = pnand %p6818_p5, %p3475_p6 }
 0x1a3   : > { %s3482_s8 = sand.u32 (!%p3476_p7), 1, %s8867_s18   ;;  %s6819_s27 = sshll.u32 (!%p3476_p7), %s8923_s21, 1 }
 0x1a4   : > { %3479 = sbr.rel (%p3476_p7) target bundleno = 1110 (0x456), region = 88  ;;  %p10191_p8 = scmp.lt.s32.totalorder (!%p3476_p7), %s6819_s27, 3 }
 0x1a5   : > { %s8827_s9 = smul.u32 (!%p3476_p7), 3200, %s3482_s8  ;;  %s6820_s30 = sshll.u32 (!%p3476_p7), %s8923_s21, 5 }
 0x1a6   : > { %p10709_p9 = scmp.lt.s32.totalorder (!%p3476_p7), %s6820_s30, 63  ;;  %p6673_p10 = scmp.eq.s32.totalorder (!%p3476_p7), %s8923_s21, 0 }
 0x1a7   : > { %s9750_s10 = scalar_lea.vmem (!%p3476_p7), [#allocation2], %s8827_s9  ;;  %p3529_p11 = scmp.lt.s32.totalorder (!%p3476_p7), %s8923_s21, 1 }
 0x1a9   : > { %v6881_v16 = vld [vmem:[%s9750_s10 + $0x70] sm:$0xf]  ;;  %v8441_v17 = vld [vmem:[%s9750_s10 + $0x74] sm:$0xf0]  ;;  %v6873_v27 = vld [vmem:[%s9750_s10 + $0x60] sm:$0xf] }
 0x1aa   : > { %v6945_v18 = vld [vmem:[%s9750_s10 + $0xf0] sm:$0xf]  ;;  %v6882_v19 = vor.u32 %v8441_v17, %v6881_v16  ;;  %v8457_v20 = vld [vmem:[%s9750_s10 + $0xf4] sm:$0xf0]  ;;  %v8439_v29 = vld [vmem:[%s9750_s10 + $0x64] sm:$0xf0] }
 0x1ab   : > { %v7009_v21 = vld [vmem:[%s9750_s10 + $0x170] sm:$0xf]  ;;  %v8473_v22 = vld [vmem:[%s9750_s10 + $0x174] sm:$0xf0]  ;;  %v6946_v23 = vor.u32 %v8457_v20, %v6945_v18  ;;  %v6937_v30 = vld [vmem:[%s9750_s10 + $0xe0] sm:$0xf]  ;;  %v6874_v32 = vor.u32 %v8439_v29, %v6873_v27 }
 0x1ac   : > { %v7010_v24 = vor.u32 %v8473_v22, %v7009_v21  ;;  %v7073_v25 = vld [vmem:[%s9750_s10 + $0x1f0] sm:$0xf]  ;;  %v8489_v26 = vld [vmem:[%s9750_s10 + $0x1f4] sm:$0xf0]  ;;  %5989 = vmatpush.bf16.msra.mxu0 %v6882_v19  ;;  %v8455_v31 = vld [vmem:[%s9750_s10 + $0xe4] sm:$0xf0] }
 0x1ad   : > { %v7074_v28 = vor.u32 %v8489_v26, %v7073_v25  ;;  %6002 = vmatpush.bf16.msra.mxu1 %v6946_v23  ;;  %v6938_v33 = vor.u32 %v8455_v31, %v6937_v30  ;;  %v7001_v34 = vld [vmem:[%s9750_s10 + $0x160] sm:$0xf]  ;;  %v8471_v35 = vld [vmem:[%s9750_s10 + $0x164] sm:$0xf0]  ;;  %v6865_v39 = vld [vmem:[%s9750_s10 + $0x50] sm:$0xf] }
 0x1ae   : > { %6015 = vmatpush.bf16.msra.mxu2 %v7010_v24  ;;  %v7065_v36 = vld [vmem:[%s9750_s10 + $0x1e0] sm:$0xf]  ;;  %v7002_v37 = vor.u32 %v8471_v35, %v7001_v34  ;;  %v8487_v38 = vld [vmem:[%s9750_s10 + $0x1e4] sm:$0xf0]  ;;  %v8437_v40 = vld [vmem:[%s9750_s10 + $0x54] sm:$0xf0] }
 0x1af   : > { %6028 = vmatpush.bf16.msra.mxu3 %v7074_v28  ;;  %v7066_v41 = vor.u32 %v8487_v38, %v7065_v36  ;;  %v6929_v42 = vld [vmem:[%s9750_s10 + $0xd0] sm:$0xf]  ;;  %v8453_v43 = vld [vmem:[%s9750_s10 + $0xd4] sm:$0xf0]  ;;  %v6866_v45 = vor.u32 %v8437_v40, %v6865_v39  ;;  %v6857_v51 = vld [vmem:[%s9750_s10 + $0x40] sm:$0xf] }
 0x1b0   : > { %v6993_v44 = vld [vmem:[%s9750_s10 + $0x150] sm:$0xf]  ;;  %5990 = vmatpush.bf16.msra.mxu0 %v6874_v32  ;;  %v8469_v46 = vld [vmem:[%s9750_s10 + $0x154] sm:$0xf0]  ;;  %v6930_v49 = vor.u32 %v8453_v43, %v6929_v42  ;;  %v8435_v52 = vld [vmem:[%s9750_s10 + $0x44] sm:$0xf0] }
 0x1b1   : > { %v7057_v47 = vld [vmem:[%s9750_s10 + $0x1d0] sm:$0xf]  ;;  %v8485_v48 = vld [vmem:[%s9750_s10 + $0x1d4] sm:$0xf0]  ;;  %6003 = vmatpush.bf16.msra.mxu1 %v6938_v33  ;;  %v6994_v50 = vor.u32 %v8469_v46, %v6993_v44  ;;  %v6921_v53 = vld [vmem:[%s9750_s10 + $0xc0] sm:$0xf]  ;;  %v6858_v60 = vor.u32 %v8435_v52, %v6857_v51 }
 0x1b2   : > { %6016 = vmatpush.bf16.msra.mxu2 %v7002_v37  ;;  %v7058_v54 = vor.u32 %v8485_v48, %v7057_v47  ;;  %v8451_v55 = vld [vmem:[%s9750_s10 + $0xc4] sm:$0xf0]  ;;  %v6985_v56 = vld [vmem:[%s9750_s10 + $0x140] sm:$0xf]  ;;  %v6849_v63 = vld [vmem:[%s9750_s10 + $0x30] sm:$0xf] }
 0x1b3   : > { %6029 = vmatpush.bf16.msra.mxu3 %v7066_v41  ;;  %v8467_v57 = vld [vmem:[%s9750_s10 + $0x144] sm:$0xf0]  ;;  %v7049_v58 = vld [vmem:[%s9750_s10 + $0x1c0] sm:$0xf]  ;;  %v6922_v61 = vor.u32 %v8451_v55, %v6921_v53  ;;  %v8433_v0 = vld [vmem:[%s9750_s10 + $0x34] sm:$0xf0] }
 0x1b4   : > { %v8483_v59 = vld [vmem:[%s9750_s10 + $0x1c4] sm:$0xf0]  ;;  %5991 = vmatpush.bf16.msra.mxu0 %v6866_v45  ;;  %v6986_v62 = vor.u32 %v8467_v57, %v6985_v56  ;;  %v6913_v1 = vld [vmem:[%s9750_s10 + $0xb0] sm:$0xf]  ;;  %v8449_v3 = vld [vmem:[%s9750_s10 + $0xb4] sm:$0xf0]  ;;  %v6850_v8 = vor.u32 %v8433_v0, %v6849_v63 }
 0x1b5   : > { %6004 = vmatpush.bf16.msra.mxu1 %v6930_v49  ;;  %v7050_v2 = vor.u32 %v8483_v59, %v7049_v58  ;;  %v6977_v4 = vld [vmem:[%s9750_s10 + $0x130] sm:$0xf]  ;;  %v8465_v5 = vld [vmem:[%s9750_s10 + $0x134] sm:$0xf0]  ;;  %v6914_v9 = vor.u32 %v8449_v3, %v6913_v1  ;;  %v6841_v11 = vld [vmem:[%s9750_s10 + $0x20] sm:$0xf] }
 0x1b6   : > { %6017 = vmatpush.bf16.msra.mxu2 %v6994_v50  ;;  %v7041_v6 = vld [vmem:[%s9750_s10 + $0x1b0] sm:$0xf]  ;;  %v8481_v7 = vld [vmem:[%s9750_s10 + $0x1b4] sm:$0xf0]  ;;  %v6978_v10 = vor.u32 %v8465_v5, %v6977_v4  ;;  %v8431_v12 = vld [vmem:[%s9750_s10 + $0x24] sm:$0xf0] }
 0x1b7   : > { %6030 = vmatpush.bf16.msra.mxu3 %v7058_v54  ;;  %v6905_v13 = vld [vmem:[%s9750_s10 + $0xa0] sm:$0xf]  ;;  %v7042_v14 = vor.u32 %v8481_v7, %v7041_v6  ;;  %v8447_v15 = vld [vmem:[%s9750_s10 + $0xa4] sm:$0xf0]  ;;  %v6842_v20 = vor.u32 %v8431_v12, %v6841_v11  ;;  %v6833_v23 = vld [vmem:[%s9750_s10 + $0x10] sm:$0xf] }
 0x1b8   : > { %5992 = vmatpush.bf16.msra.mxu0 %v6858_v60  ;;  %v6969_v16 = vld [vmem:[%s9750_s10 + $0x120] sm:$0xf]  ;;  %v8463_v17 = vld [vmem:[%s9750_s10 + $0x124] sm:$0xf0]  ;;  %v6906_v21 = vor.u32 %v8447_v15, %v6905_v13  ;;  %v8429_v24 = vld [vmem:[%s9750_s10 + $0x14] sm:$0xf0] }
 0x1b9   : > { %6005 = vmatpush.bf16.msra.mxu1 %v6922_v61  ;;  %v7033_v18 = vld [vmem:[%s9750_s10 + $0x1a0] sm:$0xf]  ;;  %v8479_v19 = vld [vmem:[%s9750_s10 + $0x1a4] sm:$0xf0]  ;;  %v6970_v22 = vor.u32 %v8463_v17, %v6969_v16  ;;  %v6897_v25 = vld [vmem:[%s9750_s10 + $0x90] sm:$0xf]  ;;  %v6834_v32 = vor.u32 %v8429_v24, %v6833_v23 }
 0x1ba   : > { %6018 = vmatpush.bf16.msra.mxu2 %v6986_v62  ;;  %v7034_v26 = vor.u32 %v8479_v19, %v7033_v18  ;;  %v8445_v27 = vld [vmem:[%s9750_s10 + $0x94] sm:$0xf0]  ;;  %v6961_v28 = vld [vmem:[%s9750_s10 + $0x110] sm:$0xf]  ;;  %v6825_v33 = vld [vmem:[%s9750_s10] sm:$0xf] }
 0x1bb   : > { %6031 = vmatpush.bf16.msra.mxu3 %v7050_v2  ;;  %v8461_v29 = vld [vmem:[%s9750_s10 + $0x114] sm:$0xf0]  ;;  %v7025_v30 = vld [vmem:[%s9750_s10 + $0x190] sm:$0xf]  ;;  %v8427_v34 = vld [vmem:[%s9750_s10 + $0x4] sm:$0xf0]  ;;  %v6898_v35 = vor.u32 %v8445_v27, %v6897_v25 }
 0x1bc   : > { %5993 = vmatpush.bf16.msra.mxu0 %v6850_v8  ;;  %v8477_v31 = vld [vmem:[%s9750_s10 + $0x194] sm:$0xf0]  ;;  %v6962_v36 = vor.u32 %v8461_v29, %v6961_v28  ;;  %v6889_v37 = vld [vmem:[%s9750_s10 + $0x80] sm:$0xf]  ;;  %v8443_v38 = vld [vmem:[%s9750_s10 + $0x84] sm:$0xf0]  ;;  %v6826_v47 = vor.u32 %v8427_v34, %v6825_v33 }
 0x1bd   : > { %6006 = vmatpush.bf16.msra.mxu1 %v6914_v9  ;;  %v6953_v39 = vld [vmem:[%s9750_s10 + $0x100] sm:$0xf]  ;;  %v7026_v40 = vor.u32 %v8477_v31, %v7025_v30  ;;  %v8459_v41 = vld [vmem:[%s9750_s10 + $0x104] sm:$0xf0]  ;;  %v7137_v42 = vld [vmem:[%s9750_s10 + $0x270] sm:$0xf]  ;;  %v6890_v51 = vor.u32 %v8443_v38, %v6889_v37 }
 0x1be   : > { %6019 = vmatpush.bf16.msra.mxu2 %v6978_v10  ;;  %v8505_v43 = vld [vmem:[%s9750_s10 + $0x274] sm:$0xf0]  ;;  %v7201_v44 = vld [vmem:[%s9750_s10 + $0x2f0] sm:$0xf]  ;;  %v7017_v49 = vld [vmem:[%s9750_s10 + $0x180] sm:$0xf]  ;;  %v6954_v52 = vor.u32 %v8459_v41, %v6953_v39 }
 0x1bf   : > { %6032 = vmatpush.bf16.msra.mxu3 %v7042_v14  ;;  %v8521_v45 = vld [vmem:[%s9750_s10 + $0x2f4] sm:$0xf0]  ;;  %v7265_v46 = vld [vmem:[%s9750_s10 + $0x370] sm:$0xf]  ;;  %v8475_v50 = vld [vmem:[%s9750_s10 + $0x184] sm:$0xf0]  ;;  %v7138_v55 = vor.u32 %v8505_v43, %v7137_v42 }
 0x1c0   : > { %5994 = vmatpush.bf16.msra.mxu0 %v6842_v20  ;;  %v8537_v48 = vld [vmem:[%s9750_s10 + $0x374] sm:$0xf0]  ;;  %v7329_v53 = vld [vmem:[%s9750_s10 + $0x3f0] sm:$0xf]  ;;  %v7202_v56 = vor.u32 %v8521_v45, %v7201_v44  ;;  %v7129_v57 = vld [vmem:[%s9750_s10 + $0x260] sm:$0xf]  ;;  %v7018_v59 = vor.u32 %v8475_v50, %v7017_v49 }
 0x1c1   : > { %6007 = vmatpush.bf16.msra.mxu1 %v6906_v21  ;;  %v8553_v54 = vld [vmem:[%s9750_s10 + $0x3f4] sm:$0xf0]  ;;  %v7266_v58 = vor.u32 %v8537_v48, %v7265_v46  ;;  %v8503_v60 = vld [vmem:[%s9750_s10 + $0x264] sm:$0xf0]  ;;  %v7193_v61 = vld [vmem:[%s9750_s10 + $0x2e0] sm:$0xf] }
 0x1c2   : > { %6020 = vmatpush.bf16.msra.mxu2 %v6970_v22  ;;  %v8519_v62 = vld [vmem:[%s9750_s10 + $0x2e4] sm:$0xf0]  ;;  %v7330_v63 = vor.u32 %v8553_v54, %v7329_v53  ;;  %v7257_v0 = vld [vmem:[%s9750_s10 + $0x360] sm:$0xf]  ;;  %v7130_v4 = vor.u32 %v8503_v60, %v7129_v57  ;;  %v7121_v6 = vld [vmem:[%s9750_s10 + $0x250] sm:$0xf] }
 0x1c3   : > { %6033 = vmatpush.bf16.msra.mxu3 %v7034_v26  ;;  %v8535_v1 = vld [vmem:[%s9750_s10 + $0x364] sm:$0xf0]  ;;  %v7321_v2 = vld [vmem:[%s9750_s10 + $0x3e0] sm:$0xf]  ;;  %v7194_v5 = vor.u32 %v8519_v62, %v7193_v61  ;;  %v8501_v7 = vld [vmem:[%s9750_s10 + $0x254] sm:$0xf0] }
 0x1c4   : > { %5995 = vmatpush.bf16.msra.mxu0 %v6834_v32  ;;  %v8551_v3 = vld [vmem:[%s9750_s10 + $0x3e4] sm:$0xf0]  ;;  %v7258_v8 = vor.u32 %v8535_v1, %v7257_v0  ;;  %v7185_v9 = vld [vmem:[%s9750_s10 + $0x2d0] sm:$0xf]  ;;  %v8517_v10 = vld [vmem:[%s9750_s10 + $0x2d4] sm:$0xf0]  ;;  %v7122_v19 = vor.u32 %v8501_v7, %v7121_v6 }
 0x1c5   : > { %6008 = vmatpush.bf16.msra.mxu1 %v6898_v35  ;;  %v3535_v11 = vld [vmem:[%s10847_s0 + $0x10] sm:$0xff]  ;;  %v7322_v12 = vor.u32 %v8551_v3, %v7321_v2  ;;  %v8533_v14 = vld [vmem:[%s9750_s10 + $0x354] sm:$0xf0]  ;;  %v7113_v18 = vld [vmem:[%s9750_s10 + $0x240] sm:$0xf]  ;;  %v7186_v20 = vor.u32 %v8517_v10, %v7185_v9  ;;  %s10859_s27 = smov (!%p10191_p8, %s6819_s27), 3 }
 0x1c6   : > { %6021 = vmatpush.bf16.msra.mxu2 %v6962_v36  ;;  %v7249_v13 = vld [vmem:[%s9750_s10 + $0x350] sm:$0xf]  ;;  %v9841_v15 = vpack.c.bf16 %v3535_v11, %v3535_v11  ;;  %v8549_v17 = vld [vmem:[%s9750_s10 + $0x3d4] sm:$0xf0]  ;;  %v8499_v21 = vld [vmem:[%s9750_s10 + $0x244] sm:$0xf0]  ;;  %s10230_s15 = scalar_lea.vmem %s10849_s2, %s10859_s27 }
 0x1c7   : > { %6034 = vmatpush.bf16.msra.mxu3 %v7026_v40  ;;  %v7313_v16 = vld [vmem:[%s9750_s10 + $0x3d0] sm:$0xf]  ;;  %v3533_v22 = vld [vmem:[%s10847_s0] sm:$0xff]  ;;  %v3536_v23 = vld [vmem:[%s10847_s0 + $0x18] sm:$0xff]  ;;  %v7250_v24 = vor.u32 %v8533_v14, %v7249_v13  ;;  %v7114_v36 = vor.u32 %v8499_v21, %v7113_v18  ;;  %s10861_s30 = smov (!%p10709_p9, %s6820_s30), 63  ;;  %s10863_s21 = smov (!%p3529_p11, %s8923_s21), 1 }
 0x1c8   : > { %5996 = vmatpush.bf16.msra.mxu0 %v6826_v47  ;;  %v7177_v25 = vld [vmem:[%s9750_s10 + $0x2c0] sm:$0xf]  ;;  %v8515_v26 = vld [vmem:[%s9750_s10 + $0x2c4] sm:$0xf0]  ;;  %v9855_v27 = vpack.c.bf16 %v3533_v22, %v3533_v22  ;;  %v9857_v28 = vpack.c.bf16 %v3536_v23, %v3536_v23  ;;  %v7314_v30 = vor.u32 %v8549_v17, %v7313_v16  ;;  %v7105_v38 = vld [vmem:[%s9750_s10 + $0x230] sm:$0xf] }
 0x1c9   : > { %6009 = vmatpush.bf16.msra.mxu1 %v6890_v51  ;;  %v3534_v29 = vld [vmem:[%s10847_s0 + $0x8] sm:$0xff]  ;;  %v7241_v31 = vld [vmem:[%s9750_s10 + $0x340] sm:$0xf]  ;;  %v7178_v37 = vor.u32 %v8515_v26, %v7177_v25  ;;  %v8497_v40 = vld [vmem:[%s9750_s10 + $0x234] sm:$0xf0]  ;;  %s6821_s7 = sshll.u32 %s10861_s30, 3 }
 0x1ca   : > { %6022 = vmatpush.bf16.msra.mxu2 %v6954_v52  ;;  %v8531_v32 = vld [vmem:[%s9750_s10 + $0x344] sm:$0xf0]  ;;  %v9865_v33 = vpack.c.bf16 %v3534_v29, %v3534_v29  ;;  %v7305_v34 = vld [vmem:[%s9750_s10 + $0x3c0] sm:$0xf]  ;;  %v7169_v41 = vld [vmem:[%s9750_s10 + $0x2b0] sm:$0xf]  ;;  %v7106_v48 = vor.u32 %v8497_v40, %v7105_v38  ;;  %s10757_s11 = scalar_lea.vmem %s10850_s3, %s6821_s7 }
 0x1cb   : > { %6035 = vmatpush.bf16.msra.mxu3 %v7018_v59  ;;  %v8547_v35 = vld [vmem:[%s9750_s10 + $0x3c4] sm:$0xf0]  ;;  %5997 = vmatmul.bf16.vlgmr.msra.gmra.mxu0 %v9855_v27  ;;  %v7242_v39 = vor.u32 %v8531_v32, %v7241_v31  ;;  %v8513_v42 = vld [vmem:[%s9750_s10 + $0x2b4] sm:$0xf0]  ;;  %v7233_v44 = vld [vmem:[%s9750_s10 + $0x330] sm:$0xf] }
 0x1cc   : > { %6041 = vmatpush.bf16.msrb.mxu0 %v7138_v55  ;;  %6010 = vmatmul.bf16.vlgmr.msra.gmra.mxu1 %v9865_v33  ;;  %v7306_v43 = vor.u32 %v8547_v35, %v7305_v34  ;;  %v8529_v45 = vld [vmem:[%s9750_s10 + $0x334] sm:$0xf0]  ;;  %v7297_v46 = vld [vmem:[%s9750_s10 + $0x3b0] sm:$0xf]  ;;  %v7170_v49 = vor.u32 %v8513_v42, %v7169_v41  ;;  %v7097_v50 = vld [vmem:[%s9750_s10 + $0x220] sm:$0xf] }
 0x1cd   : > { %6054 = vmatpush.bf16.msrb.mxu1 %v7202_v56  ;;  %6023 = vmatmul.bf16.vlgmr.msra.gmra.mxu2 %v9841_v15  ;;  %v8545_v47 = vld [vmem:[%s9750_s10 + $0x3b4] sm:$0xf0]  ;;  %v7234_v51 = vor.u32 %v8529_v45, %v7233_v44  ;;  %v8495_v52 = vld [vmem:[%s9750_s10 + $0x224] sm:$0xf0]  ;;  %v7161_v53 = vld [vmem:[%s9750_s10 + $0x2a0] sm:$0xf] }
 0x1ce   : > { %6067 = vmatpush.bf16.msrb.mxu2 %v7266_v58  ;;  %6036 = vmatmul.bf16.vlgmr.msra.gmra.mxu3 %v9857_v28  ;;  %v8511_v54 = vld [vmem:[%s9750_s10 + $0x2a4] sm:$0xf0]  ;;  %v7298_v55 = vor.u32 %v8545_v47, %v7297_v46  ;;  %v7225_v56 = vld [vmem:[%s9750_s10 + $0x320] sm:$0xf]  ;;  %v7098_v60 = vor.u32 %v8495_v52, %v7097_v50  ;;  %v7089_v62 = vld [vmem:[%s9750_s10 + $0x210] sm:$0xf] }
 0x1cf   : > { %6080 = vmatpush.bf16.msrb.mxu3 %v7330_v63  ;;  %v8527_v57 = vld [vmem:[%s9750_s10 + $0x324] sm:$0xf0]  ;;  %v7289_v58 = vld [vmem:[%s9750_s10 + $0x3a0] sm:$0xf]  ;;  %v7162_v61 = vor.u32 %v8511_v54, %v7161_v53  ;;  %v8493_v0 = vld [vmem:[%s9750_s10 + $0x214] sm:$0xf0] }
 0x1d0   : > { %6042 = vmatpush.bf16.msrb.mxu0 %v7130_v4  ;;  %v8543_v59 = vld [vmem:[%s9750_s10 + $0x3a4] sm:$0xf0]  ;;  %v7226_v63 = vor.u32 %v8527_v57, %v7225_v56  ;;  %v7153_v1 = vld [vmem:[%s9750_s10 + $0x290] sm:$0xf]  ;;  %v8509_v2 = vld [vmem:[%s9750_s10 + $0x294] sm:$0xf0]  ;;  %v7090_v9 = vor.u32 %v8493_v0, %v7089_v62 }
 0x1d1   : > { %6055 = vmatpush.bf16.msrb.mxu1 %v7194_v5  ;;  %v7290_v3 = vor.u32 %v8543_v59, %v7289_v58  ;;  %v7217_v4 = vld [vmem:[%s9750_s10 + $0x310] sm:$0xf]  ;;  %v8525_v5 = vld [vmem:[%s9750_s10 + $0x314] sm:$0xf0]  ;;  %v7154_v10 = vor.u32 %v8509_v2, %v7153_v1  ;;  %v8491_v11 = vld [vmem:[%s9750_s10 + $0x204] sm:$0xf0] }
 0x1d2   : > { %6068 = vmatpush.bf16.msrb.mxu2 %v7258_v8  ;;  %v7281_v6 = vld [vmem:[%s9750_s10 + $0x390] sm:$0xf]  ;;  %v8541_v7 = vld [vmem:[%s9750_s10 + $0x394] sm:$0xf0]  ;;  %v7081_v8 = vld [vmem:[%s9750_s10 + $0x200] sm:$0xf]  ;;  %v7218_v14 = vor.u32 %v8525_v5, %v7217_v4 }
 0x1d3   : > { %6081 = vmatpush.bf16.msrb.mxu3 %v7322_v12  ;;  %v7145_v12 = vld [vmem:[%s9750_s10 + $0x280] sm:$0xf]  ;;  %v8507_v13 = vld [vmem:[%s9750_s10 + $0x284] sm:$0xf0]  ;;  %v7393_v18 = vld [vmem:[%s9750_s10 + $0x470] sm:$0xf]  ;;  %v7082_v26 = vor.u32 %v8491_v11, %v7081_v8 }
 0x1d4   : > { %6043 = vmatpush.bf16.msrb.mxu0 %v7122_v19  ;;  %v7209_v16 = vld [vmem:[%s9750_s10 + $0x300] sm:$0xf]  ;;  %v8523_v17 = vld [vmem:[%s9750_s10 + $0x304] sm:$0xf0]  ;;  %v7282_v19 = vor.u32 %v8541_v7, %v7281_v6  ;;  %v7457_v21 = vld [vmem:[%s9750_s10 + $0x4f0] sm:$0xf]  ;;  %v7146_v29 = vor.u32 %v8507_v13, %v7145_v12 }
 0x1d5   : > { %6056 = vmatpush.bf16.msrb.mxu1 %v7186_v20  ;;  %v8569_v20 = vld [vmem:[%s9750_s10 + $0x474] sm:$0xf0]  ;;  %v7521_v23 = vld [vmem:[%s9750_s10 + $0x570] sm:$0xf]  ;;  %v7273_v25 = vld [vmem:[%s9750_s10 + $0x380] sm:$0xf]  ;;  %v7210_v34 = vor.u32 %v8523_v17, %v7209_v16 }
 0x1d6   : > { %6069 = vmatpush.bf16.msrb.mxu2 %v7250_v24  ;;  %v8585_v22 = vld [vmem:[%s9750_s10 + $0x4f4] sm:$0xf0]  ;;  %v7585_v31 = vld [vmem:[%s9750_s10 + $0x5f0] sm:$0xf]  ;;  %v3537_v32 = vld [vmem:[%s10847_s0 + $0x20] sm:$0xff]  ;;  %v7394_v35 = vor.u32 %v8569_v20, %v7393_v18 }
 0x1d7   : > { %6082 = vmatpush.bf16.msrb.mxu3 %v7314_v30  ;;  %v8601_v24 = vld [vmem:[%s9750_s10 + $0x574] sm:$0xf0]  ;;  %v8539_v30 = vld [vmem:[%s9750_s10 + $0x384] sm:$0xf0]  ;;  %v3539_v38 = vld [vmem:[%s10847_s0 + $0x30] sm:$0xff] }
 0x1d8   : > { %6044 = vmatpush.bf16.msrb.mxu0 %v7114_v36  ;;  %v8617_v36 = vld [vmem:[%s9750_s10 + $0x5f4] sm:$0xf0]  ;;  %v7522_v40 = vor.u32 %v8601_v24, %v7521_v23  ;;  %v8567_v41 = vld [vmem:[%s9750_s10 + $0x464] sm:$0xf0]  ;;  %v7449_v42 = vld [vmem:[%s9750_s10 + $0x4e0] sm:$0xf]  ;;  %v7274_v44 = vor.u32 %v8539_v30, %v7273_v25  ;;  %v9929_v50 = vpack.c.bf16 %v3539_v38, %v3539_v38 }
 0x1d9   : > { %6057 = vmatpush.bf16.msrb.mxu1 %v7178_v37  ;;  %v7385_v37 = vld [vmem:[%s9750_s10 + $0x460] sm:$0xf]  ;;  %v8583_v45 = vld [vmem:[%s9750_s10 + $0x4e4] sm:$0xf0]  ;;  %v7377_v58 = vld [vmem:[%s9750_s10 + $0x450] sm:$0xf] }
 0x1da   : > { %6070 = vmatpush.bf16.msrb.mxu2 %v7242_v39  ;;  %v7458_v39 = vor.u32 %v8585_v22, %v7457_v21  ;;  %v7513_v46 = vld [vmem:[%s9750_s10 + $0x560] sm:$0xf]  ;;  %v8599_v47 = vld [vmem:[%s9750_s10 + $0x564] sm:$0xf0]  ;;  %v7386_v52 = vor.u32 %v8567_v41, %v7385_v37  ;;  %v7450_v56 = vor.u32 %v8583_v45, %v7449_v42  ;;  %v8565_v59 = vld [vmem:[%s9750_s10 + $0x454] sm:$0xf0] }
 0x1db   : > { %6083 = vmatpush.bf16.msrb.mxu3 %v7306_v43  ;;  %v3538_v43 = vld [vmem:[%s10847_s0 + $0x28] sm:$0xff]  ;;  %v7577_v53 = vld [vmem:[%s9750_s10 + $0x5e0] sm:$0xf]  ;;  %v7514_v57 = vor.u32 %v8599_v47, %v7513_v46  ;;  %v8581_v62 = vld [vmem:[%s9750_s10 + $0x4d4] sm:$0xf0]  ;;  %v7378_v2 = vor.u32 %v8565_v59, %v7377_v58 }
 0x1dc   : > { %6045 = vmatpush.bf16.msrb.mxu0 %v7106_v48  ;;  %v9927_v48 = vpack.c.bf16 %v3537_v32, %v3537_v32  ;;  %v8615_v54 = vld [vmem:[%s9750_s10 + $0x5e4] sm:$0xf0]  ;;  %v8597_v0 = vld [vmem:[%s9750_s10 + $0x554] sm:$0xf0]  ;;  %v7369_v7 = vld [vmem:[%s9750_s10 + $0x440] sm:$0xf] }
 0x1dd   : > { %6058 = vmatpush.bf16.msrb.mxu1 %v7170_v49  ;;  %v7586_v49 = vor.u32 %v8617_v36, %v7585_v31  ;;  %v7578_v1 = vor.u32 %v8615_v54, %v7577_v53  ;;  %v8613_v4 = vld [vmem:[%s9750_s10 + $0x5d4] sm:$0xf0]  ;;  %v8563_v8 = vld [vmem:[%s9750_s10 + $0x444] sm:$0xf0]  ;;  %v7497_v11 = vld [vmem:[%s9750_s10 + $0x540] sm:$0xf] }
 0x1de   : > { %6071 = vmatpush.bf16.msrb.mxu2 %v7234_v51  ;;  %v3540_v51 = vld [vmem:[%s10847_s0 + $0x38] sm:$0xff]  ;;  %v8595_v12 = vld [vmem:[%s9750_s10 + $0x544] sm:$0xf0]  ;;  %v7561_v16 = vld [vmem:[%s9750_s10 + $0x5c0] sm:$0xf] }
 0x1df   : > { %6084 = vmatpush.bf16.msrb.mxu3 %v7298_v55  ;;  %v9936_v55 = vpack.c.bf16 %v3538_v43, %v3538_v43  ;;  %v8611_v17 = vld [vmem:[%s9750_s10 + $0x5c4] sm:$0xf0]  ;;  %v7361_v20 = vld [vmem:[%s9750_s10 + $0x430] sm:$0xf]  ;;  %v8561_v21 = vld [vmem:[%s9750_s10 + $0x434] sm:$0xf0] }
 0x1e0   : > { %6046 = vmatpush.bf16.msrb.mxu0 %v7098_v60  ;;  %v7441_v60 = vld [vmem:[%s9750_s10 + $0x4d0] sm:$0xf]  ;;  %v8577_v23 = vld [vmem:[%s9750_s10 + $0x4b4] sm:$0xf0]  ;;  %v8559_v36 = vld [vmem:[%s9750_s10 + $0x424] sm:$0xf0] }
 0x1e1   : > { %6059 = vmatpush.bf16.msrb.mxu1 %v7162_v61  ;;  %v9942_v61 = vpack.c.bf16 %v3540_v51, %v3540_v51  ;;  %v7442_v5 = vor.u32 %v8581_v62, %v7441_v60  ;;  %v7425_v22 = vld [vmem:[%s9750_s10 + $0x4b0] sm:$0xf]  ;;  %v8593_v25 = vld [vmem:[%s9750_s10 + $0x534] sm:$0xf0]  ;;  %v7417_v37 = vld [vmem:[%s9750_s10 + $0x4a0] sm:$0xf] }
 0x1e2   : > { %6072 = vmatpush.bf16.msrb.mxu2 %v7226_v63  ;;  %v7505_v63 = vld [vmem:[%s9750_s10 + $0x550] sm:$0xf]  ;;  %v8609_v31 = vld [vmem:[%s9750_s10 + $0x5b4] sm:$0xf0]  ;;  %v7426_v32 = vor.u32 %v8577_v23, %v7425_v22  ;;  %v8575_v38 = vld [vmem:[%s9750_s10 + $0x4a4] sm:$0xf0] }
 0x1e3   : > { %6085 = vmatpush.bf16.msrb.mxu3 %v7290_v3  ;;  %v7569_v3 = vld [vmem:[%s9750_s10 + $0x5d0] sm:$0xf]  ;;  %v7506_v6 = vor.u32 %v8597_v0, %v7505_v63  ;;  %v7545_v43 = vld [vmem:[%s9750_s10 + $0x5a0] sm:$0xf]  ;;  %v7418_v45 = vor.u32 %v8575_v38, %v7417_v37  ;;  %v8589_v54 = vld [vmem:[%s9750_s10 + $0x514] sm:$0xf0] }
 0x1e4   : > { %6047 = vmatpush.bf16.msrb.mxu0 %v7090_v9  ;;  %v7433_v9 = vld [vmem:[%s9750_s10 + $0x4c0] sm:$0xf]  ;;  %v7570_v13 = vor.u32 %v8613_v4, %v7569_v3  ;;  %v7489_v24 = vld [vmem:[%s9750_s10 + $0x530] sm:$0xf]  ;;  %v8605_v59 = vld [vmem:[%s9750_s10 + $0x594] sm:$0xf0] }
 0x1e5   : > { %6060 = vmatpush.bf16.msrb.mxu1 %v7154_v10  ;;  %v8579_v10 = vld [vmem:[%s9750_s10 + $0x4c4] sm:$0xf0]  ;;  %v7553_v30 = vld [vmem:[%s9750_s10 + $0x5b0] sm:$0xf]  ;;  %v7337_v60 = vld [vmem:[%s9750_s10 + $0x400] sm:$0xf] }
 0x1e6   : > { %6073 = vmatpush.bf16.msrb.mxu2 %v7218_v14  ;;  %v7370_v14 = vor.u32 %v8563_v8, %v7369_v7  ;;  %v7434_v18 = vor.u32 %v8579_v10, %v7433_v9  ;;  %v7554_v41 = vor.u32 %v8609_v31, %v7553_v30  ;;  %v7345_v47 = vld [vmem:[%s9750_s10 + $0x410] sm:$0xf]  ;;  %v8555_v62 = vld [vmem:[%s9750_s10 + $0x404] sm:$0xf0]  ;;  %v7465_v3 = vld [vmem:[%s9750_s10 + $0x500] sm:$0xf] }
 0x1e7   : > { %6086 = vmatpush.bf16.msrb.mxu3 %v7282_v19  ;;  %v7498_v19 = vor.u32 %v8595_v12, %v7497_v11  ;;  %v7409_v51 = vld [vmem:[%s9750_s10 + $0x490] sm:$0xf]  ;;  %v8587_v4 = vld [vmem:[%s9750_s10 + $0x504] sm:$0xf0]  ;;  %v8649_v9 = vld [vmem:[%s9750_s10 + $0x6f4] sm:$0xf0]  ;;  %v7338_v11 = vor.u32 %v8555_v62, %v7337_v60 }
 0x1e8   : > { %6048 = vmatpush.bf16.msrb.mxu0 %v7082_v26  ;;  %v7562_v26 = vor.u32 %v8611_v17, %v7561_v16  ;;  %v7473_v53 = vld [vmem:[%s9750_s10 + $0x510] sm:$0xf]  ;;  %v8665_v12 = vld [vmem:[%s9750_s10 + $0x774] sm:$0xf0]  ;;  %v7466_v17 = vor.u32 %v8587_v4, %v7465_v3  ;;  %v7641_v30 = vld [vmem:[%s9750_s10 + $0x660] sm:$0xf] }
 0x1e9   : > { %6061 = vmatpush.bf16.msrb.mxu1 %v7146_v29  ;;  %v7362_v29 = vor.u32 %v8561_v21, %v7361_v20  ;;  %v7474_v0 = vor.u32 %v8589_v54, %v7473_v53  ;;  %v7713_v8 = vld [vmem:[%s9750_s10 + $0x6f0] sm:$0xf]  ;;  %v8681_v23 = vld [vmem:[%s9750_s10 + $0x7f4] sm:$0xf0]  ;;  %v8631_v31 = vld [vmem:[%s9750_s10 + $0x664] sm:$0xf0] }
 0x1ea   : > { %6074 = vmatpush.bf16.msrb.mxu2 %v7210_v34  ;;  %v7490_v34 = vor.u32 %v8593_v25, %v7489_v24  ;;  %v7777_v10 = vld [vmem:[%s9750_s10 + $0x770] sm:$0xf]  ;;  %v7714_v22 = vor.u32 %v8649_v9, %v7713_v8  ;;  %v3542_v24 = vld [vmem:[%s10847_s0 + $0x48] sm:$0xff]  ;;  %v3544_v25 = vld [vmem:[%s10847_s0 + $0x58] sm:$0xff] }
 0x1eb   : > { %6087 = vmatpush.bf16.msrb.mxu3 %v7274_v44  ;;  %6049 = vmatmul.bf16.vlgmr.msrb.gmra.mxu0 %v9927_v48  ;;  %v8607_v44 = vld [vmem:[%s9750_s10 + $0x5a4] sm:$0xf0]  ;;  %v7841_v20 = vld [vmem:[%s9750_s10 + $0x7f0] sm:$0xf]  ;;  %v7769_v37 = vld [vmem:[%s9750_s10 + $0x760] sm:$0xf] }
 0x1ec   : > { %6093 = vmatpush.bf16.msra.mxu0 %v7394_v35  ;;  %6062 = vmatmul.bf16.vlgmr.msrb.gmra.mxu1 %v9936_v55  ;;  %v7353_v35 = vld [vmem:[%s9750_s10 + $0x420] sm:$0xf]  ;;  %v8663_v38 = vld [vmem:[%s9750_s10 + $0x764] sm:$0xf0]  ;;  %v7761_v53 = vld [vmem:[%s9750_s10 + $0x750] sm:$0xf] }
 0x1ed   : > { %6106 = vmatpush.bf16.msra.mxu1 %v7458_v39  ;;  %6075 = vmatmul.bf16.vlgmr.msrb.gmra.mxu2 %v9929_v50  ;;  %v7481_v39 = vld [vmem:[%s9750_s10 + $0x520] sm:$0xf]  ;;  %v7354_v42 = vor.u32 %v8559_v36, %v7353_v35  ;;  %v8647_v36 = vld [vmem:[%s9750_s10 + $0x6e4] sm:$0xf0]  ;;  %v8661_v54 = vld [vmem:[%s9750_s10 + $0x754] sm:$0xf0] }
 0x1ee   : > { %6119 = vmatpush.bf16.msra.mxu2 %v7522_v40  ;;  %6088 = vmatmul.bf16.vlgmr.msrb.gmra.mxu3 %v9942_v61  ;;  %v8591_v40 = vld [vmem:[%s9750_s10 + $0x524] sm:$0xf0]  ;;  %v7762_v62 = vor.u32 %v8661_v54, %v7761_v53  ;;  %v7753_v3 = vld [vmem:[%s9750_s10 + $0x740] sm:$0xf]  ;;  %v8669_v54 = vld [vmem:[%s9750_s10 + $0x794] sm:$0xf0] }
 0x1ef   : > { %6132 = vmatpush.bf16.msra.mxu3 %v7586_v49  ;;  %v7482_v46 = vor.u32 %v8591_v40, %v7481_v39  ;;  %v8557_v49 = vld [vmem:[%s9750_s10 + $0x414] sm:$0xf0]  ;;  %v7842_v39 = vor.u32 %v8681_v23, %v7841_v20  ;;  %v10022_v40 = vpack.c.bf16 %v3542_v24, %v3542_v24  ;;  %v8659_v4 = vld [vmem:[%s9750_s10 + $0x744] sm:$0xf0]  ;;  %v7809_v20 = vld [vmem:[%s9750_s10 + $0x7b0] sm:$0xf] }
 0x1f0   : > { %6094 = vmatpush.bf16.msra.mxu0 %v7386_v52  ;;  %v8573_v52 = vld [vmem:[%s9750_s10 + $0x494] sm:$0xf0]  ;;  %v7346_v58 = vor.u32 %v8557_v49, %v7345_v47  ;;  %v7633_v47 = vld [vmem:[%s9750_s10 + $0x650] sm:$0xf]  ;;  %v8675_v8 = vld [vmem:[%s9750_s10 + $0x7c4] sm:$0xf0] }
 0x1f1   : > { %6107 = vmatpush.bf16.msra.mxu1 %v7450_v56  ;;  %v7546_v56 = vor.u32 %v8607_v44, %v7545_v43  ;;  %v7410_v63 = vor.u32 %v8573_v52, %v7409_v51  ;;  %v7833_v43 = vld [vmem:[%s9750_s10 + $0x7e0] sm:$0xf]  ;;  %v8679_v44 = vld [vmem:[%s9750_s10 + $0x7e4] sm:$0xf0]  ;;  %v8629_v49 = vld [vmem:[%s9750_s10 + $0x654] sm:$0xf0] }
 0x1f2   : > { %6120 = vmatpush.bf16.msra.mxu2 %v7514_v57  ;;  %v7537_v57 = vld [vmem:[%s9750_s10 + $0x590] sm:$0xf]  ;;  %v8645_v52 = vld [vmem:[%s9750_s10 + $0x6d4] sm:$0xf0]  ;;  %v7609_v24 = vld [vmem:[%s9750_s10 + $0x620] sm:$0xf] }
 0x1f3   : > { %6133 = vmatpush.bf16.msra.mxu3 %v7578_v1  ;;  %v7401_v1 = vld [vmem:[%s9750_s10 + $0x480] sm:$0xf]  ;;  %v7538_v7 = vor.u32 %v8605_v59, %v7537_v57  ;;  %v7697_v51 = vld [vmem:[%s9750_s10 + $0x6d0] sm:$0xf]  ;;  %v7634_v57 = vor.u32 %v8629_v49, %v7633_v47  ;;  %v8677_v59 = vld [vmem:[%s9750_s10 + $0x7d4] sm:$0xf0] }
 0x1f4   : > { %6095 = vmatpush.bf16.msra.mxu0 %v7378_v2  ;;  %v8571_v2 = vld [vmem:[%s9750_s10 + $0x484] sm:$0xf0]  ;;  %v7698_v60 = vor.u32 %v8645_v52, %v7697_v51  ;;  %v7729_v47 = vld [vmem:[%s9750_s10 + $0x710] sm:$0xf]  ;;  %v8653_v49 = vld [vmem:[%s9750_s10 + $0x714] sm:$0xf0] }
 0x1f5   : > { %6108 = vmatpush.bf16.msra.mxu1 %v7442_v5  ;;  %v7649_v5 = vld [vmem:[%s9750_s10 + $0x670] sm:$0xf]  ;;  %v7402_v16 = vor.u32 %v8571_v2, %v7401_v1  ;;  %v7689_v1 = vld [vmem:[%s9750_s10 + $0x6c0] sm:$0xf]  ;;  %v8643_v2 = vld [vmem:[%s9750_s10 + $0x6c4] sm:$0xf0] }
 0x1f6   : > { %6121 = vmatpush.bf16.msra.mxu2 %v7506_v6  ;;  %v8633_v6 = vld [vmem:[%s9750_s10 + $0x674] sm:$0xf0]  ;;  %v7690_v9 = vor.u32 %v8643_v2, %v7689_v1  ;;  %v7793_v52 = vld [vmem:[%s9750_s10 + $0x790] sm:$0xf] }
 0x1f7   : > { %6134 = vmatpush.bf16.msra.mxu3 %v7570_v13  ;;  %v7529_v13 = vld [vmem:[%s9750_s10 + $0x580] sm:$0xf]  ;;  %v7650_v21 = vor.u32 %v8633_v6, %v7649_v5  ;;  %v7905_v1 = vld [vmem:[%s9750_s10 + $0x870] sm:$0xf]  ;;  %v8697_v2 = vld [vmem:[%s9750_s10 + $0x874] sm:$0xf0] }
 0x1f8   : > { %6096 = vmatpush.bf16.msra.mxu0 %v7370_v14  ;;  %v8603_v14 = vld [vmem:[%s9750_s10 + $0x584] sm:$0xf0] }
 0x1f9   : > { %6109 = vmatpush.bf16.msra.mxu1 %v7434_v18  ;;  %v3541_v18 = vld [vmem:[%s10847_s0 + $0x40] sm:$0xff] }
 0x1fa   : > { %6122 = vmatpush.bf16.msra.mxu2 %v7498_v19  ;;  %v3543_v19 = vld [vmem:[%s10847_s0 + $0x50] sm:$0xff] }
 0x1fb   : > { %6135 = vmatpush.bf16.msra.mxu3 %v7562_v26  ;;  %v7778_v26 = vor.u32 %v8665_v12, %v7777_v10  ;;  %v10017_v35 = vpack.c.bf16 %v3543_v19, %v3543_v19  ;;  %v7754_v10 = vor.u32 %v8659_v4, %v7753_v3  ;;  %v8625_v12 = vld [vmem:[%s9750_s10 + $0x634] sm:$0xf0]  ;;  %v7794_v3 = vor.u32 %v8669_v54, %v7793_v52  ;;  %v7969_v4 = vld [vmem:[%s9750_s10 + $0x8f0] sm:$0xf] }
 0x1fc   : > { %6097 = vmatpush.bf16.msra.mxu0 %v7362_v29  ;;  %v7530_v29 = vor.u32 %v8603_v14, %v7529_v13  ;;  %v7681_v13 = vld [vmem:[%s9750_s10 + $0x6b0] sm:$0xf]  ;;  %v8641_v14 = vld [vmem:[%s9750_s10 + $0x6b4] sm:$0xf0] }
 0x1fd   : > { %6110 = vmatpush.bf16.msra.mxu1 %v7426_v32  ;;  %v7705_v32 = vld [vmem:[%s9750_s10 + $0x6e0] sm:$0xf]  ;;  %v8709_v52 = vld [vmem:[%s9750_s10 + $0x8d4] sm:$0xf0] }
 0x1fe   : > { %6123 = vmatpush.bf16.msra.mxu2 %v7490_v34  ;;  %v10015_v34 = vpack.c.bf16 %v3541_v18, %v3541_v18  ;;  %v8725_v54 = vld [vmem:[%s9750_s10 + $0x954] sm:$0xf0] }
 0x1ff   : > { %6136 = vmatpush.bf16.msra.mxu3 %v7554_v41  ;;  %v10024_v41 = vpack.c.bf16 %v3544_v25, %v3544_v25  ;;  %v8623_v25 = vld [vmem:[%s9750_s10 + $0x624] sm:$0xf0] }
 0x200   : > { %6098 = vmatpush.bf16.msra.mxu0 %v7354_v42  ;;  %v7642_v42 = vor.u32 %v8631_v31, %v7641_v30  ;;  %v7737_v30 = vld [vmem:[%s9750_s10 + $0x720] sm:$0xf]  ;;  %v8655_v31 = vld [vmem:[%s9750_s10 + $0x724] sm:$0xf0] }
 0x201   : > { %6111 = vmatpush.bf16.msra.mxu1 %v7418_v45  ;;  %v7706_v45 = vor.u32 %v8647_v36, %v7705_v32  ;;  %v7610_v36 = vor.u32 %v8623_v25, %v7609_v24  ;;  %v7897_v24 = vld [vmem:[%s9750_s10 + $0x860] sm:$0xf]  ;;  %v8695_v25 = vld [vmem:[%s9750_s10 + $0x864] sm:$0xf0] }
 0x202   : > { %6124 = vmatpush.bf16.msra.mxu2 %v7482_v46  ;;  %v7770_v46 = vor.u32 %v8663_v38, %v7769_v37  ;;  %v7801_v37 = vld [vmem:[%s9750_s10 + $0x7a0] sm:$0xf]  ;;  %v8671_v38 = vld [vmem:[%s9750_s10 + $0x7a4] sm:$0xf0] }
 0x203   : > { %6137 = vmatpush.bf16.msra.mxu3 %v7546_v56  ;;  %v7834_v56 = vor.u32 %v8679_v44, %v7833_v43  ;;  %v7601_v43 = vld [vmem:[%s9750_s10 + $0x610] sm:$0xf]  ;;  %v8621_v44 = vld [vmem:[%s9750_s10 + $0x614] sm:$0xf0]  ;;  %v7802_v51 = vor.u32 %v8671_v38, %v7801_v37 }
 0x204   : > { %6099 = vmatpush.bf16.msra.mxu0 %v7346_v58  ;;  %v7825_v58 = vld [vmem:[%s9750_s10 + $0x7d0] sm:$0xf]  ;;  %v7602_v53 = vor.u32 %v8621_v44, %v7601_v43  ;;  %v8089_v43 = vld [vmem:[%s9750_s10 + $0x9e0] sm:$0xf]  ;;  %v8743_v44 = vld [vmem:[%s9750_s10 + $0x9e4] sm:$0xf0] }
 0x205   : > { %6112 = vmatpush.bf16.msra.mxu1 %v7410_v63  ;;  %v7625_v63 = vld [vmem:[%s9750_s10 + $0x640] sm:$0xf]  ;;  %v7826_v5 = vor.u32 %v8677_v59, %v7825_v58  ;;  %v7730_v59 = vor.u32 %v8653_v49, %v7729_v47  ;;  %v7889_v47 = vld [vmem:[%s9750_s10 + $0x850] sm:$0xf]  ;;  %v8693_v49 = vld [vmem:[%s9750_s10 + $0x854] sm:$0xf0] }
 0x206   : > { %6125 = vmatpush.bf16.msra.mxu2 %v7474_v0  ;;  %v8627_v0 = vld [vmem:[%s9750_s10 + $0x644] sm:$0xf0] }
 0x207   : > { %6138 = vmatpush.bf16.msra.mxu3 %v7538_v7  ;;  %v7626_v6 = vor.u32 %v8627_v0, %v7625_v63  ;;  %v7817_v7 = vld [vmem:[%s9750_s10 + $0x7c0] sm:$0xf]  ;;  %v8651_v0 = vld [vmem:[%s9750_s10 + $0x704] sm:$0xf0] }
 0x208   : > { %6100 = vmatpush.bf16.msra.mxu0 %v7338_v11  ;;  %v7617_v11 = vld [vmem:[%s9750_s10 + $0x630] sm:$0xf]  ;;  %v7818_v18 = vor.u32 %v8675_v8, %v7817_v7  ;;  %v7721_v63 = vld [vmem:[%s9750_s10 + $0x700] sm:$0xf]  ;;  %v8729_v8 = vld [vmem:[%s9750_s10 + $0x974] sm:$0xf0] }
 0x209   : > { %6113 = vmatpush.bf16.msra.mxu1 %v7402_v16  ;;  %v7745_v16 = vld [vmem:[%s9750_s10 + $0x730] sm:$0xf]  ;;  %v7618_v19 = vor.u32 %v8625_v12, %v7617_v11  ;;  %v7722_v12 = vor.u32 %v8651_v0, %v7721_v63  ;;  %v7881_v63 = vld [vmem:[%s9750_s10 + $0x840] sm:$0xf]  ;;  %v8691_v0 = vld [vmem:[%s9750_s10 + $0x844] sm:$0xf0] }
 0x20a   : > { %6126 = vmatpush.bf16.msra.mxu2 %v7466_v17  ;;  %v8657_v17 = vld [vmem:[%s9750_s10 + $0x734] sm:$0xf0] }
 0x20b   : > { %6139 = vmatpush.bf16.msra.mxu3 %v7530_v29  ;;  %6101 = vmatmul.bf16.vlgmr.msra.gmra.mxu0 %v10015_v34  ;;  %v7746_v23 = vor.u32 %v8657_v17, %v7745_v16  ;;  %v8639_v29 = vld [vmem:[%s9750_s10 + $0x6a4] sm:$0xf0]  ;;  %v8097_v16 = vld [vmem:[%s9750_s10 + $0x9f0] sm:$0xf]  ;;  %v7906_v17 = vor.u32 %v8697_v2, %v7905_v1  ;;  %v7945_v1 = vld [vmem:[%s9750_s10 + $0x8c0] sm:$0xf] }
 0x20c   : > { %6145 = vmatpush.bf16.msrb.mxu0 %v7650_v21  ;;  %6114 = vmatmul.bf16.vlgmr.msra.gmra.mxu1 %v10022_v40  ;;  %v8673_v21 = vld [vmem:[%s9750_s10 + $0x7b4] sm:$0xf0]  ;;  %v8707_v2 = vld [vmem:[%s9750_s10 + $0x8c4] sm:$0xf0] }
 0x20d   : > { %6158 = vmatpush.bf16.msrb.mxu1 %v7714_v22  ;;  %6127 = vmatmul.bf16.vlgmr.msra.gmra.mxu2 %v10017_v35  ;;  %v7682_v22 = vor.u32 %v8641_v14, %v7681_v13  ;;  %v7810_v32 = vor.u32 %v8673_v21, %v7809_v20  ;;  %v3545_v13 = vld [vmem:[%s10847_s0 + $0x60] sm:$0xff]  ;;  %v3547_v14 = vld [vmem:[%s10847_s0 + $0x70] sm:$0xff]  ;;  %v3546_v20 = vld [vmem:[%s10847_s0 + $0x68] sm:$0xff] }
 0x20e   : > { %6171 = vmatpush.bf16.msrb.mxu2 %v7778_v26  ;;  %6140 = vmatmul.bf16.vlgmr.msra.gmra.mxu3 %v10024_v41  ;;  %v7673_v26 = vld [vmem:[%s9750_s10 + $0x6a0] sm:$0xf]  ;;  %v3548_v21 = vld [vmem:[%s10847_s0 + $0x78] sm:$0xff]  ;;  %v10110_v38 = vpack.c.bf16 %v3546_v20, %v3546_v20  ;;  %v8065_v20 = vld [vmem:[%s9750_s10 + $0x9b0] sm:$0xf] }
 0x20f   : > { %6184 = vmatpush.bf16.msrb.mxu3 %v7842_v39  ;;  %v7674_v39 = vor.u32 %v8639_v29, %v7673_v26  ;;  %v7961_v26 = vld [vmem:[%s9750_s10 + $0x8e0] sm:$0xf]  ;;  %v10103_v29 = vpack.c.bf16 %v3545_v13, %v3545_v13  ;;  %v7937_v13 = vld [vmem:[%s9750_s10 + $0x8b0] sm:$0xf] }
 0x210   : > { %6146 = vmatpush.bf16.msrb.mxu0 %v7642_v42  ;;  %v7738_v42 = vor.u32 %v8655_v31, %v7737_v30  ;;  %v10105_v30 = vpack.c.bf16 %v3547_v14, %v3547_v14  ;;  %v8711_v31 = vld [vmem:[%s9750_s10 + $0x8e4] sm:$0xf0]  ;;  %v8705_v14 = vld [vmem:[%s9750_s10 + $0x8b4] sm:$0xf0] }
 0x211   : > { %6159 = vmatpush.bf16.msrb.mxu1 %v7706_v45  ;;  %v7665_v45 = vld [vmem:[%s9750_s10 + $0x690] sm:$0xf] }
 0x212   : > { %6172 = vmatpush.bf16.msrb.mxu2 %v7770_v46  ;;  %v8637_v46 = vld [vmem:[%s9750_s10 + $0x694] sm:$0xf0] }
 0x213   : > { %6185 = vmatpush.bf16.msrb.mxu3 %v7834_v56  ;;  %v7593_v56 = vld [vmem:[%s9750_s10 + $0x600] sm:$0xf]  ;;  %v7666_v58 = vor.u32 %v8637_v46, %v7665_v45  ;;  %v7962_v45 = vor.u32 %v8711_v31, %v7961_v26  ;;  %v8703_v31 = vld [vmem:[%s9750_s10 + $0x8a4] sm:$0xf0] }
 0x214   : > { %6147 = vmatpush.bf16.msrb.mxu0 %v7634_v57  ;;  %v8619_v57 = vld [vmem:[%s9750_s10 + $0x604] sm:$0xf0]  ;;  %v7929_v26 = vld [vmem:[%s9750_s10 + $0x8a0] sm:$0xf] }
 0x215   : > { %6160 = vmatpush.bf16.msrb.mxu1 %v7698_v60  ;;  %v7657_v60 = vld [vmem:[%s9750_s10 + $0x680] sm:$0xf]  ;;  %v7594_v7 = vor.u32 %v8619_v57, %v7593_v56  ;;  %v8090_v56 = vor.u32 %v8743_v44, %v8089_v43  ;;  %v7890_v57 = vor.u32 %v8693_v49, %v7889_v47  ;;  %v8735_v44 = vld [vmem:[%s9750_s10 + $0x9a4] sm:$0xf0]  ;;  %v7857_v47 = vld [vmem:[%s9750_s10 + $0x810] sm:$0xf] }
 0x216   : > { %6173 = vmatpush.bf16.msrb.mxu2 %v7762_v62  ;;  %v8635_v62 = vld [vmem:[%s9750_s10 + $0x684] sm:$0xf0]  ;;  %v8057_v43 = vld [vmem:[%s9750_s10 + $0x9a0] sm:$0xf]  ;;  %v8685_v49 = vld [vmem:[%s9750_s10 + $0x814] sm:$0xf0] }
 0x217   : > { %6186 = vmatpush.bf16.msrb.mxu3 %v7826_v5  ;;  %v8713_v5 = vld [vmem:[%s9750_s10 + $0x8f4] sm:$0xf0]  ;;  %v7658_v11 = vor.u32 %v8635_v62, %v7657_v60 }
 0x218   : > { %6148 = vmatpush.bf16.msrb.mxu0 %v7626_v6  ;;  %v8033_v6 = vld [vmem:[%s9750_s10 + $0x970] sm:$0xf] }
 0x219   : > { %6161 = vmatpush.bf16.msrb.mxu1 %v7690_v9  ;;  %v7785_v9 = vld [vmem:[%s9750_s10 + $0x780] sm:$0xf] }
 0x21a   : > { %6174 = vmatpush.bf16.msrb.mxu2 %v7754_v10  ;;  %v8667_v10 = vld [vmem:[%s9750_s10 + $0x784] sm:$0xf0] }
 0x21b   : > { %6187 = vmatpush.bf16.msrb.mxu3 %v7818_v18  ;;  %v7970_v18 = vor.u32 %v8713_v5, %v7969_v4  ;;  %v8723_v4 = vld [vmem:[%s9750_s10 + $0x944] sm:$0xf0] }
 0x21c   : > { %6149 = vmatpush.bf16.msrb.mxu0 %v7618_v19  ;;  %v8745_v19 = vld [vmem:[%s9750_s10 + $0x9f4] sm:$0xf0] }
 0x21d   : > { %6162 = vmatpush.bf16.msrb.mxu1 %v7682_v22  ;;  %v8034_v22 = vor.u32 %v8729_v8, %v8033_v6  ;;  %v8098_v37 = vor.u32 %v8745_v19, %v8097_v16  ;;  %v7882_v6 = vor.u32 %v8691_v0, %v7881_v63  ;;  %v8739_v8 = vld [vmem:[%s9750_s10 + $0x9c4] sm:$0xf0]  ;;  %v8001_v16 = vld [vmem:[%s9750_s10 + $0x930] sm:$0xf] }
 0x21e   : > { %6175 = vmatpush.bf16.msrb.mxu2 %v7746_v23  ;;  %v7786_v23 = vor.u32 %v8667_v10, %v7785_v9  ;;  %v7946_v9 = vor.u32 %v8707_v2, %v7945_v1  ;;  %v7913_v1 = vld [vmem:[%s9750_s10 + $0x880] sm:$0xf]  ;;  %v8699_v2 = vld [vmem:[%s9750_s10 + $0x884] sm:$0xf0] }
 0x21f   : > { %6188 = vmatpush.bf16.msrb.mxu3 %v7810_v32  ;;  %v8025_v32 = vld [vmem:[%s9750_s10 + $0x960] sm:$0xf] }
 0x220   : > { %6150 = vmatpush.bf16.msrb.mxu0 %v7610_v36  ;;  %v8727_v36 = vld [vmem:[%s9750_s10 + $0x964] sm:$0xf0] }
 0x221   : > { %6163 = vmatpush.bf16.msrb.mxu1 %v7674_v39  ;;  %v10112_v39 = vpack.c.bf16 %v3548_v21, %v3548_v21  ;;  %v8026_v46 = vor.u32 %v8727_v36, %v8025_v32  ;;  %v8737_v21 = vld [vmem:[%s9750_s10 + $0x9b4] sm:$0xf0]  ;;  %v7993_v32 = vld [vmem:[%s9750_s10 + $0x920] sm:$0xf]  ;;  %v8719_v36 = vld [vmem:[%s9750_s10 + $0x924] sm:$0xf0] }
 0x222   : > { %6176 = vmatpush.bf16.msrb.mxu2 %v7738_v42  ;;  %v7898_v42 = vor.u32 %v8695_v25, %v7897_v24  ;;  %v7865_v24 = vld [vmem:[%s9750_s10 + $0x820] sm:$0xf]  ;;  %v8687_v25 = vld [vmem:[%s9750_s10 + $0x824] sm:$0xf0] }
 0x223   : > { %6189 = vmatpush.bf16.msrb.mxu3 %v7802_v51  ;;  %v7953_v51 = vld [vmem:[%s9750_s10 + $0x8d0] sm:$0xf] }
 0x224   : > { %6151 = vmatpush.bf16.msrb.mxu0 %v7602_v53  ;;  %v8017_v53 = vld [vmem:[%s9750_s10 + $0x950] sm:$0xf]  ;;  %v7954_v60 = vor.u32 %v8709_v52, %v7953_v51  ;;  %v8701_v52 = vld [vmem:[%s9750_s10 + $0x894] sm:$0xf0] }
 0x225   : > { %6164 = vmatpush.bf16.msrb.mxu1 %v7666_v58  ;;  %v8081_v58 = vld [vmem:[%s9750_s10 + $0x9d0] sm:$0xf]  ;;  %v8018_v62 = vor.u32 %v8725_v54, %v8017_v53  ;;  %v8717_v54 = vld [vmem:[%s9750_s10 + $0x914] sm:$0xf0] }
 0x226   : > { %6177 = vmatpush.bf16.msrb.mxu2 %v7730_v59  ;;  %v8741_v59 = vld [vmem:[%s9750_s10 + $0x9d4] sm:$0xf0]  ;;  %v7921_v51 = vld [vmem:[%s9750_s10 + $0x890] sm:$0xf] }
 0x227   : > { %6190 = vmatpush.bf16.msrb.mxu3 %v7794_v3  ;;  %v8009_v3 = vld [vmem:[%s9750_s10 + $0x940] sm:$0xf]  ;;  %v8082_v5 = vor.u32 %v8741_v59, %v8081_v58  ;;  %v7985_v53 = vld [vmem:[%s9750_s10 + $0x910] sm:$0xf]  ;;  %v7858_v58 = vor.u32 %v8685_v49, %v7857_v47  ;;  %v8733_v59 = vld [vmem:[%s9750_s10 + $0x994] sm:$0xf0]  ;;  %v7922_v63 = vor.u32 %v8701_v52, %v7921_v51 }
 0x228   : > { %6152 = vmatpush.bf16.msrb.mxu0 %v7594_v7  ;;  %v8073_v7 = vld [vmem:[%s9750_s10 + $0x9c0] sm:$0xf]  ;;  %v8010_v10 = vor.u32 %v8723_v4, %v8009_v3  ;;  %v7986_v0 = vor.u32 %v8717_v54, %v7985_v53  ;;  %v8715_v4 = vld [vmem:[%s9750_s10 + $0x904] sm:$0xf0] }
 0x229   : > { %6165 = vmatpush.bf16.msrb.mxu1 %v7658_v11  ;;  %v7873_v11 = vld [vmem:[%s9750_s10 + $0x830] sm:$0xf]  ;;  %v7977_v3 = vld [vmem:[%s9750_s10 + $0x900] sm:$0xf]  ;;  %v8807_v54 = vld [vmem:[%s9750_s10 + $0xbe4] sm:$0xf0] }
 0x22a   : > { %6178 = vmatpush.bf16.msrb.mxu2 %v7722_v12  ;;  %v8689_v12 = vld [vmem:[%s9750_s10 + $0x834] sm:$0xf0]  ;;  %v8345_v53 = vld [vmem:[%s9750_s10 + $0xbe0] sm:$0xf] }
 0x22b   : > { %6191 = vmatpush.bf16.msrb.mxu3 %v7786_v23  ;;  %6153 = vmatmul.bf16.vlgmr.msrb.gmra.mxu0 %v10103_v29  ;;  %v7874_v19 = vor.u32 %v8689_v12, %v7873_v11  ;;  %v8793_v12 = vld [vmem:[%s9750_s10 + $0xb74] sm:$0xf0] }
 0x22c   : > { %6197 = vmatpush.bf16.msra.mxu0 %v7906_v17  ;;  %6166 = vmatmul.bf16.vlgmr.msrb.gmra.mxu1 %v10110_v38  ;;  %v8721_v17 = vld [vmem:[%s9750_s10 + $0x934] sm:$0xf0] }
 0x22d   : > { %6210 = vmatpush.bf16.msra.mxu1 %v7970_v18  ;;  %6179 = vmatmul.bf16.vlgmr.msrb.gmra.mxu2 %v10105_v30  ;;  %v8074_v18 = vor.u32 %v8739_v8, %v8073_v7  ;;  %v8002_v23 = vor.u32 %v8721_v17, %v8001_v16  ;;  %v8225_v8 = vld [vmem:[%s9750_s10 + $0xaf0] sm:$0xf]  ;;  %v7914_v16 = vor.u32 %v8699_v2, %v7913_v1 }
 0x22e   : > { %6223 = vmatpush.bf16.msra.mxu2 %v8034_v22  ;;  %6192 = vmatmul.bf16.vlgmr.msrb.gmra.mxu3 %v10112_v39  ;;  %v7938_v22 = vor.u32 %v8705_v14, %v7937_v13  ;;  %v8041_v13 = vld [vmem:[%s9750_s10 + $0x980] sm:$0xf]  ;;  %v8731_v14 = vld [vmem:[%s9750_s10 + $0x984] sm:$0xf0]  ;;  %v7978_v17 = vor.u32 %v8715_v4, %v7977_v3  ;;  %v8346_v1 = vor.u32 %v8807_v54, %v8345_v53  ;;  %v8337_v3 = vld [vmem:[%s9750_s10 + $0xbd0] sm:$0xf] }
 0x22f   : > { %6236 = vmatpush.bf16.msra.mxu3 %v8098_v37  ;;  %v8066_v37 = vor.u32 %v8737_v21, %v8065_v20  ;;  %v8353_v20 = vld [vmem:[%s9750_s10 + $0xbf0] sm:$0xf]  ;;  %v8805_v4 = vld [vmem:[%s9750_s10 + $0xbd4] sm:$0xf0]  ;;  %v8185_v53 = vld [vmem:[%s9750_s10 + $0xaa0] sm:$0xf] }
 0x230   : > { %6198 = vmatpush.bf16.msra.mxu0 %v7898_v42  ;;  %v7866_v42 = vor.u32 %v8687_v25, %v7865_v24  ;;  %v3550_v24 = vld [vmem:[%s10847_s0 + $0x88] sm:$0xff]  ;;  %v3552_v25 = vld [vmem:[%s10847_s0 + $0x98] sm:$0xff] }
 0x231   : > { %6211 = vmatpush.bf16.msra.mxu1 %v7962_v45  ;;  %v7930_v45 = vor.u32 %v8703_v31, %v7929_v26  ;;  %v8042_v31 = vor.u32 %v8731_v14, %v8041_v13  ;;  %v10205_v49 = vpack.c.bf16 %v3550_v24, %v3550_v24  ;;  %v10207_v51 = vpack.c.bf16 %v3552_v25, %v3552_v25  ;;  %v3983_v14 = vld [vmem:[%s10230_s15] sm:$0x3]  ;;  %v8769_v24 = vld [vmem:[%s9750_s10 + $0xab4] sm:$0xf0]  ;;  %v8257_v25 = vld [vmem:[%s9750_s10 + $0xb30] sm:$0xf] }
 0x232   : > { %6224 = vmatpush.bf16.msra.mxu2 %v8026_v46  ;;  %v7994_v46 = vor.u32 %v8719_v36, %v7993_v32  ;;  %v8153_v32 = vld [vmem:[%s9750_s10 + $0xa60] sm:$0xf]  ;;  %v8759_v36 = vld [vmem:[%s9750_s10 + $0xa64] sm:$0xf0]  ;;  %v8338_v13 = vor.u32 %v8805_v4, %v8337_v3 }
 0x233   : > { %6237 = vmatpush.bf16.msra.mxu3 %v8090_v56  ;;  %v8058_v56 = vor.u32 %v8735_v44, %v8057_v43  ;;  %v8775_v44 = vld [vmem:[%s9750_s10 + $0xae4] sm:$0xf0]  ;;  %v8154_v52 = vor.u32 %v8759_v36, %v8153_v32 }
 0x234   : > { %6199 = vmatpush.bf16.msra.mxu0 %v7890_v57  ;;  %v8049_v57 = vld [vmem:[%s9750_s10 + $0x990] sm:$0xf] }
 0x235   : > { %6212 = vmatpush.bf16.msra.mxu1 %v7954_v60  ;;  %v7849_v60 = vld [vmem:[%s9750_s10 + $0x800] sm:$0xf]  ;;  %v8050_v7 = vor.u32 %v8733_v59, %v8049_v57  ;;  %v8757_v59 = vld [vmem:[%s9750_s10 + $0xa54] sm:$0xf0] }
 0x236   : > { %6225 = vmatpush.bf16.msra.mxu2 %v8018_v62  ;;  %v8683_v62 = vld [vmem:[%s9750_s10 + $0x804] sm:$0xf0] }
 0x237   : > { %6238 = vmatpush.bf16.msra.mxu3 %v8082_v5  ;;  %v8161_v5 = vld [vmem:[%s9750_s10 + $0xa70] sm:$0xf]  ;;  %v7850_v11 = vor.u32 %v8683_v62, %v7849_v60  ;;  %v8773_v62 = vld [vmem:[%s9750_s10 + $0xad4] sm:$0xf0] }
 0x238   : > { %6200 = vmatpush.bf16.msra.mxu0 %v7882_v6  ;;  %v8761_v6 = vld [vmem:[%s9750_s10 + $0xa74] sm:$0xf0]  ;;  %v8209_v60 = vld [vmem:[%s9750_s10 + $0xad0] sm:$0xf] }
 0x239   : > { %6213 = vmatpush.bf16.msra.mxu1 %v7946_v9  ;;  %v8777_v9 = vld [vmem:[%s9750_s10 + $0xaf4] sm:$0xf0]  ;;  %v8162_v21 = vor.u32 %v8761_v6, %v8161_v5  ;;  %v8210_v5 = vor.u32 %v8773_v62, %v8209_v60 }
 0x23a   : > { %6226 = vmatpush.bf16.msra.mxu2 %v8010_v10  ;;  %v8289_v10 = vld [vmem:[%s9750_s10 + $0xb70] sm:$0xf] }
 0x23b   : > { %6239 = vmatpush.bf16.msra.mxu3 %v8074_v18  ;;  %v3549_v18 = vld [vmem:[%s10847_s0 + $0x80] sm:$0xff]  ;;  %v8290_v26 = vor.u32 %v8793_v12, %v8289_v10  ;;  %v8771_v10 = vld [vmem:[%s9750_s10 + $0xac4] sm:$0xf0] }
 0x23c   : > { %6201 = vmatpush.bf16.msra.mxu0 %v7874_v19  ;;  %v3551_v19 = vld [vmem:[%s10847_s0 + $0x90] sm:$0xff]  ;;  %v8787_v12 = vld [vmem:[%s9750_s10 + $0xb44] sm:$0xf0] }
 0x23d   : > { %6214 = vmatpush.bf16.msra.mxu1 %v7938_v22  ;;  %v8226_v22 = vor.u32 %v8777_v9, %v8225_v8  ;;  %v10200_v43 = vpack.c.bf16 %v3551_v19, %v3551_v19  ;;  %v8755_v8 = vld [vmem:[%s9750_s10 + $0xa44] sm:$0xf0]  ;;  %v8201_v9 = vld [vmem:[%s9750_s10 + $0xac0] sm:$0xf]  ;;  %v8129_v19 = vld [vmem:[%s9750_s10 + $0xa30] sm:$0xf] }
 0x23e   : > { %6227 = vmatpush.bf16.msra.mxu2 %v8002_v23  ;;  %v8809_v23 = vld [vmem:[%s9750_s10 + $0xbf4] sm:$0xf0] }
 0x23f   : > { %6240 = vmatpush.bf16.msra.mxu3 %v8066_v37  ;;  %v8217_v37 = vld [vmem:[%s9750_s10 + $0xae0] sm:$0xf]  ;;  %v8354_v47 = vor.u32 %v8809_v23, %v8353_v20  ;;  %v8202_v20 = vor.u32 %v8771_v10, %v8201_v9  ;;  %v8193_v23 = vld [vmem:[%s9750_s10 + $0xab0] sm:$0xf]  ;;  %v8781_v10 = vld [vmem:[%s9750_s10 + $0xb14] sm:$0xf0] }
 0x240   : > { %6202 = vmatpush.bf16.msra.mxu0 %v7866_v42  ;;  %v10198_v42 = vpack.c.bf16 %v3549_v18, %v3549_v18  ;;  %v8803_v18 = vld [vmem:[%s9750_s10 + $0xbc4] sm:$0xf0]  ;;  %v8241_v9 = vld [vmem:[%s9750_s10 + $0xb10] sm:$0xf] }
 0x241   : > { %6215 = vmatpush.bf16.msra.mxu1 %v7930_v45  ;;  %v8281_v45 = vld [vmem:[%s9750_s10 + $0xb60] sm:$0xf] }
 0x242   : > { %6228 = vmatpush.bf16.msra.mxu2 %v7994_v46  ;;  %v8791_v46 = vld [vmem:[%s9750_s10 + $0xb64] sm:$0xf0] }
 0x243   : > { %6241 = vmatpush.bf16.msra.mxu3 %v8058_v56  ;;  %v8218_v56 = vor.u32 %v8775_v44, %v8217_v37  ;;  %v8282_v57 = vor.u32 %v8791_v46, %v8281_v45  ;;  %v8321_v37 = vld [vmem:[%s9750_s10 + $0xbb0] sm:$0xf]  ;;  %v8801_v44 = vld [vmem:[%s9750_s10 + $0xbb4] sm:$0xf0]  ;;  %v8194_v45 = vor.u32 %v8769_v24, %v8193_v23  ;;  %v8763_v23 = vld [vmem:[%s9750_s10 + $0xa84] sm:$0xf0] }
 0x244   : > { %6203 = vmatpush.bf16.msra.mxu0 %v7858_v58  ;;  %v8145_v58 = vld [vmem:[%s9750_s10 + $0xa50] sm:$0xf]  ;;  %v8322_v60 = vor.u32 %v8801_v44, %v8321_v37  ;;  %v8233_v24 = vld [vmem:[%s9750_s10 + $0xb00] sm:$0xf]  ;;  %v8440_v37 = vld [vmem:[%s9750_s10 + $0x74] sm:$0xf] }
 0x245   : > { %6216 = vmatpush.bf16.msra.mxu1 %v7922_v63  ;;  %v8273_v63 = vld [vmem:[%s9750_s10 + $0xb50] sm:$0xf]  ;;  %v8146_v2 = vor.u32 %v8757_v59, %v8145_v58  ;;  %v8783_v58 = vld [vmem:[%s9750_s10 + $0xb24] sm:$0xf0]  ;;  %v6883_v44 = vld [vmem:[%s9750_s10 + $0x78] sm:$0xf0] }
 0x246   : > { %6229 = vmatpush.bf16.msra.mxu2 %v7986_v0  ;;  %v8789_v0 = vld [vmem:[%s9750_s10 + $0xb54] sm:$0xf0] }
 0x247   : > { %6242 = vmatpush.bf16.msra.mxu3 %v8050_v7  ;;  %v8274_v6 = vor.u32 %v8789_v0, %v8273_v63  ;;  %v8137_v7 = vld [vmem:[%s9750_s10 + $0xa40] sm:$0xf] }
 0x248   : > { %6204 = vmatpush.bf16.msra.mxu0 %v7850_v11  ;;  %v8265_v11 = vld [vmem:[%s9750_s10 + $0xb40] sm:$0xf]  ;;  %v5998_v54 = vpop.f32.mrf.mxu0 }
 0x249   : > { %6217 = vmatpush.bf16.msra.mxu1 %v7914_v16  ;;  %v8138_v16 = vor.u32 %v8755_v8, %v8137_v7  ;;  %v6011_v62 = vpop.f32.mrf.mxu1  ;;  %v8313_v0 = vld [vmem:[%s9750_s10 + $0xba0] sm:$0xf]  ;;  %v8177_v7 = vld [vmem:[%s9750_s10 + $0xa90] sm:$0xf]  ;;  %v8765_v8 = vld [vmem:[%s9750_s10 + $0xa94] sm:$0xf0] }
 0x24a   : > { %6230 = vmatpush.bf16.msra.mxu2 %v7978_v17  ;;  %v8329_v17 = vld [vmem:[%s9750_s10 + $0xbc0] sm:$0xf] }
 0x24b   : > { %6243 = vmatpush.bf16.msra.mxu3 %v8042_v31  ;;  %6205 = vmatmul.bf16.vlgmr.msra.gmra.mxu0 %v10198_v42  ;;  %v3985_v31 = vperm.slane %v3983_v14, 0  ;;  %v8330_v32 = vor.u32 %v8803_v18, %v8329_v17  ;;  %v8797_v17 = vld [vmem:[%s9750_s10 + $0xb94] sm:$0xf0]  ;;  %v8105_v18 = vld [vmem:[%s9750_s10 + $0xa00] sm:$0xf] }
 0x24c   : > { %6249 = vmatpush.bf16.msrb.mxu0 %v8162_v21  ;;  %6218 = vmatmul.bf16.vlgmr.msra.gmra.mxu1 %v10205_v49  ;;  %v8266_v21 = vor.u32 %v8787_v12, %v8265_v11 }
 0x24d   : > { %6262 = vmatpush.bf16.msrb.mxu1 %v8226_v22  ;;  %6231 = vmatmul.bf16.vlgmr.msra.gmra.mxu2 %v10200_v43  ;;  %v8753_v22 = vld [vmem:[%s9750_s10 + $0xa34] sm:$0xf0]  ;;  %v5999_v59 = vadd.f32 %v5998_v54, %v3985_v31  ;;  %v8417_v31 = vld [vmem:[%s9750_s10 + $0xc70] sm:$0xf]  ;;  %v8795_v54 = vld [vmem:[%s9750_s10 + $0xb84] sm:$0xf0] }
 0x24e   : > { %6275 = vmatpush.bf16.msrb.mxu2 %v8290_v26  ;;  %6244 = vmatmul.bf16.vlgmr.msra.gmra.mxu3 %v10207_v51  ;;  %v8785_v26 = vld [vmem:[%s9750_s10 + $0xb34] sm:$0xf0]  ;;  %v8130_v36 = vor.u32 %v8753_v22, %v8129_v19  ;;  %v8747_v19 = vld [vmem:[%s9750_s10 + $0xa04] sm:$0xf0]  ;;  %v8169_v22 = vld [vmem:[%s9750_s10 + $0xa80] sm:$0xf] }
 0x24f   : > { %6288 = vmatpush.bf16.msrb.mxu3 %v8354_v47  ;;  %v8258_v46 = vor.u32 %v8785_v26, %v8257_v25  ;;  %v8121_v47 = vld [vmem:[%s9750_s10 + $0xa20] sm:$0xf]  ;;  %v8779_v26 = vld [vmem:[%s9750_s10 + $0xb04] sm:$0xf0] }
 0x250   : > { %6250 = vmatpush.bf16.msrb.mxu0 %v8154_v52  ;;  %v8751_v52 = vld [vmem:[%s9750_s10 + $0xa24] sm:$0xf0]  ;;  %v10265_v11 = vpop.f32.mrf.mxu2  ;;  %v6000_v25 = vpop.f32.mrf.mxu0 }
 0x251   : > { %6263 = vmatpush.bf16.msrb.mxu1 %v8218_v56  ;;  %v8767_v56 = vld [vmem:[%s9750_s10 + $0xaa4] sm:$0xf0]  ;;  %v8122_v63 = vor.u32 %v8751_v52, %v8121_v47  ;;  %v10268_v14 = vpop.f32.mrf.mxu3  ;;  %v8106_v47 = vor.u32 %v8747_v19, %v8105_v18  ;;  %v6947_v52 = vld [vmem:[%s9750_s10 + $0xf8] sm:$0xf0]  ;;  %v6939_v18 = vld [vmem:[%s9750_s10 + $0xe8] sm:$0xf0] }
 0x252   : > { %6276 = vmatpush.bf16.msrb.mxu2 %v8282_v57  ;;  %v8249_v57 = vld [vmem:[%s9750_s10 + $0xb20] sm:$0xf]  ;;  %v8186_v3 = vor.u32 %v8767_v56, %v8185_v53  ;;  %v8170_v56 = vor.u32 %v8763_v23, %v8169_v22  ;;  %v7003_v25 = vld [vmem:[%s9750_s10 + $0x168] sm:$0xf0] }
 0x253   : > { %6289 = vmatpush.bf16.msrb.mxu3 %v8346_v1  ;;  %v8799_v1 = vld [vmem:[%s9750_s10 + $0xba4] sm:$0xf0]  ;;  %v8250_v4 = vor.u32 %v8783_v58, %v8249_v57  ;;  %v8297_v53 = vld [vmem:[%s9750_s10 + $0xb80] sm:$0xf]  ;;  %v8234_v57 = vor.u32 %v8779_v26, %v8233_v24  ;;  %v8470_v24 = vld [vmem:[%s9750_s10 + $0x164] sm:$0xf] }
 0x254   : > { %6251 = vmatpush.bf16.msrb.mxu0 %v8146_v2  ;;  %v10257_v2 = vadd.f32 %v6011_v62, %v5999_v59  ;;  %v8314_v12 = vor.u32 %v8799_v1, %v8313_v0  ;;  %v3553_v58 = vld [vmem:[%s10847_s0 + $0xa0] sm:$0xff]  ;;  %v3555_v59 = vld [vmem:[%s10847_s0 + $0xb0] sm:$0xff]  ;;  %v7011_v0 = vld [vmem:[%s9750_s10 + $0x178] sm:$0xf0] }
 0x255   : > { %6264 = vmatpush.bf16.msrb.mxu1 %v8210_v5  ;;  %v8113_v5 = vld [vmem:[%s9750_s10 + $0xa10] sm:$0xf]  ;;  %v3554_v1 = vld [vmem:[%s10847_s0 + $0xa8] sm:$0xff] }
 0x256   : > { %6277 = vmatpush.bf16.msrb.mxu2 %v8274_v6  ;;  %v8749_v6 = vld [vmem:[%s9750_s10 + $0xa14] sm:$0xf0]  ;;  %v6025_v23 = vadd.f32 %v10265_v11, %v10257_v2  ;;  %v6931_v2 = vld [vmem:[%s9750_s10 + $0xd8] sm:$0xf0]  ;;  %v7006_v11 = vor.u32 %v8470_v24, %v7003_v25  ;;  %v8464_v25 = vld [vmem:[%s9750_s10 + $0x134] sm:$0xf] }
 0x257   : > { %6290 = vmatpush.bf16.msrb.mxu3 %v8338_v13  ;;  %v8305_v13 = vld [vmem:[%s9750_s10 + $0xb90] sm:$0xf] }
 0x258   : > { %6252 = vmatpush.bf16.msrb.mxu0 %v8138_v16  ;;  %v8114_v16 = vor.u32 %v8749_v6, %v8113_v5  ;;  %v8298_v6 = vor.u32 %v8795_v54, %v8297_v53  ;;  %v6995_v53 = vld [vmem:[%s9750_s10 + $0x158] sm:$0xf0] }
 0x259   : > { %6265 = vmatpush.bf16.msrb.mxu1 %v8202_v20  ;;  %v8178_v20 = vor.u32 %v8765_v8, %v8177_v7  ;;  %v8409_v7 = vld [vmem:[%s9750_s10 + $0xc60] sm:$0xf]  ;;  %v8823_v8 = vld [vmem:[%s9750_s10 + $0xc64] sm:$0xf0] }
 0x25a   : > { %6278 = vmatpush.bf16.msrb.mxu2 %v8266_v21  ;;  %v8242_v21 = vor.u32 %v8781_v10, %v8241_v9  ;;  %v8438_v9 = vld [vmem:[%s9750_s10 + $0x64] sm:$0xf]  ;;  %v6039_v10 = vpop.f32.mrf.mxu3  ;;  %v8410_v22 = vor.u32 %v8823_v8, %v8409_v7  ;;  %v8385_v8 = vld [vmem:[%s9750_s10 + $0xc30] sm:$0xf] }
 0x25b   : > { %6291 = vmatpush.bf16.msrb.mxu3 %v8330_v32  ;;  %v8825_v32 = vld [vmem:[%s9750_s10 + $0xc74] sm:$0xf0]  ;;  %v8432_v10 = vld [vmem:[%s9750_s10 + $0x34] sm:$0xf] }
 0x25c   : > { %6253 = vmatpush.bf16.msrb.mxu0 %v8130_v36  ;;  %v8306_v36 = vor.u32 %v8797_v17, %v8305_v13  ;;  %v8418_v62 = vor.u32 %v8825_v32, %v8417_v31  ;;  %v10304_v13 = vpack.c.bf16 %v3555_v59, %v3555_v59  ;;  %v8454_v17 = vld [vmem:[%s9750_s10 + $0xe4] sm:$0xf]  ;;  %v8401_v32 = vld [vmem:[%s9750_s10 + $0xc50] sm:$0xf] }
 0x25d   : > { %6266 = vmatpush.bf16.msrb.mxu1 %v8194_v45  ;;  %v8456_v45 = vld [vmem:[%s9750_s10 + $0xf4] sm:$0xf]  ;;  %v6942_v31 = vor.u32 %v8454_v17, %v6939_v18  ;;  %v8434_v59 = vld [vmem:[%s9750_s10 + $0x44] sm:$0xf]  ;;  %v6851_v17 = vld [vmem:[%s9750_s10 + $0x38] sm:$0xf0] }
 0x25e   : > { %6279 = vmatpush.bf16.msrb.mxu2 %v8258_v46  ;;  %v6013_v46 = vpop.f32.mrf.mxu1  ;;  %v6950_v5 = vor.u32 %v8456_v45, %v6947_v52  ;;  %v8452_v45 = vld [vmem:[%s9750_s10 + $0xd4] sm:$0xf] }
 0x25f   : > { %6292 = vmatpush.bf16.msrb.mxu3 %v8322_v60  ;;  %v8472_v60 = vld [vmem:[%s9750_s10 + $0x174] sm:$0xf]  ;;  %v6038_v46 = vadd.f32 %v10268_v14, %v6025_v23 }
 0x260   : > { %6254 = vmatpush.bf16.msrb.mxu0 %v8122_v63  ;;  %v6886_v63 = vor.u32 %v8440_v37, %v6883_v44  ;;  %v7014_v19 = vor.u32 %v8472_v60, %v7011_v0  ;;  %v8436_v37 = vld [vmem:[%s9750_s10 + $0x54] sm:$0xf]  ;;  %v6867_v44 = vld [vmem:[%s9750_s10 + $0x58] sm:$0xf0]  ;;  %v6859_v60 = vld [vmem:[%s9750_s10 + $0x48] sm:$0xf0] }
 0x261   : > { %6267 = vmatpush.bf16.msrb.mxu1 %v8186_v3  ;;  %v3556_v3 = vld [vmem:[%s10847_s0 + $0xb8] sm:$0xff]  ;;  %v8468_v52 = vld [vmem:[%s9750_s10 + $0x154] sm:$0xf]  ;;  %v6870_v54 = vor.u32 %v8436_v37, %v6867_v44  ;;  %v8815_v37 = vld [vmem:[%s9750_s10 + $0xc24] sm:$0xf0] }
 0x262   : > { %6280 = vmatpush.bf16.msrb.mxu2 %v8250_v4  ;;  %v6026_v4 = vpop.f32.mrf.mxu2  ;;  %v6998_v14 = vor.u32 %v8468_v52, %v6995_v53  ;;  %v8448_v18 = vld [vmem:[%s9750_s10 + $0xb4] sm:$0xf]  ;;  %v8430_v44 = vld [vmem:[%s9750_s10 + $0x24] sm:$0xf] }
 0x263   : > { %6293 = vmatpush.bf16.msrb.mxu3 %v8314_v12  ;;  %v10302_v12 = vpack.c.bf16 %v3553_v58, %v3553_v58  ;;  %v8819_v58 = vld [vmem:[%s9750_s10 + $0xc44] sm:$0xf0]  ;;  %v6987_v4 = vld [vmem:[%s9750_s10 + $0x148] sm:$0xf0] }
 0x264   : > { %6255 = vmatpush.bf16.msrb.mxu0 %v8114_v16  ;;  %v6875_v16 = vld [vmem:[%s9750_s10 + $0x68] sm:$0xf0] }
 0x265   : > { %6268 = vmatpush.bf16.msrb.mxu1 %v8178_v20  ;;  %v10309_v20 = vpack.c.bf16 %v3554_v1, %v3554_v1  ;;  %v6878_v26 = vor.u32 %v8438_v9, %v6875_v16  ;;  %v8817_v9 = vld [vmem:[%s9750_s10 + $0xc34] sm:$0xf0] }
 0x266   : > { %6281 = vmatpush.bf16.msrb.mxu2 %v8242_v21  ;;  %v10311_v21 = vpack.c.bf16 %v3556_v3, %v3556_v3  ;;  %v8466_v3 = vld [vmem:[%s9750_s10 + $0x144] sm:$0xf]  ;;  %v8386_v24 = vor.u32 %v8817_v9, %v8385_v8  ;;  %v6963_v9 = vld [vmem:[%s9750_s10 + $0x118] sm:$0xf0] }
 0x267   : > { %6294 = vmatpush.bf16.msrb.mxu3 %v8306_v36  ;;  %v8821_v36 = vld [vmem:[%s9750_s10 + $0xc54] sm:$0xf0]  ;;  %v6990_v23 = vor.u32 %v8466_v3, %v6987_v4  ;;  %v6835_v3 = vld [vmem:[%s9750_s10 + $0x18] sm:$0xf0]  ;;  %v8444_v4 = vld [vmem:[%s9750_s10 + $0x94] sm:$0xf] }
 0x268   : > { %6256 = vmatpush.bf16.msrb.mxu0 %v8106_v47  ;;  %v8402_v47 = vor.u32 %v8821_v36, %v8401_v32  ;;  %v6050_v0 = vpop.f32.mrf.mxu0  ;;  %v8377_v36 = vld [vmem:[%s9750_s10 + $0xc20] sm:$0xf] }
 0x269   : > { %6269 = vmatpush.bf16.msrb.mxu1 %v8170_v56  ;;  %v6934_v56 = vor.u32 %v8452_v45, %v6931_v2  ;;  %v6063_v16 = vpop.f32.mrf.mxu1  ;;  %v6843_v45 = vld [vmem:[%s9750_s10 + $0x28] sm:$0xf0]  ;;  %v8446_v2 = vld [vmem:[%s9750_s10 + $0xa4] sm:$0xf] }
 0x26a   : > { %6282 = vmatpush.bf16.msrb.mxu2 %v8234_v57  ;;  %v8393_v57 = vld [vmem:[%s9750_s10 + $0xc40] sm:$0xf] }
 0x26b   : > { %6295 = vmatpush.bf16.msrb.mxu3 %v8298_v6  ;;  %6257 = vmatmul.bf16.vlgmr.msrb.gmra.mxu0 %v10302_v12  ;;  %v8394_v1 = vor.u32 %v8819_v58, %v8393_v57  ;;  %v6862_v6 = vor.u32 %v8434_v59, %v6859_v60  ;;  %v6971_v57 = vld [vmem:[%s9750_s10 + $0x128] sm:$0xf0]  ;;  %v6846_v58 = vor.u32 %v8430_v44, %v6843_v45  ;;  %v8520_v44 = vld [vmem:[%s9750_s10 + $0x2f4] sm:$0xf] }
 0x26c   : > { %6301 = vmatpush.bf16.msra.mxu0 %v8418_v62  ;;  %6270 = vmatmul.bf16.vlgmr.msrb.gmra.mxu1 %v10309_v20  ;;  %v8450_v62 = vld [vmem:[%s9750_s10 + $0xc4] sm:$0xf] }
 0x26d   : > { %6314 = vmatpush.bf16.msra.mxu1 %v6886_v63  ;;  %6283 = vmatmul.bf16.vlgmr.msrb.gmra.mxu2 %v10304_v13  ;;  %v6923_v63 = vld [vmem:[%s9750_s10 + $0xc8] sm:$0xf0] }
 0x26e   : > { %6327 = vmatpush.bf16.msra.mxu2 %v6950_v5  ;;  %6296 = vmatmul.bf16.vlgmr.msrb.gmra.mxu3 %v10311_v21  ;;  %v6051_v5 = vadd.f32 %v6050_v0, %v6038_v46  ;;  %v6926_v7 = vor.u32 %v8450_v62, %v6923_v63  ;;  %v8369_v62 = vld [vmem:[%s9750_s10 + $0xc10] sm:$0xf]  ;;  %v8813_v63 = vld [vmem:[%s9750_s10 + $0xc14] sm:$0xf0] }
 0x26f   : > { %6340 = vmatpush.bf16.msra.mxu3 %v7014_v19  ;;  %v6915_v19 = vld [vmem:[%s9750_s10 + $0xb8] sm:$0xf0]  ;;  %v8370_v8 = vor.u32 %v8813_v63, %v8369_v62 }
 0x270   : > { %6302 = vmatpush.bf16.msra.mxu0 %v8410_v22  ;;  %v6064_v22 = vadd.f32 %v6063_v16, %v6051_v5  ;;  %v6918_v32 = vor.u32 %v8448_v18, %v6915_v19  ;;  %v6076_v46 = vpop.f32.mrf.mxu2  ;;  %v6052_v53 = vpop.f32.mrf.mxu0  ;;  %v6899_v5 = vld [vmem:[%s9750_s10 + $0x98] sm:$0xf0]  ;;  %v8811_v16 = vld [vmem:[%s9750_s10 + $0xc04] sm:$0xf0]  ;;  %v8426_v19 = vld [vmem:[%s9750_s10 + $0x4] sm:$0xf] }
 0x271   : > { %6315 = vmatpush.bf16.msra.mxu1 %v6878_v26  ;;  %v6979_v26 = vld [vmem:[%s9750_s10 + $0x138] sm:$0xf0]  ;;  %v6089_v60 = vpop.f32.mrf.mxu3  ;;  %v6065_v0 = vpop.f32.mrf.mxu1  ;;  %v6902_v18 = vor.u32 %v8444_v4, %v6899_v5  ;;  %v3557_v53 = vld [vmem:[%s10847_s0 + $0xc0] sm:$0xff] }
 0x272   : > { %6328 = vmatpush.bf16.msra.mxu2 %v6942_v31  ;;  %v6854_v31 = vor.u32 %v8432_v10, %v6851_v17  ;;  %v6077_v52 = vadd.f32 %v6076_v46, %v6064_v22  ;;  %v8361_v10 = vld [vmem:[%s9750_s10 + $0xc00] sm:$0xf]  ;;  %v6827_v22 = vld [vmem:[%s9750_s10 + $0x8] sm:$0xf0]  ;;  %v8502_v0 = vld [vmem:[%s9750_s10 + $0x264] sm:$0xf]  ;;  %v10387_v4 = vpack.c.bf16 %v3557_v53, %v3557_v53 }
 0x273   : > { %6341 = vmatpush.bf16.msra.mxu3 %v7006_v11  ;;  %v6907_v11 = vld [vmem:[%s9750_s10 + $0xa8] sm:$0xf0]  ;;  %v8362_v45 = vor.u32 %v8811_v16, %v8361_v10  ;;  %v8530_v53 = vld [vmem:[%s9750_s10 + $0x344] sm:$0xf] }
 0x274   : > { %6303 = vmatpush.bf16.msra.mxu0 %v8402_v47  ;;  %v6982_v47 = vor.u32 %v8464_v25, %v6979_v26  ;;  %v6910_v59 = vor.u32 %v8446_v2, %v6907_v11  ;;  %v8488_v25 = vld [vmem:[%s9750_s10 + $0x1f4] sm:$0xf]  ;;  %v7075_v26 = vld [vmem:[%s9750_s10 + $0x1f8] sm:$0xf0]  ;;  %v8458_v11 = vld [vmem:[%s9750_s10 + $0x104] sm:$0xf] }
 0x275   : > { %6316 = vmatpush.bf16.msra.mxu1 %v6870_v54  ;;  %v8378_v54 = vor.u32 %v8815_v37, %v8377_v36  ;;  %v8504_v36 = vld [vmem:[%s9750_s10 + $0x274] sm:$0xf]  ;;  %v7139_v37 = vld [vmem:[%s9750_s10 + $0x278] sm:$0xf0]  ;;  %v6955_v46 = vld [vmem:[%s9750_s10 + $0x108] sm:$0xf0] }
 0x276   : > { %6329 = vmatpush.bf16.msra.mxu2 %v6934_v56  ;;  %v8462_v56 = vld [vmem:[%s9750_s10 + $0x124] sm:$0xf]  ;;  %v7203_v2 = vld [vmem:[%s9750_s10 + $0x2f8] sm:$0xf0]  ;;  %v6958_v63 = vor.u32 %v8458_v11, %v6955_v46  ;;  %v7115_v46 = vld [vmem:[%s9750_s10 + $0x248] sm:$0xf0] }
 0x277   : > { %6342 = vmatpush.bf16.msra.mxu3 %v6998_v14  ;;  %v8428_v14 = vld [vmem:[%s9750_s10 + $0x14] sm:$0xf]  ;;  %v7206_v62 = vor.u32 %v8520_v44, %v7203_v2  ;;  %v8482_v44 = vld [vmem:[%s9750_s10 + $0x1c4] sm:$0xf]  ;;  %v7051_v2 = vld [vmem:[%s9750_s10 + $0x1c8] sm:$0xf0] }
 0x278   : > { %6304 = vmatpush.bf16.msra.mxu0 %v8394_v1  ;;  %v10357_v1 = vadd.f32 %v6089_v60, %v6077_v52  ;;  %v6838_v17 = vor.u32 %v8428_v14, %v6835_v3  ;;  %v8486_v60 = vld [vmem:[%s9750_s10 + $0x1e4] sm:$0xf]  ;;  %v7067_v14 = vld [vmem:[%s9750_s10 + $0x1e8] sm:$0xf0] }
 0x279   : > { %6317 = vmatpush.bf16.msra.mxu1 %v6862_v6  ;;  %v6974_v6 = vor.u32 %v8462_v56, %v6971_v57  ;;  %v7267_v56 = vld [vmem:[%s9750_s10 + $0x378] sm:$0xf0]  ;;  %v6091_v57 = vpop.f32.mrf.mxu3  ;;  %v7131_v3 = vld [vmem:[%s9750_s10 + $0x268] sm:$0xf0]  ;;  %v7070_v10 = vor.u32 %v8486_v60, %v7067_v14  ;;  %v8498_v11 = vld [vmem:[%s9750_s10 + $0x244] sm:$0xf] }
 0x27a   : > { %6330 = vmatpush.bf16.msra.mxu2 %v6926_v7  ;;  %v8460_v7 = vld [vmem:[%s9750_s10 + $0x114] sm:$0xf]  ;;  %v7134_v16 = vor.u32 %v8502_v0, %v7131_v3  ;;  %v7054_v57 = vor.u32 %v8482_v44, %v7051_v2  ;;  %v7107_v14 = vld [vmem:[%s9750_s10 + $0x238] sm:$0xf0] }
 0x27b   : > { %6343 = vmatpush.bf16.msra.mxu3 %v6990_v23  ;;  %v8442_v23 = vld [vmem:[%s9750_s10 + $0x84] sm:$0xf] }
 0x27c   : > { %6305 = vmatpush.bf16.msra.mxu0 %v8386_v24  ;;  %v6891_v24 = vld [vmem:[%s9750_s10 + $0x88] sm:$0xf0] }
 0x27d   : > { %6318 = vmatpush.bf16.msra.mxu1 %v6854_v31  ;;  %v6078_v31 = vpop.f32.mrf.mxu2  ;;  %v6894_v52 = vor.u32 %v8442_v23, %v6891_v24  ;;  %v7123_v23 = vld [vmem:[%s9750_s10 + $0x258] sm:$0xf0] }
 0x27e   : > { %6331 = vmatpush.bf16.msra.mxu2 %v6918_v32  ;;  %v6966_v32 = vor.u32 %v8460_v7, %v6963_v9  ;;  %v7195_v7 = vld [vmem:[%s9750_s10 + $0x2e8] sm:$0xf0]  ;;  %v8532_v31 = vld [vmem:[%s9750_s10 + $0x354] sm:$0xf] }
 0x27f   : > { %6344 = vmatpush.bf16.msra.mxu3 %v6982_v47  ;;  %v6830_v47 = vor.u32 %v8426_v19, %v6827_v22  ;;  %v7259_v9 = vld [vmem:[%s9750_s10 + $0x368] sm:$0xf0]  ;;  %v7059_v19 = vld [vmem:[%s9750_s10 + $0x1d8] sm:$0xf0]  ;;  %v8500_v22 = vld [vmem:[%s9750_s10 + $0x254] sm:$0xf] }
 0x280   : > { %6306 = vmatpush.bf16.msra.mxu0 %v8378_v54  ;;  %v8536_v54 = vld [vmem:[%s9750_s10 + $0x374] sm:$0xf] }
 0x281   : > { %6319 = vmatpush.bf16.msra.mxu1 %v6846_v58  ;;  %v7078_v58 = vor.u32 %v8488_v25, %v7075_v26  ;;  %v7270_v5 = vor.u32 %v8536_v54, %v7267_v56  ;;  %v8516_v25 = vld [vmem:[%s9750_s10 + $0x2d4] sm:$0xf]  ;;  %v7187_v26 = vld [vmem:[%s9750_s10 + $0x2d8] sm:$0xf0]  ;;  %v7243_v54 = vld [vmem:[%s9750_s10 + $0x348] sm:$0xf0] }
 0x282   : > { %6332 = vmatpush.bf16.msra.mxu2 %v6910_v59  ;;  %v7142_v59 = vor.u32 %v8504_v36, %v7139_v37  ;;  %v7126_v37 = vor.u32 %v8500_v22, %v7123_v23  ;;  %v7246_v3 = vor.u32 %v8530_v53, %v7243_v54  ;;  %v7099_v22 = vld [vmem:[%s9750_s10 + $0x228] sm:$0xf0]  ;;  %v8508_v54 = vld [vmem:[%s9750_s10 + $0x294] sm:$0xf] }
 0x283   : > { %6345 = vmatpush.bf16.msra.mxu3 %v6974_v6  ;;  %v8518_v6 = vld [vmem:[%s9750_s10 + $0x2e4] sm:$0xf] }
 0x284   : > { %6307 = vmatpush.bf16.msra.mxu0 %v8370_v8  ;;  %v8534_v8 = vld [vmem:[%s9750_s10 + $0x364] sm:$0xf] }
 0x285   : > { %6320 = vmatpush.bf16.msra.mxu1 %v6838_v17  ;;  %v8484_v17 = vld [vmem:[%s9750_s10 + $0x1d4] sm:$0xf]  ;;  %v7262_v24 = vor.u32 %v8534_v8, %v7259_v9 }
 0x286   : > { %6333 = vmatpush.bf16.msra.mxu2 %v6902_v18  ;;  %v7198_v18 = vor.u32 %v8518_v6, %v7195_v7  ;;  %v7062_v36 = vor.u32 %v8484_v17, %v7059_v19  ;;  %v7171_v6 = vld [vmem:[%s9750_s10 + $0x2b8] sm:$0xf0]  ;;  %v8494_v19 = vld [vmem:[%s9750_s10 + $0x224] sm:$0xf] }
 0x287   : > { %6346 = vmatpush.bf16.msra.mxu3 %v6966_v32  ;;  %v7251_v32 = vld [vmem:[%s9750_s10 + $0x358] sm:$0xf0]  ;;  %v7102_v2 = vor.u32 %v8494_v19, %v7099_v22 }
 0x288   : > { %6308 = vmatpush.bf16.msra.mxu0 %v8362_v45  ;;  %v7190_v45 = vor.u32 %v8516_v25, %v7187_v26  ;;  %v7235_v7 = vld [vmem:[%s9750_s10 + $0x338] sm:$0xf0]  ;;  %v8510_v25 = vld [vmem:[%s9750_s10 + $0x2a4] sm:$0xf]  ;;  %v7163_v26 = vld [vmem:[%s9750_s10 + $0x2a8] sm:$0xf0] }
 0x289   : > { %6321 = vmatpush.bf16.msra.mxu1 %v6830_v47  ;;  %v7179_v47 = vld [vmem:[%s9750_s10 + $0x2c8] sm:$0xf0] }
 0x28a   : > { %6334 = vmatpush.bf16.msra.mxu2 %v6894_v52  ;;  %v6102_v52 = vpop.f32.mrf.mxu0 }
 0x28b   : > { %6347 = vmatpush.bf16.msra.mxu3 %v6958_v63  ;;  %6309 = vmatmul.bf16.vlgmr.msra.gmra.mxu0 %v10387_v4  ;;  %v6103_v56 = vadd.f32 %v6102_v52, %v10357_v1  ;;  %v8496_v63 = vld [vmem:[%s9750_s10 + $0x234] sm:$0xf]  ;;  %v7091_v52 = vld [vmem:[%s9750_s10 + $0x218] sm:$0xf0] }
 0x28c   : > { %6353 = vmatpush.bf16.msrb.mxu0 %v7078_v58  ;;  %6322 = vmatmul.bf16.vlgmr.msra.gmra.mxu1 %v9855_v27  ;;  %v8514_v27 = vld [vmem:[%s9750_s10 + $0x2c4] sm:$0xf]  ;;  %v6115_v58 = vpop.f32.mrf.mxu1  ;;  %v8528_v1 = vld [vmem:[%s9750_s10 + $0x334] sm:$0xf]  ;;  %v7110_v9 = vor.u32 %v8496_v63, %v7107_v14 }
 0x28d   : > { %6366 = vmatpush.bf16.msrb.mxu1 %v7142_v59  ;;  %6335 = vmatmul.bf16.vlgmr.msra.gmra.mxu2 %v9865_v33  ;;  %v7254_v33 = vor.u32 %v8532_v31, %v7251_v32  ;;  %v8480_v59 = vld [vmem:[%s9750_s10 + $0x1b4] sm:$0xf]  ;;  %v7182_v60 = vor.u32 %v8514_v27, %v7179_v47  ;;  %v6116_v0 = vadd.f32 %v6115_v58, %v6103_v56  ;;  %v8526_v32 = vld [vmem:[%s9750_s10 + $0x324] sm:$0xf]  ;;  %v7027_v27 = vld [vmem:[%s9750_s10 + $0x198] sm:$0xf0] }
 0x28e   : > { %6379 = vmatpush.bf16.msrb.mxu2 %v7206_v62  ;;  %6348 = vmatmul.bf16.vlgmr.msra.gmra.mxu3 %v9841_v15  ;;  %v7118_v15 = vor.u32 %v8498_v11, %v7115_v46  ;;  %v7043_v62 = vld [vmem:[%s9750_s10 + $0x1b8] sm:$0xf0]  ;;  %v8476_v11 = vld [vmem:[%s9750_s10 + $0x194] sm:$0xf]  ;;  %v8490_v63 = vld [vmem:[%s9750_s10 + $0x204] sm:$0xf] }
 0x28f   : > { %6392 = vmatpush.bf16.msrb.mxu3 %v7270_v5  ;;  %v8512_v5 = vld [vmem:[%s9750_s10 + $0x2b4] sm:$0xf]  ;;  %v7046_v8 = vor.u32 %v8480_v59, %v7043_v62  ;;  %v7155_v56 = vld [vmem:[%s9750_s10 + $0x298] sm:$0xf0]  ;;  %v7030_v58 = vor.u32 %v8476_v11, %v7027_v27  ;;  %v7019_v62 = vld [vmem:[%s9750_s10 + $0x188] sm:$0xf0] }
 0x290   : > { %6354 = vmatpush.bf16.msrb.mxu0 %v7070_v10  ;;  %v8478_v10 = vld [vmem:[%s9750_s10 + $0x1a4] sm:$0xf]  ;;  %v6128_v17 = vpop.f32.mrf.mxu2  ;;  %v8492_v47 = vld [vmem:[%s9750_s10 + $0x214] sm:$0xf]  ;;  %v7158_v14 = vor.u32 %v8508_v54, %v7155_v56  ;;  %v7515_v56 = vld [vmem:[%s9750_s10 + $0x568] sm:$0xf0] }
 0x291   : > { %6367 = vmatpush.bf16.msrb.mxu1 %v7134_v16  ;;  %v7174_v16 = vor.u32 %v8512_v5, %v7171_v6  ;;  %v6129_v23 = vadd.f32 %v6128_v17, %v6116_v0  ;;  %v6141_v31 = vpop.f32.mrf.mxu3  ;;  %v7094_v59 = vor.u32 %v8492_v47, %v7091_v52  ;;  %v7083_v0 = vld [vmem:[%s9750_s10 + $0x208] sm:$0xf0]  ;;  %v7459_v17 = vld [vmem:[%s9750_s10 + $0x4f8] sm:$0xf0]  ;;  %v8566_v11 = vld [vmem:[%s9750_s10 + $0x464] sm:$0xf] }
 0x292   : > { %6380 = vmatpush.bf16.msrb.mxu2 %v7198_v18  ;;  %v7035_v18 = vld [vmem:[%s9750_s10 + $0x1a8] sm:$0xf0]  ;;  %v7086_v22 = vor.u32 %v8490_v63, %v7083_v0  ;;  %v8582_v27 = vld [vmem:[%s9750_s10 + $0x4e4] sm:$0xf]  ;;  %v8580_v63 = vld [vmem:[%s9750_s10 + $0x4d4] sm:$0xf] }
 0x293   : > { %6393 = vmatpush.bf16.msrb.mxu3 %v7262_v24  ;;  %v7238_v24 = vor.u32 %v8528_v1, %v7235_v7  ;;  %v10430_v44 = vadd.f32 %v6141_v31, %v6129_v23  ;;  %v7147_v5 = vld [vmem:[%s9750_s10 + $0x288] sm:$0xf0]  ;;  %v8552_v7 = vld [vmem:[%s9750_s10 + $0x3f4] sm:$0xf]  ;;  %v8522_v23 = vld [vmem:[%s9750_s10 + $0x304] sm:$0xf] }
 0x294   : > { %6355 = vmatpush.bf16.msrb.mxu0 %v7062_v36  ;;  %v7227_v36 = vld [vmem:[%s9750_s10 + $0x328] sm:$0xf0]  ;;  %v6117_v46 = vpop.f32.mrf.mxu1  ;;  %v8600_v31 = vld [vmem:[%s9750_s10 + $0x574] sm:$0xf]  ;;  %v8598_v54 = vld [vmem:[%s9750_s10 + $0x564] sm:$0xf] }
 0x295   : > { %6368 = vmatpush.bf16.msrb.mxu1 %v7126_v37  ;;  %v6104_v37 = vpop.f32.mrf.mxu0  ;;  %v7230_v53 = vor.u32 %v8526_v32, %v7227_v36  ;;  %v7523_v32 = vld [vmem:[%s9750_s10 + $0x578] sm:$0xf0]  ;;  %v7451_v47 = vld [vmem:[%s9750_s10 + $0x4e8] sm:$0xf0]  ;;  %v7518_v0 = vor.u32 %v8598_v54, %v7515_v56  ;;  %v8558_v54 = vld [vmem:[%s9750_s10 + $0x424] sm:$0xf] }
 0x296   : > { %6381 = vmatpush.bf16.msrb.mxu2 %v7190_v45  ;;  %v7038_v45 = vor.u32 %v8478_v10, %v7035_v18  ;;  %v7395_v10 = vld [vmem:[%s9750_s10 + $0x478] sm:$0xf0]  ;;  %v7526_v52 = vor.u32 %v8600_v31, %v7523_v32  ;;  %v8560_v32 = vld [vmem:[%s9750_s10 + $0x434] sm:$0xf] }
 0x297   : > { %6394 = vmatpush.bf16.msrb.mxu3 %v7254_v33  ;;  %v7166_v33 = vor.u32 %v8510_v25, %v7163_v26  ;;  %v7299_v31 = vld [vmem:[%s9750_s10 + $0x3b8] sm:$0xf0] }
 0x298   : > { %6356 = vmatpush.bf16.msrb.mxu0 %v7054_v57  ;;  %v8524_v57 = vld [vmem:[%s9750_s10 + $0x314] sm:$0xf]  ;;  %v6130_v6 = vpop.f32.mrf.mxu2 }
 0x299   : > { %6369 = vmatpush.bf16.msrb.mxu1 %v7118_v15  ;;  %v7219_v15 = vld [vmem:[%s9750_s10 + $0x318] sm:$0xf0]  ;;  %v6143_v18 = vpop.f32.mrf.mxu3 }
 0x29a   : > { %6382 = vmatpush.bf16.msrb.mxu2 %v7182_v60  ;;  %v8474_v60 = vld [vmem:[%s9750_s10 + $0x184] sm:$0xf]  ;;  %v7222_v1 = vor.u32 %v8524_v57, %v7219_v15  ;;  %v7454_v15 = vor.u32 %v8582_v27, %v7451_v47  ;;  %v7507_v6 = vld [vmem:[%s9750_s10 + $0x558] sm:$0xf0] }
 0x29b   : > { %6395 = vmatpush.bf16.msrb.mxu3 %v7246_v3  ;;  %v8506_v3 = vld [vmem:[%s9750_s10 + $0x284] sm:$0xf]  ;;  %v7022_v19 = vor.u32 %v8474_v60, %v7019_v62  ;;  %v8564_v60 = vld [vmem:[%s9750_s10 + $0x454] sm:$0xf]  ;;  %v7379_v62 = vld [vmem:[%s9750_s10 + $0x458] sm:$0xf0] }
 0x29c   : > { %6357 = vmatpush.bf16.msrb.mxu0 %v7046_v8  ;;  %v7331_v8 = vld [vmem:[%s9750_s10 + $0x3f8] sm:$0xf0]  ;;  %v7150_v25 = vor.u32 %v8506_v3, %v7147_v5  ;;  %v8596_v5 = vld [vmem:[%s9750_s10 + $0x554] sm:$0xf] }
 0x29d   : > { %6370 = vmatpush.bf16.msrb.mxu1 %v7110_v9  ;;  %v8568_v9 = vld [vmem:[%s9750_s10 + $0x474] sm:$0xf]  ;;  %v7334_v26 = vor.u32 %v8552_v7, %v7331_v8  ;;  %v8546_v7 = vld [vmem:[%s9750_s10 + $0x3c4] sm:$0xf]  ;;  %v7307_v8 = vld [vmem:[%s9750_s10 + $0x3c8] sm:$0xf0] }
 0x29e   : > { %6383 = vmatpush.bf16.msrb.mxu2 %v7174_v16  ;;  %v8584_v16 = vld [vmem:[%s9750_s10 + $0x4f4] sm:$0xf]  ;;  %v7398_v36 = vor.u32 %v8568_v9, %v7395_v10  ;;  %v8562_v9 = vld [vmem:[%s9750_s10 + $0x444] sm:$0xf]  ;;  %v7310_v18 = vor.u32 %v8546_v7, %v7307_v8  ;;  %v7283_v7 = vld [vmem:[%s9750_s10 + $0x398] sm:$0xf0] }
 0x29f   : > { %6396 = vmatpush.bf16.msrb.mxu3 %v7238_v24  ;;  %v7211_v24 = vld [vmem:[%s9750_s10 + $0x308] sm:$0xf0]  ;;  %v7462_v37 = vor.u32 %v8584_v16, %v7459_v17  ;;  %v8578_v10 = vld [vmem:[%s9750_s10 + $0x4c4] sm:$0xf]  ;;  %v8556_v8 = vld [vmem:[%s9750_s10 + $0x414] sm:$0xf] }
 0x2a0   : > { %6358 = vmatpush.bf16.msrb.mxu0 %v7038_v45  ;;  %v8550_v45 = vld [vmem:[%s9750_s10 + $0x3e4] sm:$0xf]  ;;  %v7214_v46 = vor.u32 %v8522_v23, %v7211_v24  ;;  %v7435_v16 = vld [vmem:[%s9750_s10 + $0x4c8] sm:$0xf0] }
 0x2a1   : > { %6371 = vmatpush.bf16.msrb.mxu1 %v7102_v2  ;;  %v7323_v2 = vld [vmem:[%s9750_s10 + $0x3e8] sm:$0xf0]  ;;  %v7438_v24 = vor.u32 %v8578_v10, %v7435_v16  ;;  %v8572_v10 = vld [vmem:[%s9750_s10 + $0x494] sm:$0xf]  ;;  %v7411_v16 = vld [vmem:[%s9750_s10 + $0x498] sm:$0xf0] }
 0x2a2   : > { %6384 = vmatpush.bf16.msrb.mxu2 %v7166_v33  ;;  %v7387_v33 = vld [vmem:[%s9750_s10 + $0x468] sm:$0xf0] }
 0x2a3   : > { %6397 = vmatpush.bf16.msrb.mxu3 %v7230_v53  ;;  %v7326_v53 = vor.u32 %v8550_v45, %v7323_v2  ;;  %v7390_v57 = vor.u32 %v8566_v11, %v7387_v33  ;;  %v7427_v45 = vld [vmem:[%s9750_s10 + $0x4b8] sm:$0xf0] }
 0x2a4   : > { %6359 = vmatpush.bf16.msrb.mxu0 %v7030_v58  ;;  %v8548_v58 = vld [vmem:[%s9750_s10 + $0x3d4] sm:$0xf]  ;;  %v7491_v33 = vld [vmem:[%s9750_s10 + $0x538] sm:$0xf0] }
 0x2a5   : > { %6372 = vmatpush.bf16.msrb.mxu1 %v7094_v59  ;;  %v7315_v59 = vld [vmem:[%s9750_s10 + $0x3d8] sm:$0xf0] }
 0x2a6   : > { %6385 = vmatpush.bf16.msrb.mxu2 %v7158_v14  ;;  %v7443_v14 = vld [vmem:[%s9750_s10 + $0x4d8] sm:$0xf0]  ;;  %v7318_v3 = vor.u32 %v8548_v58, %v7315_v59  ;;  %v7419_v58 = vld [vmem:[%s9750_s10 + $0x4a8] sm:$0xf0] }
 0x2a7   : > { %6398 = vmatpush.bf16.msrb.mxu3 %v7222_v1  ;;  %v7446_v1 = vor.u32 %v8580_v63, %v7443_v14  ;;  %v8590_v14 = vld [vmem:[%s9750_s10 + $0x524] sm:$0xf] }
 0x2a8   : > { %6360 = vmatpush.bf16.msrb.mxu0 %v7022_v19  ;;  %v6154_v17 = vpop.f32.mrf.mxu0  ;;  %v8594_v19 = vld [vmem:[%s9750_s10 + $0x544] sm:$0xf] }
 0x2a9   : > { %6373 = vmatpush.bf16.msrb.mxu1 %v7086_v22  ;;  %v7499_v22 = vld [vmem:[%s9750_s10 + $0x548] sm:$0xf0] }
 0x2aa   : > { %6386 = vmatpush.bf16.msrb.mxu2 %v7150_v25  ;;  %v6167_v25 = vpop.f32.mrf.mxu1  ;;  %v7502_v11 = vor.u32 %v8594_v19, %v7499_v22  ;;  %v7475_v19 = vld [vmem:[%s9750_s10 + $0x518] sm:$0xf0]  ;;  %v8538_v22 = vld [vmem:[%s9750_s10 + $0x384] sm:$0xf] }
 0x2ab   : > { %6399 = vmatpush.bf16.msrb.mxu3 %v7214_v46  ;;  %6361 = vmatmul.bf16.vlgmr.msrb.gmra.mxu0 %v9857_v28  ;;  %v7382_v28 = vor.u32 %v8564_v60, %v7379_v62  ;;  %v8592_v46 = vld [vmem:[%s9750_s10 + $0x534] sm:$0xf] }
 0x2ac   : > { %6405 = vmatpush.bf16.msra.mxu0 %v7334_v26  ;;  %6374 = vmatmul.bf16.vlgmr.msrb.gmra.mxu1 %v9927_v48  ;;  %v7510_v48 = vor.u32 %v8596_v5, %v7507_v6  ;;  %v8544_v26 = vld [vmem:[%s9750_s10 + $0x3b4] sm:$0xf]  ;;  %v7494_v60 = vor.u32 %v8592_v46, %v7491_v33 }
 0x2ad   : > { %6418 = vmatpush.bf16.msra.mxu1 %v7398_v36  ;;  %6387 = vmatmul.bf16.vlgmr.msrb.gmra.mxu2 %v9936_v55  ;;  %v7371_v55 = vld [vmem:[%s9750_s10 + $0x448] sm:$0xf0]  ;;  %v7363_v36 = vld [vmem:[%s9750_s10 + $0x438] sm:$0xf0]  ;;  %v8648_v46 = vld [vmem:[%s9750_s10 + $0x6f4] sm:$0xf] }
 0x2ae   : > { %6431 = vmatpush.bf16.msra.mxu2 %v7462_v37  ;;  %6400 = vmatmul.bf16.vlgmr.msrb.gmra.mxu3 %v9929_v50  ;;  %v6155_v50 = vadd.f32 %v6154_v17, %v10430_v44  ;;  %v7374_v23 = vor.u32 %v8562_v9, %v7371_v55  ;;  %v8576_v37 = vld [vmem:[%s9750_s10 + $0x4b4] sm:$0xf]  ;;  %v7302_v44 = vor.u32 %v8544_v26, %v7299_v31  ;;  %v7347_v55 = vld [vmem:[%s9750_s10 + $0x418] sm:$0xf0]  ;;  %v7339_v26 = vld [vmem:[%s9750_s10 + $0x408] sm:$0xf0] }
 0x2af   : > { %6444 = vmatpush.bf16.msra.mxu3 %v7526_v52  ;;  %v7366_v27 = vor.u32 %v8560_v32, %v7363_v36  ;;  %v7430_v47 = vor.u32 %v8576_v37, %v7427_v45  ;;  %v8542_v52 = vld [vmem:[%s9750_s10 + $0x3a4] sm:$0xf]  ;;  %v8588_v17 = vld [vmem:[%s9750_s10 + $0x514] sm:$0xf]  ;;  %v7403_v32 = vld [vmem:[%s9750_s10 + $0x488] sm:$0xf0] }
 0x2b0   : > { %6406 = vmatpush.bf16.msra.mxu0 %v7326_v53  ;;  %v6168_v2 = vadd.f32 %v6167_v25, %v6155_v50  ;;  %v7291_v53 = vld [vmem:[%s9750_s10 + $0x3a8] sm:$0xf0]  ;;  %v6180_v56 = vpop.f32.mrf.mxu2  ;;  %v8554_v25 = vld [vmem:[%s9750_s10 + $0x404] sm:$0xf]  ;;  %v8616_v36 = vld [vmem:[%s9750_s10 + $0x5f4] sm:$0xf] }
 0x2b1   : > { %6419 = vmatpush.bf16.msra.mxu1 %v7390_v57  ;;  %v7355_v57 = vld [vmem:[%s9750_s10 + $0x428] sm:$0xf0]  ;;  %v6193_v62 = vpop.f32.mrf.mxu3  ;;  %v7294_v63 = vor.u32 %v8542_v52, %v7291_v53  ;;  %v8570_v31 = vld [vmem:[%s9750_s10 + $0x484] sm:$0xf]  ;;  %v7587_v37 = vld [vmem:[%s9750_s10 + $0x5f8] sm:$0xf0] }
 0x2b2   : > { %6432 = vmatpush.bf16.msra.mxu2 %v7454_v15  ;;  %v8574_v15 = vld [vmem:[%s9750_s10 + $0x4a4] sm:$0xf]  ;;  %v6181_v59 = vadd.f32 %v6180_v56, %v6168_v2  ;;  %v7358_v6 = vor.u32 %v8558_v54, %v7355_v57  ;;  %v6169_v9 = vpop.f32.mrf.mxu1  ;;  %v7275_v50 = vld [vmem:[%s9750_s10 + $0x388] sm:$0xf0]  ;;  %v7478_v2 = vor.u32 %v8588_v17, %v7475_v19  ;;  %v7342_v54 = vor.u32 %v8554_v25, %v7339_v26  ;;  %v8628_v17 = vld [vmem:[%s9750_s10 + $0x654] sm:$0xf] }
 0x2b3   : > { %6445 = vmatpush.bf16.msra.mxu3 %v7518_v0  ;;  %v7483_v0 = vld [vmem:[%s9750_s10 + $0x528] sm:$0xf0]  ;;  %v7278_v33 = vor.u32 %v8538_v22, %v7275_v50  ;;  %v7406_v56 = vor.u32 %v8570_v31, %v7403_v32  ;;  %v7590_v57 = vor.u32 %v8616_v36, %v7587_v37  ;;  %v8644_v19 = vld [vmem:[%s9750_s10 + $0x6d4] sm:$0xf]  ;;  %v7699_v22 = vld [vmem:[%s9750_s10 + $0x6d8] sm:$0xf0] }
 0x2b4   : > { %6407 = vmatpush.bf16.msra.mxu0 %v7318_v3  ;;  %v6156_v3 = vpop.f32.mrf.mxu0  ;;  %v10501_v5 = vadd.f32 %v6193_v62, %v6181_v59  ;;  %v7467_v52 = vld [vmem:[%s9750_s10 + $0x508] sm:$0xf0]  ;;  %v7779_v59 = vld [vmem:[%s9750_s10 + $0x778] sm:$0xf0]  ;;  %v7702_v25 = vor.u32 %v8644_v19, %v7699_v22  ;;  %v8610_v26 = vld [vmem:[%s9750_s10 + $0x5c4] sm:$0xf] }
 0x2b5   : > { %6420 = vmatpush.bf16.msra.mxu1 %v7382_v28  ;;  %v7422_v28 = vor.u32 %v8574_v15, %v7419_v58  ;;  %v8664_v58 = vld [vmem:[%s9750_s10 + $0x774] sm:$0xf]  ;;  %v7643_v3 = vld [vmem:[%s9750_s10 + $0x668] sm:$0xf0]  ;;  %v8626_v32 = vld [vmem:[%s9750_s10 + $0x644] sm:$0xf] }
 0x2b6   : > { %6433 = vmatpush.bf16.msra.mxu2 %v7446_v1  ;;  %v8540_v1 = vld [vmem:[%s9750_s10 + $0x394] sm:$0xf]  ;;  %v7771_v9 = vld [vmem:[%s9750_s10 + $0x768] sm:$0xf0] }
 0x2b7   : > { %6446 = vmatpush.bf16.msra.mxu3 %v7510_v48  ;;  %v7486_v48 = vor.u32 %v8590_v14, %v7483_v0  ;;  %v7579_v14 = vld [vmem:[%s9750_s10 + $0x5e8] sm:$0xf0]  ;;  %v8630_v0 = vld [vmem:[%s9750_s10 + $0x664] sm:$0xf] }
 0x2b8   : > { %6408 = vmatpush.bf16.msra.mxu0 %v7310_v18  ;;  %v7286_v18 = vor.u32 %v8540_v1, %v7283_v7  ;;  %v6182_v45 = vpop.f32.mrf.mxu2  ;;  %v7782_v1 = vor.u32 %v8664_v58, %v7779_v59  ;;  %v7563_v31 = vld [vmem:[%s9750_s10 + $0x5c8] sm:$0xf0] }
 0x2b9   : > { %6421 = vmatpush.bf16.msra.mxu1 %v7374_v23  ;;  %v7350_v23 = vor.u32 %v8556_v8, %v7347_v55  ;;  %v6195_v53 = vpop.f32.mrf.mxu3  ;;  %v8662_v8 = vld [vmem:[%s9750_s10 + $0x764] sm:$0xf]  ;;  %v7646_v55 = vor.u32 %v8630_v0, %v7643_v3  ;;  %v7627_v36 = vld [vmem:[%s9750_s10 + $0x648] sm:$0xf0] }
 0x2ba   : > { %6434 = vmatpush.bf16.msra.mxu2 %v7438_v24  ;;  %v7414_v24 = vor.u32 %v8572_v10, %v7411_v16  ;;  %v8612_v16 = vld [vmem:[%s9750_s10 + $0x5d4] sm:$0xf]  ;;  %v7774_v50 = vor.u32 %v8662_v8, %v7771_v9  ;;  %v7691_v37 = vld [vmem:[%s9750_s10 + $0x6c8] sm:$0xf0]  ;;  %v7555_v53 = vld [vmem:[%s9750_s10 + $0x5b8] sm:$0xf0] }
 0x2bb   : > { %6447 = vmatpush.bf16.msra.mxu3 %v7502_v11  ;;  %v8632_v11 = vld [vmem:[%s9750_s10 + $0x674] sm:$0xf]  ;;  %v8606_v0 = vld [vmem:[%s9750_s10 + $0x5a4] sm:$0xf]  ;;  %v7547_v3 = vld [vmem:[%s9750_s10 + $0x5a8] sm:$0xf0] }
 0x2bc   : > { %6409 = vmatpush.bf16.msra.mxu0 %v7302_v44  ;;  %v7651_v44 = vld [vmem:[%s9750_s10 + $0x678] sm:$0xf0]  ;;  %v7675_v8 = vld [vmem:[%s9750_s10 + $0x6a8] sm:$0xf0] }
 0x2bd   : > { %6422 = vmatpush.bf16.msra.mxu1 %v7366_v27  ;;  %v7715_v27 = vld [vmem:[%s9750_s10 + $0x6f8] sm:$0xf0]  ;;  %v7654_v15 = vor.u32 %v8632_v11, %v7651_v44  ;;  %v8658_v11 = vld [vmem:[%s9750_s10 + $0x744] sm:$0xf]  ;;  %v7755_v44 = vld [vmem:[%s9750_s10 + $0x748] sm:$0xf0] }
 0x2be   : > { %6435 = vmatpush.bf16.msra.mxu2 %v7430_v47  ;;  %v8586_v47 = vld [vmem:[%s9750_s10 + $0x504] sm:$0xf]  ;;  %v7758_v59 = vor.u32 %v8658_v11, %v7755_v44 }
 0x2bf   : > { %6448 = vmatpush.bf16.msra.mxu3 %v7494_v60  ;;  %v7718_v60 = vor.u32 %v8648_v46, %v7715_v27  ;;  %v7470_v62 = vor.u32 %v8586_v47, %v7467_v52  ;;  %v8608_v52 = vld [vmem:[%s9750_s10 + $0x5b4] sm:$0xf]  ;;  %v8618_v44 = vld [vmem:[%s9750_s10 + $0x604] sm:$0xf] }
 0x2c0   : > { %6410 = vmatpush.bf16.msra.mxu0 %v7294_v63  ;;  %v8614_v63 = vld [vmem:[%s9750_s10 + $0x5e4] sm:$0xf] }
 0x2c1   : > { %6423 = vmatpush.bf16.msra.mxu1 %v7358_v6  ;;  %v8646_v6 = vld [vmem:[%s9750_s10 + $0x6e4] sm:$0xf]  ;;  %v7582_v7 = vor.u32 %v8614_v63, %v7579_v14 }
 0x2c2   : > { %6436 = vmatpush.bf16.msra.mxu2 %v7422_v28  ;;  %v7707_v28 = vld [vmem:[%s9750_s10 + $0x6e8] sm:$0xf0] }
 0x2c3   : > { %6449 = vmatpush.bf16.msra.mxu3 %v7486_v48  ;;  %v7710_v10 = vor.u32 %v8646_v6, %v7707_v28  ;;  %v7571_v48 = vld [vmem:[%s9750_s10 + $0x5d8] sm:$0xf0]  ;;  %v8622_v6 = vld [vmem:[%s9750_s10 + $0x624] sm:$0xf] }
 0x2c4   : > { %6411 = vmatpush.bf16.msra.mxu0 %v7286_v18  ;;  %v7635_v18 = vld [vmem:[%s9750_s10 + $0x658] sm:$0xf0] }
 0x2c5   : > { %6424 = vmatpush.bf16.msra.mxu1 %v7350_v23  ;;  %v7574_v23 = vor.u32 %v8612_v16, %v7571_v48  ;;  %v7550_v16 = vor.u32 %v8606_v0, %v7547_v3  ;;  %v8654_v48 = vld [vmem:[%s9750_s10 + $0x724] sm:$0xf] }
 0x2c6   : > { %6437 = vmatpush.bf16.msra.mxu2 %v7414_v24  ;;  %v7763_v24 = vld [vmem:[%s9750_s10 + $0x758] sm:$0xf0] }
 0x2c7   : > { %6450 = vmatpush.bf16.msra.mxu3 %v7478_v2  ;;  %v7566_v2 = vor.u32 %v8610_v26, %v7563_v31  ;;  %v8636_v26 = vld [vmem:[%s9750_s10 + $0x694] sm:$0xf]  ;;  %v7667_v31 = vld [vmem:[%s9750_s10 + $0x698] sm:$0xf0] }
 0x2c8   : > { %6412 = vmatpush.bf16.msra.mxu0 %v7278_v33  ;;  %v6206_v45 = vpop.f32.mrf.mxu0  ;;  %v7630_v33 = vor.u32 %v8626_v32, %v7627_v36  ;;  %v8652_v36 = vld [vmem:[%s9750_s10 + $0x714] sm:$0xf]  ;;  %v7670_v11 = vor.u32 %v8636_v26, %v7667_v31  ;;  %v7891_v26 = vld [vmem:[%s9750_s10 + $0x858] sm:$0xf0] }
 0x2c9   : > { %6425 = vmatpush.bf16.msra.mxu1 %v7342_v54  ;;  %v6207_v46 = vadd.f32 %v6206_v45, %v10501_v5  ;;  %v6219_v47 = vpop.f32.mrf.mxu1  ;;  %v8624_v54 = vld [vmem:[%s9750_s10 + $0x634] sm:$0xf]  ;;  %v7558_v5 = vor.u32 %v8608_v52, %v7555_v53  ;;  %v7531_v45 = vld [vmem:[%s9750_s10 + $0x588] sm:$0xf0]  ;;  %v7843_v52 = vld [vmem:[%s9750_s10 + $0x7f8] sm:$0xf0] }
 0x2ca   : > { %6438 = vmatpush.bf16.msra.mxu2 %v7406_v56  ;;  %v7619_v56 = vld [vmem:[%s9750_s10 + $0x638] sm:$0xf0]  ;;  %v8708_v31 = vld [vmem:[%s9750_s10 + $0x8d4] sm:$0xf] }
 0x2cb   : > { %6451 = vmatpush.bf16.msra.mxu3 %v7470_v62  ;;  %6413 = vmatmul.bf16.vlgmr.msra.gmra.mxu0 %v9942_v61  ;;  %v8660_v61 = vld [vmem:[%s9750_s10 + $0x754] sm:$0xf]  ;;  %v6220_v58 = vadd.f32 %v6219_v47, %v6207_v46  ;;  %v7747_v62 = vld [vmem:[%s9750_s10 + $0x738] sm:$0xf0]  ;;  %v7622_v63 = vor.u32 %v8624_v54, %v7619_v56  ;;  %v7595_v46 = vld [vmem:[%s9750_s10 + $0x608] sm:$0xf0] }
 0x2cc   : > { %6457 = vmatpush.bf16.msrb.mxu0 %v7590_v57  ;;  %6426 = vmatmul.bf16.vlgmr.msra.gmra.mxu1 %v10015_v34  ;;  %v8642_v34 = vld [vmem:[%s9750_s10 + $0x6c4] sm:$0xf]  ;;  %v8640_v57 = vld [vmem:[%s9750_s10 + $0x6b4] sm:$0xf] }
 0x2cd   : > { %6470 = vmatpush.bf16.msrb.mxu1 %v7654_v15  ;;  %6439 = vmatmul.bf16.vlgmr.msra.gmra.mxu2 %v10022_v40  ;;  %v7638_v40 = vor.u32 %v8628_v17, %v7635_v18  ;;  %v7694_v27 = vor.u32 %v8642_v34, %v7691_v37  ;;  %v7683_v15 = vld [vmem:[%s9750_s10 + $0x6b8] sm:$0xf0]  ;;  %v7739_v17 = vld [vmem:[%s9750_s10 + $0x728] sm:$0xf0]  ;;  %v8680_v47 = vld [vmem:[%s9750_s10 + $0x7f4] sm:$0xf] }
 0x2ce   : > { %6483 = vmatpush.bf16.msrb.mxu2 %v7718_v60  ;;  %6452 = vmatmul.bf16.vlgmr.msra.gmra.mxu3 %v10017_v35  ;;  %v7766_v35 = vor.u32 %v8660_v61, %v7763_v24  ;;  %v8656_v60 = vld [vmem:[%s9750_s10 + $0x734] sm:$0xf]  ;;  %v7686_v14 = vor.u32 %v8640_v57, %v7683_v15  ;;  %v7539_v61 = vld [vmem:[%s9750_s10 + $0x598] sm:$0xf0]  ;;  %v7742_v32 = vor.u32 %v8654_v48, %v7739_v17  ;;  %v7963_v48 = vld [vmem:[%s9750_s10 + $0x8e8] sm:$0xf0] }
 0x2cf   : > { %6496 = vmatpush.bf16.msrb.mxu3 %v7782_v1  ;;  %v7611_v1 = vld [vmem:[%s9750_s10 + $0x628] sm:$0xf0]  ;;  %v8620_v24 = vld [vmem:[%s9750_s10 + $0x614] sm:$0xf]  ;;  %v7731_v37 = vld [vmem:[%s9750_s10 + $0x718] sm:$0xf0]  ;;  %v7846_v0 = vor.u32 %v8680_v47, %v7843_v52 }
 0x2d0   : > { %6458 = vmatpush.bf16.msrb.mxu0 %v7582_v7  ;;  %v6232_v28 = vpop.f32.mrf.mxu2  ;;  %v8638_v7 = vld [vmem:[%s9750_s10 + $0x6a4] sm:$0xf]  ;;  %v6208_v18 = vpop.f32.mrf.mxu0  ;;  %v7614_v22 = vor.u32 %v8622_v6, %v7611_v1  ;;  %v7734_v54 = vor.u32 %v8652_v36, %v7731_v37  ;;  %v8696_v56 = vld [vmem:[%s9750_s10 + $0x874] sm:$0xf]  ;;  %v7907_v57 = vld [vmem:[%s9750_s10 + $0x878] sm:$0xf0] }
 0x2d1   : > { %6471 = vmatpush.bf16.msrb.mxu1 %v7646_v55  ;;  %v6233_v9 = vadd.f32 %v6232_v28, %v6220_v58  ;;  %v7750_v55 = vor.u32 %v8656_v60, %v7747_v62  ;;  %v8712_v15 = vld [vmem:[%s9750_s10 + $0x8f4] sm:$0xf]  ;;  %v7723_v60 = vld [vmem:[%s9750_s10 + $0x708] sm:$0xf0]  ;;  %v7910_v3 = vor.u32 %v8696_v56, %v7907_v57  ;;  %v8035_v28 = vld [vmem:[%s9750_s10 + $0x978] sm:$0xf0] }
 0x2d2   : > { %6484 = vmatpush.bf16.msrb.mxu2 %v7710_v10  ;;  %v6245_v10 = vpop.f32.mrf.mxu3  ;;  %v8728_v6 = vld [vmem:[%s9750_s10 + $0x974] sm:$0xf]  ;;  %v8019_v37 = vld [vmem:[%s9750_s10 + $0x958] sm:$0xf0]  ;;  %v8722_v47 = vld [vmem:[%s9750_s10 + $0x944] sm:$0xf] }
 0x2d3   : > { %6497 = vmatpush.bf16.msrb.mxu3 %v7774_v50  ;;  %v10572_v19 = vadd.f32 %v6245_v10, %v6233_v9  ;;  %v7678_v50 = vor.u32 %v8638_v7, %v7675_v8  ;;  %v8678_v8 = vld [vmem:[%s9750_s10 + $0x7e4] sm:$0xf]  ;;  %v7835_v9 = vld [vmem:[%s9750_s10 + $0x7e8] sm:$0xf0]  ;;  %v8038_v17 = vor.u32 %v8728_v6, %v8035_v28 }
 0x2d4   : > { %6459 = vmatpush.bf16.msrb.mxu0 %v7574_v23  ;;  %v8604_v23 = vld [vmem:[%s9750_s10 + $0x594] sm:$0xf]  ;;  %v7899_v10 = vld [vmem:[%s9750_s10 + $0x868] sm:$0xf0]  ;;  %v7838_v18 = vor.u32 %v8678_v8, %v7835_v9  ;;  %v8686_v8 = vld [vmem:[%s9750_s10 + $0x824] sm:$0xf] }
 0x2d5   : > { %6472 = vmatpush.bf16.msrb.mxu1 %v7638_v40  ;;  %v6221_v40 = vpop.f32.mrf.mxu1  ;;  %v7542_v34 = vor.u32 %v8604_v23, %v7539_v61  ;;  %v8011_v52 = vld [vmem:[%s9750_s10 + $0x948] sm:$0xf0] }
 0x2d6   : > { %6485 = vmatpush.bf16.msrb.mxu2 %v7702_v25  ;;  %v7603_v25 = vld [vmem:[%s9750_s10 + $0x618] sm:$0xf0] }
 0x2d7   : > { %6498 = vmatpush.bf16.msrb.mxu3 %v7766_v35  ;;  %v8602_v35 = vld [vmem:[%s9750_s10 + $0x584] sm:$0xf]  ;;  %v7827_v40 = vld [vmem:[%s9750_s10 + $0x7d8] sm:$0xf0] }
 0x2d8   : > { %6460 = vmatpush.bf16.msrb.mxu0 %v7566_v2  ;;  %v7606_v2 = vor.u32 %v8620_v24, %v7603_v25  ;;  %v6234_v53 = vpop.f32.mrf.mxu2  ;;  %v7534_v58 = vor.u32 %v8602_v35, %v7531_v45  ;;  %v8676_v24 = vld [vmem:[%s9750_s10 + $0x7d4] sm:$0xf]  ;;  %v8674_v45 = vld [vmem:[%s9750_s10 + $0x7c4] sm:$0xf] }
 0x2d9   : > { %6473 = vmatpush.bf16.msrb.mxu1 %v7630_v33  ;;  %v8634_v33 = vld [vmem:[%s9750_s10 + $0x684] sm:$0xf]  ;;  %v8692_v25 = vld [vmem:[%s9750_s10 + $0x854] sm:$0xf] }
 0x2da   : > { %6486 = vmatpush.bf16.msrb.mxu2 %v7694_v27  ;;  %v7659_v27 = vld [vmem:[%s9750_s10 + $0x688] sm:$0xf0]  ;;  %v6247_v62 = vpop.f32.mrf.mxu3 }
 0x2db   : > { %6499 = vmatpush.bf16.msrb.mxu3 %v7758_v59  ;;  %v7971_v59 = vld [vmem:[%s9750_s10 + $0x8f8] sm:$0xf0] }
 0x2dc   : > { %6461 = vmatpush.bf16.msrb.mxu0 %v7558_v5  ;;  %v8650_v5 = vld [vmem:[%s9750_s10 + $0x704] sm:$0xf]  ;;  %v7974_v1 = vor.u32 %v8712_v15, %v7971_v59  ;;  %v8672_v15 = vld [vmem:[%s9750_s10 + $0x7b4] sm:$0xf]  ;;  %v7939_v62 = vld [vmem:[%s9750_s10 + $0x8b8] sm:$0xf0] }
 0x2dd   : > { %6474 = vmatpush.bf16.msrb.mxu1 %v7622_v63  ;;  %v7598_v63 = vor.u32 %v8618_v44, %v7595_v46  ;;  %v7726_v7 = vor.u32 %v8650_v5, %v7723_v60  ;;  %v7883_v44 = vld [vmem:[%s9750_s10 + $0x848] sm:$0xf0]  ;;  %v8688_v59 = vld [vmem:[%s9750_s10 + $0x834] sm:$0xf]  ;;  %v7875_v5 = vld [vmem:[%s9750_s10 + $0x838] sm:$0xf0] }
 0x2de   : > { %6487 = vmatpush.bf16.msrb.mxu2 %v7686_v14  ;;  %v7662_v14 = vor.u32 %v8634_v33, %v7659_v27  ;;  %v7947_v46 = vld [vmem:[%s9750_s10 + $0x8c8] sm:$0xf0]  ;;  %v8704_v60 = vld [vmem:[%s9750_s10 + $0x8b4] sm:$0xf]  ;;  %v7878_v6 = vor.u32 %v8688_v59, %v7875_v5  ;;  %v8227_v5 = vld [vmem:[%s9750_s10 + $0xaf8] sm:$0xf0] }
 0x2df   : > { %6500 = vmatpush.bf16.msrb.mxu3 %v7750_v55  ;;  %v8694_v55 = vld [vmem:[%s9750_s10 + $0x864] sm:$0xf]  ;;  %v7942_v28 = vor.u32 %v8704_v60, %v7939_v62  ;;  %v7979_v62 = vld [vmem:[%s9750_s10 + $0x908] sm:$0xf0] }
 0x2e0   : > { %6462 = vmatpush.bf16.msrb.mxu0 %v7550_v16  ;;  %v8710_v16 = vld [vmem:[%s9750_s10 + $0x8e4] sm:$0xf]  ;;  %v7902_v23 = vor.u32 %v8694_v55, %v7899_v10  ;;  %v7867_v55 = vld [vmem:[%s9750_s10 + $0x828] sm:$0xf0] }
 0x2e1   : > { %6475 = vmatpush.bf16.msrb.mxu1 %v7614_v22  ;;  %v8726_v22 = vld [vmem:[%s9750_s10 + $0x964] sm:$0xf]  ;;  %v7966_v61 = vor.u32 %v8710_v16, %v7963_v48  ;;  %v7931_v16 = vld [vmem:[%s9750_s10 + $0x8a8] sm:$0xf0] }
 0x2e2   : > { %6488 = vmatpush.bf16.msrb.mxu2 %v7678_v50  ;;  %v8027_v50 = vld [vmem:[%s9750_s10 + $0x968] sm:$0xf0]  ;;  %v8702_v10 = vld [vmem:[%s9750_s10 + $0x8a4] sm:$0xf] }
 0x2e3   : > { %6501 = vmatpush.bf16.msrb.mxu3 %v7742_v32  ;;  %v7955_v32 = vld [vmem:[%s9750_s10 + $0x8d8] sm:$0xf0]  ;;  %v8030_v36 = vor.u32 %v8726_v22, %v8027_v50  ;;  %v8718_v50 = vld [vmem:[%s9750_s10 + $0x924] sm:$0xf] }
 0x2e4   : > { %6463 = vmatpush.bf16.msrb.mxu0 %v7542_v34  ;;  %v7830_v34 = vor.u32 %v8676_v24, %v7827_v40  ;;  %v7958_v35 = vor.u32 %v8708_v31, %v7955_v32  ;;  %v7870_v40 = vor.u32 %v8686_v8, %v7867_v55  ;;  %v7795_v31 = vld [vmem:[%s9750_s10 + $0x798] sm:$0xf0]  ;;  %v8684_v32 = vld [vmem:[%s9750_s10 + $0x814] sm:$0xf]  ;;  %v8714_v60 = vld [vmem:[%s9750_s10 + $0x904] sm:$0xf] }
 0x2e5   : > { %6476 = vmatpush.bf16.msrb.mxu1 %v7606_v2  ;;  %v7819_v2 = vld [vmem:[%s9750_s10 + $0x7c8] sm:$0xf0]  ;;  %v8742_v8 = vld [vmem:[%s9750_s10 + $0x9e4] sm:$0xf] }
 0x2e6   : > { %6489 = vmatpush.bf16.msrb.mxu2 %v7670_v11  ;;  %v8690_v11 = vld [vmem:[%s9750_s10 + $0x844] sm:$0xf]  ;;  %v7822_v27 = vor.u32 %v8674_v45, %v7819_v2  ;;  %v7987_v2 = vld [vmem:[%s9750_s10 + $0x918] sm:$0xf0] }
 0x2e7   : > { %6502 = vmatpush.bf16.msrb.mxu3 %v7734_v54  ;;  %v7886_v54 = vor.u32 %v8690_v11, %v7883_v44  ;;  %v8666_v11 = vld [vmem:[%s9750_s10 + $0x784] sm:$0xf]  ;;  %v7787_v44 = vld [vmem:[%s9750_s10 + $0x788] sm:$0xf0] }
 0x2e8   : > { %6464 = vmatpush.bf16.msrb.mxu0 %v7534_v58  ;;  %v6258_v33 = vpop.f32.mrf.mxu0  ;;  %v7811_v58 = vld [vmem:[%s9750_s10 + $0x7b8] sm:$0xf0]  ;;  %v7790_v59 = vor.u32 %v8666_v11, %v7787_v44  ;;  %v8758_v55 = vld [vmem:[%s9750_s10 + $0xa64] sm:$0xf]  ;;  %v8203_v44 = vld [vmem:[%s9750_s10 + $0xac8] sm:$0xf0] }
 0x2e9   : > { %6477 = vmatpush.bf16.msrb.mxu1 %v7598_v63  ;;  %v6259_v53 = vadd.f32 %v6258_v33, %v10572_v19  ;;  %v6271_v57 = vpop.f32.mrf.mxu1  ;;  %v7814_v19 = vor.u32 %v8672_v15, %v7811_v58  ;;  %v7851_v33 = vld [vmem:[%s9750_s10 + $0x808] sm:$0xf0]  ;;  %v8163_v15 = vld [vmem:[%s9750_s10 + $0xa78] sm:$0xf0]  ;;  %v8776_v58 = vld [vmem:[%s9750_s10 + $0xaf4] sm:$0xf] }
 0x2ea   : > { %6490 = vmatpush.bf16.msrb.mxu2 %v7662_v14  ;;  %v8014_v14 = vor.u32 %v8722_v47, %v8011_v52  ;;  %v7915_v47 = vld [vmem:[%s9750_s10 + $0x888] sm:$0xf0]  ;;  %v8744_v52 = vld [vmem:[%s9750_s10 + $0x9f4] sm:$0xf]  ;;  %v8770_v11 = vld [vmem:[%s9750_s10 + $0xac4] sm:$0xf] }
 0x2eb   : > { %6503 = vmatpush.bf16.msrb.mxu3 %v7726_v7  ;;  %6465 = vmatmul.bf16.vlgmr.msrb.gmra.mxu0 %v10024_v41  ;;  %v8724_v41 = vld [vmem:[%s9750_s10 + $0x954] sm:$0xf]  ;;  %v6272_v63 = vadd.f32 %v6271_v57, %v6259_v53  ;;  %v7803_v7 = vld [vmem:[%s9750_s10 + $0x7a8] sm:$0xf0]  ;;  %v8099_v53 = vld [vmem:[%s9750_s10 + $0x9f8] sm:$0xf0] }
 0x2ec   : > { %6509 = vmatpush.bf16.msra.mxu0 %v7846_v0  ;;  %6478 = vmatmul.bf16.vlgmr.msrb.gmra.mxu1 %v10103_v29  ;;  %v8706_v29 = vld [vmem:[%s9750_s10 + $0x8c4] sm:$0xf]  ;;  %v8720_v0 = vld [vmem:[%s9750_s10 + $0x934] sm:$0xf] }
 0x2ed   : > { %6522 = vmatpush.bf16.msra.mxu1 %v7910_v3  ;;  %6491 = vmatmul.bf16.vlgmr.msrb.gmra.mxu2 %v10110_v38  ;;  %v7894_v38 = vor.u32 %v8692_v25, %v7891_v26  ;;  %v7950_v56 = vor.u32 %v8706_v29, %v7947_v46  ;;  %v8003_v3 = vld [vmem:[%s9750_s10 + $0x938] sm:$0xf0]  ;;  %v7934_v25 = vor.u32 %v8702_v10, %v7931_v16  ;;  %v8668_v26 = vld [vmem:[%s9750_s10 + $0x794] sm:$0xf]  ;;  %v8155_v10 = vld [vmem:[%s9750_s10 + $0xa68] sm:$0xf0] }
 0x2ee   : > { %6535 = vmatpush.bf16.msra.mxu2 %v7974_v1  ;;  %6504 = vmatmul.bf16.vlgmr.msrb.gmra.mxu3 %v10105_v30  ;;  %v8022_v30 = vor.u32 %v8724_v41, %v8019_v37  ;;  %v8670_v1 = vld [vmem:[%s9750_s10 + $0x7a4] sm:$0xf]  ;;  %v8700_v41 = vld [vmem:[%s9750_s10 + $0x894] sm:$0xf]  ;;  %v7923_v37 = vld [vmem:[%s9750_s10 + $0x898] sm:$0xf0]  ;;  %v7798_v45 = vor.u32 %v8668_v26, %v7795_v31 }
 0x2ef   : > { %6548 = vmatpush.bf16.msra.mxu3 %v8038_v17  ;;  %v8006_v17 = vor.u32 %v8720_v0, %v8003_v3  ;;  %v7806_v22 = vor.u32 %v8670_v1, %v7803_v7  ;;  %v7926_v46 = vor.u32 %v8700_v41, %v7923_v37  ;;  %v8760_v57 = vld [vmem:[%s9750_s10 + $0xa74] sm:$0xf]  ;;  %v8102_v0 = vor.u32 %v8744_v52, %v8099_v53  ;;  %v8774_v16 = vld [vmem:[%s9750_s10 + $0xae4] sm:$0xf]  ;;  %v8147_v31 = vld [vmem:[%s9750_s10 + $0xa58] sm:$0xf0] }
 0x2f0   : > { %6510 = vmatpush.bf16.msra.mxu0 %v7838_v18  ;;  %v6284_v9 = vpop.f32.mrf.mxu2  ;;  %v8166_v3 = vor.u32 %v8760_v57, %v8163_v15  ;;  %v8230_v1 = vor.u32 %v8776_v58, %v8227_v5  ;;  %v7982_v7 = vor.u32 %v8714_v60, %v7979_v62  ;;  %v8756_v26 = vld [vmem:[%s9750_s10 + $0xa54] sm:$0xf]  ;;  %v8275_v37 = vld [vmem:[%s9750_s10 + $0xb58] sm:$0xf0]  ;;  %v8206_v53 = vor.u32 %v8770_v11, %v8203_v44  ;;  %v8746_v11 = vld [vmem:[%s9750_s10 + $0xa04] sm:$0xf] }
 0x2f1   : > { %6523 = vmatpush.bf16.msra.mxu1 %v7902_v23  ;;  %v6285_v48 = vadd.f32 %v6284_v9, %v6272_v63  ;;  %v6297_v18 = vpop.f32.mrf.mxu3  ;;  %v7995_v23 = vld [vmem:[%s9750_s10 + $0x928] sm:$0xf0]  ;;  %v8752_v57 = vld [vmem:[%s9750_s10 + $0xa34] sm:$0xf]  ;;  %v8131_v58 = vld [vmem:[%s9750_s10 + $0xa38] sm:$0xf0] }
 0x2f2   : > { %6536 = vmatpush.bf16.msra.mxu2 %v7966_v61  ;;  %v6260_v61 = vpop.f32.mrf.mxu0  ;;  %v8091_v9 = vld [vmem:[%s9750_s10 + $0x9e8] sm:$0xf0]  ;;  %v8195_v5 = vld [vmem:[%s9750_s10 + $0xab8] sm:$0xf0] }
 0x2f3   : > { %6549 = vmatpush.bf16.msra.mxu3 %v8030_v36  ;;  %v10643_v24 = vadd.f32 %v6297_v18, %v6285_v48  ;;  %v6273_v36 = vpop.f32.mrf.mxu1  ;;  %v8219_v48 = vld [vmem:[%s9750_s10 + $0xae8] sm:$0xf0]  ;;  %v8094_v18 = vor.u32 %v8742_v8, %v8091_v9  ;;  %v8766_v8 = vld [vmem:[%s9750_s10 + $0xaa4] sm:$0xf] }
 0x2f4   : > { %6511 = vmatpush.bf16.msra.mxu0 %v7830_v34  ;;  %v7859_v34 = vld [vmem:[%s9750_s10 + $0x818] sm:$0xf0]  ;;  %v8222_v61 = vor.u32 %v8774_v16, %v8219_v48  ;;  %v8187_v9 = vld [vmem:[%s9750_s10 + $0xaa8] sm:$0xf0]  ;;  %v8782_v48 = vld [vmem:[%s9750_s10 + $0xb24] sm:$0xf] }
 0x2f5   : > { %6524 = vmatpush.bf16.msra.mxu1 %v7894_v38  ;;  %v7998_v38 = vor.u32 %v8718_v50, %v7995_v23  ;;  %v7862_v29 = vor.u32 %v8684_v32, %v7859_v34  ;;  %v8283_v50 = vld [vmem:[%s9750_s10 + $0xb68] sm:$0xf0]  ;;  %v8158_v23 = vor.u32 %v8758_v55, %v8155_v10  ;;  %v8772_v32 = vld [vmem:[%s9750_s10 + $0xad4] sm:$0xf]  ;;  %v8211_v36 = vld [vmem:[%s9750_s10 + $0xad8] sm:$0xf0] }
 0x2f6   : > { %6537 = vmatpush.bf16.msra.mxu2 %v7958_v35  ;;  %v8716_v35 = vld [vmem:[%s9750_s10 + $0x914] sm:$0xf]  ;;  %v8107_v44 = vld [vmem:[%s9750_s10 + $0xa08] sm:$0xf0] }
 0x2f7   : > { %6550 = vmatpush.bf16.msra.mxu3 %v8022_v30  ;;  %v8682_v30 = vld [vmem:[%s9750_s10 + $0x804] sm:$0xf] }
 0x2f8   : > { %6512 = vmatpush.bf16.msra.mxu0 %v7822_v27  ;;  %v8698_v27 = vld [vmem:[%s9750_s10 + $0x884] sm:$0xf] }
 0x2f9   : > { %6525 = vmatpush.bf16.msra.mxu1 %v7886_v54  ;;  %v6286_v54 = vpop.f32.mrf.mxu2  ;;  %v6299_v63 = vpop.f32.mrf.mxu3 }
 0x2fa   : > { %6538 = vmatpush.bf16.msra.mxu2 %v7950_v56  ;;  %v7990_v56 = vor.u32 %v8716_v35, %v7987_v2  ;;  %v8738_v35 = vld [vmem:[%s9750_s10 + $0x9c4] sm:$0xf]  ;;  %v8736_v54 = vld [vmem:[%s9750_s10 + $0x9b4] sm:$0xf] }
 0x2fb   : > { %6551 = vmatpush.bf16.msra.mxu3 %v8014_v14  ;;  %v7854_v14 = vor.u32 %v8682_v30, %v7851_v33  ;;  %v8754_v2 = vld [vmem:[%s9750_s10 + $0xa44] sm:$0xf]  ;;  %v8267_v33 = vld [vmem:[%s9750_s10 + $0xb48] sm:$0xf0]  ;;  %v8784_v63 = vld [vmem:[%s9750_s10 + $0xb34] sm:$0xf] }
 0x2fc   : > { %6513 = vmatpush.bf16.msra.mxu0 %v7814_v19  ;;  %v7918_v19 = vor.u32 %v8698_v27, %v7915_v47  ;;  %v8786_v30 = vld [vmem:[%s9750_s10 + $0xb44] sm:$0xf]  ;;  %v8852_v27 = vld [vmem:[%s10230_s15] sm:$0x3]  ;;  %s6822_s15 = sshll.u32 %s10863_s21, 3 }
 0x2fd   : > { %6526 = vmatpush.bf16.msra.mxu1 %v7878_v6  ;;  %v8792_v6 = vld [vmem:[%s9750_s10 + $0xb74] sm:$0xf]  ;;  %v3986_v47 = vperm.slane %v8852_v27, 1  ;;  %v8270_v60 = vor.u32 %v8786_v30, %v8267_v33  ;;  %v8355_v27 = vld [vmem:[%s9750_s10 + $0xbf8] sm:$0xf0]  ;;  %s3532_s18 = scalar_lea.vmem %s10852_s5, %s6822_s15 }
 0x2fe   : > { %6539 = vmatpush.bf16.msra.mxu2 %v7942_v28  ;;  %v8291_v28 = vld [vmem:[%s9750_s10 + $0xb78] sm:$0xf0]  ;;  %v8808_v30 = vld [vmem:[%s9750_s10 + $0xbf4] sm:$0xf] }
 0x2ff   : > { %6552 = vmatpush.bf16.msra.mxu3 %v8006_v17  ;;  %v8294_v17 = vor.u32 %v8792_v6, %v8291_v28  ;;  %v8734_v6 = vld [vmem:[%s9750_s10 + $0x9a4] sm:$0xf]  ;;  %v8059_v28 = vld [vmem:[%s9750_s10 + $0x9a8] sm:$0xf0] }
 0x300   : > { %6514 = vmatpush.bf16.msra.mxu0 %v7806_v22  ;;  %v8790_v22 = vld [vmem:[%s9750_s10 + $0xb64] sm:$0xf]  ;;  %v8062_v16 = vor.u32 %v8734_v6, %v8059_v28  ;;  %v6655_v6 = vld [vmem:[%s10757_s11 + $0x70] sm:$0xff] }
 0x301   : > { %6527 = vmatpush.bf16.msra.mxu1 %v7870_v40  ;;  %v8740_v40 = vld [vmem:[%s9750_s10 + $0x9d4] sm:$0xf]  ;;  %v8286_v34 = vor.u32 %v8790_v22, %v8283_v50 }
 0x302   : > { %6540 = vmatpush.bf16.msra.mxu2 %v7934_v25  ;;  %v8083_v25 = vld [vmem:[%s9750_s10 + $0x9d8] sm:$0xf0] }
 0x303   : > { %6553 = vmatpush.bf16.msra.mxu3 %v7998_v38  ;;  %v8086_v41 = vor.u32 %v8740_v40, %v8083_v25  ;;  %v8214_v38 = vor.u32 %v8772_v32, %v8211_v36  ;;  %v8051_v40 = vld [vmem:[%s9750_s10 + $0x998] sm:$0xf0]  ;;  %v8748_v25 = vld [vmem:[%s9750_s10 + $0xa14] sm:$0xf] }
 0x304   : > { %6515 = vmatpush.bf16.msra.mxu0 %v7798_v45  ;;  %v8075_v45 = vld [vmem:[%s9750_s10 + $0x9c8] sm:$0xf0]  ;;  %v8115_v32 = vld [vmem:[%s9750_s10 + $0xa18] sm:$0xf0]  ;;  %v8764_v36 = vld [vmem:[%s9750_s10 + $0xa94] sm:$0xf] }
 0x305   : > { %6528 = vmatpush.bf16.msra.mxu1 %v7862_v29 }
 0x306   : > { %6541 = vmatpush.bf16.msra.mxu2 %v7926_v46  ;;  %v8078_v46 = vor.u32 %v8738_v35, %v8075_v45  ;;  %v8730_v35 = vld [vmem:[%s9750_s10 + $0x984] sm:$0xf]  ;;  %v8118_v45 = vor.u32 %v8748_v25, %v8115_v32  ;;  %v8800_v25 = vld [vmem:[%s9750_s10 + $0xbb4] sm:$0xf]  ;;  %v6650_v32 = vld [vmem:[%s10757_s11 + $0x48] sm:$0xff] }
 0x307   : > { %6554 = vmatpush.bf16.msra.mxu3 %v7990_v56  ;;  %v8067_v56 = vld [vmem:[%s9750_s10 + $0x9b8] sm:$0xf0] }
 0x308   : > { %6516 = vmatpush.bf16.msra.mxu0 %v7790_v59  ;;  %v10695_v29 = vpop.f32.mrf.mxu0  ;;  %v8768_v59 = vld [vmem:[%s9750_s10 + $0xab4] sm:$0xf]  ;;  %v8070_v62 = vor.u32 %v8736_v54, %v8067_v56  ;;  %v8778_v56 = vld [vmem:[%s9750_s10 + $0xb04] sm:$0xf] }
 0x309   : > { %6529 = vmatpush.bf16.msra.mxu1 %v7854_v14  ;;  %v6323_v15 = vpop.f32.mrf.mxu1  ;;  %v8259_v14 = vld [vmem:[%s9750_s10 + $0xb38] sm:$0xf0] }
 0x30a   : > { %6542 = vmatpush.bf16.msra.mxu2 %v7918_v19  ;;  %v6324_v19 = vadd.f32 %v6323_v15, %v3986_v47  ;;  %v8262_v55 = vor.u32 %v8784_v63, %v8259_v14  ;;  %v8824_v47 = vld [vmem:[%s9750_s10 + $0xc74] sm:$0xf]  ;;  %v8110_v15 = vor.u32 %v8746_v11, %v8107_v44  ;;  %v8806_v63 = vld [vmem:[%s9750_s10 + $0xbe4] sm:$0xf]  ;;  %v8347_v14 = vld [vmem:[%s9750_s10 + $0xbe8] sm:$0xf0] }
 0x30b   : > { %6555 = vmatpush.bf16.msra.mxu3 %v7982_v7  ;;  %6517 = vmatmul.bf16.vlgmr.msra.gmra.mxu0 %v10112_v39  ;;  %v8788_v39 = vld [vmem:[%s9750_s10 + $0xb54] sm:$0xf]  ;;  %v8123_v7 = vld [vmem:[%s9750_s10 + $0xa28] sm:$0xf0]  ;;  %v8350_v28 = vor.u32 %v8806_v63, %v8347_v14  ;;  %v6644_v63 = vld [vmem:[%s10757_s11 + $0x18] sm:$0xff] }
 0x30c   : > { %6561 = vmatpush.bf16.msrb.mxu0 %v8102_v0  ;;  %6530 = vmatmul.bf16.vlgmr.msra.gmra.mxu1 %v10198_v42  ;;  %v8139_v42 = vld [vmem:[%s9750_s10 + $0xa48] sm:$0xf0]  ;;  %v8134_v0 = vor.u32 %v8752_v57, %v8131_v58  ;;  %v8810_v14 = vld [vmem:[%s9750_s10 + $0xc04] sm:$0xf] }
 0x30d   : > { %6574 = vmatpush.bf16.msrb.mxu1 %v8166_v3  ;;  %6543 = vmatmul.bf16.vlgmr.msra.gmra.mxu2 %v10205_v49  ;;  %v8150_v49 = vor.u32 %v8756_v26, %v8147_v31  ;;  %v8142_v52 = vor.u32 %v8754_v2, %v8139_v42  ;;  %v8198_v3 = vor.u32 %v8768_v59, %v8195_v5  ;;  %v8043_v42 = vld [vmem:[%s9750_s10 + $0x988] sm:$0xf0] }
 0x30e   : > { %6587 = vmatpush.bf16.msrb.mxu2 %v8230_v1  ;;  %6556 = vmatmul.bf16.vlgmr.msra.gmra.mxu3 %v10200_v43  ;;  %v8278_v43 = vor.u32 %v8788_v39, %v8275_v37  ;;  %v8750_v1 = vld [vmem:[%s9750_s10 + $0xa24] sm:$0xf]  ;;  %v8046_v54 = vor.u32 %v8730_v35, %v8043_v42  ;;  %v8235_v57 = vld [vmem:[%s9750_s10 + $0xb08] sm:$0xf0]  ;;  %v8358_v5 = vor.u32 %v8808_v30, %v8355_v27 }
 0x30f   : > { %6600 = vmatpush.bf16.msrb.mxu3 %v8294_v17  ;;  %v8251_v17 = vld [vmem:[%s9750_s10 + $0xb28] sm:$0xf0]  ;;  %v8126_v50 = vor.u32 %v8750_v1, %v8123_v7  ;;  %v8804_v7 = vld [vmem:[%s9750_s10 + $0xbd4] sm:$0xf] }
 0x310   : > { %6562 = vmatpush.bf16.msrb.mxu0 %v8094_v18  ;;  %v6336_v10 = vpop.f32.mrf.mxu2  ;;  %v6312_v22 = vpop.f32.mrf.mxu0  ;;  %v8254_v39 = vor.u32 %v8782_v48, %v8251_v17  ;;  %v8331_v17 = vld [vmem:[%s9750_s10 + $0xbc8] sm:$0xf0] }
 0x311   : > { %6575 = vmatpush.bf16.msrb.mxu1 %v8158_v23  ;;  %v6337_v18 = vadd.f32 %v6336_v10, %v6324_v19  ;;  %v8190_v23 = vor.u32 %v8766_v8, %v8187_v9  ;;  %v6349_v26 = vpop.f32.mrf.mxu3  ;;  %v6325_v31 = vpop.f32.mrf.mxu1  ;;  %v6656_v19 = vld [vmem:[%s10757_s11 + $0x78] sm:$0xff]  ;;  %v6654_v9 = vld [vmem:[%s10757_s11 + $0x68] sm:$0xff]  ;;  %v8818_v22 = vld [vmem:[%s9750_s10 + $0xc44] sm:$0xf] }
 0x312   : > { %6588 = vmatpush.bf16.msrb.mxu2 %v8222_v61  ;;  %v8732_v61 = vld [vmem:[%s9750_s10 + $0x994] sm:$0xf]  ;;  %v8339_v8 = vld [vmem:[%s9750_s10 + $0xbd8] sm:$0xf0]  ;;  %v8315_v35 = vld [vmem:[%s9750_s10 + $0xba8] sm:$0xf0] }
 0x313   : > { %6601 = vmatpush.bf16.msrb.mxu3 %v8286_v34  ;;  %v8179_v34 = vld [vmem:[%s9750_s10 + $0xa98] sm:$0xf0]  ;;  %v8054_v37 = vor.u32 %v8732_v61, %v8051_v40  ;;  %v8342_v48 = vor.u32 %v8804_v7, %v8339_v8  ;;  %v8379_v42 = vld [vmem:[%s9750_s10 + $0xc28] sm:$0xf0]  ;;  %v6311_v7 = vadd.f32 %v10695_v29, %v10643_v24 }
 0x314   : > { %6563 = vmatpush.bf16.msrb.mxu0 %v8086_v41  ;;  %v10735_v41 = vadd.f32 %v6349_v26, %v6337_v18  ;;  %v8182_v2 = vor.u32 %v8764_v36, %v8179_v34  ;;  %v8403_v10 = vld [vmem:[%s9750_s10 + $0xc58] sm:$0xf0]  ;;  %v8816_v36 = vld [vmem:[%s9750_s10 + $0xc34] sm:$0xf]  ;;  %v6642_v8 = vld [vmem:[%s10757_s11 + $0x8] sm:$0xff] }
 0x315   : > { %6576 = vmatpush.bf16.msrb.mxu1 %v8150_v49  ;;  %v8780_v49 = vld [vmem:[%s9750_s10 + $0xb14] sm:$0xf]  ;;  %v6652_v18 = vld [vmem:[%s10757_s11 + $0x58] sm:$0xff] }
 0x316   : > { %6589 = vmatpush.bf16.msrb.mxu2 %v8214_v38  ;;  %v8243_v38 = vld [vmem:[%s9750_s10 + $0xb18] sm:$0xf0] }
 0x317   : > { %6602 = vmatpush.bf16.msrb.mxu3 %v8278_v43  ;;  %v8762_v43 = vld [vmem:[%s9750_s10 + $0xa84] sm:$0xf]  ;;  %v8246_v33 = vor.u32 %v8780_v49, %v8243_v38  ;;  %v8323_v26 = vld [vmem:[%s9750_s10 + $0xbb8] sm:$0xf0] }
 0x318   : > { %6564 = vmatpush.bf16.msrb.mxu0 %v8078_v46  ;;  %v8171_v46 = vld [vmem:[%s9750_s10 + $0xa88] sm:$0xf0]  ;;  %v8387_v34 = vld [vmem:[%s9750_s10 + $0xc38] sm:$0xf0]  ;;  %v8798_v38 = vld [vmem:[%s9750_s10 + $0xba4] sm:$0xf] }
 0x319   : > { %6577 = vmatpush.bf16.msrb.mxu1 %v8142_v52  ;;  %v8419_v52 = vld [vmem:[%s9750_s10 + $0xc78] sm:$0xf0]  ;;  %v8174_v58 = vor.u32 %v8762_v43, %v8171_v46  ;;  %v6351_v59 = vpop.f32.mrf.mxu3  ;;  %v8390_v49 = vor.u32 %v8816_v36, %v8387_v34  ;;  %v6647_v46 = vld [vmem:[%s10757_s11 + $0x30] sm:$0xff]  ;;  %v8318_v30 = vor.u32 %v8798_v38, %v8315_v35  ;;  %v6669_v38 = vld [vmem:[%s10757_s11 + $0xe0] sm:$0xff] }
 0x31a   : > { %6590 = vmatpush.bf16.msrb.mxu2 %v8206_v53  ;;  %v6338_v53 = vpop.f32.mrf.mxu2 }
 0x31b   : > { %6603 = vmatpush.bf16.msrb.mxu3 %v8270_v60  ;;  %v8422_v60 = vor.u32 %v8824_v47, %v8419_v52  ;;  %v8796_v47 = vld [vmem:[%s9750_s10 + $0xb94] sm:$0xf]  ;;  %v8307_v52 = vld [vmem:[%s9750_s10 + $0xb98] sm:$0xf0] }
 0x31c   : > { %6565 = vmatpush.bf16.msrb.mxu0 %v8070_v62  ;;  %v8238_v62 = vor.u32 %v8778_v56, %v8235_v57  ;;  %v8812_v57 = vld [vmem:[%s9750_s10 + $0xc14] sm:$0xf]  ;;  %v8310_v59 = vor.u32 %v8796_v47, %v8307_v52  ;;  %v6662_v47 = vld [vmem:[%s10757_s11 + $0xa8] sm:$0xff]  ;;  %v6661_v52 = vld [vmem:[%s10757_s11 + $0xa0] sm:$0xff] }
 0x31d   : > { %6578 = vmatpush.bf16.msrb.mxu1 %v8134_v0  ;;  %v8822_v0 = vld [vmem:[%s9750_s10 + $0xc64] sm:$0xf] }
 0x31e   : > { %6591 = vmatpush.bf16.msrb.mxu2 %v8198_v3  ;;  %v8411_v3 = vld [vmem:[%s9750_s10 + $0xc68] sm:$0xf0] }
 0x31f   : > { %6604 = vmatpush.bf16.msrb.mxu3 %v8262_v55  ;;  %v8414_v1 = vor.u32 %v8822_v0, %v8411_v3  ;;  %v8820_v55 = vld [vmem:[%s9750_s10 + $0xc54] sm:$0xf] }
 0x320   : > { %6566 = vmatpush.bf16.msrb.mxu0 %v8062_v16  ;;  %v6653_v16 = vld [vmem:[%s10757_s11 + $0x60] sm:$0xff]  ;;  %v6643_v3 = vld [vmem:[%s10757_s11 + $0x10] sm:$0xff] }
 0x321   : > { %6579 = vmatpush.bf16.msrb.mxu1 %v8126_v50  ;;  %v8395_v50 = vld [vmem:[%s9750_s10 + $0xc48] sm:$0xf0] }
 0x322   : > { %6592 = vmatpush.bf16.msrb.mxu2 %v8190_v23  ;;  %v8398_v40 = vor.u32 %v8818_v22, %v8395_v50 }
 0x323   : > { %6605 = vmatpush.bf16.msrb.mxu3 %v8254_v39 }
 0x324   : > { %6567 = vmatpush.bf16.msrb.mxu0 %v8054_v37  ;;  %v6649_v37 = vld [vmem:[%s10757_s11 + $0x40] sm:$0xff] }
 0x325   : > { %6580 = vmatpush.bf16.msrb.mxu1 %v8118_v45  ;;  %v6648_v45 = vld [vmem:[%s10757_s11 + $0x38] sm:$0xff] }
 0x326   : > { %6593 = vmatpush.bf16.msrb.mxu2 %v8182_v2  ;;  %v8814_v2 = vld [vmem:[%s9750_s10 + $0xc24] sm:$0xf] }
 0x327   : > { %6606 = vmatpush.bf16.msrb.mxu3 %v8246_v33  ;;  %v8382_v33 = vor.u32 %v8814_v2, %v8379_v42  ;;  %v6668_v42 = vld [vmem:[%s10757_s11 + $0xd8] sm:$0xff] }
 0x328   : > { %6568 = vmatpush.bf16.msrb.mxu0 %v8046_v54  ;;  %v6646_v54 = vld [vmem:[%s10757_s11 + $0x28] sm:$0xff] }
 0x329   : > { %6581 = vmatpush.bf16.msrb.mxu1 %v8110_v15  ;;  %v6375_v31 = vpop.f32.mrf.mxu1  ;;  %v8371_v15 = vld [vmem:[%s9750_s10 + $0xc18] sm:$0xf0] }
 0x32a   : > { %6594 = vmatpush.bf16.msrb.mxu2 %v8174_v58  ;;  %v6645_v58 = vld [vmem:[%s10757_s11 + $0x20] sm:$0xff] }
 0x32b   : > { %6607 = vmatpush.bf16.msrb.mxu3 %v8238_v62  ;;  %6569 = vmatmul.bf16.vlgmr.msrb.gmra.mxu0 %v10207_v51  ;;  %v8406_v51 = vor.u32 %v8820_v55, %v8403_v10  ;;  %v8299_v62 = vld [vmem:[%s9750_s10 + $0xb88] sm:$0xf0]  ;;  %v6639_v55 = vmax.f32 %v6311_v7, 0.0 }
 0x32c   : > { %6613 = vmatpush.bf16.msra.mxu0 %v8358_v5  ;;  %6582 = vmatmul.bf16.vlgmr.msrb.gmra.mxu1 %v10302_v12  ;;  %v6362_v12 = vpop.f32.mrf.mxu0  ;;  %v8374_v5 = vor.u32 %v8812_v57, %v8371_v15 }
 0x32d   : > { %6626 = vmatpush.bf16.msra.mxu1 %v8422_v60  ;;  %6595 = vmatmul.bf16.vlgmr.msrb.gmra.mxu2 %v10309_v20  ;;  %v8802_v20 = vld [vmem:[%s9750_s10 + $0xbc4] sm:$0xf]  ;;  %v6363_v61 = vadd.f32 %v6362_v12, %v10735_v41  ;;  %v8326_v41 = vor.u32 %v8800_v25, %v8323_v26 }
 0x32e   : > { %6682 = vmatpush.msra.mxu2 %v6656_v19  ;;  %6608 = vmatmul.bf16.vlgmr.msrb.gmra.mxu3 %v10304_v13  ;;  %v6651_v13 = vld [vmem:[%s10757_s11 + $0x50] sm:$0xff]  ;;  %v8334_v23 = vor.u32 %v8802_v20, %v8331_v17  ;;  %v8794_v60 = vld [vmem:[%s9750_s10 + $0xb84] sm:$0xf]  ;;  %v8363_v19 = vld [vmem:[%s9750_s10 + $0xc08] sm:$0xf0] }
 0x32f   : > { %v6376_v39 = vadd.f32 %v6375_v31, %v6363_v61  ;;  %s6674_s10 = scalar_select %p6673_p10, 1, 0 }
 0x330   : > { %6683 = vmatpush.msra.mxu2 %v6655_v6  ;;  %6614 = vmatpush.bf16.msra.mxu0 %v8350_v28  ;;  %v6388_v11 = vpop.f32.mrf.mxu2  ;;  %v8302_v6 = vor.u32 %v8794_v60, %v8299_v62  ;;  %v8366_v28 = vor.u32 %v8810_v14, %v8363_v19 }
 0x331   : > { %6627 = vmatpush.bf16.msra.mxu1 %v8414_v1  ;;  %v6389_v44 = vadd.f32 %v6388_v11, %v6376_v39  ;;  %v6401_v27 = vpop.f32.mrf.mxu3  ;;  %v6377_v53 = vpop.f32.mrf.mxu1  ;;  %v6672_v39 = vld [vmem:[%s10757_s11 + $0xf8] sm:$0xff]  ;;  %v6667_v11 = vld [vmem:[%s10757_s11 + $0xd0] sm:$0xff]  ;;  %s6675_s12 = scvt.s32.f32 %s6674_s10 }
 0x332   : > { %6684 = vmatpush.msra.mxu2 %v6654_v9  ;;  %v6641_v9 = vld [vmem:[%s10757_s11] sm:$0xff]  ;;  %6702 = vmatpush.msra.mxu3 %v6672_v39  ;;  %v6660_v53 = vld [vmem:[%s10757_s11 + $0x98] sm:$0xff] }
 0x333   : > { %v6402_v56 = vadd.f32 %v6401_v27, %v6389_v44  ;;  %v6666_v44 = vld [vmem:[%s10757_s11 + $0xc8] sm:$0xff]  ;;  %v6663_v27 = vld [vmem:[%s10757_s11 + $0xb0] sm:$0xff] }
 0x334   : > { %6685 = vmatpush.msra.mxu2 %v6653_v16  ;;  %6615 = vmatpush.bf16.msra.mxu0 %v8342_v48  ;;  %v6364_v43 = vpop.f32.mrf.mxu0 }
 0x335   : > { %6628 = vmatpush.bf16.msra.mxu1 %v8406_v51 }
 0x336   : > { %6686 = vmatpush.msra.mxu2 %v6652_v18 }
 0x338   : > { %6687 = vmatpush.msra.mxu2 %v6651_v13  ;;  %6616 = vmatpush.bf16.msra.mxu0 %v8334_v23  ;;  %v6390_v0 = vpop.f32.mrf.mxu2 }
 0x339   : > { %6629 = vmatpush.bf16.msra.mxu1 %v8398_v40  ;;  %v6403_v1 = vpop.f32.mrf.mxu3 }
 0x33a   : > { %6688 = vmatpush.msra.mxu2 %v6650_v32 }
 0x33c   : > { %6689 = vmatpush.msra.mxu2 %v6649_v37  ;;  %6617 = vmatpush.bf16.msra.mxu0 %v8326_v41  ;;  %v6671_v37 = vld [vmem:[%s10757_s11 + $0xf0] sm:$0xff] }
 0x33d   : > { %6630 = vmatpush.bf16.msra.mxu1 %v8390_v49  ;;  %6703 = vmatpush.msra.mxu3 %v6671_v37  ;;  %v6670_v49 = vld [vmem:[%s10757_s11 + $0xe8] sm:$0xff] }
 0x33e   : > { %6690 = vmatpush.msra.mxu2 %v6648_v45 }
 0x33f   : > { %6704 = vmatpush.msra.mxu3 %v6670_v49 }
 0x340   : > { %6691 = vmatpush.msra.mxu2 %v6647_v46  ;;  %6618 = vmatpush.bf16.msra.mxu0 %v8318_v30  ;;  %v6665_v46 = vld [vmem:[%s10757_s11 + $0xc0] sm:$0xff] }
 0x341   : > { %6631 = vmatpush.bf16.msra.mxu1 %v8382_v33  ;;  %6705 = vmatpush.msra.mxu3 %v6669_v38  ;;  %v6664_v33 = vld [vmem:[%s10757_s11 + $0xb8] sm:$0xff] }
 0x342   : > { %6692 = vmatpush.msra.mxu2 %v6646_v54  ;;  %v6659_v54 = vld [vmem:[%s10757_s11 + $0x90] sm:$0xff] }
 0x343   : > { %6706 = vmatpush.msra.mxu3 %v6668_v42 }
 0x344   : > { %6693 = vmatpush.msra.mxu2 %v6645_v58  ;;  %6619 = vmatpush.bf16.msra.mxu0 %v8310_v59  ;;  %v6658_v58 = vld [vmem:[%s10757_s11 + $0x88] sm:$0xff]  ;;  %v6657_v59 = vld [vmem:[%s10757_s11 + $0x80] sm:$0xff] }
 0x345   : > { %6632 = vmatpush.bf16.msra.mxu1 %v8374_v5  ;;  %6707 = vmatpush.msra.mxu3 %v6667_v11 }
 0x346   : > { %6694 = vmatpush.msra.mxu2 %v6644_v63 }
 0x347   : > { %6708 = vmatpush.msra.mxu3 %v6666_v44 }
 0x348   : > { %6695 = vmatpush.msra.mxu2 %v6643_v3  ;;  %6620 = vmatpush.bf16.msra.mxu0 %v8302_v6  ;;  %v6414_v10 = vpop.f32.mrf.mxu0 }
 0x349   : > { %6633 = vmatpush.bf16.msra.mxu1 %v8366_v28  ;;  %v6415_v16 = vadd.f32 %v6414_v10, %v6402_v56  ;;  %v6427_v48 = vpop.f32.mrf.mxu1  ;;  %6709 = vmatpush.msra.mxu3 %v6665_v46 }
 0x34a   : > { %6696 = vmatpush.msra.mxu2 %v6642_v8 }
 0x34b   : > { %6621 = vmatmul.bf16.vlgmr.msra.gmra.mxu0 %v10311_v21  ;;  %v6428_v51 = vadd.f32 %v6427_v48, %v6415_v16  ;;  %6710 = vmatpush.msra.mxu3 %v6664_v33 }
 0x34c   : > { %6697 = vmatpush.msra.mxu2 %v6641_v9  ;;  %6634 = vmatmul.bf16.vlgmr.msra.gmra.mxu1 %v10387_v4 }
 0x34d   : > { %6698 = vmatmul.f32.vlgmr.msra.gmra.mxu2 %v6639_v55  ;;  %6711 = vmatpush.msra.mxu3 %v6663_v27 }
 0x34f   : > { %6712 = vmatpush.msra.mxu3 %v6662_v47 }
 0x350   : > { %v6440_v20 = vpop.f32.mrf.mxu2  ;;  %v6416_v29 = vpop.f32.mrf.mxu0 }
 0x351   : > { %v6441_v17 = vadd.f32 %v6440_v20, %v6428_v51  ;;  %v6453_v24 = vpop.f32.mrf.mxu3  ;;  %v6429_v22 = vpop.f32.mrf.mxu1  ;;  %6713 = vmatpush.msra.mxu3 %v6661_v52  ;;  %v6676_v29 = vld [vmem:[%s10851_s4] sm:$0x1] }
 0x353   : > { %v6454_v18 = vadd.f32 %v6453_v24, %v6441_v17  ;;  %6714 = vmatpush.msra.mxu3 %v6660_v53 }
 0x355   : > { %6715 = vmatpush.msra.mxu3 %v6659_v54 }
 0x357   : > { %6716 = vmatpush.msra.mxu3 %v6658_v58 }
 0x358   : > { %v6442_v50 = vpop.f32.mrf.mxu2 }
 0x359   : > { %v6455_v12 = vpop.f32.mrf.mxu3  ;;  %6717 = vmatpush.msra.mxu3 %v6657_v59 }
 0x368   : > { %v6466_v13 = vpop.f32.mrf.mxu0 }
 0x369   : > { %v6467_v23 = vadd.f32 %v6466_v13, %v6454_v18  ;;  %v6479_v21 = vpop.f32.mrf.mxu1  ;;  %v6677_v18 = vstv %s6675_s12 }
 0x36a   : > { %v6678_v22 = vmul.f32 %v6677_v18, %v6676_v29 }
 0x36b   : > { %v6480_v4 = vadd.f32 %v6479_v21, %v6467_v23 }
 0x36c   : > { %v6680_v50 = vperm.slane %v6678_v22, 0 }
 0x370   : > { %v6492_v61 = vpop.f32.mrf.mxu2  ;;  %v6468_v25 = vpop.f32.mrf.mxu0 }
 0x371   : > { %v6505_v40 = vpop.f32.mrf.mxu3  ;;  %v6481_v26 = vpop.f32.mrf.mxu1  ;;  %v6493_v56 = vadd.f32 %v6492_v61, %v6480_v4 }
 0x373   : > { %v6506_v5 = vadd.f32 %v6505_v40, %v6493_v56 }
 0x378   : > { %v6494_v31 = vpop.f32.mrf.mxu2 }
 0x379   : > { %v6507_v32 = vpop.f32.mrf.mxu3 }
 0x388   : > { %v6518_v36 = vpop.f32.mrf.mxu0 }
 0x389   : > { %v6531_v34 = vpop.f32.mrf.mxu1  ;;  %v6519_v60 = vadd.f32 %v6518_v36, %v6506_v5 }
 0x38b   : > { %v6532_v0 = vadd.f32 %v6531_v34, %v6519_v60 }
 0x390   : > { %v6544_v41 = vpop.f32.mrf.mxu2  ;;  %v6520_v45 = vpop.f32.mrf.mxu0 }
 0x391   : > { %v6557_v35 = vpop.f32.mrf.mxu3  ;;  %v6533_v2 = vpop.f32.mrf.mxu1  ;;  %v6545_v3 = vadd.f32 %v6544_v41, %v6532_v0 }
 0x393   : > { %v6558_v28 = vadd.f32 %v6557_v35, %v6545_v3 }
 0x398   : > { %v6546_v43 = vpop.f32.mrf.mxu2 }
 0x399   : > { %v6559_v30 = vpop.f32.mrf.mxu3 }
 0x3a8   : > { %v6570_v57 = vpop.f32.mrf.mxu0 }
 0x3a9   : > { %v6583_v15 = vpop.f32.mrf.mxu1  ;;  %v6571_v7 = vadd.f32 %v6570_v57, %v6558_v28 }
 0x3ab   : > { %v6584_v8 = vadd.f32 %v6583_v15, %v6571_v7 }
 0x3b0   : > { %v6596_v62 = vpop.f32.mrf.mxu2  ;;  %v6572_v14 = vpop.f32.mrf.mxu0 }
 0x3b1   : > { %v6609_v63 = vpop.f32.mrf.mxu3  ;;  %v6585_v19 = vpop.f32.mrf.mxu1  ;;  %v6597_v9 = vadd.f32 %v6596_v62, %v6584_v8 }
 0x3b3   : > { %v6610_v55 = vadd.f32 %v6609_v63, %v6597_v9 }
 0x3b8   : > { %v6598_v6 = vpop.f32.mrf.mxu2 }
 0x3b9   : > { %v6611_v1 = vpop.f32.mrf.mxu3 }
 0x3c8   : > { %v6622_v10 = vpop.f32.mrf.mxu0 }
 0x3c9   : > { %v6623_v16 = vadd.f32 %v6622_v10, %v6610_v55  ;;  %v6635_v48 = vpop.f32.mrf.mxu1 }
 0x3cb   : > { %v6636_v51 = vadd.f32 %v6635_v48, %v6623_v16 }
 0x3cd   : > { %v6640_v20 = vmax.f32 %v6636_v51, 0.0 }
 0x3cf   : > { %6718 = vmatmul.f32.vlgmr.msra.gmra.mxu3 %v6640_v20 }
 0x3d0   : > { %v6624_v17 = vpop.f32.mrf.mxu0  ;;  %v6699_v12 = vpop.f32.mrf.mxu2 }
 0x3d1   : > { %v6637_v24 = vpop.f32.mrf.mxu1  ;;  %v6700_v13 = vadd.f32 %v6699_v12, %v6680_v50 }
 0x452   : > { %v6719_v23 = vpop.f32.mrf.mxu3 }
 0x453   : > { %v6720_v21 = vadd.f32 %v6719_v23, %v6700_v13 }
 0x455   : > { %6722 = vst [vmem:[%s3532_s18] sm:$0xff] %v6720_v21 }
 0x456 PF: > { %p12_p12 = scmp.ge.s32.totalorder %s8926_s22, 4   ;;  %s10855_s18 = smov %s8871_s19 }
 0x457   : > { %s10856_s19 = smov %s8935_s25  ;;  %s10857_s20 = smov %s8926_s22 }
 0x458   :  { %14 = sbr.rel (!%p12_p12) target bundleno = 2 (0x2), region = 139 }

</bundles_post_ra>
